<compile_context>
chip_gen: v5e
topology: v5e:2x2
jax: 0.10.0
libtpu: 0.0.40
codegen_flags: <defaults>
</compile_context>

<pallas_src>
import functools

import jax
import jax.numpy as jnp
from jax.experimental import pallas as pl
from jax.experimental.pallas import tpu as pltpu


_COMPILER_PARAMS = pltpu.CompilerParams(
    dimension_semantics=("parallel",),
    vmem_limit_bytes=32 * 1024 * 1024,   # explicit budget; tiles use < ~10 MiB
)


def _round_up(x, m):
    return pl.cdiv(x, m) * m


# ----------------------------------------------------------------------------
# Pallas kernels
# ----------------------------------------------------------------------------
def _matmul_act_kernel(x_ref, w_ref, b_ref, o_ref, *, activation):
    """One M-tile of (bf16 patches @ bf16 weights) + f32 bias + activation."""
    acc = jnp.dot(x_ref[...], w_ref[...], preferred_element_type=jnp.float32)
    acc = acc + b_ref[...]                        # (tm, N) + (1, N), f32
    if activation == "leaky_relu":
        acc = jnp.where(acc >= 0.0, acc, 0.2 * acc)
    o_ref[...] = acc.astype(o_ref.dtype)


def matmul_act(x, w, b, activation=None, out_dtype=jnp.float32, tm_max=256):
    """y = act(x @ w + b); bf16 MXU inputs, f32 accumulation, padded M-tiling."""
    M, K = x.shape
    K2, N = w.shape
    assert K == K2
    tm = min(tm_max, _round_up(M, 16))            # multiple of 16 (bf16 sublanes)
    Mp = _round_up(M, tm)
    if Mp != M:
        x = jnp.pad(x, ((0, Mp - M), (0, 0)))     # padded rows are dropped below
    xb = x.astype(jnp.bfloat16)
    wb = w.astype(jnp.bfloat16)
    bb = b.reshape(1, N).astype(jnp.float32)
    grid = (Mp // tm,)
    out_bytes = Mp * N * jnp.dtype(out_dtype).itemsize
    cost = pl.CostEstimate(
        flops=2 * Mp * K * N,
        transcendentals=0,
        bytes_accessed=Mp * K * 2 + K * N * 2 + N * 4 + out_bytes,
    )
    out = pl.pallas_call(
        functools.partial(_matmul_act_kernel, activation=activation),
        out_shape=jax.ShapeDtypeStruct((Mp, N), out_dtype),
        grid=grid,
        in_specs=[
            pl.BlockSpec((tm, K), lambda i: (i, 0)),
            pl.BlockSpec((K, N), lambda i: (0, 0)),
            pl.BlockSpec((1, N), lambda i: (0, 0)),
        ],
        out_specs=pl.BlockSpec((tm, N), lambda i: (i, 0)),
        compiler_params=_COMPILER_PARAMS,
        cost_estimate=cost,
    )(xb, wb, bb)
    return out[:M] if Mp != M else out


def _maxpool_leaky_kernel(x_ref, o_ref):
    """One image: x_ref (H, W/2, 2C) -> 2x2 max pool -> LeakyReLU -> (H/2, W/2, C).

    Window selection uses only leading-dim slab selects and 128-aligned lane
    slices (no sublane-strided gathers), so no HBM-side gather is needed.
    """
    x = x_ref[...]                                # (H, W/2, 2C)
    h, w2, c2 = x.shape
    c = c2 // 2
    y = x.reshape(h // 2, 2, w2, c2)              # split leading dim only (free)
    rm = jnp.maximum(y[:, 0], y[:, 1])            # max over the two image rows
    m = jnp.maximum(rm[:, :, :c], rm[:, :, c:])   # max over the two columns
    m = m.astype(jnp.float32)
    o_ref[...] = jnp.where(m >= 0.0, m, 0.2 * m).astype(o_ref.dtype)


def maxpool2_leaky(x_nhwc):
    """MaxPool2d(2) + LeakyReLU(0.2), tiled one image per grid step."""
    n, h, w, c = x_nhwc.shape
    # Free row-major reshape: lanes become 2C (the two pooled columns), no copy.
    x3 = x_nhwc.reshape(n * h, w // 2, 2 * c)
    itemsize = jnp.dtype(x_nhwc.dtype).itemsize
    cost = pl.CostEstimate(
        flops=4 * n * (h // 2) * (w // 2) * c,
        transcendentals=0,
        bytes_accessed=(n * h * w * c + n * (h // 2) * (w // 2) * c) * itemsize,
    )
    out = pl.pallas_call(
        _maxpool_leaky_kernel,
        out_shape=jax.ShapeDtypeStruct((n * (h // 2), w // 2, c), x_nhwc.dtype),
        grid=(n,),
        in_specs=[pl.BlockSpec((h, w // 2, 2 * c), lambda i: (i, 0, 0))],
        out_specs=pl.BlockSpec((h // 2, w // 2, c), lambda i: (i, 0, 0)),
        compiler_params=_COMPILER_PARAMS,
        cost_estimate=cost,
    )(x3)
    return out.reshape(n, h // 2, w // 2, c)


def _classifier_kernel(x_ref, w1_ref, b1_ref, w2_ref, b2_ref, o_ref):
    """Fused Linear(512,360) -> Linear(360,1) -> 360*sigmoid, one M-tile."""
    h = jnp.dot(x_ref[...], w1_ref[...], preferred_element_type=jnp.float32)
    h = h + b1_ref[...]                                    # (tm, 360) f32
    # 360x1 second linear as a lane reduction (keeps the intermediate in VMEM).
    y = jnp.sum(h * w2_ref[...], axis=-1, keepdims=True) + b2_ref[...]  # (tm, 1)
    o_ref[...] = (360.0 / (1.0 + jnp.exp(-y))).astype(o_ref.dtype)


def classifier_head(x, w1, b1, w2, b2, tm_max=256):
    M, K = x.shape                 # (batch, 512)
    N1 = w1.shape[1]               # 360
    tm = min(tm_max, _round_up(M, 16))
    Mp = _round_up(M, tm)
    if Mp != M:
        x = jnp.pad(x, ((0, Mp - M), (0, 0)))
    xb = x.astype(jnp.bfloat16)
    w1b = w1.astype(jnp.bfloat16)
    b1r = b1.reshape(1, N1).astype(jnp.float32)
    w2r = w2.reshape(1, N1).astype(jnp.float32)   # (360,1) -> (1,360)
    b2r = b2.reshape(1, 1).astype(jnp.float32)
    grid = (Mp // tm,)
    cost = pl.CostEstimate(
        flops=2 * Mp * K * N1 + 3 * Mp * N1,
        transcendentals=Mp,
        bytes_accessed=Mp * K * 2 + K * N1 * 2 + 2 * N1 * 4 + 4 + Mp * 4,
    )
    out = pl.pallas_call(
        _classifier_kernel,
        out_shape=jax.ShapeDtypeStruct((Mp, 1), jnp.float32),
        grid=grid,
        in_specs=[
            pl.BlockSpec((tm, K), lambda i: (i, 0)),
            pl.BlockSpec((K, N1), lambda i: (0, 0)),
            pl.BlockSpec((1, N1), lambda i: (0, 0)),
            pl.BlockSpec((1, N1), lambda i: (0, 0)),
            pl.BlockSpec((1, 1), lambda i: (0, 0)),
        ],
        out_specs=pl.BlockSpec((tm, 1), lambda i: (i, 0)),
        compiler_params=_COMPILER_PARAMS,
        cost_estimate=cost,
    )(xb, w1b, b1r, w2r, b2r)
    return out[:M] if Mp != M else out


# ----------------------------------------------------------------------------
# Glue: im2col patch extraction (plain JAX, bf16) + conv wrapper
# ----------------------------------------------------------------------------
def im2col(x_nhwc, k, stride, pad):
    n, h, w, c = x_nhwc.shape
    xp = jnp.pad(x_nhwc, ((0, 0), (pad, pad), (pad, pad), (0, 0)))
    ho = (h + 2 * pad - k) // stride + 1
    wo = (w + 2 * pad - k) // stride + 1
    cols = []
    for di in range(k):
        for dj in range(k):
            cols.append(
                xp[:, di:di + (ho - 1) * stride + 1:stride,
                      dj:dj + (wo - 1) * stride + 1:stride, :]
            )
    patches = jnp.stack(cols, axis=3)             # (N, Ho, Wo, k*k, C)
    return patches.reshape(n * ho * wo, k * k * c), (n, ho, wo)


def conv2d(x_nhwc, w_hwio, b, stride, pad, activation=None):
    # TODO(synk): im2col is still XLA glue; fusing the patch gather into the
    # matmul kernel's DMA (pl.ANY + manual copies) would remove the duplicated
    # patch-matrix HBM traffic on conv2/conv3.
    kh, kw, cin, cout = w_hwio.shape
    patches, (n, ho, wo) = im2col(x_nhwc, kh, stride, pad)
    y = matmul_act(patches, w_hwio.reshape(kh * kw * cin, cout), b,
                   activation, out_dtype=jnp.bfloat16)
    return y.reshape(n, ho, wo, cout)


# ----------------------------------------------------------------------------
# Parameters (deterministic synthetic init) and forward pass
# ----------------------------------------------------------------------------
def init_params(key, img_size, dim):
    cin = img_size[2]
    ks = jax.random.split(key, 12)

    def rnd(k, shape, scale):
        return (scale * jax.random.normal(k, shape)).astype(jnp.float32)

    return {
        "w1": rnd(ks[0], (4, 4, cin, dim), 0.10), "b1": rnd(ks[1], (dim,), 0.10),
        "w2": rnd(ks[2], (4, 4, dim, 2 * dim), 0.05), "b2": rnd(ks[3], (2 * dim,), 0.05),
        "w3": rnd(ks[4], (4, 4, 2 * dim, 4 * dim), 0.05), "b3": rnd(ks[5], (4 * dim,), 0.05),
        "w4": rnd(ks[6], (3, 3, 4 * dim, 8 * dim), 0.05), "b4": rnd(ks[7], (8 * dim,), 0.05),
        "wf1": rnd(ks[8], (512, 360), 0.05), "bf1": rnd(ks[9], (360,), 0.05),
        "wf2": rnd(ks[10], (360, 1), 0.05), "bf2": rnd(ks[11], (1,), 0.05),
    }


def encoder_maxpool_forward(x_nchw, params):
    n = x_nchw.shape[0]
    # NCHW -> NHWC, carry activations in bf16 (MXU-native; halves HBM traffic).
    x = jnp.transpose(x_nchw, (0, 2, 3, 1)).astype(jnp.bfloat16)

    # Conv2d(Cin, dim, 4, 2, 1) + LeakyReLU(0.2)   (fused in the matmul kernel)
    x = conv2d(x, params["w1"], params["b1"], 2, 1, activation="leaky_relu")
    # Conv2d(dim, 2dim, 4, 2, 1) -> MaxPool2d(2) -> LeakyReLU(0.2)
    x = conv2d(x, params["w2"], params["b2"], 2, 1)
    x = maxpool2_leaky(x)
    # Conv2d(2dim, 4dim, 4, 2, 1) -> MaxPool2d(2) -> LeakyReLU(0.2)
    x = conv2d(x, params["w3"], params["b3"], 2, 1)
    x = maxpool2_leaky(x)
    # Conv2d(4dim, 8dim, 3, 2, 1)
    x = conv2d(x, params["w4"], params["b4"], 2, 1)

    # flatten in NCHW order to match torch's x.view(batch_size, -1)
    x = jnp.transpose(x, (0, 3, 1, 2)).reshape(n, -1)             # (N, 512)

    # Fused: Linear(512,360) -> Linear(360,1) -> Sigmoid, then 360 * (.)
    x = classifier_head(x, params["wf1"], params["bf1"],
                        params["wf2"], params["bf2"])
    return x                                                      # (N, 1)


if __name__ == "__main__":
    # img 64x64x1 with dim=64 is the smallest config consistent with the
    # hard-coded output_size=512 in the module (8*dim * 1*1 = 512).
    img_size = (64, 64, 1)
    dim = 64
    batch = 2

    key = jax.random.PRNGKey(0)
    k_in, k_par = jax.random.split(key)
    x = jax.random.normal(
        k_in, (batch, img_size[2], img_size[0], img_size[1]), dtype=jnp.float32
    )  # NCHW, matching the PyTorch module's input convention
    params = init_params(k_par, img_size, dim)

    out = jax.jit(encoder_maxpool_forward)(x, params)
    out = jax.block_until_ready(out)
    assert out.shape == (batch, 1)
    assert bool(jnp.all(jnp.isfinite(out)))
    print("KERNEL_OK")
</pallas_src>

<mosaic_0001>
module attributes {stable_mosaic.version = 11 : i64} {
  func.func @_matmul_act_kernel(%arg0: i32, %arg1: memref<256x16xbf16, #tpu.memory_space<vmem>>, %arg2: memref<16x64xbf16, #tpu.memory_space<vmem>>, %arg3: memref<1x64xf32, #tpu.memory_space<vmem>>, %arg4: memref<256x64xbf16, #tpu.memory_space<vmem>>) attributes {dimension_semantics = [#tpu.dimension_semantics<parallel>], iteration_bounds = array<i64: 8>, scalar_prefetch = 0 : i64, scratch_operands = 0 : i64, tpu.core_type = #tpu.core_type<tc>, window_params = [{transform_indices = @transform_0, window_bounds = array<i64: 256, 16>}, {pipeline_mode = #tpu.pipeline_mode<synchronous>, transform_indices = @transform_1, window_bounds = array<i64: 16, 64>}, {pipeline_mode = #tpu.pipeline_mode<synchronous>, transform_indices = @transform_2, window_bounds = array<i64: 1, 64>}, {transform_indices = @transform_3, window_bounds = array<i64: 256, 64>}]} {
    %c0 = arith.constant 0 : index
    %c0_0 = arith.constant 0 : index
    %0 = vector.load %arg1[%c0, %c0_0] : memref<256x16xbf16, #tpu.memory_space<vmem>>, vector<256x16xbf16>
    %c0_1 = arith.constant 0 : index
    %c0_2 = arith.constant 0 : index
    %1 = vector.load %arg2[%c0_1, %c0_2] : memref<16x64xbf16, #tpu.memory_space<vmem>>, vector<16x64xbf16>
    %cst = arith.constant dense<0.000000e+00> : vector<256x64xf32>
    %2 = tpu.matmul %0, %1, %cst {dimension_numbers = #tpu.dot_dimension_numbers<[1], [0], [0], [1], [0, 0, 1, 1], [], []>} : vector<256x16xbf16>, vector<16x64xbf16>, vector<256x64xf32> -> vector<256x64xf32>
    %c0_3 = arith.constant 0 : index
    %c0_4 = arith.constant 0 : index
    %3 = vector.load %arg3[%c0_3, %c0_4] : memref<1x64xf32, #tpu.memory_space<vmem>>, vector<1x64xf32>
    %4 = vector.broadcast %3 : vector<1x64xf32> to vector<256x64xf32>
    %5 = arith.addf %2, %4 : vector<256x64xf32>
    %cst_5 = arith.constant 0.000000e+00 : f32
    %6 = vector.broadcast %cst_5 : f32 to vector<256x64xf32>
    %7 = arith.cmpf oge, %5, %6 : vector<256x64xf32>
    %cst_6 = arith.constant 2.000000e-01 : f32
    %8 = vector.broadcast %cst_6 : f32 to vector<256x64xf32>
    %9 = arith.mulf %8, %5 : vector<256x64xf32>
    %10 = arith.select %7, %5, %9 : vector<256x64xi1>, vector<256x64xf32>
    %11 = arith.truncf %10 : vector<256x64xf32> to vector<256x64xbf16>
    %c0_7 = arith.constant 0 : index
    %c0_8 = arith.constant 0 : index
    %12 = vector.load %arg4[%c0_7, %c0_8] : memref<256x64xbf16, #tpu.memory_space<vmem>>, vector<256x64xbf16>
    tpu.vector_store %arg4[%c0_7, %c0_8], %11 {strides = array<i32>} : memref<256x64xbf16, #tpu.memory_space<vmem>>, vector<256x64xbf16>,
    return
  }
  func.func @transform_0(%arg0: i32) -> (i32, i32) {
    %c0_i32 = arith.constant 0 : i32
    %c0_i32_0 = arith.constant 0 : i32
    return %arg0, %c0_i32 : i32, i32
  }
  func.func @transform_1(%arg0: i32) -> (i32, i32) {
    %c0_i32 = arith.constant 0 : i32
    %c0_i32_0 = arith.constant 0 : i32
    %c0_i32_1 = arith.constant 0 : i32
    return %c0_i32, %c0_i32_0 : i32, i32
  }
  func.func @transform_2(%arg0: i32) -> (i32, i32) {
    %c0_i32 = arith.constant 0 : i32
    %c0_i32_0 = arith.constant 0 : i32
    %c0_i32_1 = arith.constant 0 : i32
    return %c0_i32, %c0_i32_0 : i32, i32
  }
  func.func @transform_3(%arg0: i32) -> (i32, i32) {
    %c0_i32 = arith.constant 0 : i32
    %c0_i32_0 = arith.constant 0 : i32
    return %arg0, %c0_i32 : i32, i32
  }
}

module attributes {stable_mosaic.version = 11 : i64} {
  func.func @_matmul_act_kernel(%arg0: i32, %arg1: memref<256x1024xbf16, #tpu.memory_space<vmem>>, %arg2: memref<1024x128xbf16, #tpu.memory_space<vmem>>, %arg3: memref<1x128xf32, #tpu.memory_space<vmem>>, %arg4: memref<256x128xbf16, #tpu.memory_space<vmem>>) attributes {dimension_semantics = [#tpu.dimension_semantics<parallel>], iteration_bounds = array<i64: 2>, scalar_prefetch = 0 : i64, scratch_operands = 0 : i64, tpu.core_type = #tpu.core_type<tc>, window_params = [{transform_indices = @transform_0, window_bounds = array<i64: 256, 1024>}, {pipeline_mode = #tpu.pipeline_mode<synchronous>, transform_indices = @transform_1, window_bounds = array<i64: 1024, 128>}, {pipeline_mode = #tpu.pipeline_mode<synchronous>, transform_indices = @transform_2, window_bounds = array<i64: 1, 128>}, {transform_indices = @transform_3, window_bounds = array<i64: 256, 128>}]} {
    %c0 = arith.constant 0 : index
    %c0_0 = arith.constant 0 : index
    %0 = vector.load %arg1[%c0, %c0_0] : memref<256x1024xbf16, #tpu.memory_space<vmem>>, vector<256x1024xbf16>
    %c0_1 = arith.constant 0 : index
    %c0_2 = arith.constant 0 : index
    %1 = vector.load %arg2[%c0_1, %c0_2] : memref<1024x128xbf16, #tpu.memory_space<vmem>>, vector<1024x128xbf16>
    %cst = arith.constant dense<0.000000e+00> : vector<256x128xf32>
    %2 = tpu.matmul %0, %1, %cst {dimension_numbers = #tpu.dot_dimension_numbers<[1], [0], [0], [1], [0, 0, 1, 1], [], []>} : vector<256x1024xbf16>, vector<1024x128xbf16>, vector<256x128xf32> -> vector<256x128xf32>
    %c0_3 = arith.constant 0 : index
    %c0_4 = arith.constant 0 : index
    %3 = vector.load %arg3[%c0_3, %c0_4] : memref<1x128xf32, #tpu.memory_space<vmem>>, vector<1x128xf32>
    %4 = vector.broadcast %3 : vector<1x128xf32> to vector<256x128xf32>
    %5 = arith.addf %2, %4 : vector<256x128xf32>
    %6 = arith.truncf %5 : vector<256x128xf32> to vector<256x128xbf16>
    %c0_5 = arith.constant 0 : index
    %c0_6 = arith.constant 0 : index
    %7 = vector.load %arg4[%c0_5, %c0_6] : memref<256x128xbf16, #tpu.memory_space<vmem>>, vector<256x128xbf16>
    tpu.vector_store %arg4[%c0_5, %c0_6], %6 {strides = array<i32>} : memref<256x128xbf16, #tpu.memory_space<vmem>>, vector<256x128xbf16>,
    return
  }
  func.func @transform_0(%arg0: i32) -> (i32, i32) {
    %c0_i32 = arith.constant 0 : i32
    %c0_i32_0 = arith.constant 0 : i32
    return %arg0, %c0_i32 : i32, i32
  }
  func.func @transform_1(%arg0: i32) -> (i32, i32) {
    %c0_i32 = arith.constant 0 : i32
    %c0_i32_0 = arith.constant 0 : i32
    %c0_i32_1 = arith.constant 0 : i32
    return %c0_i32, %c0_i32_0 : i32, i32
  }
  func.func @transform_2(%arg0: i32) -> (i32, i32) {
    %c0_i32 = arith.constant 0 : i32
    %c0_i32_0 = arith.constant 0 : i32
    %c0_i32_1 = arith.constant 0 : i32
    return %c0_i32, %c0_i32_0 : i32, i32
  }
  func.func @transform_3(%arg0: i32) -> (i32, i32) {
    %c0_i32 = arith.constant 0 : i32
    %c0_i32_0 = arith.constant 0 : i32
    return %arg0, %c0_i32 : i32, i32
  }
}

module attributes {stable_mosaic.version = 11 : i64} {
  func.func @_maxpool_leaky_kernel(%arg0: i32, %arg1: memref<16x8x256xbf16, #tpu.memory_space<vmem>>, %arg2: memref<8x8x128xbf16, #tpu.memory_space<vmem>>) attributes {dimension_semantics = [#tpu.dimension_semantics<parallel>], iteration_bounds = array<i64: 2>, scalar_prefetch = 0 : i64, scratch_operands = 0 : i64, tpu.core_type = #tpu.core_type<tc>, window_params = [{transform_indices = @transform_0, window_bounds = array<i64: 16, 8, 256>}, {transform_indices = @transform_1, window_bounds = array<i64: 8, 8, 128>}]} {
    %c0 = arith.constant 0 : index
    %c0_0 = arith.constant 0 : index
    %c0_1 = arith.constant 0 : index
    %0 = vector.load %arg1[%c0, %c0_0, %c0_1] : memref<16x8x256xbf16, #tpu.memory_space<vmem>>, vector<16x8x256xbf16>
    %1 = vector.shape_cast %0 : vector<16x8x256xbf16> to vector<8x2x8x256xbf16>
    %2 = vector.extract_strided_slice %1 {offsets = [0, 0, 0, 0], sizes = [8, 1, 8, 256], strides = [1, 1, 1, 1]} : vector<8x2x8x256xbf16> to vector<8x1x8x256xbf16>
    %3 = vector.shape_cast %2 : vector<8x1x8x256xbf16> to vector<8x8x256xbf16>
    %4 = vector.extract_strided_slice %1 {offsets = [0, 1, 0, 0], sizes = [8, 1, 8, 256], strides = [1, 1, 1, 1]} : vector<8x2x8x256xbf16> to vector<8x1x8x256xbf16>
    %5 = vector.shape_cast %4 : vector<8x1x8x256xbf16> to vector<8x8x256xbf16>
    %6 = arith.maximumf %3, %5 : vector<8x8x256xbf16>
    %7 = vector.extract_strided_slice %6 {offsets = [0, 0, 0], sizes = [8, 8, 128], strides = [1, 1, 1]} : vector<8x8x256xbf16> to vector<8x8x128xbf16>
    %8 = vector.extract_strided_slice %6 {offsets = [0, 0, 128], sizes = [8, 8, 128], strides = [1, 1, 1]} : vector<8x8x256xbf16> to vector<8x8x128xbf16>
    %9 = arith.maximumf %7, %8 : vector<8x8x128xbf16>
    %10 = arith.extf %9 : vector<8x8x128xbf16> to vector<8x8x128xf32>
    %cst = arith.constant 0.000000e+00 : f32
    %11 = vector.broadcast %cst : f32 to vector<8x8x128xf32>
    %12 = arith.cmpf oge, %10, %11 : vector<8x8x128xf32>
    %cst_2 = arith.constant 2.000000e-01 : f32
    %13 = vector.broadcast %cst_2 : f32 to vector<8x8x128xf32>
    %14 = arith.mulf %13, %10 : vector<8x8x128xf32>
    %15 = arith.select %12, %10, %14 : vector<8x8x128xi1>, vector<8x8x128xf32>
    %16 = arith.truncf %15 : vector<8x8x128xf32> to vector<8x8x128xbf16>
    %c0_3 = arith.constant 0 : index
    %c0_4 = arith.constant 0 : index
    %c0_5 = arith.constant 0 : index
    %17 = vector.load %arg2[%c0_3, %c0_4, %c0_5] : memref<8x8x128xbf16, #tpu.memory_space<vmem>>, vector<8x8x128xbf16>
    tpu.vector_store %arg2[%c0_3, %c0_4, %c0_5], %16 {strides = array<i32>} : memref<8x8x128xbf16, #tpu.memory_space<vmem>>, vector<8x8x128xbf16>,
    return
  }
  func.func @transform_0(%arg0: i32) -> (i32, i32, i32) {
    %c0_i32 = arith.constant 0 : i32
    %c0_i32_0 = arith.constant 0 : i32
    %c0_i32_1 = arith.constant 0 : i32
    return %arg0, %c0_i32, %c0_i32_0 : i32, i32, i32
  }
  func.func @transform_1(%arg0: i32) -> (i32, i32, i32) {
    %c0_i32 = arith.constant 0 : i32
    %c0_i32_0 = arith.constant 0 : i32
    %c0_i32_1 = arith.constant 0 : i32
    return %arg0, %c0_i32, %c0_i32_0 : i32, i32, i32
  }
}

module attributes {stable_mosaic.version = 11 : i64} {
  func.func @_matmul_act_kernel(%arg0: i32, %arg1: memref<32x2048xbf16, #tpu.memory_space<vmem>>, %arg2: memref<2048x256xbf16, #tpu.memory_space<vmem>>, %arg3: memref<1x256xf32, #tpu.memory_space<vmem>>, %arg4: memref<32x256xbf16, #tpu.memory_space<vmem>>) attributes {dimension_semantics = [#tpu.dimension_semantics<parallel>], iteration_bounds = array<i64: 1>, scalar_prefetch = 0 : i64, scratch_operands = 0 : i64, tpu.core_type = #tpu.core_type<tc>, window_params = [{transform_indices = @transform_0, window_bounds = array<i64: 32, 2048>}, {pipeline_mode = #tpu.pipeline_mode<synchronous>, transform_indices = @transform_1, window_bounds = array<i64: 2048, 256>}, {pipeline_mode = #tpu.pipeline_mode<synchronous>, transform_indices = @transform_2, window_bounds = array<i64: 1, 256>}, {transform_indices = @transform_3, window_bounds = array<i64: 32, 256>}]} {
    %c0 = arith.constant 0 : index
    %c0_0 = arith.constant 0 : index
    %0 = vector.load %arg1[%c0, %c0_0] : memref<32x2048xbf16, #tpu.memory_space<vmem>>, vector<32x2048xbf16>
    %c0_1 = arith.constant 0 : index
    %c0_2 = arith.constant 0 : index
    %1 = vector.load %arg2[%c0_1, %c0_2] : memref<2048x256xbf16, #tpu.memory_space<vmem>>, vector<2048x256xbf16>
    %cst = arith.constant dense<0.000000e+00> : vector<32x256xf32>
    %2 = tpu.matmul %0, %1, %cst {dimension_numbers = #tpu.dot_dimension_numbers<[1], [0], [0], [1], [0, 0, 1, 1], [], []>} : vector<32x2048xbf16>, vector<2048x256xbf16>, vector<32x256xf32> -> vector<32x256xf32>
    %c0_3 = arith.constant 0 : index
    %c0_4 = arith.constant 0 : index
    %3 = vector.load %arg3[%c0_3, %c0_4] : memref<1x256xf32, #tpu.memory_space<vmem>>, vector<1x256xf32>
    %4 = vector.broadcast %3 : vector<1x256xf32> to vector<32x256xf32>
    %5 = arith.addf %2, %4 : vector<32x256xf32>
    %6 = arith.truncf %5 : vector<32x256xf32> to vector<32x256xbf16>
    %c0_5 = arith.constant 0 : index
    %c0_6 = arith.constant 0 : index
    %7 = vector.load %arg4[%c0_5, %c0_6] : memref<32x256xbf16, #tpu.memory_space<vmem>>, vector<32x256xbf16>
    tpu.vector_store %arg4[%c0_5, %c0_6], %6 {strides = array<i32>} : memref<32x256xbf16, #tpu.memory_space<vmem>>, vector<32x256xbf16>,
    return
  }
  func.func @transform_0(%arg0: i32) -> (i32, i32) {
    %c0_i32 = arith.constant 0 : i32
    %c0_i32_0 = arith.constant 0 : i32
    return %arg0, %c0_i32 : i32, i32
  }
  func.func @transform_1(%arg0: i32) -> (i32, i32) {
    %c0_i32 = arith.constant 0 : i32
    %c0_i32_0 = arith.constant 0 : i32
    %c0_i32_1 = arith.constant 0 : i32
    return %c0_i32, %c0_i32_0 : i32, i32
  }
  func.func @transform_2(%arg0: i32) -> (i32, i32) {
    %c0_i32 = arith.constant 0 : i32
    %c0_i32_0 = arith.constant 0 : i32
    %c0_i32_1 = arith.constant 0 : i32
    return %c0_i32, %c0_i32_0 : i32, i32
  }
  func.func @transform_3(%arg0: i32) -> (i32, i32) {
    %c0_i32 = arith.constant 0 : i32
    %c0_i32_0 = arith.constant 0 : i32
    return %arg0, %c0_i32 : i32, i32
  }
}

module attributes {stable_mosaic.version = 11 : i64} {
  func.func @_maxpool_leaky_kernel(%arg0: i32, %arg1: memref<4x2x512xbf16, #tpu.memory_space<vmem>>, %arg2: memref<2x2x256xbf16, #tpu.memory_space<vmem>>) attributes {dimension_semantics = [#tpu.dimension_semantics<parallel>], iteration_bounds = array<i64: 2>, scalar_prefetch = 0 : i64, scratch_operands = 0 : i64, tpu.core_type = #tpu.core_type<tc>, window_params = [{transform_indices = @transform_0, window_bounds = array<i64: 4, 2, 512>}, {transform_indices = @transform_1, window_bounds = array<i64: 2, 2, 256>}]} {
    %c0 = arith.constant 0 : index
    %c0_0 = arith.constant 0 : index
    %c0_1 = arith.constant 0 : index
    %0 = vector.load %arg1[%c0, %c0_0, %c0_1] : memref<4x2x512xbf16, #tpu.memory_space<vmem>>, vector<4x2x512xbf16>
    %1 = vector.shape_cast %0 : vector<4x2x512xbf16> to vector<2x2x2x512xbf16>
    %2 = vector.extract_strided_slice %1 {offsets = [0, 0, 0, 0], sizes = [2, 1, 2, 512], strides = [1, 1, 1, 1]} : vector<2x2x2x512xbf16> to vector<2x1x2x512xbf16>
    %3 = vector.shape_cast %2 : vector<2x1x2x512xbf16> to vector<2x2x512xbf16>
    %4 = vector.extract_strided_slice %1 {offsets = [0, 1, 0, 0], sizes = [2, 1, 2, 512], strides = [1, 1, 1, 1]} : vector<2x2x2x512xbf16> to vector<2x1x2x512xbf16>
    %5 = vector.shape_cast %4 : vector<2x1x2x512xbf16> to vector<2x2x512xbf16>
    %6 = arith.maximumf %3, %5 : vector<2x2x512xbf16>
    %7 = vector.extract_strided_slice %6 {offsets = [0, 0, 0], sizes = [2, 2, 256], strides = [1, 1, 1]} : vector<2x2x512xbf16> to vector<2x2x256xbf16>
    %8 = vector.extract_strided_slice %6 {offsets = [0, 0, 256], sizes = [2, 2, 256], strides = [1, 1, 1]} : vector<2x2x512xbf16> to vector<2x2x256xbf16>
    %9 = arith.maximumf %7, %8 : vector<2x2x256xbf16>
    %10 = arith.extf %9 : vector<2x2x256xbf16> to vector<2x2x256xf32>
    %cst = arith.constant 0.000000e+00 : f32
    %11 = vector.broadcast %cst : f32 to vector<2x2x256xf32>
    %12 = arith.cmpf oge, %10, %11 : vector<2x2x256xf32>
    %cst_2 = arith.constant 2.000000e-01 : f32
    %13 = vector.broadcast %cst_2 : f32 to vector<2x2x256xf32>
    %14 = arith.mulf %13, %10 : vector<2x2x256xf32>
    %15 = arith.select %12, %10, %14 : vector<2x2x256xi1>, vector<2x2x256xf32>
    %16 = arith.truncf %15 : vector<2x2x256xf32> to vector<2x2x256xbf16>
    %c0_3 = arith.constant 0 : index
    %c0_4 = arith.constant 0 : index
    %c0_5 = arith.constant 0 : index
    %17 = vector.load %arg2[%c0_3, %c0_4, %c0_5] : memref<2x2x256xbf16, #tpu.memory_space<vmem>>, vector<2x2x256xbf16>
    tpu.vector_store %arg2[%c0_3, %c0_4, %c0_5], %16 {strides = array<i32>} : memref<2x2x256xbf16, #tpu.memory_space<vmem>>, vector<2x2x256xbf16>,
    return
  }
  func.func @transform_0(%arg0: i32) -> (i32, i32, i32) {
    %c0_i32 = arith.constant 0 : i32
    %c0_i32_0 = arith.constant 0 : i32
    %c0_i32_1 = arith.constant 0 : i32
    return %arg0, %c0_i32, %c0_i32_0 : i32, i32, i32
  }
  func.func @transform_1(%arg0: i32) -> (i32, i32, i32) {
    %c0_i32 = arith.constant 0 : i32
    %c0_i32_0 = arith.constant 0 : i32
    %c0_i32_1 = arith.constant 0 : i32
    return %arg0, %c0_i32, %c0_i32_0 : i32, i32, i32
  }
}

module attributes {stable_mosaic.version = 11 : i64} {
  func.func @_matmul_act_kernel(%arg0: i32, %arg1: memref<16x2304xbf16, #tpu.memory_space<vmem>>, %arg2: memref<2304x512xbf16, #tpu.memory_space<vmem>>, %arg3: memref<1x512xf32, #tpu.memory_space<vmem>>, %arg4: memref<16x512xbf16, #tpu.memory_space<vmem>>) attributes {dimension_semantics = [#tpu.dimension_semantics<parallel>], iteration_bounds = array<i64: 1>, scalar_prefetch = 0 : i64, scratch_operands = 0 : i64, tpu.core_type = #tpu.core_type<tc>, window_params = [{transform_indices = @transform_0, window_bounds = array<i64: 16, 2304>}, {pipeline_mode = #tpu.pipeline_mode<synchronous>, transform_indices = @transform_1, window_bounds = array<i64: 2304, 512>}, {pipeline_mode = #tpu.pipeline_mode<synchronous>, transform_indices = @transform_2, window_bounds = array<i64: 1, 512>}, {transform_indices = @transform_3, window_bounds = array<i64: 16, 512>}]} {
    %c0 = arith.constant 0 : index
    %c0_0 = arith.constant 0 : index
    %0 = vector.load %arg1[%c0, %c0_0] : memref<16x2304xbf16, #tpu.memory_space<vmem>>, vector<16x2304xbf16>
    %c0_1 = arith.constant 0 : index
    %c0_2 = arith.constant 0 : index
    %1 = vector.load %arg2[%c0_1, %c0_2] : memref<2304x512xbf16, #tpu.memory_space<vmem>>, vector<2304x512xbf16>
    %cst = arith.constant dense<0.000000e+00> : vector<16x512xf32>
    %2 = tpu.matmul %0, %1, %cst {dimension_numbers = #tpu.dot_dimension_numbers<[1], [0], [0], [1], [0, 0, 1, 1], [], []>} : vector<16x2304xbf16>, vector<2304x512xbf16>, vector<16x512xf32> -> vector<16x512xf32>
    %c0_3 = arith.constant 0 : index
    %c0_4 = arith.constant 0 : index
    %3 = vector.load %arg3[%c0_3, %c0_4] : memref<1x512xf32, #tpu.memory_space<vmem>>, vector<1x512xf32>
    %4 = vector.broadcast %3 : vector<1x512xf32> to vector<16x512xf32>
    %5 = arith.addf %2, %4 : vector<16x512xf32>
    %6 = arith.truncf %5 : vector<16x512xf32> to vector<16x512xbf16>
    %c0_5 = arith.constant 0 : index
    %c0_6 = arith.constant 0 : index
    %7 = vector.load %arg4[%c0_5, %c0_6] : memref<16x512xbf16, #tpu.memory_space<vmem>>, vector<16x512xbf16>
    tpu.vector_store %arg4[%c0_5, %c0_6], %6 {strides = array<i32>} : memref<16x512xbf16, #tpu.memory_space<vmem>>, vector<16x512xbf16>,
    return
  }
  func.func @transform_0(%arg0: i32) -> (i32, i32) {
    %c0_i32 = arith.constant 0 : i32
    %c0_i32_0 = arith.constant 0 : i32
    return %arg0, %c0_i32 : i32, i32
  }
  func.func @transform_1(%arg0: i32) -> (i32, i32) {
    %c0_i32 = arith.constant 0 : i32
    %c0_i32_0 = arith.constant 0 : i32
    %c0_i32_1 = arith.constant 0 : i32
    return %c0_i32, %c0_i32_0 : i32, i32
  }
  func.func @transform_2(%arg0: i32) -> (i32, i32) {
    %c0_i32 = arith.constant 0 : i32
    %c0_i32_0 = arith.constant 0 : i32
    %c0_i32_1 = arith.constant 0 : i32
    return %c0_i32, %c0_i32_0 : i32, i32
  }
  func.func @transform_3(%arg0: i32) -> (i32, i32) {
    %c0_i32 = arith.constant 0 : i32
    %c0_i32_0 = arith.constant 0 : i32
    return %arg0, %c0_i32 : i32, i32
  }
}

module attributes {stable_mosaic.version = 11 : i64} {
  func.func @_classifier_kernel(%arg0: i32, %arg1: memref<16x512xbf16, #tpu.memory_space<vmem>>, %arg2: memref<512x360xbf16, #tpu.memory_space<vmem>>, %arg3: memref<1x360xf32, #tpu.memory_space<vmem>>, %arg4: memref<1x360xf32, #tpu.memory_space<vmem>>, %arg5: memref<1x1xf32, #tpu.memory_space<vmem>>, %arg6: memref<16x1xf32, #tpu.memory_space<vmem>>) attributes {dimension_semantics = [#tpu.dimension_semantics<parallel>], iteration_bounds = array<i64: 1>, scalar_prefetch = 0 : i64, scratch_operands = 0 : i64, tpu.core_type = #tpu.core_type<tc>, window_params = [{transform_indices = @transform_0, window_bounds = array<i64: 16, 512>}, {pipeline_mode = #tpu.pipeline_mode<synchronous>, transform_indices = @transform_1, window_bounds = array<i64: 512, 360>}, {pipeline_mode = #tpu.pipeline_mode<synchronous>, transform_indices = @transform_2, window_bounds = array<i64: 1, 360>}, {pipeline_mode = #tpu.pipeline_mode<synchronous>, transform_indices = @transform_3, window_bounds = array<i64: 1, 360>}, {pipeline_mode = #tpu.pipeline_mode<synchronous>, transform_indices = @transform_4, window_bounds = array<i64: 1, 1>}, {transform_indices = @transform_5, window_bounds = array<i64: 16, 1>}]} {
    %c0 = arith.constant 0 : index
    %c0_0 = arith.constant 0 : index
    %0 = vector.load %arg1[%c0, %c0_0] : memref<16x512xbf16, #tpu.memory_space<vmem>>, vector<16x512xbf16>
    %c0_1 = arith.constant 0 : index
    %c0_2 = arith.constant 0 : index
    %1 = vector.load %arg2[%c0_1, %c0_2] : memref<512x360xbf16, #tpu.memory_space<vmem>>, vector<512x360xbf16>
    %cst = arith.constant dense<0.000000e+00> : vector<16x360xf32>
    %2 = tpu.matmul %0, %1, %cst {dimension_numbers = #tpu.dot_dimension_numbers<[1], [0], [0], [1], [0, 0, 1, 1], [], []>} : vector<16x512xbf16>, vector<512x360xbf16>, vector<16x360xf32> -> vector<16x360xf32>
    %c0_3 = arith.constant 0 : index
    %c0_4 = arith.constant 0 : index
    %3 = vector.load %arg3[%c0_3, %c0_4] : memref<1x360xf32, #tpu.memory_space<vmem>>, vector<1x360xf32>
    %4 = vector.broadcast %3 : vector<1x360xf32> to vector<16x360xf32>
    %5 = arith.addf %2, %4 : vector<16x360xf32>
    %c0_5 = arith.constant 0 : index
    %c0_6 = arith.constant 0 : index
    %6 = vector.load %arg4[%c0_5, %c0_6] : memref<1x360xf32, #tpu.memory_space<vmem>>, vector<1x360xf32>
    %7 = vector.broadcast %6 : vector<1x360xf32> to vector<16x360xf32>
    %8 = arith.mulf %5, %7 : vector<16x360xf32>
    %cst_7 = arith.constant dense<0.000000e+00> : vector<16xf32>
    %9 = vector.multi_reduction <add>, %8, %cst_7 [1] : vector<16x360xf32> to vector<16xf32>
    %10 = vector.shape_cast %9 : vector<16xf32> to vector<16x1xf32>
    %c0_8 = arith.constant 0 : index
    %c0_9 = arith.constant 0 : index
    %11 = vector.load %arg5[%c0_8, %c0_9] : memref<1x1xf32, #tpu.memory_space<vmem>>, vector<1x1xf32>
    %12 = vector.broadcast %11 : vector<1x1xf32> to vector<16x1xf32>
    %13 = arith.addf %10, %12 : vector<16x1xf32>
    %cst_10 = arith.constant 0.000000e+00 : f32
    %14 = vector.broadcast %cst_10 : f32 to vector<16x1xf32>
    %15 = arith.subf %14, %13 : vector<16x1xf32>
    %16 = math.exp %15 : vector<16x1xf32>
    %cst_11 = arith.constant 1.000000e+00 : f32
    %17 = vector.broadcast %cst_11 : f32 to vector<16x1xf32>
    %18 = arith.addf %17, %16 : vector<16x1xf32>
    %cst_12 = arith.constant 3.600000e+02 : f32
    %19 = vector.broadcast %cst_12 : f32 to vector<16x1xf32>
    %20 = arith.divf %19, %18 : vector<16x1xf32>
    %c0_13 = arith.constant 0 : index
    %c0_14 = arith.constant 0 : index
    %21 = vector.load %arg6[%c0_13, %c0_14] : memref<16x1xf32, #tpu.memory_space<vmem>>, vector<16x1xf32>
    tpu.vector_store %arg6[%c0_13, %c0_14], %20 {strides = array<i32>} : memref<16x1xf32, #tpu.memory_space<vmem>>, vector<16x1xf32>,
    return
  }
  func.func @transform_0(%arg0: i32) -> (i32, i32) {
    %c0_i32 = arith.constant 0 : i32
    %c0_i32_0 = arith.constant 0 : i32
    return %arg0, %c0_i32 : i32, i32
  }
  func.func @transform_1(%arg0: i32) -> (i32, i32) {
    %c0_i32 = arith.constant 0 : i32
    %c0_i32_0 = arith.constant 0 : i32
    %c0_i32_1 = arith.constant 0 : i32
    return %c0_i32, %c0_i32_0 : i32, i32
  }
  func.func @transform_2(%arg0: i32) -> (i32, i32) {
    %c0_i32 = arith.constant 0 : i32
    %c0_i32_0 = arith.constant 0 : i32
    %c0_i32_1 = arith.constant 0 : i32
    return %c0_i32, %c0_i32_0 : i32, i32
  }
  func.func @transform_3(%arg0: i32) -> (i32, i32) {
    %c0_i32 = arith.constant 0 : i32
    %c0_i32_0 = arith.constant 0 : i32
    %c0_i32_1 = arith.constant 0 : i32
    return %c0_i32, %c0_i32_0 : i32, i32
  }
  func.func @transform_4(%arg0: i32) -> (i32, i32) {
    %c0_i32 = arith.constant 0 : i32
    %c0_i32_0 = arith.constant 0 : i32
    %c0_i32_1 = arith.constant 0 : i32
    return %c0_i32, %c0_i32_0 : i32, i32
  }
  func.func @transform_5(%arg0: i32) -> (i32, i32) {
    %c0_i32 = arith.constant 0 : i32
    %c0_i32_0 = arith.constant 0 : i32
    return %arg0, %c0_i32 : i32, i32
  }
}

</mosaic_0001>

<bundles_post_ra>
// kernel: encoder_maxpool_forward.7
= control target key start
LH: loop header
LB: loop body
LE: loop exit
PB: predicated region body
PF: predicated region fallthrough
CT: control target
= control target key end

     0   :  { %8 = vsyncpa [#allocation3], 0  ;;  %s881_s12 = smov 0   ;;  %s1045_s0 = inlined_call_operand.vmem [shape: bf16[2048,16], index: 0, kind: input, shape index: {}]   ;;  %s1046_s1 = inlined_call_operand.vmem [shape: bf16[16,64], index: 1, kind: input, shape index: {}]   ;;  %s1047_s2 = inlined_call_operand.hbm [shape: f32[1,64], index: 2, kind: input, shape index: {}]   ;;  %s1048_s3 = inlined_call_operand.vmem [shape: bf16[2048,64], index: 3, kind: output, shape index: {}]  }
   0x1 LB: > { %s681_s13 = sadd.s32 4294967295, %s858_s12   ;;  %p683_p0 = scmp.ge.s32.totalorder %s858_s12, 1  ;;  %s858_s12 = sphi %s881_s12, %s14_s12  }
   0x2   : > { %p113_p1 = scmp.lt.s32.totalorder %s858_s12, 9  ;;  %s128_s16 = sshll.u32 %s1047_s2, 4  ;;  %s129_s16 = int_to_ptr.hbm [resolvable:$true] %s128_s16 }
   0x3   : > { %p806_p3 = scmp.eq.s32.totalorder %s681_s13, 0  ;;  %s860_s17 = smov [#allocation2]  }
   0x4   : > { %p114_p2 = pnand %p683_p0, %p113_p1  ;;  %s130_s18 = sshll.u32 %s860_s17, 4  ;;  %s131_s18 = int_to_ptr.vmem [resolvable:$true] %s130_s18 }
   0x6   : > { %p802_p4 = pneg %p114_p2  ;;  %152 = sbr.rel (%p114_p2) target bundleno = 218 (0xda), region = 32 }
   0x8   : > { %p803_p5 = pnand %p806_p3, %p802_p4 }
   0xa   : > { %805 = dma.hbm_to_vmem [thread:$0]  (!%p803_p5), %s129_s16, 16, %s131_s18, [#allocation3]  }
   0xb   : > { %853 = dma.done.wait (%p806_p3), [#allocation3], 16  }
   0xc   : > { %855 = vsyncadd (%p806_p3), [#allocation3], 4294967280  ;;  %s688_s19 = sshll.u32 %s681_s13, 5  ;;  %v794_v0 = vld [vmem:[%s1046_s1] sm:$0xff]  ;;  %vm314_vm0 = vcmask 130048   ;;  %vm580_vm3 = vcmask 519168  }
   0xd   : > { %p178_p6 = scmp.lt.s32.totalorder %s688_s19, 255  ;;  %370 = vmatpush.bf16.msra.mxu0 %v794_v0  ;;  %795 = vmatpush.bf16.msra.mxu1 %v794_v0  ;;  %v937_v17 = vld [vmem:[#allocation2] ss:$0 sm:$0xff] }
   0xe   : > { %796 = vmatpush.bf16.msra.mxu2 %v794_v0  ;;  %797 = vmatpush.bf16.msra.mxu3 %v794_v0 }
   0xf   : > { %s1050_s19 = smov (!%p178_p6, %s688_s19), 255 }
  0x10   : > { %s689_s20 = sshll.u32 %s1050_s19, 2 }
  0x11   : > { %s900_s23 = scalar_lea.vmem %s1045_s0, %s689_s20  ;;  %s946_s28 = scalar_lea.vmem %s1048_s3, %s689_s20 }
  0x12   : > { %v778_v1 = vld [vmem:[%s900_s23] sm:$0xff]  ;;  %v779_v5 = vld [vmem:[%s900_s23 + $0x8] sm:$0xff]  ;;  %v780_v9 = vld [vmem:[%s900_s23 + $0x10] sm:$0xff] }
  0x13   : > { %v782_v2 = vld [vmem:[%s900_s23 + $0x20] sm:$0xff]  ;;  %760 = vmatmul.msk.bf16.vlgmr.msra.gmra.mxu0 %vm314_vm0, %v778_v1  ;;  %v783_v6 = vld [vmem:[%s900_s23 + $0x28] sm:$0xff]  ;;  %v784_v10 = vld [vmem:[%s900_s23 + $0x30] sm:$0xff] }
  0x14   : > { %v786_v3 = vld [vmem:[%s900_s23 + $0x40] sm:$0xff]  ;;  %764 = vmatmul.msk.bf16.vlgmr.msra.gmra.mxu1 %vm314_vm0, %v782_v2  ;;  %v787_v7 = vld [vmem:[%s900_s23 + $0x48] sm:$0xff]  ;;  %v788_v11 = vld [vmem:[%s900_s23 + $0x50] sm:$0xff] }
  0x15   : > { %v790_v4 = vld [vmem:[%s900_s23 + $0x60] sm:$0xff]  ;;  %768 = vmatmul.msk.bf16.vlgmr.msra.gmra.mxu2 %vm314_vm0, %v786_v3  ;;  %v791_v8 = vld [vmem:[%s900_s23 + $0x68] sm:$0xff]  ;;  %v792_v12 = vld [vmem:[%s900_s23 + $0x70] sm:$0xff] }
  0x16   : > { %772 = vmatmul.msk.bf16.vlgmr.msra.gmra.mxu3 %vm314_vm0, %v790_v4  ;;  %v781_v13 = vld [vmem:[%s900_s23 + $0x18] sm:$0xff] }
  0x17   : > { %v785_v14 = vld [vmem:[%s900_s23 + $0x38] sm:$0xff] }
  0x18   : > { %v789_v15 = vld [vmem:[%s900_s23 + $0x58] sm:$0xff] }
  0x19   : > { %v793_v16 = vld [vmem:[%s900_s23 + $0x78] sm:$0xff] }
  0x23   : > { %761 = vmatmul.msk.bf16.gmra.mxu0 %vm314_vm0, %v779_v5 }
  0x24   : > { %765 = vmatmul.msk.bf16.gmra.mxu1 %vm314_vm0, %v783_v6 }
  0x25   : > { %769 = vmatmul.msk.bf16.gmra.mxu2 %vm314_vm0, %v787_v7 }
  0x26   : > { %773 = vmatmul.msk.bf16.gmra.mxu3 %vm314_vm0, %v791_v8 }
  0x33   : > { %762 = vmatmul.msk.bf16.gmra.mxu0 %vm314_vm0, %v780_v9 }
  0x34   : > { %766 = vmatmul.msk.bf16.gmra.mxu1 %vm314_vm0, %v784_v10 }
  0x35   : > { %770 = vmatmul.msk.bf16.gmra.mxu2 %vm314_vm0, %v788_v11 }
  0x36   : > { %774 = vmatmul.msk.bf16.gmra.mxu3 %vm314_vm0, %v792_v12 }
  0x43   : > { %763 = vmatmul.msk.bf16.gmra.mxu0 %vm314_vm0, %v781_v13 }
  0x44   : > { %767 = vmatmul.msk.bf16.gmra.mxu1 %vm314_vm0, %v785_v14 }
  0x45   : > { %771 = vmatmul.msk.bf16.gmra.mxu2 %vm314_vm0, %v789_v15 }
  0x46   : > { %775 = vmatmul.msk.bf16.gmra.mxu3 %vm314_vm0, %v793_v16 }
  0x90   : > { %v372_v18 = vpop.f32.mrf.mxu0 }
  0x91   : > { %v392_v19 = vpop.f32.mrf.mxu1  ;;  %v373_v20 = vadd.f32 %v937_v17, %v372_v18 }
  0x92   : > { %v393_v21 = vadd.f32 %v937_v17, %v392_v19 }
  0x93   : > { %vm452_vm1 = vcmp.ge.f32.partialorder %v373_v20, 0.0  ;;  %v484_v22 = vmul.f32 0.2, %v373_v20 }
  0x94   : > { %vm460_vm2 = vcmp.ge.f32.partialorder %v393_v21, 0.0  ;;  %v492_v23 = vmul.f32 0.2, %v393_v21 }
  0x95   : > { %v516_v24 = vsel %vm452_vm1, %v373_v20, %v484_v22 }
  0x96   : > { %v524_v25 = vsel %vm460_vm2, %v393_v21, %v492_v23  ;;  %v548_v26 = vpack.c.bf16 %v516_v24, %v516_v24 }
  0x97   : > { %v556_v27 = vpack.c.bf16 %v524_v25, %v524_v25 }
  0x98   : > { %v412_v28 = vpop.f32.mrf.mxu2  ;;  %581 = vst.msk [vmem:[%s946_s28] sm:$0xf] %vm580_vm3, %v548_v26  ;;  %v374_v32 = vpop.f32.mrf.mxu0 }
  0x99   : > { %v432_v29 = vpop.f32.mrf.mxu3  ;;  %v413_v30 = vadd.f32 %v937_v17, %v412_v28  ;;  %v394_v33 = vpop.f32.mrf.mxu1  ;;  %589 = vst.msk [vmem:[%s946_s28 + $0x20] sm:$0xf] %vm580_vm3, %v556_v27  ;;  %v375_v34 = vadd.f32 %v937_v17, %v374_v32 }
  0x9a   : > { %v433_v31 = vadd.f32 %v937_v17, %v432_v29  ;;  %v395_v35 = vadd.f32 %v937_v17, %v394_v33 }
  0x9b   : > { %vm468_vm4 = vcmp.ge.f32.partialorder %v413_v30, 0.0  ;;  %v500_v36 = vmul.f32 0.2, %v413_v30  ;;  %vm453_vm6 = vcmp.ge.f32.partialorder %v375_v34, 0.0  ;;  %v485_v38 = vmul.f32 0.2, %v375_v34 }
  0x9c   : > { %vm476_vm5 = vcmp.ge.f32.partialorder %v433_v31, 0.0  ;;  %v508_v37 = vmul.f32 0.2, %v433_v31  ;;  %vm461_vm7 = vcmp.ge.f32.partialorder %v395_v35, 0.0  ;;  %v493_v39 = vmul.f32 0.2, %v395_v35 }
  0x9d   : > { %v532_v40 = vsel %vm468_vm4, %v413_v30, %v500_v36  ;;  %v517_v44 = vsel %vm453_vm6, %v375_v34, %v485_v38 }
  0x9e   : > { %v540_v41 = vsel %vm476_vm5, %v433_v31, %v508_v37  ;;  %v564_v42 = vpack.c.bf16 %v532_v40, %v532_v40  ;;  %v525_v45 = vsel %vm461_vm7, %v395_v35, %v493_v39  ;;  %v549_v46 = vpack.c.bf16 %v517_v44, %v517_v44 }
  0x9f   : > { %v572_v43 = vpack.c.bf16 %v540_v41, %v540_v41  ;;  %v557_v47 = vpack.c.bf16 %v525_v45, %v525_v45 }
  0xa0   : > { %597 = vst.msk [vmem:[%s946_s28 + $0x40] sm:$0xf] %vm580_vm3, %v564_v42  ;;  %v414_v48 = vpop.f32.mrf.mxu2  ;;  %v377_v52 = vpop.f32.mrf.mxu0 }
  0xa1   : > { %v434_v49 = vpop.f32.mrf.mxu3  ;;  %605 = vst.msk [vmem:[%s946_s28 + $0x60] sm:$0xf] %vm580_vm3, %v572_v43  ;;  %v415_v50 = vadd.f32 %v937_v17, %v414_v48  ;;  %v397_v53 = vpop.f32.mrf.mxu1  ;;  %v378_v54 = vadd.f32 %v937_v17, %v377_v52 }
  0xa2   : > { %v435_v51 = vadd.f32 %v937_v17, %v434_v49  ;;  %582 = vst.msk [vmem:[%s946_s28 + $0x4] sm:$0xf] %vm580_vm3, %v549_v46  ;;  %v398_v55 = vadd.f32 %v937_v17, %v397_v53 }
  0xa3   : > { %590 = vst.msk [vmem:[%s946_s28 + $0x24] sm:$0xf] %vm580_vm3, %v557_v47  ;;  %vm469_vm8 = vcmp.ge.f32.partialorder %v415_v50, 0.0  ;;  %v501_v56 = vmul.f32 0.2, %v415_v50  ;;  %vm454_vm10 = vcmp.ge.f32.partialorder %v378_v54, 0.0 }
  0xa4   : > { %vm477_vm9 = vcmp.ge.f32.partialorder %v435_v51, 0.0  ;;  %v509_v57 = vmul.f32 0.2, %v435_v51  ;;  %v486_v58 = vmul.f32 0.2, %v378_v54  ;;  %vm462_vm11 = vcmp.ge.f32.partialorder %v398_v55, 0.0 }
  0xa5   : > { %v533_v59 = vsel %vm469_vm8, %v415_v50, %v501_v56  ;;  %v494_v60 = vmul.f32 0.2, %v398_v55 }
  0xa6   : > { %v565_v61 = vpack.c.bf16 %v533_v59, %v533_v59  ;;  %v541_v62 = vsel %vm477_vm9, %v435_v51, %v509_v57  ;;  %v518_v63 = vsel %vm454_vm10, %v378_v54, %v486_v58 }
  0xa7   : > { %v573_v0 = vpack.c.bf16 %v541_v62, %v541_v62  ;;  %v550_v1 = vpack.c.bf16 %v518_v63, %v518_v63  ;;  %v526_v2 = vsel %vm462_vm11, %v398_v55, %v494_v60 }
  0xa8   : > { %598 = vst.msk [vmem:[%s946_s28 + $0x44] sm:$0xf] %vm580_vm3, %v565_v61  ;;  %v558_v3 = vpack.c.bf16 %v526_v2, %v526_v2  ;;  %v417_v4 = vpop.f32.mrf.mxu2  ;;  %v379_v8 = vpop.f32.mrf.mxu0 }
  0xa9   : > { %v437_v5 = vpop.f32.mrf.mxu3  ;;  %606 = vst.msk [vmem:[%s946_s28 + $0x64] sm:$0xf] %vm580_vm3, %v573_v0  ;;  %v418_v6 = vadd.f32 %v937_v17, %v417_v4  ;;  %v399_v9 = vpop.f32.mrf.mxu1  ;;  %v380_v10 = vadd.f32 %v937_v17, %v379_v8 }
  0xaa   : > { %v438_v7 = vadd.f32 %v937_v17, %v437_v5  ;;  %583 = vst.msk [vmem:[%s946_s28 + $0x8] sm:$0xf] %vm580_vm3, %v550_v1  ;;  %v400_v11 = vadd.f32 %v937_v17, %v399_v9 }
  0xab   : > { %591 = vst.msk [vmem:[%s946_s28 + $0x28] sm:$0xf] %vm580_vm3, %v558_v3  ;;  %vm470_vm12 = vcmp.ge.f32.partialorder %v418_v6, 0.0  ;;  %v502_v12 = vmul.f32 0.2, %v418_v6  ;;  %vm455_vm14 = vcmp.ge.f32.partialorder %v380_v10, 0.0 }
  0xac   : > { %vm478_vm13 = vcmp.ge.f32.partialorder %v438_v7, 0.0  ;;  %v510_v13 = vmul.f32 0.2, %v438_v7  ;;  %v487_v14 = vmul.f32 0.2, %v380_v10  ;;  %vm463_vm15 = vcmp.ge.f32.partialorder %v400_v11, 0.0 }
  0xad   : > { %v534_v15 = vsel %vm470_vm12, %v418_v6, %v502_v12  ;;  %v495_v16 = vmul.f32 0.2, %v400_v11 }
  0xae   : > { %v566_v18 = vpack.c.bf16 %v534_v15, %v534_v15  ;;  %v542_v19 = vsel %vm478_vm13, %v438_v7, %v510_v13  ;;  %v519_v20 = vsel %vm455_vm14, %v380_v10, %v487_v14 }
  0xaf   : > { %v574_v21 = vpack.c.bf16 %v542_v19, %v542_v19  ;;  %v551_v22 = vpack.c.bf16 %v519_v20, %v519_v20  ;;  %v527_v23 = vsel %vm463_vm15, %v400_v11, %v495_v16 }
  0xb0   : > { %599 = vst.msk [vmem:[%s946_s28 + $0x48] sm:$0xf] %vm580_vm3, %v566_v18  ;;  %v559_v24 = vpack.c.bf16 %v527_v23, %v527_v23  ;;  %v419_v25 = vpop.f32.mrf.mxu2  ;;  %v382_v29 = vpop.f32.mrf.mxu0 }
  0xb1   : > { %v439_v26 = vpop.f32.mrf.mxu3  ;;  %607 = vst.msk [vmem:[%s946_s28 + $0x68] sm:$0xf] %vm580_vm3, %v574_v21  ;;  %v420_v27 = vadd.f32 %v937_v17, %v419_v25  ;;  %v402_v30 = vpop.f32.mrf.mxu1  ;;  %v383_v31 = vadd.f32 %v937_v17, %v382_v29 }
  0xb2   : > { %v440_v28 = vadd.f32 %v937_v17, %v439_v26  ;;  %584 = vst.msk [vmem:[%s946_s28 + $0xc] sm:$0xf] %vm580_vm3, %v551_v22  ;;  %v403_v32 = vadd.f32 %v937_v17, %v402_v30 }
  0xb3   : > { %592 = vst.msk [vmem:[%s946_s28 + $0x2c] sm:$0xf] %vm580_vm3, %v559_v24  ;;  %vm471_vm0 = vcmp.ge.f32.partialorder %v420_v27, 0.0  ;;  %v503_v33 = vmul.f32 0.2, %v420_v27  ;;  %vm456_vm2 = vcmp.ge.f32.partialorder %v383_v31, 0.0 }
  0xb4   : > { %vm479_vm1 = vcmp.ge.f32.partialorder %v440_v28, 0.0  ;;  %v511_v34 = vmul.f32 0.2, %v440_v28  ;;  %v488_v35 = vmul.f32 0.2, %v383_v31  ;;  %vm464_vm4 = vcmp.ge.f32.partialorder %v403_v32, 0.0 }
  0xb5   : > { %v535_v36 = vsel %vm471_vm0, %v420_v27, %v503_v33  ;;  %v496_v37 = vmul.f32 0.2, %v403_v32 }
  0xb6   : > { %v567_v38 = vpack.c.bf16 %v535_v36, %v535_v36  ;;  %v543_v39 = vsel %vm479_vm1, %v440_v28, %v511_v34  ;;  %v520_v40 = vsel %vm456_vm2, %v383_v31, %v488_v35 }
  0xb7   : > { %v575_v41 = vpack.c.bf16 %v543_v39, %v543_v39  ;;  %v552_v42 = vpack.c.bf16 %v520_v40, %v520_v40  ;;  %v528_v43 = vsel %vm464_vm4, %v403_v32, %v496_v37 }
  0xb8   : > { %600 = vst.msk [vmem:[%s946_s28 + $0x4c] sm:$0xf] %vm580_vm3, %v567_v38  ;;  %v560_v44 = vpack.c.bf16 %v528_v43, %v528_v43  ;;  %v422_v45 = vpop.f32.mrf.mxu2  ;;  %v384_v49 = vpop.f32.mrf.mxu0 }
  0xb9   : > { %v442_v46 = vpop.f32.mrf.mxu3  ;;  %608 = vst.msk [vmem:[%s946_s28 + $0x6c] sm:$0xf] %vm580_vm3, %v575_v41  ;;  %v423_v47 = vadd.f32 %v937_v17, %v422_v45  ;;  %v404_v50 = vpop.f32.mrf.mxu1  ;;  %v385_v51 = vadd.f32 %v937_v17, %v384_v49 }
  0xba   : > { %v443_v48 = vadd.f32 %v937_v17, %v442_v46  ;;  %585 = vst.msk [vmem:[%s946_s28 + $0x10] sm:$0xf] %vm580_vm3, %v552_v42  ;;  %v405_v52 = vadd.f32 %v937_v17, %v404_v50 }
  0xbb   : > { %593 = vst.msk [vmem:[%s946_s28 + $0x30] sm:$0xf] %vm580_vm3, %v560_v44  ;;  %vm472_vm5 = vcmp.ge.f32.partialorder %v423_v47, 0.0  ;;  %v504_v53 = vmul.f32 0.2, %v423_v47  ;;  %vm457_vm7 = vcmp.ge.f32.partialorder %v385_v51, 0.0 }
  0xbc   : > { %vm480_vm6 = vcmp.ge.f32.partialorder %v443_v48, 0.0  ;;  %v512_v54 = vmul.f32 0.2, %v443_v48  ;;  %v489_v55 = vmul.f32 0.2, %v385_v51  ;;  %vm465_vm8 = vcmp.ge.f32.partialorder %v405_v52, 0.0 }
  0xbd   : > { %v536_v56 = vsel %vm472_vm5, %v423_v47, %v504_v53  ;;  %v497_v57 = vmul.f32 0.2, %v405_v52 }
  0xbe   : > { %v568_v58 = vpack.c.bf16 %v536_v56, %v536_v56  ;;  %v544_v59 = vsel %vm480_vm6, %v443_v48, %v512_v54  ;;  %v521_v60 = vsel %vm457_vm7, %v385_v51, %v489_v55 }
  0xbf   : > { %v576_v61 = vpack.c.bf16 %v544_v59, %v544_v59  ;;  %v553_v62 = vpack.c.bf16 %v521_v60, %v521_v60  ;;  %v529_v63 = vsel %vm465_vm8, %v405_v52, %v497_v57 }
  0xc0   : > { %601 = vst.msk [vmem:[%s946_s28 + $0x50] sm:$0xf] %vm580_vm3, %v568_v58  ;;  %v561_v0 = vpack.c.bf16 %v529_v63, %v529_v63  ;;  %v424_v1 = vpop.f32.mrf.mxu2  ;;  %v387_v5 = vpop.f32.mrf.mxu0 }
  0xc1   : > { %v444_v2 = vpop.f32.mrf.mxu3  ;;  %609 = vst.msk [vmem:[%s946_s28 + $0x70] sm:$0xf] %vm580_vm3, %v576_v61  ;;  %v425_v3 = vadd.f32 %v937_v17, %v424_v1  ;;  %v407_v6 = vpop.f32.mrf.mxu1  ;;  %v388_v7 = vadd.f32 %v937_v17, %v387_v5 }
  0xc2   : > { %v445_v4 = vadd.f32 %v937_v17, %v444_v2  ;;  %586 = vst.msk [vmem:[%s946_s28 + $0x14] sm:$0xf] %vm580_vm3, %v553_v62  ;;  %v408_v8 = vadd.f32 %v937_v17, %v407_v6 }
  0xc3   : > { %594 = vst.msk [vmem:[%s946_s28 + $0x34] sm:$0xf] %vm580_vm3, %v561_v0  ;;  %vm473_vm9 = vcmp.ge.f32.partialorder %v425_v3, 0.0  ;;  %v505_v9 = vmul.f32 0.2, %v425_v3  ;;  %vm458_vm11 = vcmp.ge.f32.partialorder %v388_v7, 0.0 }
  0xc4   : > { %vm481_vm10 = vcmp.ge.f32.partialorder %v445_v4, 0.0  ;;  %v513_v10 = vmul.f32 0.2, %v445_v4  ;;  %v490_v11 = vmul.f32 0.2, %v388_v7  ;;  %vm466_vm12 = vcmp.ge.f32.partialorder %v408_v8, 0.0 }
  0xc5   : > { %v537_v12 = vsel %vm473_vm9, %v425_v3, %v505_v9  ;;  %v498_v13 = vmul.f32 0.2, %v408_v8 }
  0xc6   : > { %v569_v14 = vpack.c.bf16 %v537_v12, %v537_v12  ;;  %v545_v15 = vsel %vm481_vm10, %v445_v4, %v513_v10  ;;  %v522_v16 = vsel %vm458_vm11, %v388_v7, %v490_v11 }
  0xc7   : > { %v577_v18 = vpack.c.bf16 %v545_v15, %v545_v15  ;;  %v554_v19 = vpack.c.bf16 %v522_v16, %v522_v16  ;;  %v530_v20 = vsel %vm466_vm12, %v408_v8, %v498_v13 }
  0xc8   : > { %602 = vst.msk [vmem:[%s946_s28 + $0x54] sm:$0xf] %vm580_vm3, %v569_v14  ;;  %v562_v21 = vpack.c.bf16 %v530_v20, %v530_v20  ;;  %v427_v22 = vpop.f32.mrf.mxu2  ;;  %v389_v26 = vpop.f32.mrf.mxu0 }
  0xc9   : > { %v447_v23 = vpop.f32.mrf.mxu3  ;;  %610 = vst.msk [vmem:[%s946_s28 + $0x74] sm:$0xf] %vm580_vm3, %v577_v18  ;;  %v428_v24 = vadd.f32 %v937_v17, %v427_v22  ;;  %v409_v27 = vpop.f32.mrf.mxu1  ;;  %v390_v28 = vadd.f32 %v937_v17, %v389_v26 }
  0xca   : > { %v448_v25 = vadd.f32 %v937_v17, %v447_v23  ;;  %587 = vst.msk [vmem:[%s946_s28 + $0x18] sm:$0xf] %vm580_vm3, %v554_v19  ;;  %v410_v29 = vadd.f32 %v937_v17, %v409_v27 }
  0xcb   : > { %595 = vst.msk [vmem:[%s946_s28 + $0x38] sm:$0xf] %vm580_vm3, %v562_v21  ;;  %vm474_vm13 = vcmp.ge.f32.partialorder %v428_v24, 0.0  ;;  %v506_v30 = vmul.f32 0.2, %v428_v24  ;;  %vm459_vm15 = vcmp.ge.f32.partialorder %v390_v28, 0.0 }
  0xcc   : > { %vm482_vm14 = vcmp.ge.f32.partialorder %v448_v25, 0.0  ;;  %v514_v31 = vmul.f32 0.2, %v448_v25  ;;  %v491_v32 = vmul.f32 0.2, %v390_v28  ;;  %vm467_vm0 = vcmp.ge.f32.partialorder %v410_v29, 0.0 }
  0xcd   : > { %v538_v33 = vsel %vm474_vm13, %v428_v24, %v506_v30  ;;  %v499_v34 = vmul.f32 0.2, %v410_v29 }
  0xce   : > { %v570_v35 = vpack.c.bf16 %v538_v33, %v538_v33  ;;  %v546_v36 = vsel %vm482_vm14, %v448_v25, %v514_v31  ;;  %v523_v37 = vsel %vm459_vm15, %v390_v28, %v491_v32 }
  0xcf   : > { %v578_v38 = vpack.c.bf16 %v546_v36, %v546_v36  ;;  %v555_v39 = vpack.c.bf16 %v523_v37, %v523_v37  ;;  %v531_v40 = vsel %vm467_vm0, %v410_v29, %v499_v34 }
  0xd0   : > { %603 = vst.msk [vmem:[%s946_s28 + $0x58] sm:$0xf] %vm580_vm3, %v570_v35  ;;  %v563_v41 = vpack.c.bf16 %v531_v40, %v531_v40  ;;  %v429_v42 = vpop.f32.mrf.mxu2 }
  0xd1   : > { %v449_v43 = vpop.f32.mrf.mxu3  ;;  %611 = vst.msk [vmem:[%s946_s28 + $0x78] sm:$0xf] %vm580_vm3, %v578_v38  ;;  %v430_v44 = vadd.f32 %v937_v17, %v429_v42 }
  0xd2   : > { %v450_v45 = vadd.f32 %v937_v17, %v449_v43  ;;  %588 = vst.msk [vmem:[%s946_s28 + $0x1c] sm:$0xf] %vm580_vm3, %v555_v39 }
  0xd3   : > { %596 = vst.msk [vmem:[%s946_s28 + $0x3c] sm:$0xf] %vm580_vm3, %v563_v41  ;;  %vm475_vm1 = vcmp.ge.f32.partialorder %v430_v44, 0.0  ;;  %v507_v46 = vmul.f32 0.2, %v430_v44 }
  0xd4   : > { %vm483_vm2 = vcmp.ge.f32.partialorder %v450_v45, 0.0  ;;  %v515_v47 = vmul.f32 0.2, %v450_v45 }
  0xd5   : > { %v539_v48 = vsel %vm475_vm1, %v430_v44, %v507_v46 }
  0xd6   : > { %v571_v49 = vpack.c.bf16 %v539_v48, %v539_v48  ;;  %v547_v50 = vsel %vm483_vm2, %v450_v45, %v515_v47 }
  0xd7   : > { %v579_v51 = vpack.c.bf16 %v547_v50, %v547_v50 }
  0xd8   : > { %604 = vst.msk [vmem:[%s946_s28 + $0x5c] sm:$0xf] %vm580_vm3, %v571_v49 }
  0xd9   : > { %612 = vst.msk [vmem:[%s946_s28 + $0x7c] sm:$0xf] %vm580_vm3, %v579_v51 }
  0xda PF: > { %s14_s12 = sadd.s32 1, %s858_s12  }
  0xdb   : > { %p11_p7 = scmp.ge.s32.totalorder %s14_s12, 10  }
  0xdd   :  { %13 = sbr.rel (!%p11_p7) target bundleno = 1 (0x1), region = 67 }
  0xe2   :  { %635 = vsyncpa [#allocation3], 1 }
  0xe3   :  { %637 = vsyncpa [#allocation3 + $0x1], 1 }

// kernel: encoder_maxpool_forward.9
= control target key start
LH: loop header
LB: loop body
LE: loop exit
PB: predicated region body
PF: predicated region fallthrough
CT: control target
= control target key end

     0   :  { %s417_s6 = smov 0   ;;  %s471_s0 = inlined_call_operand.vmem [shape: bf16[32,8,256], index: 0, kind: input, shape index: {}]   ;;  %s472_s1 = inlined_call_operand.vmem [shape: bf16[16,8,128], index: 1, kind: output, shape index: {}]  }
   0x1 LB: > { %s355_s7 = sadd.s32 4294967295, %s405_s6   ;;  %p359_p0 = scmp.ge.s32.totalorder %s405_s6, 1  ;;  %s405_s6 = sphi %s417_s6, %s11_s6  }
   0x2   : > { %p89_p1 = scmp.lt.s32.totalorder %s405_s6, 3 }
   0x4   : > { %p90_p2 = pnand %p359_p0, %p89_p1 }
   0x5   : > { %s360_s8 = sshll.u32 (!%p90_p2), %s355_s7, 4  ;;  %s444_s13 = sshll.u32 (!%p90_p2), %s355_s7, 3 }
   0x6   : > { %93 = sbr.rel (%p90_p2) target bundleno = 58 (0x3a), region = 24  ;;  %p111_p3 = scmp.lt.s32.totalorder (!%p90_p2), %s360_s8, 31 }
   0x7   : > { %p118_p4 = scmp.lt.s32.totalorder (!%p90_p2), %s444_s13, 15 }
   0xb   : > { %s474_s8 = smov (!%p111_p3, %s360_s8), 31  ;;  %s476_s13 = smov (!%p118_p4, %s444_s13), 15 }
   0xc   : > { %s367_s9 = sshll.u32 %s474_s8, 3  ;;  %s364_s14 = sshll.u32 %s476_s13, 2 }
   0xd   : > { %s430_s12 = scalar_lea.vmem %s471_s0, %s367_s9  ;;  %s462_s17 = scalar_lea.vmem %s472_s1, %s364_s14 }
   0xe   : > { %v123_v0 = vld [vmem:[%s430_s12] sm:$0xff]  ;;  %v124_v1 = vld [vmem:[%s430_s12 + $0x8] sm:$0xff]  ;;  %v125_v2 = vld [vmem:[%s430_s12 + $0x10] sm:$0xff] }
   0xf   : > { %v126_v3 = vld [vmem:[%s430_s12 + $0x18] sm:$0xff]  ;;  %v139_v4 = vunpack.c.l.bf16 %v123_v0  ;;  %v140_v5 = vunpack.c.h.bf16 %v123_v0  ;;  %v141_v6 = vunpack.c.l.bf16 %v125_v2  ;;  %v142_v7 = vunpack.c.h.bf16 %v125_v2  ;;  %v127_v8 = vld [vmem:[%s430_s12 + $0x20] sm:$0xff]  ;;  %v128_v13 = vld [vmem:[%s430_s12 + $0x28] sm:$0xff] }
  0x10   : > { %v155_v9 = vunpack.c.l.bf16 %v124_v1  ;;  %v156_v10 = vunpack.c.h.bf16 %v124_v1  ;;  %v157_v11 = vunpack.c.l.bf16 %v126_v3  ;;  %v158_v12 = vunpack.c.h.bf16 %v126_v3  ;;  %v129_v14 = vld [vmem:[%s430_s12 + $0x30] sm:$0xff]  ;;  %v130_v15 = vld [vmem:[%s430_s12 + $0x38] sm:$0xff]  ;;  %v131_v20 = vld [vmem:[%s430_s12 + $0x40] sm:$0xff] }
  0x11   : > { %v143_v16 = vunpack.c.l.bf16 %v127_v8  ;;  %v144_v17 = vunpack.c.h.bf16 %v127_v8  ;;  %v145_v18 = vunpack.c.l.bf16 %v129_v14  ;;  %v146_v19 = vunpack.c.h.bf16 %v129_v14  ;;  %v133_v29 = vld [vmem:[%s430_s12 + $0x50] sm:$0xff]  ;;  %v132_v32 = vld [vmem:[%s430_s12 + $0x48] sm:$0xff]  ;;  %v134_v39 = vld [vmem:[%s430_s12 + $0x58] sm:$0xff] }
  0x12   : > { %v171_v21 = vmax.f32 %v139_v4, %v155_v9  ;;  %v172_v22 = vmax.f32 %v140_v5, %v156_v10  ;;  %v173_v23 = vmax.f32 %v141_v6, %v157_v11  ;;  %v174_v24 = vmax.f32 %v142_v7, %v158_v12  ;;  %v135_v52 = vld [vmem:[%s430_s12 + $0x60] sm:$0xff]  ;;  %v137_v61 = vld [vmem:[%s430_s12 + $0x70] sm:$0xff]  ;;  %v136_v5 = vld [vmem:[%s430_s12 + $0x68] sm:$0xff] }
  0x13   : > { %v159_v25 = vunpack.c.l.bf16 %v128_v13  ;;  %v160_v26 = vunpack.c.h.bf16 %v128_v13  ;;  %v161_v27 = vunpack.c.l.bf16 %v130_v15  ;;  %v162_v28 = vunpack.c.h.bf16 %v130_v15 }
  0x14   : > { %v187_v30 = vpack.c.bf16 %v172_v22, %v171_v21  ;;  %v188_v31 = vpack.c.bf16 %v174_v24, %v173_v23  ;;  %v147_v33 = vunpack.c.l.bf16 %v131_v20  ;;  %v148_v34 = vunpack.c.h.bf16 %v131_v20 }
  0x15   : > { %v175_v35 = vmax.f32 %v143_v16, %v159_v25  ;;  %v176_v36 = vmax.f32 %v144_v17, %v160_v26  ;;  %v177_v37 = vmax.f32 %v145_v18, %v161_v27  ;;  %v178_v38 = vmax.f32 %v146_v19, %v162_v28  ;;  %v138_v18 = vld [vmem:[%s430_s12 + $0x78] sm:$0xff] }
  0x16   : > { %v211_v40 = vrot.slane %v187_v30, 4  ;;  %v212_v41 = vrot.slane %v188_v31, 4  ;;  %v149_v42 = vunpack.c.l.bf16 %v133_v29  ;;  %v150_v43 = vunpack.c.h.bf16 %v133_v29 }
  0x17   : > { %v189_v44 = vpack.c.bf16 %v176_v36, %v175_v35  ;;  %v190_v45 = vpack.c.bf16 %v178_v38, %v177_v37  ;;  %v163_v46 = vunpack.c.l.bf16 %v132_v32  ;;  %v164_v47 = vunpack.c.h.bf16 %v132_v32 }
  0x18   : > { %v227_v48 = vunpack.c.l.bf16 %v211_v40  ;;  %v228_v49 = vunpack.c.l.bf16 %v212_v41  ;;  %v165_v50 = vunpack.c.l.bf16 %v134_v39  ;;  %v166_v51 = vunpack.c.h.bf16 %v134_v39 }
  0x19   : > { %v213_v53 = vrot.slane %v189_v44, 4  ;;  %v214_v54 = vrot.slane %v190_v45, 4  ;;  %v179_v55 = vmax.f32 %v147_v33, %v163_v46  ;;  %v180_v56 = vmax.f32 %v148_v34, %v164_v47 }
  0x1a   : > { %v235_v57 = vmax.f32 %v171_v21, %v227_v48  ;;  %v236_v58 = vmax.f32 %v173_v23, %v228_v49  ;;  %v181_v59 = vmax.f32 %v149_v42, %v165_v50  ;;  %v182_v60 = vmax.f32 %v150_v43, %v166_v51 }
  0x1b   : > { %v229_v62 = vunpack.c.l.bf16 %v213_v53  ;;  %v230_v63 = vunpack.c.l.bf16 %v214_v54  ;;  %v191_v0 = vpack.c.bf16 %v180_v56, %v179_v55  ;;  %v151_v1 = vunpack.c.l.bf16 %v135_v52 }
  0x1c   : > { %v243_v2 = vpack.c.bf16 %v235_v57, %v235_v57  ;;  %v244_v3 = vpack.c.bf16 %v236_v58, %v236_v58  ;;  %v192_v4 = vpack.c.bf16 %v182_v60, %v181_v59  ;;  %v152_v6 = vunpack.c.h.bf16 %v135_v52 }
  0x1d   : > { %v237_v7 = vmax.f32 %v175_v35, %v229_v62  ;;  %v238_v8 = vmax.f32 %v177_v37, %v230_v63  ;;  %v215_v9 = vrot.slane %v191_v0, 4  ;;  %v153_v10 = vunpack.c.l.bf16 %v137_v61 }
  0x1e   : > { %v251_v11 = vunpack.c.l.bf16 %v243_v2  ;;  %v252_v12 = vunpack.c.l.bf16 %v244_v3  ;;  %v216_v13 = vrot.slane %v192_v4, 4  ;;  %v154_v14 = vunpack.c.h.bf16 %v137_v61 }
  0x1f   : > { %v245_v15 = vpack.c.bf16 %v237_v7, %v237_v7  ;;  %v246_v16 = vpack.c.bf16 %v238_v8, %v238_v8  ;;  %v231_v17 = vunpack.c.l.bf16 %v215_v9  ;;  %v167_v19 = vunpack.c.l.bf16 %v136_v5 }
  0x20   : > { %vm259_vm0 = vcmp.ge.f32.partialorder %v251_v11, 0.0  ;;  %vm260_vm1 = vcmp.ge.f32.partialorder %v252_v12, 0.0  ;;  %v267_v20 = vmul.f32 0.2, %v251_v11  ;;  %v268_v21 = vmul.f32 0.2, %v252_v12 }
  0x21   : > { %v253_v22 = vunpack.c.l.bf16 %v245_v15  ;;  %v254_v23 = vunpack.c.l.bf16 %v246_v16  ;;  %v232_v24 = vunpack.c.l.bf16 %v216_v13  ;;  %v239_v25 = vmax.f32 %v179_v55, %v231_v17 }
  0x22   : > { %v275_v26 = vsel %vm259_vm0, %v251_v11, %v267_v20  ;;  %v276_v27 = vsel %vm260_vm1, %v252_v12, %v268_v21  ;;  %v168_v28 = vunpack.c.h.bf16 %v136_v5  ;;  %v169_v29 = vunpack.c.l.bf16 %v138_v18 }
  0x23   : > { %v371_v30 = vpack.c.bf16 %v276_v27, %v275_v26  ;;  %vm261_vm2 = vcmp.ge.f32.partialorder %v253_v22, 0.0  ;;  %vm262_vm3 = vcmp.ge.f32.partialorder %v254_v23, 0.0  ;;  %v269_v31 = vmul.f32 0.2, %v253_v22 }
  0x24   : > { %v270_v32 = vmul.f32 0.2, %v254_v23  ;;  %v240_v33 = vmax.f32 %v181_v59, %v232_v24  ;;  %v247_v34 = vpack.c.bf16 %v239_v25, %v239_v25  ;;  %v170_v35 = vunpack.c.h.bf16 %v138_v18 }
  0x25   : > { %372 = vst [vmem:[%s462_s17] sm:$0xff] %v371_v30   ;;  %v277_v36 = vsel %vm261_vm2, %v253_v22, %v269_v31  ;;  %v183_v37 = vmax.f32 %v151_v1, %v167_v19  ;;  %v184_v38 = vmax.f32 %v152_v6, %v168_v28  ;;  %v185_v39 = vmax.f32 %v153_v10, %v169_v29 }
  0x26   : > { %v278_v40 = vsel %vm262_vm3, %v254_v23, %v270_v32  ;;  %v248_v41 = vpack.c.bf16 %v240_v33, %v240_v33  ;;  %v255_v42 = vunpack.c.l.bf16 %v247_v34  ;;  %v186_v43 = vmax.f32 %v154_v14, %v170_v35 }
  0x27   : > { %v376_v44 = vpack.c.bf16 %v278_v40, %v277_v36  ;;  %v193_v45 = vpack.c.bf16 %v184_v38, %v183_v37 }
  0x28   : > { %v256_v46 = vunpack.c.l.bf16 %v248_v41  ;;  %vm263_vm4 = vcmp.ge.f32.partialorder %v255_v42, 0.0  ;;  %v271_v47 = vmul.f32 0.2, %v255_v42  ;;  %v194_v48 = vpack.c.bf16 %v186_v43, %v185_v39 }
  0x29   : > { %388 = vst [vmem:[%s462_s17 + $0x8] sm:$0xff] %v376_v44   ;;  %v217_v49 = vrot.slane %v193_v45, 4 }
  0x2a   : > { %vm264_vm5 = vcmp.ge.f32.partialorder %v256_v46, 0.0  ;;  %v272_v50 = vmul.f32 0.2, %v256_v46  ;;  %v279_v51 = vsel %vm263_vm4, %v255_v42, %v271_v47  ;;  %v218_v52 = vrot.slane %v194_v48, 4 }
  0x2b   : > { %v233_v53 = vunpack.c.l.bf16 %v217_v49 }
  0x2c   : > { %v280_v54 = vsel %vm264_vm5, %v256_v46, %v272_v50  ;;  %v234_v55 = vunpack.c.l.bf16 %v218_v52 }
  0x2d   : > { %v381_v56 = vpack.c.bf16 %v280_v54, %v279_v51  ;;  %v241_v57 = vmax.f32 %v183_v37, %v233_v53 }
  0x2e   : > { %v242_v58 = vmax.f32 %v185_v39, %v234_v55 }
  0x2f   : > { %389 = vst [vmem:[%s462_s17 + $0x10] sm:$0xff] %v381_v56   ;;  %v249_v59 = vpack.c.bf16 %v241_v57, %v241_v57 }
  0x30   : > { %v250_v60 = vpack.c.bf16 %v242_v58, %v242_v58 }
  0x31   : > { %v257_v61 = vunpack.c.l.bf16 %v249_v59 }
  0x32   : > { %v258_v62 = vunpack.c.l.bf16 %v250_v60 }
  0x33   : > { %vm265_vm6 = vcmp.ge.f32.partialorder %v257_v61, 0.0  ;;  %v273_v63 = vmul.f32 0.2, %v257_v61 }
  0x34   : > { %vm266_vm7 = vcmp.ge.f32.partialorder %v258_v62, 0.0  ;;  %v274_v0 = vmul.f32 0.2, %v258_v62 }
  0x35   : > { %v281_v1 = vsel %vm265_vm6, %v257_v61, %v273_v63 }
  0x36   : > { %v282_v2 = vsel %vm266_vm7, %v258_v62, %v274_v0 }
  0x37   : > { %v386_v3 = vpack.c.bf16 %v282_v2, %v281_v1 }
  0x39   : > { %390 = vst [vmem:[%s462_s17 + $0x18] sm:$0xff] %v386_v3  }
  0x3a PF: > { %s11_s6 = sadd.s32 1, %s405_s6  }
  0x3b   : > { %p8_p5 = scmp.ge.s32.totalorder %s11_s6, 4  }
  0x3d   :  { %10 = sbr.rel (!%p8_p5) target bundleno = 1 (0x1), region = 54 }

// kernel: encoder_maxpool_forward.8
= control target key start
LH: loop header
LB: loop body
LE: loop exit
PB: predicated region body
PF: predicated region fallthrough
CT: control target
= control target key end

     0   :  { %s3399_s12 = smov 0   ;;  %s4022_s0 = inlined_call_operand.vmem [shape: bf16[512,1024], index: 0, kind: input, shape index: {}]   ;;  %s4023_s1 = inlined_call_operand.vmem [shape: bf16[1024,128], index: 1, kind: input, shape index: {}]   ;;  %s4024_s2 = inlined_call_operand.vmem [shape: f32[1,128], index: 2, kind: input, shape index: {}]   ;;  %s4025_s3 = inlined_call_operand.vmem [shape: bf16[512,128], index: 3, kind: output, shape index: {}]  }
   0x1 LB: > { %s2293_s13 = sadd.s32 4294967295, %s3377_s12   ;;  %p2297_p0 = scmp.ge.s32.totalorder %s3377_s12, 1  ;;  %s3377_s12 = sphi %s3399_s12, %s13_s12  }
   0x2   : > { %p139_p1 = scmp.lt.s32.totalorder %s3377_s12, 3 }
   0x4   : > { %p140_p2 = pnand %p2297_p0, %p139_p1 }
   0x5   : > { %s2298_s11 = sshll.u32 (!%p140_p2), %s2293_s13, 5 }
   0x6   : > { %143 = sbr.rel (%p140_p2) target bundleno = 688 (0x2b0), region = 32  ;;  %p165_p3 = scmp.lt.s32.totalorder (!%p140_p2), %s2298_s11, 63 }
   0xb   : > { %v3209_v0 = vld [vmem:[%s4023_s1 + $0x38] sm:$0xff]  ;;  %v3208_v4 = vld [vmem:[%s4023_s1 + $0x30] sm:$0xff]  ;;  %v3207_v8 = vld [vmem:[%s4023_s1 + $0x28] sm:$0xff]  ;;  %s4027_s11 = smov (!%p165_p3, %s2298_s11), 63 }
   0xc   : > { %v3217_v1 = vld [vmem:[%s4023_s1 + $0x78] sm:$0xff]  ;;  %1461 = vmatpush.bf16.msra.mxu0 %v3209_v0  ;;  %v3216_v5 = vld [vmem:[%s4023_s1 + $0x70] sm:$0xff]  ;;  %v3215_v9 = vld [vmem:[%s4023_s1 + $0x68] sm:$0xff]  ;;  %s3073_s10 = sshll.u32 %s4027_s11, 5  ;;  %s2302_s28 = sshll.u32 %s4027_s11, 2 }
   0xd   : > { %v3225_v2 = vld [vmem:[%s4023_s1 + $0xb8] sm:$0xff]  ;;  %1550 = vmatpush.bf16.msra.mxu1 %v3217_v1  ;;  %v3224_v6 = vld [vmem:[%s4023_s1 + $0xb0] sm:$0xff]  ;;  %v3223_v10 = vld [vmem:[%s4023_s1 + $0xa8] sm:$0xff]  ;;  %s3491_s20 = scalar_lea.vmem %s4022_s0, %s3073_s10  ;;  %s3923_s4 = scalar_lea.vmem %s4025_s3, %s2302_s28 }
   0xe   : > { %v3233_v3 = vld [vmem:[%s4023_s1 + $0xf8] sm:$0xff]  ;;  %1639 = vmatpush.bf16.msra.mxu2 %v3225_v2  ;;  %v3232_v7 = vld [vmem:[%s4023_s1 + $0xf0] sm:$0xff]  ;;  %v3231_v11 = vld [vmem:[%s4023_s1 + $0xe8] sm:$0xff] }
   0xf   : > { %1728 = vmatpush.bf16.msra.mxu3 %v3233_v3  ;;  %v3206_v12 = vld [vmem:[%s4023_s1 + $0x20] sm:$0xff]  ;;  %v3205_v16 = vld [vmem:[%s4023_s1 + $0x18] sm:$0xff]  ;;  %v3204_v20 = vld [vmem:[%s4023_s1 + $0x10] sm:$0xff] }
  0x10   : > { %1462 = vmatpush.bf16.msra.mxu0 %v3208_v4  ;;  %v3214_v13 = vld [vmem:[%s4023_s1 + $0x60] sm:$0xff]  ;;  %v3213_v17 = vld [vmem:[%s4023_s1 + $0x58] sm:$0xff]  ;;  %v3212_v21 = vld [vmem:[%s4023_s1 + $0x50] sm:$0xff] }
  0x11   : > { %1551 = vmatpush.bf16.msra.mxu1 %v3216_v5  ;;  %v3222_v14 = vld [vmem:[%s4023_s1 + $0xa0] sm:$0xff]  ;;  %v3221_v18 = vld [vmem:[%s4023_s1 + $0x98] sm:$0xff]  ;;  %v3220_v22 = vld [vmem:[%s4023_s1 + $0x90] sm:$0xff] }
  0x12   : > { %1640 = vmatpush.bf16.msra.mxu2 %v3224_v6  ;;  %v3230_v15 = vld [vmem:[%s4023_s1 + $0xe0] sm:$0xff]  ;;  %v3229_v19 = vld [vmem:[%s4023_s1 + $0xd8] sm:$0xff]  ;;  %v3228_v23 = vld [vmem:[%s4023_s1 + $0xd0] sm:$0xff] }
  0x13   : > { %1729 = vmatpush.bf16.msra.mxu3 %v3232_v7  ;;  %v3203_v24 = vld [vmem:[%s4023_s1 + $0x8] sm:$0xff]  ;;  %v3202_v28 = vld [vmem:[%s4023_s1] sm:$0xff]  ;;  %v3257_v40 = vld [vmem:[%s4023_s1 + $0x1b8] sm:$0xff] }
  0x14   : > { %1463 = vmatpush.bf16.msra.mxu0 %v3207_v8  ;;  %v3211_v25 = vld [vmem:[%s4023_s1 + $0x48] sm:$0xff]  ;;  %v3210_v29 = vld [vmem:[%s4023_s1 + $0x40] sm:$0xff]  ;;  %v3241_v41 = vld [vmem:[%s4023_s1 + $0x138] sm:$0xff] }
  0x15   : > { %1552 = vmatpush.bf16.msra.mxu1 %v3215_v9  ;;  %v3219_v26 = vld [vmem:[%s4023_s1 + $0x88] sm:$0xff]  ;;  %v3218_v30 = vld [vmem:[%s4023_s1 + $0x80] sm:$0xff]  ;;  %v3265_v46 = vld [vmem:[%s4023_s1 + $0x1f8] sm:$0xff] }
  0x16   : > { %1641 = vmatpush.bf16.msra.mxu2 %v3223_v10  ;;  %v3227_v27 = vld [vmem:[%s4023_s1 + $0xc8] sm:$0xff]  ;;  %v3226_v31 = vld [vmem:[%s4023_s1 + $0xc0] sm:$0xff]  ;;  %v3249_v47 = vld [vmem:[%s4023_s1 + $0x178] sm:$0xff] }
  0x17   : > { %1730 = vmatpush.bf16.msra.mxu3 %v3231_v11  ;;  %v2305_v32 = vld [vmem:[%s3491_s20] sm:$0xf]  ;;  %v3074_v34 = vld [vmem:[%s3491_s20 + $0x4] sm:$0xf]  ;;  %v2313_v36 = vld [vmem:[%s3491_s20 + $0x8] sm:$0xf] }
  0x18   : > { %1464 = vmatpush.bf16.msra.mxu0 %v3206_v12  ;;  %v3078_v33 = vld [vmem:[%s3491_s20 + $0x1c] sm:$0xf0]  ;;  %v2307_v35 = vld [vmem:[%s3491_s20 + $0x20] sm:$0xf0]  ;;  %v3079_v37 = vld [vmem:[%s3491_s20 + $0x24] sm:$0xf0] }
  0x19   : > { %1553 = vmatpush.bf16.msra.mxu1 %v3214_v13  ;;  %v3075_v38 = vld [vmem:[%s3491_s20 + $0xc] sm:$0xf]  ;;  %v2306_v42 = vor.u32 %v3078_v33, %v2305_v32  ;;  %v2310_v43 = vor.u32 %v3074_v34, %v2307_v35  ;;  %v2314_v44 = vor.u32 %v3079_v37, %v2313_v36  ;;  %v3256_v48 = vld [vmem:[%s4023_s1 + $0x1b0] sm:$0xff]  ;;  %v2337_v52 = vld [vmem:[%s3491_s20 + $0x40] sm:$0xf] }
  0x1a   : > { %1642 = vmatpush.bf16.msra.mxu2 %v3222_v14  ;;  %v2315_v39 = vld [vmem:[%s3491_s20 + $0x28] sm:$0xf0]  ;;  %v3240_v49 = vld [vmem:[%s4023_s1 + $0x130] sm:$0xff]  ;;  %v3086_v53 = vld [vmem:[%s3491_s20 + $0x5c] sm:$0xf0] }
  0x1b   : > { %1731 = vmatpush.bf16.msra.mxu3 %v3230_v15  ;;  %v2318_v45 = vor.u32 %v3075_v38, %v2315_v39  ;;  %v3264_v50 = vld [vmem:[%s4023_s1 + $0x1f0] sm:$0xff]  ;;  %v3082_v54 = vld [vmem:[%s3491_s20 + $0x44] sm:$0xf]  ;;  %v2345_v56 = vld [vmem:[%s3491_s20 + $0x48] sm:$0xf]  ;;  %v2338_v60 = vor.u32 %v3086_v53, %v2337_v52 }
  0x1c   : > { %1465 = vmatpush.bf16.msra.mxu0 %v3205_v16  ;;  %v3248_v51 = vld [vmem:[%s4023_s1 + $0x170] sm:$0xff]  ;;  %v2339_v55 = vld [vmem:[%s3491_s20 + $0x60] sm:$0xf0]  ;;  %v3087_v57 = vld [vmem:[%s3491_s20 + $0x64] sm:$0xf0] }
  0x1d   : > { %1554 = vmatpush.bf16.msra.mxu1 %v3213_v17  ;;  %v3083_v58 = vld [vmem:[%s3491_s20 + $0x4c] sm:$0xf]  ;;  %v2342_v61 = vor.u32 %v3082_v54, %v2339_v55  ;;  %v2346_v62 = vor.u32 %v3087_v57, %v2345_v56  ;;  %v2369_v0 = vld [vmem:[%s3491_s20 + $0x80] sm:$0xf]  ;;  %v3090_v2 = vld [vmem:[%s3491_s20 + $0x84] sm:$0xf] }
  0x1e   : > { %1643 = vmatpush.bf16.msra.mxu2 %v3221_v18  ;;  %v2347_v59 = vld [vmem:[%s3491_s20 + $0x68] sm:$0xf0]  ;;  %v3094_v1 = vld [vmem:[%s3491_s20 + $0x9c] sm:$0xf0]  ;;  %v2371_v3 = vld [vmem:[%s3491_s20 + $0xa0] sm:$0xf0] }
  0x1f   : > { %1732 = vmatpush.bf16.msra.mxu3 %v3229_v19  ;;  %v2350_v63 = vor.u32 %v3083_v58, %v2347_v59  ;;  %v2377_v4 = vld [vmem:[%s3491_s20 + $0x88] sm:$0xf]  ;;  %v3091_v6 = vld [vmem:[%s3491_s20 + $0x8c] sm:$0xf]  ;;  %v2370_v8 = vor.u32 %v3094_v1, %v2369_v0  ;;  %v2374_v9 = vor.u32 %v3090_v2, %v2371_v3  ;;  %v2401_v16 = vld [vmem:[%s3491_s20 + $0xc0] sm:$0xf] }
  0x20   : > { %1466 = vmatpush.bf16.msra.mxu0 %v3204_v20  ;;  %v3095_v5 = vld [vmem:[%s3491_s20 + $0xa4] sm:$0xf0]  ;;  %v2379_v7 = vld [vmem:[%s3491_s20 + $0xa8] sm:$0xf0]  ;;  %v3102_v17 = vld [vmem:[%s3491_s20 + $0xdc] sm:$0xf0] }
  0x21   : > { %1555 = vmatpush.bf16.msra.mxu1 %v3212_v21  ;;  %v2378_v10 = vor.u32 %v3095_v5, %v2377_v4  ;;  %v2382_v11 = vor.u32 %v3091_v6, %v2379_v7  ;;  %v3255_v12 = vld [vmem:[%s4023_s1 + $0x1a8] sm:$0xff]  ;;  %v3098_v18 = vld [vmem:[%s3491_s20 + $0xc4] sm:$0xf]  ;;  %v2497_v56 = vld [vmem:[%s3491_s20 + $0x180] sm:$0xf] }
  0x22   : > { %1644 = vmatpush.bf16.msra.mxu2 %v3220_v22  ;;  %v3239_v13 = vld [vmem:[%s4023_s1 + $0x128] sm:$0xff]  ;;  %v2403_v19 = vld [vmem:[%s3491_s20 + $0xe0] sm:$0xf0]  ;;  %v3126_v57 = vld [vmem:[%s3491_s20 + $0x19c] sm:$0xf0] }
  0x23   : > { %1733 = vmatpush.bf16.msra.mxu3 %v3228_v23  ;;  %v3263_v14 = vld [vmem:[%s4023_s1 + $0x1e8] sm:$0xff]  ;;  %v3122_v58 = vld [vmem:[%s3491_s20 + $0x184] sm:$0xf]  ;;  %v2498_v0 = vor.u32 %v3126_v57, %v2497_v56  ;;  %v3253_v4 = vld [vmem:[%s4023_s1 + $0x198] sm:$0xff] }
  0x24   : > { %1467 = vmatpush.bf16.msra.mxu0 %v3203_v24  ;;  %v3247_v15 = vld [vmem:[%s4023_s1 + $0x168] sm:$0xff]  ;;  %v2402_v24 = vor.u32 %v3102_v17, %v2401_v16  ;;  %v2499_v59 = vld [vmem:[%s3491_s20 + $0x1a0] sm:$0xf0]  ;;  %v3237_v5 = vld [vmem:[%s4023_s1 + $0x118] sm:$0xff] }
  0x25   : > { %1556 = vmatpush.bf16.msra.mxu1 %v3211_v25  ;;  %v2409_v20 = vld [vmem:[%s3491_s20 + $0xc8] sm:$0xf]  ;;  %v3099_v22 = vld [vmem:[%s3491_s20 + $0xcc] sm:$0xf]  ;;  %v2406_v25 = vor.u32 %v3098_v18, %v2403_v19  ;;  %v2502_v1 = vor.u32 %v3122_v58, %v2499_v59  ;;  %v3261_v6 = vld [vmem:[%s4023_s1 + $0x1d8] sm:$0xff] }
  0x26   : > { %1645 = vmatpush.bf16.msra.mxu2 %v3219_v26  ;;  %v3103_v21 = vld [vmem:[%s3491_s20 + $0xe4] sm:$0xf0]  ;;  %v2411_v23 = vld [vmem:[%s3491_s20 + $0xe8] sm:$0xf0]  ;;  %v3245_v7 = vld [vmem:[%s4023_s1 + $0x158] sm:$0xff] }
  0x27   : > { %1734 = vmatpush.bf16.msra.mxu3 %v3227_v27  ;;  %v2410_v26 = vor.u32 %v3103_v21, %v2409_v20  ;;  %v2414_v27 = vor.u32 %v3099_v22, %v2411_v23  ;;  %v2441_v32 = vld [vmem:[%s3491_s20 + $0x108] sm:$0xf]  ;;  %v3107_v34 = vld [vmem:[%s3491_s20 + $0x10c] sm:$0xf]  ;;  %v3638_v20 = vld [vmem:[%s4024_s2] ss:$0 sm:$0xff] }
  0x28   : > { %1468 = vmatpush.bf16.msra.mxu0 %v3202_v28  ;;  %v2433_v28 = vld [vmem:[%s3491_s20 + $0x100] sm:$0xf]  ;;  %v3111_v33 = vld [vmem:[%s3491_s20 + $0x124] sm:$0xf0]  ;;  %v2443_v35 = vld [vmem:[%s3491_s20 + $0x128] sm:$0xf0] }
  0x29   : > { %1557 = vmatpush.bf16.msra.mxu1 %v3210_v29  ;;  %v3110_v29 = vld [vmem:[%s3491_s20 + $0x11c] sm:$0xf0]  ;;  %v2442_v38 = vor.u32 %v3111_v33, %v2441_v32  ;;  %v2446_v39 = vor.u32 %v3107_v34, %v2443_v35  ;;  %v3138_v23 = vld [vmem:[%s3491_s20 + $0x204] sm:$0xf]  ;;  %v2603_v56 = vld [vmem:[%s3491_s20 + $0x268] sm:$0xf0] }
  0x2a   : > { %1646 = vmatpush.bf16.msra.mxu2 %v3218_v30  ;;  %v3106_v30 = vld [vmem:[%s3491_s20 + $0x104] sm:$0xf]  ;;  %v2434_v36 = vor.u32 %v3110_v29, %v2433_v28  ;;  %v2561_v21 = vld [vmem:[%s3491_s20 + $0x200] sm:$0xf]  ;;  %v2571_v28 = vld [vmem:[%s3491_s20 + $0x228] sm:$0xf0] }
  0x2b   : > { %1735 = vmatpush.bf16.msra.mxu3 %v3226_v31  ;;  %1469 = vmatmul.bf16.vlgmr.msra.gmra.mxu0 %v2306_v42  ;;  %v2435_v31 = vld [vmem:[%s3491_s20 + $0x120] sm:$0xf0]  ;;  %v3142_v22 = vld [vmem:[%s3491_s20 + $0x21c] sm:$0xf0] }
  0x2c   : > { %1817 = vmatpush.bf16.msrb.mxu0 %v3241_v41  ;;  %1558 = vmatmul.bf16.vlgmr.msra.gmra.mxu1 %v2310_v43  ;;  %v2438_v37 = vor.u32 %v3106_v30, %v2435_v31  ;;  %v3238_v41 = vld [vmem:[%s4023_s1 + $0x120] sm:$0xff]  ;;  %v2562_v29 = vor.u32 %v3142_v22, %v2561_v21  ;;  %v2635_v21 = vld [vmem:[%s3491_s20 + $0x2a8] sm:$0xf0] }
  0x2d   : > { %1647 = vmatmul.bf16.vlgmr.msra.gmra.mxu2 %v2314_v44  ;;  %1906 = vmatpush.bf16.msrb.mxu1 %v3249_v47  ;;  %v3262_v42 = vld [vmem:[%s4023_s1 + $0x1e0] sm:$0xff] }
  0x2e   : > { %1995 = vmatpush.bf16.msrb.mxu2 %v3257_v40  ;;  %1736 = vmatmul.bf16.vlgmr.msra.gmra.mxu3 %v2318_v45  ;;  %v3254_v40 = vld [vmem:[%s4023_s1 + $0x1a0] sm:$0xff] }
  0x2f   : > { %2084 = vmatpush.bf16.msrb.mxu3 %v3265_v46  ;;  %v3246_v43 = vld [vmem:[%s4023_s1 + $0x160] sm:$0xff] }
  0x30   : > { %1818 = vmatpush.bf16.msrb.mxu0 %v3240_v49  ;;  %v2465_v44 = vld [vmem:[%s3491_s20 + $0x140] sm:$0xf]  ;;  %v3114_v46 = vld [vmem:[%s3491_s20 + $0x144] sm:$0xf]  ;;  %v3119_v49 = vld [vmem:[%s3491_s20 + $0x164] sm:$0xf0] }
  0x31   : > { %1907 = vmatpush.bf16.msrb.mxu1 %v3248_v51  ;;  %v3118_v45 = vld [vmem:[%s3491_s20 + $0x15c] sm:$0xf0]  ;;  %v2467_v47 = vld [vmem:[%s3491_s20 + $0x160] sm:$0xf0]  ;;  %v2475_v51 = vld [vmem:[%s3491_s20 + $0x168] sm:$0xf0] }
  0x32   : > { %1996 = vmatpush.bf16.msrb.mxu2 %v3256_v48  ;;  %v2473_v48 = vld [vmem:[%s3491_s20 + $0x148] sm:$0xf]  ;;  %v2466_v52 = vor.u32 %v3118_v45, %v2465_v44  ;;  %v2470_v53 = vor.u32 %v3114_v46, %v2467_v47  ;;  %v3244_v47 = vld [vmem:[%s4023_s1 + $0x150] sm:$0xff] }
  0x33   : > { %2085 = vmatpush.bf16.msrb.mxu3 %v3264_v50  ;;  %v3115_v50 = vld [vmem:[%s3491_s20 + $0x14c] sm:$0xf]  ;;  %v2474_v54 = vor.u32 %v3119_v49, %v2473_v48  ;;  %v2593_v49 = vld [vmem:[%s3491_s20 + $0x240] sm:$0xf] }
  0x34   : > { %1819 = vmatpush.bf16.msrb.mxu0 %v3239_v13  ;;  %v2478_v55 = vor.u32 %v3115_v50, %v2475_v51  ;;  %v3135_v13 = vld [vmem:[%s3491_s20 + $0x1e4] sm:$0xf0]  ;;  %v3150_v50 = vld [vmem:[%s3491_s20 + $0x25c] sm:$0xf0]  ;;  %v3146_v51 = vld [vmem:[%s3491_s20 + $0x244] sm:$0xf] }
  0x35   : > { %1908 = vmatpush.bf16.msrb.mxu1 %v3247_v15  ;;  %v2539_v15 = vld [vmem:[%s3491_s20 + $0x1e8] sm:$0xf0]  ;;  %v2594_v59 = vor.u32 %v3150_v50, %v2593_v49  ;;  %v3162_v49 = vld [vmem:[%s3491_s20 + $0x2c4] sm:$0xf] }
  0x36   : > { %1997 = vmatpush.bf16.msrb.mxu2 %v3255_v12  ;;  %v2537_v12 = vld [vmem:[%s3491_s20 + $0x1c8] sm:$0xf]  ;;  %v2659_v50 = vld [vmem:[%s3491_s20 + $0x2e0] sm:$0xf0] }
  0x37   : > { %2086 = vmatpush.bf16.msrb.mxu3 %v3263_v14  ;;  %v3131_v14 = vld [vmem:[%s3491_s20 + $0x1cc] sm:$0xf]  ;;  %v2538_v18 = vor.u32 %v3135_v13, %v2537_v12  ;;  %v2625_v13 = vld [vmem:[%s3491_s20 + $0x280] sm:$0xf] }
  0x38   : > { %1820 = vmatpush.bf16.msrb.mxu0 %v3238_v41  ;;  %v2542_v19 = vor.u32 %v3131_v14, %v2539_v15  ;;  %v3158_v14 = vld [vmem:[%s3491_s20 + $0x29c] sm:$0xf0]  ;;  %v3154_v15 = vld [vmem:[%s3491_s20 + $0x284] sm:$0xf] }
  0x39   : > { %1909 = vmatpush.bf16.msrb.mxu1 %v3246_v43 }
  0x3a   : > { %1998 = vmatpush.bf16.msrb.mxu2 %v3254_v40 }
  0x3b   : > { %1474 = vmatmul.bf16.gmra.mxu0 %v2338_v60  ;;  %2087 = vmatpush.bf16.msrb.mxu3 %v3262_v42  ;;  %v2505_v60 = vld [vmem:[%s3491_s20 + $0x188] sm:$0xf] }
  0x3c   : > { %1563 = vmatmul.bf16.gmra.mxu1 %v2342_v61  ;;  %v3127_v61 = vld [vmem:[%s3491_s20 + $0x1a4] sm:$0xf0]  ;;  %1821 = vmatpush.bf16.msrb.mxu0 %v3237_v5 }
  0x3d   : > { %1652 = vmatmul.bf16.gmra.mxu2 %v2346_v62  ;;  %v3123_v62 = vld [vmem:[%s3491_s20 + $0x18c] sm:$0xf]  ;;  %v2506_v2 = vor.u32 %v3127_v61, %v2505_v60  ;;  %1910 = vmatpush.bf16.msrb.mxu1 %v3245_v7 }
  0x3e   : > { %1741 = vmatmul.bf16.gmra.mxu3 %v2350_v63  ;;  %v2507_v63 = vld [vmem:[%s3491_s20 + $0x1a8] sm:$0xf0]  ;;  %1999 = vmatpush.bf16.msrb.mxu2 %v3253_v4 }
  0x3f   : > { %v2510_v3 = vor.u32 %v3123_v62, %v2507_v63  ;;  %2088 = vmatpush.bf16.msrb.mxu3 %v3261_v6 }
  0x41   : > { %1911 = vmatpush.bf16.msrb.mxu1 %v3244_v47  ;;  %v2657_v47 = vld [vmem:[%s3491_s20 + $0x2c0] sm:$0xf] }
  0x4b   : > { %1479 = vmatmul.bf16.gmra.mxu0 %v2370_v8  ;;  %v2529_v8 = vld [vmem:[%s3491_s20 + $0x1c0] sm:$0xf] }
  0x4c   : > { %1568 = vmatmul.bf16.gmra.mxu1 %v2374_v9  ;;  %v3134_v9 = vld [vmem:[%s3491_s20 + $0x1dc] sm:$0xf0] }
  0x4d   : > { %1657 = vmatmul.bf16.gmra.mxu2 %v2378_v10  ;;  %v3130_v10 = vld [vmem:[%s3491_s20 + $0x1c4] sm:$0xf]  ;;  %v2530_v16 = vor.u32 %v3134_v9, %v2529_v8 }
  0x4e   : > { %1746 = vmatmul.bf16.gmra.mxu3 %v2382_v11  ;;  %v2531_v11 = vld [vmem:[%s3491_s20 + $0x1e0] sm:$0xf0] }
  0x4f   : > { %v2534_v17 = vor.u32 %v3130_v10, %v2531_v11 }
  0x5b   : > { %1484 = vmatmul.bf16.gmra.mxu0 %v2402_v24  ;;  %v2563_v24 = vld [vmem:[%s3491_s20 + $0x220] sm:$0xf0] }
  0x5c   : > { %1573 = vmatmul.bf16.gmra.mxu1 %v2406_v25  ;;  %v2569_v25 = vld [vmem:[%s3491_s20 + $0x208] sm:$0xf]  ;;  %v2566_v30 = vor.u32 %v3138_v23, %v2563_v24  ;;  %v2626_v24 = vor.u32 %v3158_v14, %v2625_v13  ;;  %v2689_v13 = vld [vmem:[%s3491_s20 + $0x300] sm:$0xf] }
  0x5d   : > { %1662 = vmatmul.bf16.gmra.mxu2 %v2410_v26  ;;  %v3143_v26 = vld [vmem:[%s3491_s20 + $0x224] sm:$0xf0]  ;;  %v3174_v14 = vld [vmem:[%s3491_s20 + $0x31c] sm:$0xf0] }
  0x5e   : > { %1751 = vmatmul.bf16.gmra.mxu3 %v2414_v27  ;;  %v3139_v27 = vld [vmem:[%s3491_s20 + $0x20c] sm:$0xf]  ;;  %v2570_v33 = vor.u32 %v3143_v26, %v2569_v25 }
  0x5f   : > { %v2574_v34 = vor.u32 %v3139_v27, %v2571_v28 }
  0x6b   : > { %1489 = vmatmul.bf16.gmra.mxu0 %v2434_v36 }
  0x6c   : > { %1578 = vmatmul.bf16.gmra.mxu1 %v2438_v37  ;;  %v3252_v37 = vld [vmem:[%s4023_s1 + $0x190] sm:$0xff] }
  0x6d   : > { %1667 = vmatmul.bf16.gmra.mxu2 %v2442_v38  ;;  %v3236_v38 = vld [vmem:[%s4023_s1 + $0x110] sm:$0xff] }
  0x6e   : > { %1756 = vmatmul.bf16.gmra.mxu3 %v2446_v39  ;;  %v3260_v39 = vld [vmem:[%s4023_s1 + $0x1d0] sm:$0xff]  ;;  %2000 = vmatpush.bf16.msrb.mxu2 %v3252_v37 }
  0x6f   : > { %1822 = vmatpush.bf16.msrb.mxu0 %v3236_v38  ;;  %2089 = vmatpush.bf16.msrb.mxu3 %v3260_v39 }
  0x7b   : > { %1494 = vmatmul.bf16.gmra.mxu0 %v2466_v52  ;;  %v2595_v52 = vld [vmem:[%s3491_s20 + $0x260] sm:$0xf0] }
  0x7c   : > { %1583 = vmatmul.bf16.gmra.mxu1 %v2470_v53  ;;  %v2601_v53 = vld [vmem:[%s3491_s20 + $0x248] sm:$0xf]  ;;  %v2598_v60 = vor.u32 %v3146_v51, %v2595_v52 }
  0x7d   : > { %1672 = vmatmul.bf16.gmra.mxu2 %v2474_v54  ;;  %v3151_v54 = vld [vmem:[%s3491_s20 + $0x264] sm:$0xf0] }
  0x7e   : > { %1761 = vmatmul.bf16.gmra.mxu3 %v2478_v55  ;;  %v3147_v55 = vld [vmem:[%s3491_s20 + $0x24c] sm:$0xf]  ;;  %v2665_v51 = vld [vmem:[%s3491_s20 + $0x2c8] sm:$0xf] }
  0x7f   : > { %v3167_v52 = vld [vmem:[%s3491_s20 + $0x2e4] sm:$0xf0] }
  0x8b   : > { %1499 = vmatmul.bf16.gmra.mxu0 %v2498_v0  ;;  %v2602_v0 = vor.u32 %v3151_v54, %v2601_v53  ;;  %v3163_v53 = vld [vmem:[%s3491_s20 + $0x2cc] sm:$0xf] }
  0x8c   : > { %1588 = vmatmul.bf16.gmra.mxu1 %v2502_v1  ;;  %v2606_v1 = vor.u32 %v3147_v55, %v2603_v56  ;;  %v2667_v54 = vld [vmem:[%s3491_s20 + $0x2e8] sm:$0xf0] }
  0x8d   : > { %1677 = vmatmul.bf16.gmra.mxu2 %v2506_v2 }
  0x8e   : > { %1766 = vmatmul.bf16.gmra.mxu3 %v2510_v3 }
  0x9b   : > { %1504 = vmatmul.bf16.gmra.mxu0 %v2530_v16  ;;  %v2627_v16 = vld [vmem:[%s3491_s20 + $0x2a0] sm:$0xf0] }
  0x9c   : > { %1593 = vmatmul.bf16.gmra.mxu1 %v2534_v17  ;;  %v2633_v17 = vld [vmem:[%s3491_s20 + $0x288] sm:$0xf]  ;;  %v2630_v25 = vor.u32 %v3154_v15, %v2627_v16  ;;  %v3170_v15 = vld [vmem:[%s3491_s20 + $0x304] sm:$0xf] }
  0x9d   : > { %1682 = vmatmul.bf16.gmra.mxu2 %v2538_v18  ;;  %v3159_v18 = vld [vmem:[%s3491_s20 + $0x2a4] sm:$0xf0]  ;;  %v2691_v16 = vld [vmem:[%s3491_s20 + $0x320] sm:$0xf0] }
  0x9e   : > { %1771 = vmatmul.bf16.gmra.mxu3 %v2542_v19  ;;  %v3155_v19 = vld [vmem:[%s3491_s20 + $0x28c] sm:$0xf] }
  0xa8   : > { %v1470_v31 = vpop.f32.mrf.mxu0 }
  0xa9   : > { %v1559_v32 = vpop.f32.mrf.mxu1  ;;  %v1471_v35 = vadd.f32 %v3638_v20, %v1470_v31 }
  0xab   : > { %v1560_v36 = vadd.f32 %v1559_v32, %v1471_v35  ;;  %1509 = vmatmul.bf16.gmra.mxu0 %v2562_v29  ;;  %v2634_v29 = vor.u32 %v3159_v18, %v2633_v17  ;;  %v3235_v35 = vld [vmem:[%s4023_s1 + $0x108] sm:$0xff] }
  0xac   : > { %1598 = vmatmul.bf16.gmra.mxu1 %v2566_v30  ;;  %v2638_v30 = vor.u32 %v3155_v19, %v2635_v21  ;;  %1823 = vmatpush.bf16.msrb.mxu0 %v3235_v35  ;;  %v2697_v17 = vld [vmem:[%s3491_s20 + $0x308] sm:$0xf]  ;;  %v3171_v19 = vld [vmem:[%s3491_s20 + $0x30c] sm:$0xf]  ;;  %v3250_v35 = vld [vmem:[%s4023_s1 + $0x180] sm:$0xff] }
  0xad   : > { %1687 = vmatmul.bf16.gmra.mxu2 %v2570_v33  ;;  %v3175_v18 = vld [vmem:[%s3491_s20 + $0x324] sm:$0xf0]  ;;  %v2699_v21 = vld [vmem:[%s3491_s20 + $0x328] sm:$0xf0] }
  0xae   : > { %1776 = vmatmul.bf16.gmra.mxu3 %v2574_v34  ;;  %v3251_v34 = vld [vmem:[%s4023_s1 + $0x188] sm:$0xff] }
  0xaf   : > { %2001 = vmatpush.bf16.msrb.mxu2 %v3251_v34 }
  0xb0   : > { %v1648_v40 = vpop.f32.mrf.mxu2  ;;  %v1472_v43 = vpop.f32.mrf.mxu0 }
  0xb1   : > { %v1737_v41 = vpop.f32.mrf.mxu3  ;;  %v1649_v42 = vadd.f32 %v1648_v40, %v1560_v36  ;;  %v1561_v44 = vpop.f32.mrf.mxu1  ;;  %v1473_v45 = vadd.f32 %v3638_v20, %v1472_v43  ;;  %v3259_v36 = vld [vmem:[%s4023_s1 + $0x1c8] sm:$0xff] }
  0xb2   : > { %2090 = vmatpush.bf16.msrb.mxu3 %v3259_v36  ;;  %v3234_v36 = vld [vmem:[%s4023_s1 + $0x100] sm:$0xff] }
  0xb3   : > { %v3659_v46 = vadd.f32 %v1737_v41, %v1649_v42  ;;  %v1562_v48 = vadd.f32 %v1561_v44, %v1473_v45  ;;  %v3243_v44 = vld [vmem:[%s4023_s1 + $0x148] sm:$0xff]  ;;  %2002 = vmatpush.bf16.msrb.mxu2 %v3250_v35  ;;  %1824 = vmatpush.bf16.msrb.mxu0 %v3234_v36 }
  0xb4   : > { %1912 = vmatpush.bf16.msrb.mxu1 %v3243_v44 }
  0xb8   : > { %v1650_v57 = vpop.f32.mrf.mxu2  ;;  %v1475_v62 = vpop.f32.mrf.mxu0 }
  0xb9   : > { %v1739_v58 = vpop.f32.mrf.mxu3  ;;  %v1651_v61 = vadd.f32 %v1650_v57, %v1562_v48  ;;  %v1564_v63 = vpop.f32.mrf.mxu1  ;;  %v1476_v2 = vadd.f32 %v3638_v20, %v1475_v62  ;;  %v3166_v48 = vld [vmem:[%s3491_s20 + $0x2dc] sm:$0xf0]  ;;  %v2666_v62 = vor.u32 %v3167_v52, %v2665_v51  ;;  %v3178_v51 = vld [vmem:[%s3491_s20 + $0x344] sm:$0xf] }
  0xba   : > { %v2658_v57 = vor.u32 %v3166_v48, %v2657_v47  ;;  %v3242_v47 = vld [vmem:[%s4023_s1 + $0x140] sm:$0xff] }
  0xbb   : > { %v3673_v3 = vadd.f32 %v1739_v58, %v1651_v61  ;;  %v1565_v4 = vadd.f32 %v1564_v63, %v1476_v2  ;;  %1514 = vmatmul.bf16.gmra.mxu0 %v2594_v59  ;;  %v2662_v58 = vor.u32 %v3162_v49, %v2659_v50  ;;  %v2670_v63 = vor.u32 %v3163_v53, %v2667_v54  ;;  %v2721_v49 = vld [vmem:[%s3491_s20 + $0x340] sm:$0xf]  ;;  %v2723_v52 = vld [vmem:[%s3491_s20 + $0x360] sm:$0xf0]  ;;  %v2729_v53 = vld [vmem:[%s3491_s20 + $0x348] sm:$0xf] }
  0xbc   : > { %1603 = vmatmul.bf16.gmra.mxu1 %v2598_v60  ;;  %v3182_v50 = vld [vmem:[%s3491_s20 + $0x35c] sm:$0xf0]  ;;  %v3183_v54 = vld [vmem:[%s3491_s20 + $0x364] sm:$0xf0] }
  0xbd   : > { %1692 = vmatmul.bf16.gmra.mxu2 %v2602_v0  ;;  %1913 = vmatpush.bf16.msrb.mxu1 %v3242_v47 }
  0xbe   : > { %1781 = vmatmul.bf16.gmra.mxu3 %v2606_v1 }
  0xc0   : > { %v1653_v5 = vpop.f32.mrf.mxu2  ;;  %v1477_v8 = vpop.f32.mrf.mxu0 }
  0xc1   : > { %v1742_v6 = vpop.f32.mrf.mxu3  ;;  %v1654_v7 = vadd.f32 %v1653_v5, %v1565_v4  ;;  %v1566_v9 = vpop.f32.mrf.mxu1  ;;  %v1478_v10 = vadd.f32 %v3638_v20, %v1477_v8 }
  0xc3   : > { %v3676_v11 = vadd.f32 %v1742_v6, %v1654_v7  ;;  %v1567_v12 = vadd.f32 %v1566_v9, %v1478_v10 }
  0xc8   : > { %v1655_v22 = vpop.f32.mrf.mxu2  ;;  %v1480_v27 = vpop.f32.mrf.mxu0 }
  0xc9   : > { %v1744_v23 = vpop.f32.mrf.mxu3  ;;  %v1656_v26 = vadd.f32 %v1655_v22, %v1567_v12  ;;  %v1569_v28 = vpop.f32.mrf.mxu1  ;;  %v1481_v31 = vadd.f32 %v3638_v20, %v1480_v27 }
  0xcb   : > { %v3687_v32 = vadd.f32 %v1744_v23, %v1656_v26  ;;  %v1570_v33 = vadd.f32 %v1569_v28, %v1481_v31  ;;  %1519 = vmatmul.bf16.gmra.mxu0 %v2626_v24  ;;  %v2690_v24 = vor.u32 %v3174_v14, %v2689_v13 }
  0xcc   : > { %1608 = vmatmul.bf16.gmra.mxu1 %v2630_v25  ;;  %v2694_v25 = vor.u32 %v3170_v15, %v2691_v16 }
  0xcd   : > { %1697 = vmatmul.bf16.gmra.mxu2 %v2634_v29  ;;  %v2698_v29 = vor.u32 %v3175_v18, %v2697_v17  ;;  %v2753_v17 = vld [vmem:[%s3491_s20 + $0x380] sm:$0xf] }
  0xce   : > { %1786 = vmatmul.bf16.gmra.mxu3 %v2638_v30  ;;  %v2702_v30 = vor.u32 %v3171_v19, %v2699_v21  ;;  %v3190_v18 = vld [vmem:[%s3491_s20 + $0x39c] sm:$0xf0]  ;;  %v3186_v19 = vld [vmem:[%s3491_s20 + $0x384] sm:$0xf] }
  0xcf   : > { %v2755_v21 = vld [vmem:[%s3491_s20 + $0x3a0] sm:$0xf0] }
  0xd0   : > { %v1658_v37 = vpop.f32.mrf.mxu2  ;;  %v1482_v40 = vpop.f32.mrf.mxu0 }
  0xd1   : > { %v1747_v38 = vpop.f32.mrf.mxu3  ;;  %v1659_v39 = vadd.f32 %v1658_v37, %v1570_v33  ;;  %v1571_v41 = vpop.f32.mrf.mxu1  ;;  %v1483_v42 = vadd.f32 %v3638_v20, %v1482_v40  ;;  %v3258_v37 = vld [vmem:[%s4023_s1 + $0x1c0] sm:$0xff] }
  0xd2   : > { %2091 = vmatpush.bf16.msrb.mxu3 %v3258_v37 }
  0xd3   : > { %v3699_v43 = vadd.f32 %v1747_v38, %v1659_v39  ;;  %v1572_v45 = vadd.f32 %v1571_v41, %v1483_v42 }
  0xd8   : > { %v1660_v55 = vpop.f32.mrf.mxu2  ;;  %v1485_v60 = vpop.f32.mrf.mxu0 }
  0xd9   : > { %v1749_v56 = vpop.f32.mrf.mxu3  ;;  %v1661_v59 = vadd.f32 %v1660_v55, %v1572_v45  ;;  %v1574_v61 = vpop.f32.mrf.mxu1  ;;  %v1486_v0 = vadd.f32 %v3638_v20, %v1485_v60  ;;  %v3179_v55 = vld [vmem:[%s3491_s20 + $0x34c] sm:$0xf]  ;;  %v2726_v60 = vor.u32 %v3178_v51, %v2723_v52  ;;  %v2785_v51 = vld [vmem:[%s3491_s20 + $0x3c0] sm:$0xf] }
  0xda   : > { %v3198_v52 = vld [vmem:[%s3491_s20 + $0x3dc] sm:$0xf0] }
  0xdb   : > { %v3713_v1 = vadd.f32 %v1749_v56, %v1661_v59  ;;  %v1575_v2 = vadd.f32 %v1574_v61, %v1486_v0  ;;  %1524 = vmatmul.bf16.gmra.mxu0 %v2658_v57  ;;  %v2731_v56 = vld [vmem:[%s3491_s20 + $0x368] sm:$0xf0]  ;;  %v2722_v59 = vor.u32 %v3182_v50, %v2721_v49  ;;  %v2730_v0 = vor.u32 %v3183_v54, %v2729_v53  ;;  %v3194_v53 = vld [vmem:[%s3491_s20 + $0x3c4] sm:$0xf] }
  0xdc   : > { %1613 = vmatmul.bf16.gmra.mxu1 %v2662_v58  ;;  %v2787_v54 = vld [vmem:[%s3491_s20 + $0x3e0] sm:$0xf0] }
  0xdd   : > { %1702 = vmatmul.bf16.gmra.mxu2 %v2666_v62 }
  0xde   : > { %1791 = vmatmul.bf16.gmra.mxu3 %v2670_v63 }
  0xe0   : > { %v1663_v4 = vpop.f32.mrf.mxu2  ;;  %v1487_v7 = vpop.f32.mrf.mxu0 }
  0xe1   : > { %v1752_v5 = vpop.f32.mrf.mxu3  ;;  %v1664_v6 = vadd.f32 %v1663_v4, %v1575_v2  ;;  %v1576_v8 = vpop.f32.mrf.mxu1  ;;  %v1488_v9 = vadd.f32 %v3638_v20, %v1487_v7  ;;  %v2734_v2 = vor.u32 %v3179_v55, %v2731_v56  ;;  %v2793_v55 = vld [vmem:[%s3491_s20 + $0x3c8] sm:$0xf] }
  0xe2   : > { %v3199_v56 = vld [vmem:[%s3491_s20 + $0x3e4] sm:$0xf0] }
  0xe3   : > { %v3716_v10 = vadd.f32 %v1752_v5, %v1664_v6  ;;  %v1577_v12 = vadd.f32 %v1576_v8, %v1488_v9 }
  0xe8   : > { %v1665_v22 = vpop.f32.mrf.mxu2  ;;  %v1490_v27 = vpop.f32.mrf.mxu0 }
  0xe9   : > { %v1754_v23 = vpop.f32.mrf.mxu3  ;;  %v1666_v26 = vadd.f32 %v1665_v22, %v1577_v12  ;;  %v1579_v28 = vpop.f32.mrf.mxu1  ;;  %v1491_v31 = vadd.f32 %v3638_v20, %v1490_v27  ;;  %v2761_v22 = vld [vmem:[%s3491_s20 + $0x388] sm:$0xf] }
  0xeb   : > { %v3727_v33 = vadd.f32 %v1754_v23, %v1666_v26  ;;  %v1580_v34 = vadd.f32 %v1579_v28, %v1491_v31  ;;  %1529 = vmatmul.bf16.gmra.mxu0 %v2690_v24  ;;  %v3191_v23 = vld [vmem:[%s3491_s20 + $0x3a4] sm:$0xf0]  ;;  %v3187_v24 = vld [vmem:[%s3491_s20 + $0x38c] sm:$0xf]  ;;  %v2754_v28 = vor.u32 %v3190_v18, %v2753_v17 }
  0xec   : > { %1618 = vmatmul.bf16.gmra.mxu1 %v2694_v25  ;;  %v2763_v25 = vld [vmem:[%s3491_s20 + $0x3a8] sm:$0xf0]  ;;  %v2762_v35 = vor.u32 %v3191_v23, %v2761_v22  ;;  %v2321_v22 = vld [vmem:[%s3491_s20 + $0x10] sm:$0xf] }
  0xed   : > { %1707 = vmatmul.bf16.gmra.mxu2 %v2698_v29  ;;  %v2758_v29 = vor.u32 %v3186_v19, %v2755_v21  ;;  %v2766_v36 = vor.u32 %v3187_v24, %v2763_v25  ;;  %v3080_v23 = vld [vmem:[%s3491_s20 + $0x2c] sm:$0xf0]  ;;  %v3076_v24 = vld [vmem:[%s3491_s20 + $0x14] sm:$0xf] }
  0xee   : > { %1796 = vmatmul.bf16.gmra.mxu3 %v2702_v30  ;;  %v2323_v25 = vld [vmem:[%s3491_s20 + $0x30] sm:$0xf0] }
  0xf0   : > { %v1668_v38 = vpop.f32.mrf.mxu2  ;;  %v1492_v41 = vpop.f32.mrf.mxu0 }
  0xf1   : > { %v1757_v39 = vpop.f32.mrf.mxu3  ;;  %v1669_v40 = vadd.f32 %v1668_v38, %v1580_v34  ;;  %v1581_v42 = vpop.f32.mrf.mxu1  ;;  %v1493_v44 = vadd.f32 %v3638_v20, %v1492_v41 }
  0xf3   : > { %v3739_v45 = vadd.f32 %v1757_v39, %v1669_v40  ;;  %v1582_v48 = vadd.f32 %v1581_v42, %v1493_v44 }
  0xf8   : > { %v1670_v57 = vpop.f32.mrf.mxu2  ;;  %v1495_v62 = vpop.f32.mrf.mxu0 }
  0xf9   : > { %v1759_v58 = vpop.f32.mrf.mxu3  ;;  %v1671_v61 = vadd.f32 %v1670_v57, %v1582_v48  ;;  %v1584_v63 = vpop.f32.mrf.mxu1  ;;  %v1496_v4 = vadd.f32 %v3638_v20, %v1495_v62  ;;  %v3195_v57 = vld [vmem:[%s3491_s20 + $0x3cc] sm:$0xf]  ;;  %v2790_v62 = vor.u32 %v3194_v53, %v2787_v54 }
  0xfb   : > { %v3753_v5 = vadd.f32 %v1759_v58, %v1671_v61  ;;  %v1585_v6 = vadd.f32 %v1584_v63, %v1496_v4  ;;  %1534 = vmatmul.bf16.gmra.mxu0 %v2722_v59  ;;  %v2795_v58 = vld [vmem:[%s3491_s20 + $0x3e8] sm:$0xf0]  ;;  %v2786_v61 = vor.u32 %v3198_v52, %v2785_v51  ;;  %v2794_v4 = vor.u32 %v3199_v56, %v2793_v55 }
  0xfc   : > { %1623 = vmatmul.bf16.gmra.mxu1 %v2726_v60 }
  0xfd   : > { %1712 = vmatmul.bf16.gmra.mxu2 %v2730_v0 }
  0xfe   : > { %1801 = vmatmul.bf16.gmra.mxu3 %v2734_v2 }
 0x100   : > { %v1673_v7 = vpop.f32.mrf.mxu2  ;;  %v1497_v12 = vpop.f32.mrf.mxu0 }
 0x101   : > { %v1762_v8 = vpop.f32.mrf.mxu3  ;;  %v1674_v9 = vadd.f32 %v1673_v7, %v1585_v6  ;;  %v1586_v13 = vpop.f32.mrf.mxu1  ;;  %v1498_v14 = vadd.f32 %v3638_v20, %v1497_v12  ;;  %v2798_v6 = vor.u32 %v3195_v57, %v2795_v58  ;;  %v2353_v57 = vld [vmem:[%s3491_s20 + $0x50] sm:$0xf] }
 0x102   : > { %v3088_v58 = vld [vmem:[%s3491_s20 + $0x6c] sm:$0xf0] }
 0x103   : > { %v3756_v15 = vadd.f32 %v1762_v8, %v1674_v9  ;;  %v1587_v16 = vadd.f32 %v1586_v13, %v1498_v14 }
 0x108   : > { %v1675_v26 = vpop.f32.mrf.mxu2  ;;  %v1500_v31 = vpop.f32.mrf.mxu0 }
 0x109   : > { %v1764_v27 = vpop.f32.mrf.mxu3  ;;  %v1676_v30 = vadd.f32 %v1675_v26, %v1587_v16  ;;  %v1589_v34 = vpop.f32.mrf.mxu1  ;;  %v1501_v37 = vadd.f32 %v3638_v20, %v1500_v31  ;;  %v2329_v26 = vld [vmem:[%s3491_s20 + $0x18] sm:$0xf] }
 0x10b   : > { %v3767_v38 = vadd.f32 %v1764_v27, %v1676_v30  ;;  %v1590_v39 = vadd.f32 %v1589_v34, %v1501_v37  ;;  %1539 = vmatmul.bf16.gmra.mxu0 %v2754_v28  ;;  %v3081_v27 = vld [vmem:[%s3491_s20 + $0x34] sm:$0xf0]  ;;  %v3077_v28 = vld [vmem:[%s3491_s20 + $0x1c] sm:$0xf]  ;;  %v2322_v34 = vor.u32 %v3080_v23, %v2321_v22 }
 0x10c   : > { %1628 = vmatmul.bf16.gmra.mxu1 %v2758_v29  ;;  %v2331_v29 = vld [vmem:[%s3491_s20 + $0x38] sm:$0xf0] }
 0x10d   : > { %1717 = vmatmul.bf16.gmra.mxu2 %v2762_v35  ;;  %v2326_v35 = vor.u32 %v3076_v24, %v2323_v25 }
 0x10e   : > { %1806 = vmatmul.bf16.gmra.mxu3 %v2766_v36 }
 0x110   : > { %v1678_v40 = vpop.f32.mrf.mxu2  ;;  %v1502_v44 = vpop.f32.mrf.mxu0 }
 0x111   : > { %v1767_v41 = vpop.f32.mrf.mxu3  ;;  %v1679_v42 = vadd.f32 %v1678_v40, %v1590_v39  ;;  %v1591_v47 = vpop.f32.mrf.mxu1  ;;  %v1503_v48 = vadd.f32 %v3638_v20, %v1502_v44  ;;  %v2330_v40 = vor.u32 %v3081_v27, %v2329_v26 }
 0x113   : > { %v3770_v49 = vadd.f32 %v1767_v41, %v1679_v42  ;;  %v1592_v50 = vadd.f32 %v1591_v47, %v1503_v48  ;;  %v2334_v41 = vor.u32 %v3077_v28, %v2331_v29 }
 0x118   : > { %v1680_v59 = vpop.f32.mrf.mxu2  ;;  %v1505_v0 = vpop.f32.mrf.mxu0 }
 0x119   : > { %v1769_v60 = vpop.f32.mrf.mxu3  ;;  %v1681_v63 = vadd.f32 %v1680_v59, %v1592_v50  ;;  %v1594_v2 = vpop.f32.mrf.mxu1  ;;  %v1506_v7 = vadd.f32 %v3638_v20, %v1505_v0  ;;  %v3084_v59 = vld [vmem:[%s3491_s20 + $0x54] sm:$0xf]  ;;  %v2363_v0 = vld [vmem:[%s3491_s20 + $0x78] sm:$0xf0] }
 0x11b   : > { %v3781_v8 = vadd.f32 %v1769_v60, %v1681_v63  ;;  %v1595_v9 = vadd.f32 %v1594_v2, %v1506_v7  ;;  %1544 = vmatmul.bf16.gmra.mxu0 %v2786_v61  ;;  %v2355_v60 = vld [vmem:[%s3491_s20 + $0x70] sm:$0xf0]  ;;  %v2361_v61 = vld [vmem:[%s3491_s20 + $0x58] sm:$0xf]  ;;  %v3085_v63 = vld [vmem:[%s3491_s20 + $0x5c] sm:$0xf] }
 0x11c   : > { %1633 = vmatmul.bf16.gmra.mxu1 %v2790_v62  ;;  %v3089_v62 = vld [vmem:[%s3491_s20 + $0x74] sm:$0xf0]  ;;  %v2358_v7 = vor.u32 %v3084_v59, %v2355_v60 }
 0x11d   : > { %1722 = vmatmul.bf16.gmra.mxu2 %v2794_v4 }
 0x11e   : > { %1811 = vmatmul.bf16.gmra.mxu3 %v2798_v6  ;;  %v2354_v6 = vor.u32 %v3088_v58, %v2353_v57 }
 0x120   : > { %v1683_v12 = vpop.f32.mrf.mxu2  ;;  %v1507_v16 = vpop.f32.mrf.mxu0 }
 0x121   : > { %v1772_v13 = vpop.f32.mrf.mxu3  ;;  %v1684_v14 = vadd.f32 %v1683_v12, %v1595_v9  ;;  %v1596_v17 = vpop.f32.mrf.mxu1  ;;  %v1508_v18 = vadd.f32 %v3638_v20, %v1507_v16  ;;  %v2366_v16 = vor.u32 %v3085_v63, %v2363_v0 }
 0x123   : > { %v3784_v19 = vadd.f32 %v1772_v13, %v1684_v14  ;;  %v1597_v21 = vadd.f32 %v1596_v17, %v1508_v18  ;;  %v2362_v14 = vor.u32 %v3089_v62, %v2361_v61 }
 0x128   : > { %v1685_v30 = vpop.f32.mrf.mxu2  ;;  %v1510_v37 = vpop.f32.mrf.mxu0 }
 0x129   : > { %v1774_v31 = vpop.f32.mrf.mxu3  ;;  %v1686_v36 = vadd.f32 %v1685_v30, %v1597_v21  ;;  %v1599_v39 = vpop.f32.mrf.mxu1  ;;  %v1511_v42 = vadd.f32 %v3638_v20, %v1510_v37  ;;  %v2385_v30 = vld [vmem:[%s3491_s20 + $0x90] sm:$0xf]  ;;  %v3097_v37 = vld [vmem:[%s3491_s20 + $0xb4] sm:$0xf0] }
 0x12b   : > { %v3795_v44 = vadd.f32 %v1774_v31, %v1686_v36  ;;  %v1600_v47 = vadd.f32 %v1599_v39, %v1511_v42  ;;  %1825 = vmatmul.bf16.vlgmr.msrb.gmra.mxu0 %v2322_v34  ;;  %v3096_v31 = vld [vmem:[%s3491_s20 + $0xac] sm:$0xf0]  ;;  %v3092_v34 = vld [vmem:[%s3491_s20 + $0x94] sm:$0xf]  ;;  %v2393_v36 = vld [vmem:[%s3491_s20 + $0x98] sm:$0xf] }
 0x12c   : > { %1914 = vmatmul.bf16.vlgmr.msrb.gmra.mxu1 %v2326_v35  ;;  %v2387_v35 = vld [vmem:[%s3491_s20 + $0xb0] sm:$0xf0]  ;;  %v3093_v39 = vld [vmem:[%s3491_s20 + $0x9c] sm:$0xf] }
 0x12d   : > { %2003 = vmatmul.bf16.vlgmr.msrb.gmra.mxu2 %v2330_v40  ;;  %v2395_v40 = vld [vmem:[%s3491_s20 + $0xb8] sm:$0xf0] }
 0x12e   : > { %2092 = vmatmul.bf16.vlgmr.msrb.gmra.mxu3 %v2334_v41 }
 0x130   : > { %v1688_v48 = vpop.f32.mrf.mxu2  ;;  %v1512_v52 = vpop.f32.mrf.mxu0 }
 0x131   : > { %v1777_v50 = vpop.f32.mrf.mxu3  ;;  %v1689_v51 = vadd.f32 %v1688_v48, %v1600_v47  ;;  %v1601_v53 = vpop.f32.mrf.mxu1  ;;  %v1513_v54 = vadd.f32 %v3638_v20, %v1512_v52  ;;  %v2386_v47 = vor.u32 %v3096_v31, %v2385_v30  ;;  %v2390_v48 = vor.u32 %v3092_v34, %v2387_v35 }
 0x133   : > { %v3798_v55 = vadd.f32 %v1777_v50, %v1689_v51  ;;  %v1602_v56 = vadd.f32 %v1601_v53, %v1513_v54  ;;  %v2394_v53 = vor.u32 %v3097_v37, %v2393_v36  ;;  %v2398_v54 = vor.u32 %v3093_v39, %v2395_v40 }
 0x138   : > { %v1690_v2 = vpop.f32.mrf.mxu2  ;;  %v1515_v12 = vpop.f32.mrf.mxu0 }
 0x139   : > { %v1779_v4 = vpop.f32.mrf.mxu3  ;;  %v1691_v9 = vadd.f32 %v1690_v2, %v1602_v56  ;;  %v1604_v13 = vpop.f32.mrf.mxu1  ;;  %v1516_v17 = vadd.f32 %v3638_v20, %v1515_v12  ;;  %v2419_v12 = vld [vmem:[%s3491_s20 + $0xf0] sm:$0xf0] }
 0x13b   : > { %v3809_v18 = vadd.f32 %v1779_v4, %v1691_v9  ;;  %v1605_v21 = vadd.f32 %v1604_v13, %v1516_v17  ;;  %1830 = vmatmul.bf16.gmra.mxu0 %v2354_v6  ;;  %v2417_v6 = vld [vmem:[%s3491_s20 + $0xd0] sm:$0xf]  ;;  %v3100_v9 = vld [vmem:[%s3491_s20 + $0xd4] sm:$0xf]  ;;  %v2425_v13 = vld [vmem:[%s3491_s20 + $0xd8] sm:$0xf] }
 0x13c   : > { %1919 = vmatmul.bf16.gmra.mxu1 %v2358_v7  ;;  %v3104_v7 = vld [vmem:[%s3491_s20 + $0xec] sm:$0xf0]  ;;  %v2427_v17 = vld [vmem:[%s3491_s20 + $0xf8] sm:$0xf0] }
 0x13d   : > { %2008 = vmatmul.bf16.gmra.mxu2 %v2362_v14  ;;  %v3105_v14 = vld [vmem:[%s3491_s20 + $0xf4] sm:$0xf0] }
 0x13e   : > { %2097 = vmatmul.bf16.gmra.mxu3 %v2366_v16  ;;  %v3101_v16 = vld [vmem:[%s3491_s20 + $0xdc] sm:$0xf] }
 0x13f   : > { %v2430_v30 = vor.u32 %v3101_v16, %v2427_v17 }
 0x140   : > { %v1693_v22 = vpop.f32.mrf.mxu2  ;;  %v1517_v25 = vpop.f32.mrf.mxu0 }
 0x141   : > { %v1782_v23 = vpop.f32.mrf.mxu3  ;;  %v1694_v24 = vadd.f32 %v1693_v22, %v1605_v21  ;;  %v1606_v26 = vpop.f32.mrf.mxu1  ;;  %v1518_v27 = vadd.f32 %v3638_v20, %v1517_v25 }
 0x143   : > { %v3812_v28 = vadd.f32 %v1782_v23, %v1694_v24  ;;  %v1607_v29 = vadd.f32 %v1606_v26, %v1518_v27  ;;  %v2418_v23 = vor.u32 %v3104_v7, %v2417_v6  ;;  %v2422_v24 = vor.u32 %v3100_v9, %v2419_v12 }
 0x148   : > { %v1695_v41 = vpop.f32.mrf.mxu2  ;;  %v1520_v51 = vpop.f32.mrf.mxu0 }
 0x149   : > { %v1784_v42 = vpop.f32.mrf.mxu3  ;;  %v1696_v50 = vadd.f32 %v1695_v41, %v1607_v29  ;;  %v1609_v52 = vpop.f32.mrf.mxu1  ;;  %v1521_v56 = vadd.f32 %v3638_v20, %v1520_v51  ;;  %v2426_v29 = vor.u32 %v3105_v14, %v2425_v13  ;;  %v3112_v51 = vld [vmem:[%s3491_s20 + $0x12c] sm:$0xf0] }
 0x14b   : > { %v3823_v57 = vadd.f32 %v1784_v42, %v1696_v50  ;;  %v1610_v58 = vadd.f32 %v1609_v52, %v1521_v56  ;;  %1835 = vmatmul.bf16.gmra.mxu0 %v2386_v47  ;;  %v2449_v50 = vld [vmem:[%s3491_s20 + $0x110] sm:$0xf]  ;;  %v3108_v52 = vld [vmem:[%s3491_s20 + $0x114] sm:$0xf]  ;;  %v3113_v56 = vld [vmem:[%s3491_s20 + $0x134] sm:$0xf0] }
 0x14c   : > { %1924 = vmatmul.bf16.gmra.mxu1 %v2390_v48 }
 0x14d   : > { %2013 = vmatmul.bf16.gmra.mxu2 %v2394_v53  ;;  %v2451_v53 = vld [vmem:[%s3491_s20 + $0x130] sm:$0xf0] }
 0x14e   : > { %2102 = vmatmul.bf16.gmra.mxu3 %v2398_v54  ;;  %v2457_v54 = vld [vmem:[%s3491_s20 + $0x118] sm:$0xf] }
 0x14f   : > { %v2458_v7 = vor.u32 %v3113_v56, %v2457_v54 }
 0x150   : > { %v1698_v59 = vpop.f32.mrf.mxu2  ;;  %v1522_v62 = vpop.f32.mrf.mxu0 }
 0x151   : > { %v1787_v60 = vpop.f32.mrf.mxu3  ;;  %v1699_v61 = vadd.f32 %v1698_v59, %v1610_v58  ;;  %v1611_v63 = vpop.f32.mrf.mxu1  ;;  %v1523_v0 = vadd.f32 %v3638_v20, %v1522_v62  ;;  %v3109_v58 = vld [vmem:[%s3491_s20 + $0x11c] sm:$0xf]  ;;  %v2450_v62 = vor.u32 %v3112_v51, %v2449_v50 }
 0x152   : > { %v2459_v59 = vld [vmem:[%s3491_s20 + $0x138] sm:$0xf0] }
 0x153   : > { %v3826_v2 = vadd.f32 %v1787_v60, %v1699_v61  ;;  %v1612_v4 = vadd.f32 %v1611_v63, %v1523_v0  ;;  %v2454_v63 = vor.u32 %v3108_v52, %v2451_v53  ;;  %v2462_v9 = vor.u32 %v3109_v58, %v2459_v59 }
 0x158   : > { %v1700_v21 = vpop.f32.mrf.mxu2  ;;  %v1525_v26 = vpop.f32.mrf.mxu0 }
 0x159   : > { %v1789_v22 = vpop.f32.mrf.mxu3  ;;  %v1701_v25 = vadd.f32 %v1700_v21, %v1612_v4  ;;  %v1614_v27 = vpop.f32.mrf.mxu1  ;;  %v1526_v31 = vadd.f32 %v3638_v20, %v1525_v26 }
 0x15b   : > { %v3837_v34 = vadd.f32 %v1789_v22, %v1701_v25  ;;  %v1615_v35 = vadd.f32 %v1614_v27, %v1526_v31  ;;  %1840 = vmatmul.bf16.gmra.mxu0 %v2418_v23  ;;  %v2481_v27 = vld [vmem:[%s3491_s20 + $0x150] sm:$0xf]  ;;  %v2483_v31 = vld [vmem:[%s3491_s20 + $0x170] sm:$0xf0] }
 0x15c   : > { %1929 = vmatmul.bf16.gmra.mxu1 %v2422_v24 }
 0x15d   : > { %2018 = vmatmul.bf16.gmra.mxu2 %v2426_v29  ;;  %v3120_v29 = vld [vmem:[%s3491_s20 + $0x16c] sm:$0xf0] }
 0x15e   : > { %2107 = vmatmul.bf16.gmra.mxu3 %v2430_v30  ;;  %v3116_v30 = vld [vmem:[%s3491_s20 + $0x154] sm:$0xf] }
 0x160   : > { %v1703_v36 = vpop.f32.mrf.mxu2  ;;  %v1527_v40 = vpop.f32.mrf.mxu0 }
 0x161   : > { %v1792_v37 = vpop.f32.mrf.mxu3  ;;  %v1704_v39 = vadd.f32 %v1703_v36, %v1615_v35  ;;  %v1616_v41 = vpop.f32.mrf.mxu1  ;;  %v1528_v42 = vadd.f32 %v3638_v20, %v1527_v40  ;;  %v2489_v35 = vld [vmem:[%s3491_s20 + $0x158] sm:$0xf] }
 0x162   : > { %v3121_v36 = vld [vmem:[%s3491_s20 + $0x174] sm:$0xf0] }
 0x163   : > { %v3840_v47 = vadd.f32 %v1792_v37, %v1704_v39  ;;  %v1617_v48 = vadd.f32 %v1616_v41, %v1528_v42  ;;  %v3117_v37 = vld [vmem:[%s3491_s20 + $0x15c] sm:$0xf]  ;;  %v2482_v42 = vor.u32 %v3120_v29, %v2481_v27  ;;  %v2490_v53 = vor.u32 %v3121_v36, %v2489_v35 }
 0x164   : > { %v2491_v39 = vld [vmem:[%s3491_s20 + $0x178] sm:$0xf0] }
 0x165   : > { %v2494_v54 = vor.u32 %v3117_v37, %v2491_v39 }
 0x168   : > { %v1705_v60 = vpop.f32.mrf.mxu2  ;;  %v1530_v4 = vpop.f32.mrf.mxu0 }
 0x169   : > { %v1794_v61 = vpop.f32.mrf.mxu3  ;;  %v1706_v0 = vadd.f32 %v1705_v60, %v1617_v48  ;;  %v1619_v6 = vpop.f32.mrf.mxu1  ;;  %v1531_v12 = vadd.f32 %v3638_v20, %v1530_v4  ;;  %v2486_v48 = vor.u32 %v3116_v30, %v2483_v31 }
 0x16b   : > { %v3851_v13 = vadd.f32 %v1794_v61, %v1706_v0  ;;  %v1620_v14 = vadd.f32 %v1619_v6, %v1531_v12  ;;  %1845 = vmatmul.bf16.gmra.mxu0 %v2450_v62  ;;  %v3128_v12 = vld [vmem:[%s3491_s20 + $0x1ac] sm:$0xf0] }
 0x16c   : > { %1934 = vmatmul.bf16.gmra.mxu1 %v2454_v63 }
 0x16d   : > { %2023 = vmatmul.bf16.gmra.mxu2 %v2458_v7 }
 0x16e   : > { %2112 = vmatmul.bf16.gmra.mxu3 %v2462_v9  ;;  %v2513_v9 = vld [vmem:[%s3491_s20 + $0x190] sm:$0xf] }
 0x16f   : > { %v2514_v27 = vor.u32 %v3128_v12, %v2513_v9 }
 0x170   : > { %v1708_v16 = vpop.f32.mrf.mxu2  ;;  %v1532_v22 = vpop.f32.mrf.mxu0 }
 0x171   : > { %v1797_v17 = vpop.f32.mrf.mxu3  ;;  %v1709_v21 = vadd.f32 %v1708_v16, %v1620_v14  ;;  %v1621_v23 = vpop.f32.mrf.mxu1  ;;  %v1533_v24 = vadd.f32 %v3638_v20, %v1532_v22  ;;  %v3124_v14 = vld [vmem:[%s3491_s20 + $0x194] sm:$0xf]  ;;  %v3125_v22 = vld [vmem:[%s3491_s20 + $0x19c] sm:$0xf] }
 0x172   : > { %v2515_v16 = vld [vmem:[%s3491_s20 + $0x1b0] sm:$0xf0] }
 0x173   : > { %v3854_v25 = vadd.f32 %v1797_v17, %v1709_v21  ;;  %v1622_v26 = vadd.f32 %v1621_v23, %v1533_v24  ;;  %v2521_v17 = vld [vmem:[%s3491_s20 + $0x198] sm:$0xf]  ;;  %v2523_v23 = vld [vmem:[%s3491_s20 + $0x1b8] sm:$0xf0]  ;;  %v2518_v29 = vor.u32 %v3124_v14, %v2515_v16 }
 0x174   : > { %v3129_v21 = vld [vmem:[%s3491_s20 + $0x1b4] sm:$0xf0]  ;;  %v2526_v37 = vor.u32 %v3125_v22, %v2523_v23 }
 0x175   : > { %v2522_v36 = vor.u32 %v3129_v21, %v2521_v17 }
 0x178   : > { %v1710_v40 = vpop.f32.mrf.mxu2  ;;  %v1535_v51 = vpop.f32.mrf.mxu0 }
 0x179   : > { %v1799_v41 = vpop.f32.mrf.mxu3  ;;  %v1711_v50 = vadd.f32 %v1710_v40, %v1622_v26  ;;  %v1624_v52 = vpop.f32.mrf.mxu1  ;;  %v1536_v56 = vadd.f32 %v3638_v20, %v1535_v51 }
 0x17b   : > { %v3865_v58 = vadd.f32 %v1799_v41, %v1711_v50  ;;  %v1625_v59 = vadd.f32 %v1624_v52, %v1536_v56  ;;  %1850 = vmatmul.bf16.gmra.mxu0 %v2482_v42 }
 0x17c   : > { %1939 = vmatmul.bf16.gmra.mxu1 %v2486_v48 }
 0x17d   : > { %2028 = vmatmul.bf16.gmra.mxu2 %v2490_v53 }
 0x17e   : > { %2117 = vmatmul.bf16.gmra.mxu3 %v2494_v54 }
 0x180   : > { %v1713_v60 = vpop.f32.mrf.mxu2  ;;  %v1537_v63 = vpop.f32.mrf.mxu0 }
 0x181   : > { %v1802_v61 = vpop.f32.mrf.mxu3  ;;  %v1714_v62 = vadd.f32 %v1713_v60, %v1625_v59  ;;  %v1626_v0 = vpop.f32.mrf.mxu1  ;;  %v1538_v4 = vadd.f32 %v3638_v20, %v1537_v63  ;;  %v2545_v59 = vld [vmem:[%s3491_s20 + $0x1d0] sm:$0xf]  ;;  %v2553_v63 = vld [vmem:[%s3491_s20 + $0x1d8] sm:$0xf] }
 0x182   : > { %v3136_v60 = vld [vmem:[%s3491_s20 + $0x1ec] sm:$0xf0] }
 0x183   : > { %v3868_v6 = vadd.f32 %v1802_v61, %v1714_v62  ;;  %v1627_v7 = vadd.f32 %v1626_v0, %v1538_v4  ;;  %v3132_v61 = vld [vmem:[%s3491_s20 + $0x1d4] sm:$0xf]  ;;  %v3137_v0 = vld [vmem:[%s3491_s20 + $0x1f4] sm:$0xf0]  ;;  %v3133_v4 = vld [vmem:[%s3491_s20 + $0x1dc] sm:$0xf]  ;;  %v2546_v14 = vor.u32 %v3136_v60, %v2545_v59 }
 0x184   : > { %v2547_v62 = vld [vmem:[%s3491_s20 + $0x1f0] sm:$0xf0]  ;;  %v2554_v23 = vor.u32 %v3137_v0, %v2553_v63  ;;  %v3141_v59 = vld [vmem:[%s3491_s20 + $0x21c] sm:$0xf] }
 0x185   : > { %v2550_v16 = vor.u32 %v3132_v61, %v2547_v62  ;;  %v2587_v60 = vld [vmem:[%s3491_s20 + $0x238] sm:$0xf0] }
 0x188   : > { %v1715_v24 = vpop.f32.mrf.mxu2  ;;  %v1540_v31 = vpop.f32.mrf.mxu0 }
 0x189   : > { %v1804_v26 = vpop.f32.mrf.mxu3  ;;  %v1716_v30 = vadd.f32 %v1715_v24, %v1627_v7  ;;  %v1629_v35 = vpop.f32.mrf.mxu1  ;;  %v1541_v39 = vadd.f32 %v3638_v20, %v1540_v31  ;;  %v2555_v7 = vld [vmem:[%s3491_s20 + $0x1f8] sm:$0xf0]  ;;  %v3370_v24 = vld [vmem:[%s4024_s2] ss:$0 sm:$0xff] }
 0x18b   : > { %v3879_v40 = vadd.f32 %v1804_v26, %v1716_v30  ;;  %v1630_v41 = vadd.f32 %v1629_v35, %v1541_v39  ;;  %1855 = vmatmul.bf16.gmra.mxu0 %v2514_v27 }
 0x18c   : > { %1944 = vmatmul.bf16.gmra.mxu1 %v2518_v29 }
 0x18d   : > { %2033 = vmatmul.bf16.gmra.mxu2 %v2522_v36 }
 0x18e   : > { %2122 = vmatmul.bf16.gmra.mxu3 %v2526_v37 }
 0x190   : > { %v1718_v42 = vpop.f32.mrf.mxu2  ;;  %v1542_v51 = vpop.f32.mrf.mxu0 }
 0x191   : > { %v1807_v48 = vpop.f32.mrf.mxu3  ;;  %v1719_v50 = vadd.f32 %v1718_v42, %v1630_v41  ;;  %v1631_v52 = vpop.f32.mrf.mxu1  ;;  %v1543_v53 = vadd.f32 %v3638_v20, %v1542_v51  ;;  %v2558_v20 = vor.u32 %v3133_v4, %v2555_v7  ;;  %v3140_v51 = vld [vmem:[%s3491_s20 + $0x214] sm:$0xf] }
 0x193   : > { %v3882_v54 = vadd.f32 %v1807_v48, %v1719_v50  ;;  %v1632_v56 = vadd.f32 %v1631_v52, %v1543_v53  ;;  %v2577_v48 = vld [vmem:[%s3491_s20 + $0x210] sm:$0xf]  ;;  %v2579_v52 = vld [vmem:[%s3491_s20 + $0x230] sm:$0xf0]  ;;  %v2585_v53 = vld [vmem:[%s3491_s20 + $0x218] sm:$0xf] }
 0x194   : > { %v3144_v50 = vld [vmem:[%s3491_s20 + $0x22c] sm:$0xf0]  ;;  %v2582_v0 = vor.u32 %v3140_v51, %v2579_v52 }
 0x195   : > { %v2578_v63 = vor.u32 %v3144_v50, %v2577_v48 }
 0x198   : > { %v1720_v9 = vpop.f32.mrf.mxu2  ;;  %v1545_v21 = vpop.f32.mrf.mxu0 }
 0x199   : > { %v1809_v12 = vpop.f32.mrf.mxu3  ;;  %v1721_v17 = vadd.f32 %v1720_v9, %v1632_v56  ;;  %v1634_v22 = vpop.f32.mrf.mxu1  ;;  %v1546_v26 = vadd.f32 %v3370_v24, %v1545_v21  ;;  %v3145_v56 = vld [vmem:[%s3491_s20 + $0x234] sm:$0xf0] }
 0x19b   : > { %v3895_v27 = vadd.f32 %v1809_v12, %v1721_v17  ;;  %v1635_v29 = vadd.f32 %v1634_v22, %v1546_v26  ;;  %1860 = vmatmul.bf16.gmra.mxu0 %v2546_v14  ;;  %v2586_v12 = vor.u32 %v3145_v56, %v2585_v53  ;;  %v2590_v14 = vor.u32 %v3141_v59, %v2587_v60  ;;  %v2609_v26 = vld [vmem:[%s3491_s20 + $0x250] sm:$0xf] }
 0x19c   : > { %1949 = vmatmul.bf16.gmra.mxu1 %v2550_v16 }
 0x19d   : > { %2038 = vmatmul.bf16.gmra.mxu2 %v2554_v23 }
 0x19e   : > { %2127 = vmatmul.bf16.gmra.mxu3 %v2558_v20 }
 0x1a0   : > { %v1723_v30 = vpop.f32.mrf.mxu2  ;;  %v1547_v36 = vpop.f32.mrf.mxu0 }
 0x1a1   : > { %v1812_v31 = vpop.f32.mrf.mxu3  ;;  %v1724_v35 = vadd.f32 %v1723_v30, %v1635_v29  ;;  %v1636_v37 = vpop.f32.mrf.mxu1  ;;  %v1548_v39 = vadd.f32 %v3370_v24, %v1547_v36  ;;  %v3152_v29 = vld [vmem:[%s3491_s20 + $0x26c] sm:$0xf0]  ;;  %v2617_v36 = vld [vmem:[%s3491_s20 + $0x258] sm:$0xf] }
 0x1a2   : > { %v2610_v53 = vor.u32 %v3152_v29, %v2609_v26  ;;  %v2649_v26 = vld [vmem:[%s3491_s20 + $0x298] sm:$0xf] }
 0x1a3   : > { %v3897_v41 = vadd.f32 %v1812_v31, %v1724_v35  ;;  %v1637_v42 = vadd.f32 %v1636_v37, %v1548_v39  ;;  %v3148_v31 = vld [vmem:[%s3491_s20 + $0x254] sm:$0xf]  ;;  %v3153_v37 = vld [vmem:[%s3491_s20 + $0x274] sm:$0xf0]  ;;  %v3149_v39 = vld [vmem:[%s3491_s20 + $0x25c] sm:$0xf] }
 0x1a4   : > { %v2611_v35 = vld [vmem:[%s3491_s20 + $0x270] sm:$0xf0]  ;;  %v2618_v60 = vor.u32 %v3153_v37, %v2617_v36  ;;  %v3161_v29 = vld [vmem:[%s3491_s20 + $0x2b4] sm:$0xf0] }
 0x1a8   : > { %v1725_v61 = vpop.f32.mrf.mxu2  ;;  %v1826_v7 = vpop.f32.mrf.mxu0 }
 0x1a9   : > { %v1814_v62 = vpop.f32.mrf.mxu3  ;;  %v1726_v4 = vadd.f32 %v1725_v61, %v1637_v42  ;;  %v1915_v9 = vpop.f32.mrf.mxu1  ;;  %v1827_v22 = vadd.f32 %v1826_v7, %v3659_v46  ;;  %v2619_v42 = vld [vmem:[%s3491_s20 + $0x278] sm:$0xf0]  ;;  %v2614_v46 = vor.u32 %v3148_v31, %v2611_v35 }
 0x1aa   : > { %v2622_v61 = vor.u32 %v3149_v39, %v2619_v42  ;;  %v2651_v31 = vld [vmem:[%s3491_s20 + $0x2b8] sm:$0xf0] }
 0x1ab   : > { %v3907_v16 = vadd.f32 %v1814_v62, %v1726_v4  ;;  %1865 = vmatmul.bf16.gmra.mxu0 %v2578_v63  ;;  %v1916_v30 = vadd.f32 %v1915_v9, %v1827_v22  ;;  %v3160_v22 = vld [vmem:[%s3491_s20 + $0x2ac] sm:$0xf0] }
 0x1ac   : > { %1954 = vmatmul.bf16.gmra.mxu1 %v2582_v0 }
 0x1ad   : > { %2043 = vmatmul.bf16.gmra.mxu2 %v2586_v12 }
 0x1ae   : > { %2132 = vmatmul.bf16.gmra.mxu3 %v2590_v14 }
 0x1b0   : > { %v2004_v17 = vpop.f32.mrf.mxu2  ;;  %v1828_v23 = vpop.f32.mrf.mxu0 }
 0x1b1   : > { %v2093_v21 = vpop.f32.mrf.mxu3  ;;  %v1917_v20 = vpop.f32.mrf.mxu1  ;;  %v1829_v24 = vadd.f32 %v1828_v23, %v3673_v3  ;;  %v2005_v48 = vadd.f32 %v2004_v17, %v1916_v30  ;;  %v3157_v30 = vld [vmem:[%s3491_s20 + $0x29c] sm:$0xf] }
 0x1b3   : > { %v1918_v50 = vadd.f32 %v1917_v20, %v1829_v24  ;;  %v2094_v62 = vadd.f32 %v2093_v21, %v2005_v48  ;;  %v2641_v21 = vld [vmem:[%s3491_s20 + $0x290] sm:$0xf]  ;;  %v3156_v20 = vld [vmem:[%s3491_s20 + $0x294] sm:$0xf] }
 0x1b4   : > { %v2643_v24 = vld [vmem:[%s3491_s20 + $0x2b0] sm:$0xf0]  ;;  %v2642_v42 = vor.u32 %v3160_v22, %v2641_v21  ;;  %v3165_v21 = vld [vmem:[%s3491_s20 + $0x2dc] sm:$0xf] }
 0x1b5   : > { %v2683_v22 = vld [vmem:[%s3491_s20 + $0x2f8] sm:$0xf0] }
 0x1b8   : > { %v2006_v51 = vpop.f32.mrf.mxu2  ;;  %v1831_v59 = vpop.f32.mrf.mxu0 }
 0x1b9   : > { %v2095_v52 = vpop.f32.mrf.mxu3  ;;  %v2007_v56 = vadd.f32 %v2006_v51, %v1918_v50  ;;  %v1920_v3 = vpop.f32.mrf.mxu1  ;;  %v1832_v9 = vadd.f32 %v1831_v59, %v3676_v11  ;;  %v2646_v11 = vor.u32 %v3156_v20, %v2643_v24 }
 0x1bb   : > { %v2096_v63 = vadd.f32 %v2095_v52, %v2007_v56  ;;  %1870 = vmatmul.bf16.gmra.mxu0 %v2610_v53  ;;  %v1921_v23 = vadd.f32 %v1920_v3, %v1832_v9  ;;  %v2654_v52 = vor.u32 %v3157_v30, %v2651_v31  ;;  %v3164_v9 = vld [vmem:[%s3491_s20 + $0x2d4] sm:$0xf] }
 0x1bc   : > { %1959 = vmatmul.bf16.gmra.mxu1 %v2614_v46 }
 0x1bd   : > { %v3269_v0 = vpack.c.bf16 %v2096_v63, %v2094_v62  ;;  %2048 = vmatmul.bf16.gmra.mxu2 %v2618_v60 }
 0x1be   : > { %2137 = vmatmul.bf16.gmra.mxu3 %v2622_v61 }
 0x1bf   : > { %3270 = vst [vmem:[%s3923_s4] sm:$0xff] %v3269_v0   ;;  %v2673_v0 = vld [vmem:[%s3491_s20 + $0x2d0] sm:$0xf] }
 0x1c0   : > { %v2009_v4 = vpop.f32.mrf.mxu2  ;;  %v1833_v12 = vpop.f32.mrf.mxu0 }
 0x1c1   : > { %v2098_v7 = vpop.f32.mrf.mxu3  ;;  %v1922_v14 = vpop.f32.mrf.mxu1  ;;  %v1834_v17 = vadd.f32 %v1833_v12, %v3687_v32  ;;  %v2010_v35 = vadd.f32 %v2009_v4, %v1921_v23  ;;  %v2650_v32 = vor.u32 %v3161_v29, %v2649_v26  ;;  %v3168_v4 = vld [vmem:[%s3491_s20 + $0x2ec] sm:$0xf0]  ;;  %v2675_v12 = vld [vmem:[%s3491_s20 + $0x2f0] sm:$0xf0] }
 0x1c2   : > { %v2674_v29 = vor.u32 %v3168_v4, %v2673_v0 }
 0x1c3   : > { %v1923_v36 = vadd.f32 %v1922_v14, %v1834_v17  ;;  %v2099_v53 = vadd.f32 %v2098_v7, %v2010_v35  ;;  %v2681_v14 = vld [vmem:[%s3491_s20 + $0x2d8] sm:$0xf] }
 0x1c4   : > { %v3169_v17 = vld [vmem:[%s3491_s20 + $0x2f4] sm:$0xf0] }
 0x1c8   : > { %v2011_v37 = vpop.f32.mrf.mxu2  ;;  %v1836_v50 = vpop.f32.mrf.mxu0 }
 0x1c9   : > { %v2100_v39 = vpop.f32.mrf.mxu3  ;;  %v2012_v48 = vadd.f32 %v2011_v37, %v1923_v36  ;;  %v1925_v51 = vpop.f32.mrf.mxu1  ;;  %v1837_v60 = vadd.f32 %v1836_v50, %v3699_v43  ;;  %v2678_v43 = vor.u32 %v3164_v9, %v2675_v12  ;;  %v2686_v36 = vor.u32 %v3165_v21, %v2683_v22 }
 0x1cb   : > { %v2101_v46 = vadd.f32 %v2100_v39, %v2012_v48  ;;  %1875 = vmatmul.bf16.gmra.mxu0 %v2642_v42  ;;  %v1926_v7 = vadd.f32 %v1925_v51, %v1837_v60  ;;  %v2713_v60 = vld [vmem:[%s3491_s20 + $0x318] sm:$0xf] }
 0x1cc   : > { %1964 = vmatmul.bf16.gmra.mxu1 %v2646_v11 }
 0x1cd   : > { %v3274_v56 = vpack.c.bf16 %v2101_v46, %v2099_v53  ;;  %2053 = vmatmul.bf16.gmra.mxu2 %v2650_v32  ;;  %v2705_v53 = vld [vmem:[%s3491_s20 + $0x310] sm:$0xf] }
 0x1ce   : > { %2142 = vmatmul.bf16.gmra.mxu3 %v2654_v52  ;;  %v3176_v46 = vld [vmem:[%s3491_s20 + $0x32c] sm:$0xf0] }
 0x1cf   : > { %3346 = vst [vmem:[%s3923_s4 + $0x8] sm:$0xff] %v3274_v56   ;;  %v2706_v12 = vor.u32 %v3176_v46, %v2705_v53 }
 0x1d0   : > { %v2014_v59 = vpop.f32.mrf.mxu2  ;;  %v1838_v61 = vpop.f32.mrf.mxu0 }
 0x1d1   : > { %v2103_v3 = vpop.f32.mrf.mxu3  ;;  %v1927_v62 = vpop.f32.mrf.mxu1  ;;  %v1839_v63 = vadd.f32 %v1838_v61, %v3713_v1  ;;  %v2015_v23 = vadd.f32 %v2014_v59, %v1926_v7  ;;  %v2682_v1 = vor.u32 %v3169_v17, %v2681_v14  ;;  %v3172_v59 = vld [vmem:[%s3491_s20 + $0x314] sm:$0xf]  ;;  %v3177_v61 = vld [vmem:[%s3491_s20 + $0x334] sm:$0xf0] }
 0x1d3   : > { %v1928_v20 = vadd.f32 %v1927_v62, %v1839_v63  ;;  %v2104_v37 = vadd.f32 %v2103_v3, %v2015_v23  ;;  %v2707_v3 = vld [vmem:[%s3491_s20 + $0x330] sm:$0xf0]  ;;  %v3173_v62 = vld [vmem:[%s3491_s20 + $0x31c] sm:$0xf] }
 0x1d4   : > { %v2715_v63 = vld [vmem:[%s3491_s20 + $0x338] sm:$0xf0] }
 0x1d5   : > { %v2718_v22 = vor.u32 %v3173_v62, %v2715_v63 }
 0x1d8   : > { %v2016_v24 = vpop.f32.mrf.mxu2  ;;  %v1841_v31 = vpop.f32.mrf.mxu0 }
 0x1d9   : > { %v2105_v26 = vpop.f32.mrf.mxu3  ;;  %v2017_v30 = vadd.f32 %v2016_v24, %v1928_v20  ;;  %v1930_v35 = vpop.f32.mrf.mxu1  ;;  %v1842_v50 = vadd.f32 %v1841_v31, %v3716_v10  ;;  %v2710_v10 = vor.u32 %v3172_v59, %v2707_v3 }
 0x1db   : > { %v2106_v39 = vadd.f32 %v2105_v26, %v2017_v30  ;;  %1880 = vmatmul.bf16.gmra.mxu0 %v2674_v29  ;;  %v1931_v56 = vadd.f32 %v1930_v35, %v1842_v50  ;;  %v3181_v50 = vld [vmem:[%s3491_s20 + $0x35c] sm:$0xf] }
 0x1dc   : > { %1969 = vmatmul.bf16.gmra.mxu1 %v2678_v43 }
 0x1dd   : > { %v3279_v42 = vpack.c.bf16 %v2106_v39, %v2104_v37  ;;  %2058 = vmatmul.bf16.gmra.mxu2 %v2682_v1  ;;  %v2737_v1 = vld [vmem:[%s3491_s20 + $0x350] sm:$0xf]  ;;  %v3180_v39 = vld [vmem:[%s3491_s20 + $0x354] sm:$0xf] }
 0x1de   : > { %2147 = vmatmul.bf16.gmra.mxu3 %v2686_v36  ;;  %v3184_v36 = vld [vmem:[%s3491_s20 + $0x36c] sm:$0xf0] }
 0x1df   : > { %3347 = vst [vmem:[%s3923_s4 + $0x10] sm:$0xff] %v3279_v42   ;;  %v2739_v42 = vld [vmem:[%s3491_s20 + $0x370] sm:$0xf0] }
 0x1e0   : > { %v2019_v11 = vpop.f32.mrf.mxu2  ;;  %v1843_v51 = vpop.f32.mrf.mxu0 }
 0x1e1   : > { %v2108_v48 = vpop.f32.mrf.mxu3  ;;  %v1932_v32 = vpop.f32.mrf.mxu1  ;;  %v1844_v52 = vadd.f32 %v1843_v51, %v3727_v33  ;;  %v2020_v0 = vadd.f32 %v2019_v11, %v1931_v56  ;;  %v2714_v33 = vor.u32 %v3177_v61, %v2713_v60  ;;  %v2745_v11 = vld [vmem:[%s3491_s20 + $0x358] sm:$0xf]  ;;  %v2747_v51 = vld [vmem:[%s3491_s20 + $0x378] sm:$0xf0]  ;;  %v2738_v56 = vor.u32 %v3184_v36, %v2737_v1 }
 0x1e2   : > { %v2750_v61 = vor.u32 %v3181_v50, %v2747_v51 }
 0x1e3   : > { %v1933_v4 = vadd.f32 %v1932_v32, %v1844_v52  ;;  %v2109_v23 = vadd.f32 %v2108_v48, %v2020_v0  ;;  %v3185_v48 = vld [vmem:[%s3491_s20 + $0x374] sm:$0xf0] }
 0x1e8   : > { %v2021_v7 = vpop.f32.mrf.mxu2  ;;  %v1846_v17 = vpop.f32.mrf.mxu0 }
 0x1e9   : > { %v2110_v9 = vpop.f32.mrf.mxu3  ;;  %v2022_v14 = vadd.f32 %v2021_v7, %v1933_v4  ;;  %v1935_v21 = vpop.f32.mrf.mxu1  ;;  %v1847_v43 = vadd.f32 %v1846_v17, %v3739_v45  ;;  %v2742_v45 = vor.u32 %v3180_v39, %v2739_v42  ;;  %v2769_v17 = vld [vmem:[%s3491_s20 + $0x390] sm:$0xf] }
 0x1eb   : > { %v2111_v20 = vadd.f32 %v2110_v9, %v2022_v14  ;;  %1885 = vmatmul.bf16.gmra.mxu0 %v2706_v12  ;;  %v1936_v37 = vadd.f32 %v1935_v21, %v1847_v43  ;;  %v3192_v21 = vld [vmem:[%s3491_s20 + $0x3ac] sm:$0xf0] }
 0x1ec   : > { %1974 = vmatmul.bf16.gmra.mxu1 %v2710_v10  ;;  %v2770_v1 = vor.u32 %v3192_v21, %v2769_v17 }
 0x1ed   : > { %v3284_v24 = vpack.c.bf16 %v2111_v20, %v2109_v23  ;;  %2063 = vmatmul.bf16.gmra.mxu2 %v2714_v33  ;;  %v2771_v23 = vld [vmem:[%s3491_s20 + $0x3b0] sm:$0xf0]  ;;  %v2777_v20 = vld [vmem:[%s3491_s20 + $0x398] sm:$0xf] }
 0x1ee   : > { %2152 = vmatmul.bf16.gmra.mxu3 %v2718_v22  ;;  %v3188_v22 = vld [vmem:[%s3491_s20 + $0x394] sm:$0xf] }
 0x1ef   : > { %3348 = vst [vmem:[%s3923_s4 + $0x18] sm:$0xff] %v3284_v24   ;;  %v3193_v24 = vld [vmem:[%s3491_s20 + $0x3b4] sm:$0xf0] }
 0x1f0   : > { %v2024_v26 = vpop.f32.mrf.mxu2  ;;  %v1848_v30 = vpop.f32.mrf.mxu0 }
 0x1f1   : > { %v2113_v29 = vpop.f32.mrf.mxu3  ;;  %v1937_v31 = vpop.f32.mrf.mxu1  ;;  %v1849_v35 = vadd.f32 %v1848_v30, %v3753_v5  ;;  %v2025_v32 = vadd.f32 %v2024_v26, %v1936_v37  ;;  %v2746_v5 = vor.u32 %v3185_v48, %v2745_v11  ;;  %v3189_v26 = vld [vmem:[%s3491_s20 + $0x39c] sm:$0xf] }
 0x1f3   : > { %v1938_v52 = vadd.f32 %v1937_v31, %v1849_v35  ;;  %v2114_v62 = vadd.f32 %v2113_v29, %v2025_v32  ;;  %v2779_v29 = vld [vmem:[%s3491_s20 + $0x3b8] sm:$0xf0] }
 0x1f4   : > { %v2782_v42 = vor.u32 %v3189_v26, %v2779_v29 }
 0x1f8   : > { %v2026_v53 = vpop.f32.mrf.mxu2  ;;  %v1851_v3 = vpop.f32.mrf.mxu0 }
 0x1f9   : > { %v2115_v46 = vpop.f32.mrf.mxu3  ;;  %v2027_v59 = vadd.f32 %v2026_v53, %v1938_v52  ;;  %v1940_v60 = vpop.f32.mrf.mxu1  ;;  %v1852_v9 = vadd.f32 %v1851_v3, %v3756_v15  ;;  %v2774_v15 = vor.u32 %v3188_v22, %v2771_v23 }
 0x1fb   : > { %v2116_v63 = vadd.f32 %v2115_v46, %v2027_v59  ;;  %1890 = vmatmul.bf16.gmra.mxu0 %v2738_v56  ;;  %v1941_v33 = vadd.f32 %v1940_v60, %v1852_v9  ;;  %v3200_v59 = vld [vmem:[%s3491_s20 + $0x3ec] sm:$0xf0]  ;;  %v3196_v60 = vld [vmem:[%s3491_s20 + $0x3d4] sm:$0xf] }
 0x1fc   : > { %1979 = vmatmul.bf16.gmra.mxu1 %v2742_v45  ;;  %v2801_v45 = vld [vmem:[%s3491_s20 + $0x3d0] sm:$0xf] }
 0x1fd   : > { %v3289_v0 = vpack.c.bf16 %v2116_v63, %v2114_v62  ;;  %2068 = vmatmul.bf16.gmra.mxu2 %v2746_v5  ;;  %v2803_v5 = vld [vmem:[%s3491_s20 + $0x3f0] sm:$0xf0]  ;;  %v3201_v62 = vld [vmem:[%s3491_s20 + $0x3f4] sm:$0xf0]  ;;  %v3197_v63 = vld [vmem:[%s3491_s20 + $0x3dc] sm:$0xf] }
 0x1fe   : > { %2157 = vmatmul.bf16.gmra.mxu3 %v2750_v61  ;;  %v2809_v61 = vld [vmem:[%s3491_s20 + $0x3d8] sm:$0xf] }
 0x1ff   : > { %3349 = vst [vmem:[%s3923_s4 + $0x20] sm:$0xff] %v3289_v0   ;;  %v2811_v0 = vld [vmem:[%s3491_s20 + $0x3f8] sm:$0xf0] }
 0x200   : > { %v2029_v4 = vpop.f32.mrf.mxu2  ;;  %v1853_v12 = vpop.f32.mrf.mxu0 }
 0x201   : > { %v2118_v7 = vpop.f32.mrf.mxu3  ;;  %v1942_v10 = vpop.f32.mrf.mxu1  ;;  %v1854_v14 = vadd.f32 %v1853_v12, %v3767_v38  ;;  %v2030_v43 = vadd.f32 %v2029_v4, %v1941_v33  ;;  %v2778_v38 = vor.u32 %v3193_v24, %v2777_v20  ;;  %v2814_v33 = vor.u32 %v3197_v63, %v2811_v0 }
 0x203   : > { %v1943_v30 = vadd.f32 %v1942_v10, %v1854_v14  ;;  %v2119_v11 = vadd.f32 %v2118_v7, %v2030_v43  ;;  %v2802_v10 = vor.u32 %v3200_v59, %v2801_v45 }
 0x208   : > { %v2031_v31 = vpop.f32.mrf.mxu2  ;;  %v1856_v37 = vpop.f32.mrf.mxu0 }
 0x209   : > { %v2120_v35 = vpop.f32.mrf.mxu3  ;;  %v2032_v36 = vadd.f32 %v2031_v31, %v1943_v30  ;;  %v1945_v39 = vpop.f32.mrf.mxu1  ;;  %v1857_v52 = vadd.f32 %v1856_v37, %v3770_v49  ;;  %v2806_v49 = vor.u32 %v3196_v60, %v2803_v5 }
 0x20b   : > { %v2121_v48 = vadd.f32 %v2120_v35, %v2032_v36  ;;  %1895 = vmatmul.bf16.gmra.mxu0 %v2770_v1  ;;  %v1946_v3 = vadd.f32 %v1945_v39, %v1857_v52 }
 0x20c   : > { %1984 = vmatmul.bf16.gmra.mxu1 %v2774_v15 }
 0x20d   : > { %v3294_v50 = vpack.c.bf16 %v2121_v48, %v2119_v11  ;;  %2073 = vmatmul.bf16.gmra.mxu2 %v2778_v38 }
 0x20e   : > { %2162 = vmatmul.bf16.gmra.mxu3 %v2782_v42 }
 0x20f   : > { %3350 = vst [vmem:[%s3923_s4 + $0x28] sm:$0xff] %v3294_v50  }
 0x210   : > { %v2034_v51 = vpop.f32.mrf.mxu2  ;;  %v1858_v53 = vpop.f32.mrf.mxu0 }
 0x211   : > { %v2123_v32 = vpop.f32.mrf.mxu3  ;;  %v1947_v46 = vpop.f32.mrf.mxu1  ;;  %v1859_v56 = vadd.f32 %v1858_v53, %v3781_v8  ;;  %v2035_v4 = vadd.f32 %v2034_v51, %v1946_v3  ;;  %v2810_v8 = vor.u32 %v3201_v62, %v2809_v61 }
 0x213   : > { %v1948_v7 = vadd.f32 %v1947_v46, %v1859_v56  ;;  %v2124_v22 = vadd.f32 %v2123_v32, %v2035_v4 }
 0x218   : > { %v2036_v9 = vpop.f32.mrf.mxu2  ;;  %v1861_v17 = vpop.f32.mrf.mxu0 }
 0x219   : > { %v2125_v12 = vpop.f32.mrf.mxu3  ;;  %v2037_v14 = vadd.f32 %v2036_v9, %v1948_v7  ;;  %v1950_v21 = vpop.f32.mrf.mxu1  ;;  %v1862_v29 = vadd.f32 %v1861_v17, %v3784_v19 }
 0x21b   : > { %v2126_v23 = vadd.f32 %v2125_v12, %v2037_v14  ;;  %1900 = vmatmul.bf16.gmra.mxu0 %v2802_v10  ;;  %v1951_v35 = vadd.f32 %v1950_v21, %v1862_v29 }
 0x21c   : > { %1989 = vmatmul.bf16.gmra.mxu1 %v2806_v49 }
 0x21d   : > { %v3299_v20 = vpack.c.bf16 %v2126_v23, %v2124_v22  ;;  %2078 = vmatmul.bf16.gmra.mxu2 %v2810_v8 }
 0x21e   : > { %2167 = vmatmul.bf16.gmra.mxu3 %v2814_v33 }
 0x21f   : > { %3351 = vst [vmem:[%s3923_s4 + $0x30] sm:$0xff] %v3299_v20  }
 0x220   : > { %v2039_v24 = vpop.f32.mrf.mxu2  ;;  %v1863_v43 = vpop.f32.mrf.mxu0 }
 0x221   : > { %v2128_v26 = vpop.f32.mrf.mxu3  ;;  %v1952_v30 = vpop.f32.mrf.mxu1  ;;  %v1864_v31 = vadd.f32 %v1863_v43, %v3795_v44  ;;  %v2040_v1 = vadd.f32 %v2039_v24, %v1951_v35 }
 0x223   : > { %v1953_v15 = vadd.f32 %v1952_v30, %v1864_v31  ;;  %v2129_v11 = vadd.f32 %v2128_v26, %v2040_v1 }
 0x228   : > { %v2041_v36 = vpop.f32.mrf.mxu2  ;;  %v1866_v38 = vpop.f32.mrf.mxu0 }
 0x229   : > { %v2130_v37 = vpop.f32.mrf.mxu3  ;;  %v2042_v39 = vadd.f32 %v2041_v36, %v1953_v15  ;;  %v1955_v42 = vpop.f32.mrf.mxu1  ;;  %v1867_v19 = vadd.f32 %v1866_v38, %v3798_v55 }
 0x22b   : > { %v2131_v48 = vadd.f32 %v2130_v37, %v2042_v39  ;;  %v1956_v46 = vadd.f32 %v1955_v42, %v1867_v19 }
 0x22d   : > { %v3304_v50 = vpack.c.bf16 %v2131_v48, %v2129_v11 }
 0x22f   : > { %3352 = vst [vmem:[%s3923_s4 + $0x38] sm:$0xff] %v3304_v50  }
 0x230   : > { %v2044_v51 = vpop.f32.mrf.mxu2  ;;  %v1868_v52 = vpop.f32.mrf.mxu0 }
 0x231   : > { %v2133_v32 = vpop.f32.mrf.mxu3  ;;  %v1957_v53 = vpop.f32.mrf.mxu1  ;;  %v1869_v44 = vadd.f32 %v1868_v52, %v3809_v18  ;;  %v2045_v56 = vadd.f32 %v2044_v51, %v1956_v46 }
 0x233   : > { %v1958_v45 = vadd.f32 %v1957_v53, %v1869_v44  ;;  %v2134_v62 = vadd.f32 %v2133_v32, %v2045_v56 }
 0x238   : > { %v2046_v59 = vpop.f32.mrf.mxu2  ;;  %v1871_v5 = vpop.f32.mrf.mxu0 }
 0x239   : > { %v2135_v3 = vpop.f32.mrf.mxu3  ;;  %v2047_v60 = vadd.f32 %v2046_v59, %v1958_v45  ;;  %v1960_v61 = vpop.f32.mrf.mxu1  ;;  %v1872_v55 = vadd.f32 %v1871_v5, %v3812_v28 }
 0x23b   : > { %v2136_v63 = vadd.f32 %v2135_v3, %v2047_v60  ;;  %v1961_v10 = vadd.f32 %v1960_v61, %v1872_v55 }
 0x23d   : > { %v3309_v0 = vpack.c.bf16 %v2136_v63, %v2134_v62 }
 0x23f   : > { %3353 = vst [vmem:[%s3923_s4 + $0x40] sm:$0xff] %v3309_v0  }
 0x240   : > { %v2049_v4 = vpop.f32.mrf.mxu2  ;;  %v1873_v9 = vpop.f32.mrf.mxu0 }
 0x241   : > { %v2138_v7 = vpop.f32.mrf.mxu3  ;;  %v1962_v12 = vpop.f32.mrf.mxu1  ;;  %v1874_v18 = vadd.f32 %v1873_v9, %v3823_v57  ;;  %v2050_v49 = vadd.f32 %v2049_v4, %v1961_v10 }
 0x243   : > { %v1963_v14 = vadd.f32 %v1962_v12, %v1874_v18  ;;  %v2139_v23 = vadd.f32 %v2138_v7, %v2050_v49 }
 0x248   : > { %v2051_v17 = vpop.f32.mrf.mxu2  ;;  %v1876_v33 = vpop.f32.mrf.mxu0 }
 0x249   : > { %v2140_v21 = vpop.f32.mrf.mxu3  ;;  %v2052_v8 = vadd.f32 %v2051_v17, %v1963_v14  ;;  %v1965_v22 = vpop.f32.mrf.mxu1  ;;  %v1877_v28 = vadd.f32 %v1876_v33, %v3826_v2 }
 0x24b   : > { %v2141_v20 = vadd.f32 %v2140_v21, %v2052_v8  ;;  %v1966_v31 = vadd.f32 %v1965_v22, %v1877_v28 }
 0x24d   : > { %v3314_v24 = vpack.c.bf16 %v2141_v20, %v2139_v23 }
 0x24f   : > { %3354 = vst [vmem:[%s3923_s4 + $0x48] sm:$0xff] %v3314_v24  }
 0x250   : > { %v2054_v26 = vpop.f32.mrf.mxu2  ;;  %v1878_v43 = vpop.f32.mrf.mxu0 }
 0x251   : > { %v2143_v29 = vpop.f32.mrf.mxu3  ;;  %v1967_v30 = vpop.f32.mrf.mxu1  ;;  %v1879_v57 = vadd.f32 %v1878_v43, %v3837_v34  ;;  %v2055_v35 = vadd.f32 %v2054_v26, %v1966_v31 }
 0x253   : > { %v1968_v1 = vadd.f32 %v1967_v30, %v1879_v57  ;;  %v2144_v42 = vadd.f32 %v2143_v29, %v2055_v35 }
 0x258   : > { %v2056_v15 = vpop.f32.mrf.mxu2  ;;  %v1881_v39 = vpop.f32.mrf.mxu0 }
 0x259   : > { %v2145_v36 = vpop.f32.mrf.mxu3  ;;  %v2057_v37 = vadd.f32 %v2056_v15, %v1968_v1  ;;  %v1970_v38 = vpop.f32.mrf.mxu1  ;;  %v1882_v2 = vadd.f32 %v1881_v39, %v3840_v47 }
 0x25b   : > { %v2146_v11 = vadd.f32 %v2145_v36, %v2057_v37  ;;  %v1971_v52 = vadd.f32 %v1970_v38, %v1882_v2 }
 0x25d   : > { %v3319_v48 = vpack.c.bf16 %v2146_v11, %v2144_v42 }
 0x25f   : > { %3355 = vst [vmem:[%s3923_s4 + $0x50] sm:$0xff] %v3319_v48  }
 0x260   : > { %v2059_v50 = vpop.f32.mrf.mxu2  ;;  %v1883_v32 = vpop.f32.mrf.mxu0 }
 0x261   : > { %v2148_v51 = vpop.f32.mrf.mxu3  ;;  %v1972_v19 = vpop.f32.mrf.mxu1  ;;  %v1884_v34 = vadd.f32 %v1883_v32, %v3851_v13  ;;  %v2060_v53 = vadd.f32 %v2059_v50, %v1971_v52 }
 0x263   : > { %v1973_v44 = vadd.f32 %v1972_v19, %v1884_v34  ;;  %v2149_v60 = vadd.f32 %v2148_v51, %v2060_v53 }
 0x268   : > { %v2061_v46 = vpop.f32.mrf.mxu2  ;;  %v1886_v59 = vpop.f32.mrf.mxu0 }
 0x269   : > { %v2150_v56 = vpop.f32.mrf.mxu3  ;;  %v2062_v45 = vadd.f32 %v2061_v46, %v1973_v44  ;;  %v1975_v3 = vpop.f32.mrf.mxu1  ;;  %v1887_v47 = vadd.f32 %v1886_v59, %v3854_v25 }
 0x26b   : > { %v2151_v5 = vadd.f32 %v2150_v56, %v2062_v45  ;;  %v1976_v7 = vadd.f32 %v1975_v3, %v1887_v47 }
 0x26d   : > { %v3324_v61 = vpack.c.bf16 %v2151_v5, %v2149_v60 }
 0x26f   : > { %3356 = vst [vmem:[%s3923_s4 + $0x58] sm:$0xff] %v3324_v61  }
 0x270   : > { %v2064_v62 = vpop.f32.mrf.mxu2  ;;  %v1888_v0 = vpop.f32.mrf.mxu0 }
 0x271   : > { %v2153_v63 = vpop.f32.mrf.mxu3  ;;  %v1977_v4 = vpop.f32.mrf.mxu1  ;;  %v1889_v13 = vadd.f32 %v1888_v0, %v3865_v58  ;;  %v2065_v55 = vadd.f32 %v2064_v62, %v1976_v7 }
 0x273   : > { %v1978_v9 = vadd.f32 %v1977_v4, %v1889_v13  ;;  %v2154_v17 = vadd.f32 %v2153_v63, %v2065_v55 }
 0x278   : > { %v2066_v12 = vpop.f32.mrf.mxu2  ;;  %v1891_v49 = vpop.f32.mrf.mxu0 }
 0x279   : > { %v2155_v18 = vpop.f32.mrf.mxu3  ;;  %v2067_v10 = vadd.f32 %v2066_v12, %v1978_v9  ;;  %v1980_v14 = vpop.f32.mrf.mxu1  ;;  %v1892_v25 = vadd.f32 %v1891_v49, %v3868_v6 }
 0x27b   : > { %v2156_v21 = vadd.f32 %v2155_v18, %v2067_v10  ;;  %v1981_v24 = vadd.f32 %v1980_v14, %v1892_v25 }
 0x27d   : > { %v3329_v8 = vpack.c.bf16 %v2156_v21, %v2154_v17 }
 0x27f   : > { %3357 = vst [vmem:[%s3923_s4 + $0x60] sm:$0xff] %v3329_v8  }
 0x280   : > { %v2069_v33 = vpop.f32.mrf.mxu2  ;;  %v1893_v23 = vpop.f32.mrf.mxu0 }
 0x281   : > { %v2158_v22 = vpop.f32.mrf.mxu3  ;;  %v1982_v20 = vpop.f32.mrf.mxu1  ;;  %v1894_v58 = vadd.f32 %v1893_v23, %v3879_v40  ;;  %v2070_v26 = vadd.f32 %v2069_v33, %v1981_v24 }
 0x283   : > { %v1983_v29 = vadd.f32 %v1982_v20, %v1894_v58  ;;  %v2159_v35 = vadd.f32 %v2158_v22, %v2070_v26 }
 0x288   : > { %v2071_v28 = vpop.f32.mrf.mxu2  ;;  %v1896_v57 = vpop.f32.mrf.mxu0 }
 0x289   : > { %v2160_v43 = vpop.f32.mrf.mxu3  ;;  %v2072_v30 = vadd.f32 %v2071_v28, %v1983_v29  ;;  %v1985_v31 = vpop.f32.mrf.mxu1  ;;  %v1897_v6 = vadd.f32 %v1896_v57, %v3882_v54 }
 0x28b   : > { %v2161_v1 = vadd.f32 %v2160_v43, %v2072_v30  ;;  %v1986_v42 = vadd.f32 %v1985_v31, %v1897_v6 }
 0x28d   : > { %v3334_v15 = vpack.c.bf16 %v2161_v1, %v2159_v35 }
 0x28f   : > { %3358 = vst [vmem:[%s3923_s4 + $0x68] sm:$0xff] %v3334_v15  }
 0x290   : > { %v2074_v36 = vpop.f32.mrf.mxu2  ;;  %v1898_v39 = vpop.f32.mrf.mxu0 }
 0x291   : > { %v2163_v37 = vpop.f32.mrf.mxu3  ;;  %v1987_v38 = vpop.f32.mrf.mxu1  ;;  %v1899_v40 = vadd.f32 %v1898_v39, %v3895_v27  ;;  %v2075_v11 = vadd.f32 %v2074_v36, %v1986_v42 }
 0x293   : > { %v1988_v48 = vadd.f32 %v1987_v38, %v1899_v40  ;;  %v2164_v19 = vadd.f32 %v2163_v37, %v2075_v11 }
 0x298   : > { %v2076_v50 = vpop.f32.mrf.mxu2  ;;  %v1901_v32 = vpop.f32.mrf.mxu0 }
 0x299   : > { %v2165_v51 = vpop.f32.mrf.mxu3  ;;  %v2077_v2 = vadd.f32 %v2076_v50, %v1988_v48  ;;  %v1990_v52 = vpop.f32.mrf.mxu1  ;;  %v1902_v54 = vadd.f32 %v1901_v32, %v3897_v41 }
 0x29b   : > { %v2166_v34 = vadd.f32 %v2165_v51, %v2077_v2  ;;  %v1991_v45 = vadd.f32 %v1990_v52, %v1902_v54 }
 0x29d   : > { %v3339_v53 = vpack.c.bf16 %v2166_v34, %v2164_v19 }
 0x29f   : > { %3359 = vst [vmem:[%s3923_s4 + $0x70] sm:$0xff] %v3339_v53  }
 0x2a0   : > { %v2079_v44 = vpop.f32.mrf.mxu2  ;;  %v1903_v56 = vpop.f32.mrf.mxu0 }
 0x2a1   : > { %v2168_v46 = vpop.f32.mrf.mxu3  ;;  %v1904_v27 = vadd.f32 %v1903_v56, %v3907_v16  ;;  %v1992_v59 = vpop.f32.mrf.mxu1  ;;  %v2080_v3 = vadd.f32 %v2079_v44, %v1991_v45 }
 0x2a3   : > { %v1993_v60 = vadd.f32 %v1992_v59, %v1904_v27  ;;  %v2169_v63 = vadd.f32 %v2168_v46, %v2080_v3 }
 0x2a8   : > { %v2081_v5 = vpop.f32.mrf.mxu2 }
 0x2a9   : > { %v2082_v61 = vadd.f32 %v2081_v5, %v1993_v60  ;;  %v2170_v62 = vpop.f32.mrf.mxu3 }
 0x2ab   : > { %v2171_v47 = vadd.f32 %v2170_v62, %v2082_v61 }
 0x2ad   : > { %v3344_v0 = vpack.c.bf16 %v2171_v47, %v2169_v63 }
 0x2af   : > { %3360 = vst [vmem:[%s3923_s4 + $0x78] sm:$0xff] %v3344_v0  }
 0x2b0 PF: > { %s13_s12 = sadd.s32 1, %s3377_s12  }
 0x2b1   : > { %p10_p4 = scmp.ge.s32.totalorder %s13_s12, 4  }
 0x2b3   :  { %12 = sbr.rel (!%p10_p4) target bundleno = 1 (0x1), region = 62 }

// kernel: encoder_maxpool_forward.11
= control target key start
LH: loop header
LB: loop body
LE: loop exit
PB: predicated region body
PF: predicated region fallthrough
CT: control target
= control target key end

     0   :  { %s304_s6 = smov 0   ;;  %s322_s0 = inlined_call_operand.vmem [shape: bf16[8,2,512], index: 0, kind: input, shape index: {}]   ;;  %s323_s1 = inlined_call_operand.vmem [shape: bf16[4,2,256], index: 1, kind: output, shape index: {}]  }
   0x1 LB: > { %s258_s7 = sadd.s32 4294967295, %s292_s6   ;;  %p262_p0 = scmp.ge.s32.totalorder %s292_s6, 1  ;;  %s292_s6 = sphi %s304_s6, %s11_s6  }
   0x2   : > { %p88_p1 = scmp.lt.s32.totalorder %s292_s6, 3 }
   0x4   : > { %p89_p2 = pnand %p262_p0, %p88_p1 }
   0x5   : > { %s263_s8 = sshll.u32 (!%p89_p2), %s258_s7, 2  ;;  %s265_s13 = sshll.u32 (!%p89_p2), %s258_s7, 1 }
   0x6   : > { %92 = sbr.rel (%p89_p2) target bundleno = 47 (0x2f), region = 24  ;;  %p109_p3 = scmp.lt.s32.totalorder (!%p89_p2), %s263_s8, 7 }
   0x7   : > { %p115_p4 = scmp.lt.s32.totalorder (!%p89_p2), %s265_s13, 3 }
   0xb   : > { %s325_s8 = smov (!%p109_p3, %s263_s8), 7  ;;  %s327_s13 = smov (!%p115_p4, %s265_s13), 3  ;;  %vm191_vm4 = vcmask 1040384  }
   0xc   : > { %s264_s9 = sshll.u32 %s325_s8, 2  ;;  %s266_s14 = sshll.u32 %s327_s13, 1 }
   0xd   : > { %s112_s12 = scalar_lea.vmem %s322_s0, %s264_s9  ;;  %s118_s17 = scalar_lea.vmem %s323_s1, %s266_s14 }
   0xe   : > { %v270_v0 = vld [vmem:[%s112_s12] sm:$0xff]   ;;  %v277_v1 = vld [vmem:[%s112_s12 + $0x8] sm:$0xff]  }
   0xf   : > { %v271_v2 = vunpack.c.l.bf16 %v270_v0  ;;  %v272_v3 = vunpack.c.h.bf16 %v270_v0  ;;  %v275_v4 = vunpack.c.l.bf16 %v277_v1  ;;  %v276_v5 = vunpack.c.h.bf16 %v277_v1 }
  0x11   : > { %v128_v6 = vmax.f32 %v271_v2, %v272_v3  ;;  %v129_v7 = vmax.f32 %v275_v4, %v276_v5 }
  0x13   : > { %132 = vst [vmem:[#allocation1] ss:$4 sm:$0xff] %v128_v6 }
  0x14   : > { %138 = vst [vmem:[#allocation1 + $0x20] ss:$4 sm:$0xff] %v129_v7 }
  0x1a   : > { %v133_v8 = vld.sshfl [vmem:[#allocation1] sm:$0xff pattern:$0x73625140]  ;;  %v134_v9 = vld.sshfl [vmem:[#allocation1 + $0x8] sm:$0xff pattern:$0x73625140] }
  0x1b   : > { %v135_v10 = vld.sshfl [vmem:[#allocation1 + $0x10] sm:$0xff pattern:$0x73625140]  ;;  %v136_v11 = vld.sshfl [vmem:[#allocation1 + $0x18] sm:$0xff pattern:$0x73625140] }
  0x1c   : > { %v163_v12 = vmax.f32 %v133_v8, %v135_v10  ;;  %v164_v13 = vmax.f32 %v134_v9, %v136_v11  ;;  %v139_v14 = vld.sshfl [vmem:[#allocation1 + $0x20] sm:$0xff pattern:$0x73625140]  ;;  %v140_v15 = vld.sshfl [vmem:[#allocation1 + $0x28] sm:$0xff pattern:$0x73625140] }
  0x1d   : > { %v141_v16 = vld.sshfl [vmem:[#allocation1 + $0x30] sm:$0xff pattern:$0x73625140]  ;;  %v142_v17 = vld.sshfl [vmem:[#allocation1 + $0x38] sm:$0xff pattern:$0x73625140] }
  0x1e   : > { %v167_v18 = vpack.c.bf16 %v164_v13, %v163_v12  ;;  %v165_v19 = vmax.f32 %v139_v14, %v141_v16  ;;  %v166_v20 = vmax.f32 %v140_v15, %v142_v17 }
  0x20   : > { %v169_v21 = vunpack.c.l.bf16 %v167_v18  ;;  %v170_v22 = vunpack.c.h.bf16 %v167_v18  ;;  %v168_v23 = vpack.c.bf16 %v166_v20, %v165_v19 }
  0x22   : > { %vm173_vm0 = vcmp.ge.f32.partialorder %v169_v21, 0.0  ;;  %vm174_vm1 = vcmp.ge.f32.partialorder %v170_v22, 0.0  ;;  %v177_v24 = vmul.f32 0.2, %v169_v21  ;;  %v178_v25 = vmul.f32 0.2, %v170_v22 }
  0x23   : > { %v171_v26 = vunpack.c.l.bf16 %v168_v23  ;;  %v172_v27 = vunpack.c.h.bf16 %v168_v23 }
  0x24   : > { %v181_v28 = vsel %vm173_vm0, %v169_v21, %v177_v24  ;;  %v182_v29 = vsel %vm174_vm1, %v170_v22, %v178_v25 }
  0x25   : > { %v185_v30 = vpack.c.bf16 %v182_v29, %v181_v28  ;;  %vm175_vm2 = vcmp.ge.f32.partialorder %v171_v26, 0.0  ;;  %vm176_vm3 = vcmp.ge.f32.partialorder %v172_v27, 0.0  ;;  %v179_v31 = vmul.f32 0.2, %v171_v26 }
  0x26   : > { %v180_v32 = vmul.f32 0.2, %v172_v27 }
  0x27   : > { %v189_v33 = vrot.slane %v185_v30, 3  ;;  %v183_v34 = vsel %vm175_vm2, %v171_v26, %v179_v31 }
  0x28   : > { %v184_v35 = vsel %vm176_vm3, %v172_v27, %v180_v32 }
  0x29   : > { %v194_v36 = vsel %vm191_vm4, %v185_v30, %v189_v33  ;;  %v186_v37 = vpack.c.bf16 %v184_v35, %v183_v34 }
  0x2a   : > { %200 = vst [vmem:[%s118_s17] sm:$0x3] %v194_v36 }
  0x2b   : > { %v190_v38 = vrot.slane %v186_v37, 3 }
  0x2d   : > { %v197_v39 = vsel %vm191_vm4, %v186_v37, %v190_v38 }
  0x2e   : > { %201 = vst [vmem:[%s118_s17 + $0x2] sm:$0x3] %v197_v39 }
  0x2f PF: > { %s11_s6 = sadd.s32 1, %s292_s6  }
  0x30   : > { %p8_p5 = scmp.ge.s32.totalorder %s11_s6, 4  }
  0x32   :  { %10 = sbr.rel (!%p8_p5) target bundleno = 1 (0x1), region = 55 }

// kernel: encoder_maxpool_forward.10
= control target key start
LH: loop header
LB: loop body
LE: loop exit
PB: predicated region body
PF: predicated region fallthrough
CT: control target
= control target key end

     0   :  { %s5748_s1 = inlined_call_operand.vmem [shape: bf16[2048,256], index: 1, kind: input, shape index: {}]   ;;  %s5749_s0 = inlined_call_operand.vmem [shape: bf16[32,2048], index: 0, kind: input, shape index: {}]   ;;  %s5750_s2 = inlined_call_operand.vmem [shape: f32[1,256], index: 2, kind: input, shape index: {}]   ;;  %s5751_s3 = inlined_call_operand.vmem [shape: bf16[32,256], index: 3, kind: output, shape index: {}]  }
   0x1   :  { %v2554_v0 = vld [vmem:[%s5748_s1 + $0x70] sm:$0xf]  ;;  %v3567_v1 = vld [vmem:[%s5748_s1 + $0x74] sm:$0xf0]  ;;  %v2546_v11 = vld [vmem:[%s5748_s1 + $0x60] sm:$0xf] }
   0x2   :  { %v2618_v2 = vld [vmem:[%s5748_s1 + $0xf0] sm:$0xf]  ;;  %v2555_v3 = vor.u32 %v3567_v1, %v2554_v0  ;;  %v3583_v4 = vld [vmem:[%s5748_s1 + $0xf4] sm:$0xf0]  ;;  %v3565_v13 = vld [vmem:[%s5748_s1 + $0x64] sm:$0xf0] }
   0x3   :  { %v2682_v5 = vld [vmem:[%s5748_s1 + $0x170] sm:$0xf]  ;;  %v3599_v6 = vld [vmem:[%s5748_s1 + $0x174] sm:$0xf0]  ;;  %v2619_v7 = vor.u32 %v3583_v4, %v2618_v2  ;;  %v2610_v14 = vld [vmem:[%s5748_s1 + $0xe0] sm:$0xf]  ;;  %v2547_v16 = vor.u32 %v3565_v13, %v2546_v11 }
   0x4   :  { %v2683_v8 = vor.u32 %v3599_v6, %v2682_v5  ;;  %v2746_v9 = vld [vmem:[%s5748_s1 + $0x1f0] sm:$0xf]  ;;  %v3615_v10 = vld [vmem:[%s5748_s1 + $0x1f4] sm:$0xf0]  ;;  %1748 = vmatpush.bf16.msra.mxu0 %v2555_v3  ;;  %v3581_v15 = vld [vmem:[%s5748_s1 + $0xe4] sm:$0xf0] }
   0x5   :  { %v2747_v12 = vor.u32 %v3615_v10, %v2746_v9  ;;  %1767 = vmatpush.bf16.msra.mxu1 %v2619_v7  ;;  %v2611_v17 = vor.u32 %v3581_v15, %v2610_v14  ;;  %v2674_v18 = vld [vmem:[%s5748_s1 + $0x160] sm:$0xf]  ;;  %v3597_v19 = vld [vmem:[%s5748_s1 + $0x164] sm:$0xf0]  ;;  %v2538_v23 = vld [vmem:[%s5748_s1 + $0x50] sm:$0xf] }
   0x6   :  { %1786 = vmatpush.bf16.msra.mxu2 %v2683_v8  ;;  %v2738_v20 = vld [vmem:[%s5748_s1 + $0x1e0] sm:$0xf]  ;;  %v2675_v21 = vor.u32 %v3597_v19, %v2674_v18  ;;  %v3613_v22 = vld [vmem:[%s5748_s1 + $0x1e4] sm:$0xf0]  ;;  %v3563_v24 = vld [vmem:[%s5748_s1 + $0x54] sm:$0xf0] }
   0x7   :  { %1805 = vmatpush.bf16.msra.mxu3 %v2747_v12  ;;  %v2739_v25 = vor.u32 %v3613_v22, %v2738_v20  ;;  %v2602_v26 = vld [vmem:[%s5748_s1 + $0xd0] sm:$0xf]  ;;  %v3579_v27 = vld [vmem:[%s5748_s1 + $0xd4] sm:$0xf0]  ;;  %v2539_v29 = vor.u32 %v3563_v24, %v2538_v23  ;;  %v2530_v35 = vld [vmem:[%s5748_s1 + $0x40] sm:$0xf] }
   0x8   :  { %v2666_v28 = vld [vmem:[%s5748_s1 + $0x150] sm:$0xf]  ;;  %1749 = vmatpush.bf16.msra.mxu0 %v2547_v16  ;;  %v3595_v30 = vld [vmem:[%s5748_s1 + $0x154] sm:$0xf0]  ;;  %v2603_v33 = vor.u32 %v3579_v27, %v2602_v26  ;;  %v3561_v36 = vld [vmem:[%s5748_s1 + $0x44] sm:$0xf0] }
   0x9   :  { %v2730_v31 = vld [vmem:[%s5748_s1 + $0x1d0] sm:$0xf]  ;;  %v3611_v32 = vld [vmem:[%s5748_s1 + $0x1d4] sm:$0xf0]  ;;  %1768 = vmatpush.bf16.msra.mxu1 %v2611_v17  ;;  %v2667_v34 = vor.u32 %v3595_v30, %v2666_v28  ;;  %v2594_v37 = vld [vmem:[%s5748_s1 + $0xc0] sm:$0xf]  ;;  %v2531_v44 = vor.u32 %v3561_v36, %v2530_v35 }
   0xa   :  { %1787 = vmatpush.bf16.msra.mxu2 %v2675_v21  ;;  %v2731_v38 = vor.u32 %v3611_v32, %v2730_v31  ;;  %v3577_v39 = vld [vmem:[%s5748_s1 + $0xc4] sm:$0xf0]  ;;  %v2658_v40 = vld [vmem:[%s5748_s1 + $0x140] sm:$0xf]  ;;  %v2522_v47 = vld [vmem:[%s5748_s1 + $0x30] sm:$0xf] }
   0xb   :  { %1806 = vmatpush.bf16.msra.mxu3 %v2739_v25  ;;  %v3593_v41 = vld [vmem:[%s5748_s1 + $0x144] sm:$0xf0]  ;;  %v2722_v42 = vld [vmem:[%s5748_s1 + $0x1c0] sm:$0xf]  ;;  %v2595_v45 = vor.u32 %v3577_v39, %v2594_v37  ;;  %v3559_v48 = vld [vmem:[%s5748_s1 + $0x34] sm:$0xf0] }
   0xc   :  { %v3609_v43 = vld [vmem:[%s5748_s1 + $0x1c4] sm:$0xf0]  ;;  %1750 = vmatpush.bf16.msra.mxu0 %v2539_v29  ;;  %v2659_v46 = vor.u32 %v3593_v41, %v2658_v40  ;;  %v2586_v49 = vld [vmem:[%s5748_s1 + $0xb0] sm:$0xf]  ;;  %v3575_v51 = vld [vmem:[%s5748_s1 + $0xb4] sm:$0xf0]  ;;  %v2523_v56 = vor.u32 %v3559_v48, %v2522_v47 }
   0xd   :  { %1769 = vmatpush.bf16.msra.mxu1 %v2603_v33  ;;  %v2723_v50 = vor.u32 %v3609_v43, %v2722_v42  ;;  %v2650_v52 = vld [vmem:[%s5748_s1 + $0x130] sm:$0xf]  ;;  %v3591_v53 = vld [vmem:[%s5748_s1 + $0x134] sm:$0xf0]  ;;  %v2587_v57 = vor.u32 %v3575_v51, %v2586_v49  ;;  %v2514_v59 = vld [vmem:[%s5748_s1 + $0x20] sm:$0xf] }
   0xe   :  { %1788 = vmatpush.bf16.msra.mxu2 %v2667_v34  ;;  %v2714_v54 = vld [vmem:[%s5748_s1 + $0x1b0] sm:$0xf]  ;;  %v3607_v55 = vld [vmem:[%s5748_s1 + $0x1b4] sm:$0xf0]  ;;  %v2651_v58 = vor.u32 %v3591_v53, %v2650_v52  ;;  %v3557_v60 = vld [vmem:[%s5748_s1 + $0x24] sm:$0xf0] }
   0xf   :  { %1807 = vmatpush.bf16.msra.mxu3 %v2731_v38  ;;  %v2578_v61 = vld [vmem:[%s5748_s1 + $0xa0] sm:$0xf]  ;;  %v2715_v62 = vor.u32 %v3607_v55, %v2714_v54  ;;  %v3573_v63 = vld [vmem:[%s5748_s1 + $0xa4] sm:$0xf0]  ;;  %v2515_v4 = vor.u32 %v3557_v60, %v2514_v59  ;;  %v2506_v7 = vld [vmem:[%s5748_s1 + $0x10] sm:$0xf] }
  0x10   :  { %1751 = vmatpush.bf16.msra.mxu0 %v2531_v44  ;;  %v2642_v0 = vld [vmem:[%s5748_s1 + $0x120] sm:$0xf]  ;;  %v3589_v1 = vld [vmem:[%s5748_s1 + $0x124] sm:$0xf0]  ;;  %v2579_v5 = vor.u32 %v3573_v63, %v2578_v61  ;;  %v3555_v8 = vld [vmem:[%s5748_s1 + $0x14] sm:$0xf0] }
  0x11   :  { %1770 = vmatpush.bf16.msra.mxu1 %v2595_v45  ;;  %v2706_v2 = vld [vmem:[%s5748_s1 + $0x1a0] sm:$0xf]  ;;  %v3605_v3 = vld [vmem:[%s5748_s1 + $0x1a4] sm:$0xf0]  ;;  %v2643_v6 = vor.u32 %v3589_v1, %v2642_v0  ;;  %v2570_v9 = vld [vmem:[%s5748_s1 + $0x90] sm:$0xf]  ;;  %v2507_v17 = vor.u32 %v3555_v8, %v2506_v7 }
  0x12   :  { %1789 = vmatpush.bf16.msra.mxu2 %v2659_v46  ;;  %v2707_v10 = vor.u32 %v3605_v3, %v2706_v2  ;;  %v3571_v11 = vld [vmem:[%s5748_s1 + $0x94] sm:$0xf0]  ;;  %v2634_v12 = vld [vmem:[%s5748_s1 + $0x110] sm:$0xf]  ;;  %v2498_v16 = vld [vmem:[%s5748_s1] sm:$0xf] }
  0x13   :  { %1808 = vmatpush.bf16.msra.mxu3 %v2723_v50  ;;  %v3587_v13 = vld [vmem:[%s5748_s1 + $0x114] sm:$0xf0]  ;;  %v2698_v14 = vld [vmem:[%s5748_s1 + $0x190] sm:$0xf]  ;;  %v3553_v18 = vld [vmem:[%s5748_s1 + $0x4] sm:$0xf0]  ;;  %v2571_v21 = vor.u32 %v3571_v11, %v2570_v9 }
  0x14   :  { %1752 = vmatpush.bf16.msra.mxu0 %v2523_v56  ;;  %v3603_v15 = vld [vmem:[%s5748_s1 + $0x194] sm:$0xf0]  ;;  %v2562_v19 = vld [vmem:[%s5748_s1 + $0x80] sm:$0xf]  ;;  %v3569_v20 = vld [vmem:[%s5748_s1 + $0x84] sm:$0xf0]  ;;  %v2635_v22 = vor.u32 %v3587_v13, %v2634_v12  ;;  %v2499_v34 = vor.u32 %v3553_v18, %v2498_v16 }
  0x15   :  { %1771 = vmatpush.bf16.msra.mxu1 %v2587_v57  ;;  %v2626_v23 = vld [vmem:[%s5748_s1 + $0x100] sm:$0xf]  ;;  %v3585_v24 = vld [vmem:[%s5748_s1 + $0x104] sm:$0xf0]  ;;  %v2699_v26 = vor.u32 %v3603_v15, %v2698_v14  ;;  %v3520_v30 = vld [vmem:[%s5749_s0 + $0x4] sm:$0xf]  ;;  %v2563_v38 = vor.u32 %v3569_v20, %v2562_v19 }
  0x16   :  { %1790 = vmatpush.bf16.msra.mxu2 %v2651_v58  ;;  %v2690_v25 = vld [vmem:[%s5748_s1 + $0x180] sm:$0xf]  ;;  %v3601_v27 = vld [vmem:[%s5748_s1 + $0x184] sm:$0xf0]  ;;  %v2372_v31 = vld [vmem:[%s5749_s0 + $0x40] sm:$0xf0]  ;;  %v2627_v39 = vor.u32 %v3585_v24, %v2626_v23 }
  0x17   :  { %1809 = vmatpush.bf16.msra.mxu3 %v2715_v62  ;;  %v2370_v28 = vld [vmem:[%s5749_s0] sm:$0xf]  ;;  %v2938_v32 = vld [vmem:[%s5748_s1 + $0x370] sm:$0xf]  ;;  %v3663_v33 = vld [vmem:[%s5748_s1 + $0x374] sm:$0xf0]  ;;  %v2691_v43 = vor.u32 %v3601_v27, %v2690_v25  ;;  %v4077_v53 = vor.u32 %v3520_v30, %v2372_v31 }
  0x18   :  { %1753 = vmatpush.bf16.msra.mxu0 %v2515_v4  ;;  %v3528_v29 = vld [vmem:[%s5749_s0 + $0x3c] sm:$0xf0]  ;;  %v2378_v35 = vld [vmem:[%s5749_s0 + $0x8] sm:$0xf]  ;;  %v2874_v36 = vld [vmem:[%s5748_s1 + $0x2f0] sm:$0xf]  ;;  %v2939_v44 = vor.u32 %v3663_v33, %v2938_v32 }
  0x19   :  { %1772 = vmatpush.bf16.msra.mxu1 %v2579_v5  ;;  %v3647_v37 = vld [vmem:[%s5748_s1 + $0x2f4] sm:$0xf0]  ;;  %v3529_v40 = vld [vmem:[%s5749_s0 + $0x44] sm:$0xf0]  ;;  %v3521_v41 = vld [vmem:[%s5749_s0 + $0xc] sm:$0xf]  ;;  %v4066_v48 = vor.u32 %v3528_v29, %v2370_v28 }
  0x1a   :  { %1791 = vmatpush.bf16.msra.mxu2 %v2643_v6  ;;  %v2380_v42 = vld [vmem:[%s5749_s0 + $0x48] sm:$0xf0]  ;;  %v2810_v45 = vld [vmem:[%s5748_s1 + $0x270] sm:$0xf]  ;;  %v3631_v46 = vld [vmem:[%s5748_s1 + $0x274] sm:$0xf0]  ;;  %v2875_v49 = vor.u32 %v3647_v37, %v2874_v36  ;;  %v4079_v54 = vor.u32 %v3529_v40, %v2378_v35 }
  0x1b   :  { %1810 = vmatpush.bf16.msra.mxu3 %v2707_v10  ;;  %v3002_v47 = vld [vmem:[%s5748_s1 + $0x3f0] sm:$0xf]  ;;  %v3679_v50 = vld [vmem:[%s5748_s1 + $0x3f4] sm:$0xf0]  ;;  %v2930_v51 = vld [vmem:[%s5748_s1 + $0x360] sm:$0xf]  ;;  %v4087_v57 = vor.u32 %v3521_v41, %v2380_v42  ;;  %v2811_v58 = vor.u32 %v3631_v46, %v2810_v45 }
  0x1c   :  { %1754 = vmatpush.bf16.msra.mxu0 %v2507_v17  ;;  %v3661_v52 = vld [vmem:[%s5748_s1 + $0x364] sm:$0xf0]  ;;  %v2866_v55 = vld [vmem:[%s5748_s1 + $0x2e0] sm:$0xf]  ;;  %v3003_v59 = vor.u32 %v3679_v50, %v3002_v47  ;;  %v2922_v2 = vld [vmem:[%s5748_s1 + $0x350] sm:$0xf] }
  0x1d   :  { %1773 = vmatpush.bf16.msra.mxu1 %v2571_v21  ;;  %v3645_v56 = vld [vmem:[%s5748_s1 + $0x2e4] sm:$0xf0]  ;;  %v2931_v60 = vor.u32 %v3661_v52, %v2930_v51  ;;  %v2802_v61 = vld [vmem:[%s5748_s1 + $0x260] sm:$0xf]  ;;  %v3659_v3 = vld [vmem:[%s5748_s1 + $0x354] sm:$0xf0] }
  0x1e   :  { %1792 = vmatpush.bf16.msra.mxu2 %v2635_v22  ;;  %v3629_v62 = vld [vmem:[%s5748_s1 + $0x264] sm:$0xf0]  ;;  %v2994_v63 = vld [vmem:[%s5748_s1 + $0x3e0] sm:$0xf]  ;;  %v2867_v0 = vor.u32 %v3645_v56, %v2866_v55  ;;  %v2858_v4 = vld [vmem:[%s5748_s1 + $0x2d0] sm:$0xf]  ;;  %v2923_v8 = vor.u32 %v3659_v3, %v2922_v2 }
  0x1f   :  { %1811 = vmatpush.bf16.msra.mxu3 %v2699_v26  ;;  %v3677_v1 = vld [vmem:[%s5748_s1 + $0x3e4] sm:$0xf0]  ;;  %v3643_v5 = vld [vmem:[%s5748_s1 + $0x2d4] sm:$0xf0]  ;;  %v2803_v6 = vor.u32 %v3629_v62, %v2802_v61  ;;  %v2794_v9 = vld [vmem:[%s5748_s1 + $0x250] sm:$0xf] }
  0x20   :  { %1755 = vmatpush.bf16.msra.mxu0 %v2499_v34  ;;  %v2995_v7 = vor.u32 %v3677_v1, %v2994_v63  ;;  %v3627_v10 = vld [vmem:[%s5748_s1 + $0x254] sm:$0xf0]  ;;  %v2986_v11 = vld [vmem:[%s5748_s1 + $0x3d0] sm:$0xf]  ;;  %v2859_v12 = vor.u32 %v3643_v5, %v2858_v4  ;;  %v2914_v14 = vld [vmem:[%s5748_s1 + $0x340] sm:$0xf] }
  0x21   :  { %1774 = vmatpush.bf16.msra.mxu1 %v2563_v38  ;;  %v3675_v13 = vld [vmem:[%s5748_s1 + $0x3d4] sm:$0xf0]  ;;  %v3657_v15 = vld [vmem:[%s5748_s1 + $0x344] sm:$0xf0]  ;;  %v2850_v16 = vld [vmem:[%s5748_s1 + $0x2c0] sm:$0xf]  ;;  %v2795_v18 = vor.u32 %v3627_v10, %v2794_v9 }
  0x22   :  { %1793 = vmatpush.bf16.msra.mxu2 %v2627_v39  ;;  %v3641_v17 = vld [vmem:[%s5748_s1 + $0x2c4] sm:$0xf0]  ;;  %v2786_v19 = vld [vmem:[%s5748_s1 + $0x240] sm:$0xf]  ;;  %v2987_v22 = vor.u32 %v3675_v13, %v2986_v11  ;;  %v2915_v23 = vor.u32 %v3657_v15, %v2914_v14  ;;  %v3536_v28 = vld [vmem:[%s5749_s0 + $0x84] sm:$0xf] }
  0x23   :  { %1812 = vmatpush.bf16.msra.mxu3 %v2691_v43  ;;  %1756 = vmatmul.bf16.vlgmr.msra.gmra.mxu0 %v4066_v48  ;;  %v3625_v20 = vld [vmem:[%s5748_s1 + $0x244] sm:$0xf0]  ;;  %v2978_v21 = vld [vmem:[%s5748_s1 + $0x3c0] sm:$0xf]  ;;  %v2851_v27 = vor.u32 %v3641_v17, %v2850_v16  ;;  %v2436_v29 = vld [vmem:[%s5749_s0 + $0xc0] sm:$0xf0] }
  0x24   :  { %1775 = vmatmul.bf16.vlgmr.msra.gmra.mxu1 %v4077_v53  ;;  %1824 = vmatpush.bf16.msrb.mxu0 %v2811_v58  ;;  %v3673_v24 = vld [vmem:[%s5748_s1 + $0x3c4] sm:$0xf0]  ;;  %v2434_v25 = vld [vmem:[%s5749_s0 + $0x80] sm:$0xf]  ;;  %v2906_v30 = vld [vmem:[%s5748_s1 + $0x330] sm:$0xf]  ;;  %v2787_v35 = vor.u32 %v3625_v20, %v2786_v19  ;;  %v4209_v50 = vor.u32 %v3536_v28, %v2436_v29 }
  0x25   :  { %1843 = vmatpush.bf16.msrb.mxu1 %v2875_v49  ;;  %1794 = vmatmul.bf16.vlgmr.msra.gmra.mxu2 %v4079_v54  ;;  %v3544_v26 = vld [vmem:[%s5749_s0 + $0xbc] sm:$0xf0]  ;;  %v3655_v31 = vld [vmem:[%s5748_s1 + $0x334] sm:$0xf0]  ;;  %v2442_v32 = vld [vmem:[%s5749_s0 + $0x88] sm:$0xf]  ;;  %v2979_v39 = vor.u32 %v3673_v24, %v2978_v21 }
  0x26   :  { %1862 = vmatpush.bf16.msrb.mxu2 %v2939_v44  ;;  %1813 = vmatmul.bf16.vlgmr.msra.gmra.mxu3 %v4087_v57  ;;  %v2842_v33 = vld [vmem:[%s5748_s1 + $0x2b0] sm:$0xf]  ;;  %v3639_v34 = vld [vmem:[%s5748_s1 + $0x2b4] sm:$0xf0]  ;;  %v3545_v36 = vld [vmem:[%s5749_s0 + $0xc4] sm:$0xf0]  ;;  %v2907_v40 = vor.u32 %v3655_v31, %v2906_v30  ;;  %v4198_v44 = vor.u32 %v3544_v26, %v2434_v25 }
  0x27   :  { %1881 = vmatpush.bf16.msrb.mxu3 %v3003_v59  ;;  %v3537_v37 = vld [vmem:[%s5749_s0 + $0x8c] sm:$0xf]  ;;  %v2778_v41 = vld [vmem:[%s5748_s1 + $0x230] sm:$0xf]  ;;  %v3623_v42 = vld [vmem:[%s5748_s1 + $0x234] sm:$0xf0]  ;;  %v2843_v45 = vor.u32 %v3639_v34, %v2842_v33  ;;  %v4211_v51 = vor.u32 %v3545_v36, %v2442_v32 }
  0x28   :  { %1825 = vmatpush.bf16.msrb.mxu0 %v2803_v6  ;;  %v2444_v38 = vld [vmem:[%s5749_s0 + $0xc8] sm:$0xf0]  ;;  %v2970_v43 = vld [vmem:[%s5748_s1 + $0x3b0] sm:$0xf]  ;;  %v3671_v46 = vld [vmem:[%s5748_s1 + $0x3b4] sm:$0xf0]  ;;  %v2779_v58 = vor.u32 %v3623_v42, %v2778_v41 }
  0x29   :  { %1844 = vmatpush.bf16.msrb.mxu1 %v2867_v0  ;;  %v2898_v47 = vld [vmem:[%s5748_s1 + $0x320] sm:$0xf]  ;;  %v3653_v49 = vld [vmem:[%s5748_s1 + $0x324] sm:$0xf0]  ;;  %v4219_v56 = vor.u32 %v3537_v37, %v2444_v38  ;;  %v2971_v59 = vor.u32 %v3671_v46, %v2970_v43  ;;  %v2890_v2 = vld [vmem:[%s5748_s1 + $0x310] sm:$0xf] }
  0x2a   :  { %1863 = vmatpush.bf16.msrb.mxu2 %v2931_v60  ;;  %v2834_v52 = vld [vmem:[%s5748_s1 + $0x2a0] sm:$0xf]  ;;  %v3637_v55 = vld [vmem:[%s5748_s1 + $0x2a4] sm:$0xf0]  ;;  %v2899_v60 = vor.u32 %v3653_v49, %v2898_v47  ;;  %v3651_v3 = vld [vmem:[%s5748_s1 + $0x314] sm:$0xf0] }
  0x2b   :  { %1882 = vmatpush.bf16.msrb.mxu3 %v2995_v7  ;;  %v2770_v61 = vld [vmem:[%s5748_s1 + $0x220] sm:$0xf]  ;;  %v3621_v62 = vld [vmem:[%s5748_s1 + $0x224] sm:$0xf0]  ;;  %v2835_v0 = vor.u32 %v3637_v55, %v2834_v52  ;;  %v2826_v4 = vld [vmem:[%s5748_s1 + $0x290] sm:$0xf]  ;;  %v2891_v9 = vor.u32 %v3651_v3, %v2890_v2 }
  0x2c   :  { %1826 = vmatpush.bf16.msrb.mxu0 %v2795_v18  ;;  %v2962_v63 = vld [vmem:[%s5748_s1 + $0x3a0] sm:$0xf]  ;;  %v3669_v1 = vld [vmem:[%s5748_s1 + $0x3a4] sm:$0xf0]  ;;  %v3635_v5 = vld [vmem:[%s5748_s1 + $0x294] sm:$0xf0]  ;;  %v2771_v6 = vor.u32 %v3621_v62, %v2770_v61 }
  0x2d   :  { %1845 = vmatpush.bf16.msrb.mxu1 %v2859_v12  ;;  %v2762_v7 = vld [vmem:[%s5748_s1 + $0x210] sm:$0xf]  ;;  %v3619_v10 = vld [vmem:[%s5748_s1 + $0x214] sm:$0xf0]  ;;  %v2827_v13 = vor.u32 %v3635_v5, %v2826_v4  ;;  %v2882_v14 = vld [vmem:[%s5748_s1 + $0x300] sm:$0xf] }
  0x2e   :  { %1864 = vmatpush.bf16.msrb.mxu2 %v2923_v8  ;;  %v2963_v8 = vor.u32 %v3669_v1, %v2962_v63  ;;  %v2954_v11 = vld [vmem:[%s5748_s1 + $0x390] sm:$0xf]  ;;  %v3667_v12 = vld [vmem:[%s5748_s1 + $0x394] sm:$0xf0]  ;;  %v3649_v15 = vld [vmem:[%s5748_s1 + $0x304] sm:$0xf0]  ;;  %v2763_v20 = vor.u32 %v3619_v10, %v2762_v7 }
  0x2f   :  { %1883 = vmatpush.bf16.msrb.mxu3 %v2987_v22  ;;  %v2818_v16 = vld [vmem:[%s5748_s1 + $0x280] sm:$0xf]  ;;  %v3633_v17 = vld [vmem:[%s5748_s1 + $0x284] sm:$0xf0]  ;;  %v3194_v18 = vld [vmem:[%s5748_s1 + $0x570] sm:$0xf]  ;;  %v2955_v24 = vor.u32 %v3667_v12, %v2954_v11  ;;  %v2883_v25 = vor.u32 %v3649_v15, %v2882_v14 }
  0x30   :  { %1827 = vmatpush.bf16.msrb.mxu0 %v2787_v35  ;;  %v3727_v19 = vld [vmem:[%s5748_s1 + $0x574] sm:$0xf0]  ;;  %v2754_v21 = vld [vmem:[%s5748_s1 + $0x200] sm:$0xf]  ;;  %v3130_v22 = vld [vmem:[%s5748_s1 + $0x4f0] sm:$0xf]  ;;  %v2819_v29 = vor.u32 %v3633_v17, %v2818_v16 }
  0x31   :  { %1846 = vmatpush.bf16.msrb.mxu1 %v2851_v27  ;;  %v3617_v26 = vld [vmem:[%s5748_s1 + $0x204] sm:$0xf0]  ;;  %v2946_v27 = vld [vmem:[%s5748_s1 + $0x380] sm:$0xf]  ;;  %v2386_v30 = vld [vmem:[%s5749_s0 + $0x10] sm:$0xf]  ;;  %v3195_v34 = vor.u32 %v3727_v19, %v3194_v18 }
  0x32   :  { %1865 = vmatpush.bf16.msrb.mxu2 %v2915_v23  ;;  %v3711_v23 = vld [vmem:[%s5748_s1 + $0x4f4] sm:$0xf0]  ;;  %v3665_v28 = vld [vmem:[%s5748_s1 + $0x384] sm:$0xf0]  ;;  %v3530_v31 = vld [vmem:[%s5749_s0 + $0x4c] sm:$0xf0]  ;;  %v2755_v42 = vor.u32 %v3617_v26, %v2754_v21 }
  0x33   :  { %1884 = vmatpush.bf16.msrb.mxu3 %v2979_v39  ;;  %1761 = vmatmul.bf16.gmra.mxu0 %v4198_v44  ;;  %v3522_v32 = vld [vmem:[%s5749_s0 + $0x14] sm:$0xf]  ;;  %v3066_v35 = vld [vmem:[%s5748_s1 + $0x470] sm:$0xf]  ;;  %v3695_v36 = vld [vmem:[%s5748_s1 + $0x474] sm:$0xf0]  ;;  %v3131_v38 = vor.u32 %v3711_v23, %v3130_v22  ;;  %v2947_v47 = vor.u32 %v3665_v28, %v2946_v27 }
  0x34   :  { %1780 = vmatmul.bf16.gmra.mxu1 %v4209_v50  ;;  %1828 = vmatpush.bf16.msrb.mxu0 %v2779_v58  ;;  %v2388_v33 = vld [vmem:[%s5749_s0 + $0x50] sm:$0xf0]  ;;  %v3258_v37 = vld [vmem:[%s5748_s1 + $0x5f0] sm:$0xf]  ;;  %v3743_v39 = vld [vmem:[%s5748_s1 + $0x5f4] sm:$0xf0]  ;;  %v3067_v52 = vor.u32 %v3695_v36, %v3066_v35 }
  0x35   :  { %1847 = vmatpush.bf16.msrb.mxu1 %v2843_v45  ;;  %1799 = vmatmul.bf16.gmra.mxu2 %v4211_v51  ;;  %v3725_v41 = vld [vmem:[%s5748_s1 + $0x564] sm:$0xf0]  ;;  %v2394_v43 = vld [vmem:[%s5749_s0 + $0x18] sm:$0xf]  ;;  %v3523_v46 = vld [vmem:[%s5749_s0 + $0x1c] sm:$0xf]  ;;  %v4356_v1 = vor.u32 %v3522_v32, %v2388_v33 }
  0x36   :  { %1866 = vmatpush.bf16.msrb.mxu2 %v2907_v40  ;;  %1818 = vmatmul.bf16.gmra.mxu3 %v4219_v56  ;;  %v3186_v40 = vld [vmem:[%s5748_s1 + $0x560] sm:$0xf]  ;;  %v3531_v45 = vld [vmem:[%s5749_s0 + $0x54] sm:$0xf0]  ;;  %v2396_v49 = vld [vmem:[%s5749_s0 + $0x58] sm:$0xf0] }
  0x37   :  { %1885 = vmatpush.bf16.msrb.mxu3 %v2971_v59  ;;  %v3058_v55 = vld [vmem:[%s5748_s1 + $0x460] sm:$0xf]  ;;  %v3693_v58 = vld [vmem:[%s5748_s1 + $0x464] sm:$0xf0]  ;;  %v3259_v59 = vor.u32 %v3743_v39, %v3258_v37  ;;  %v3178_v3 = vld [vmem:[%s5748_s1 + $0x550] sm:$0xf]  ;;  %v4367_v5 = vor.u32 %v3531_v45, %v2394_v43 }
  0x38   :  { %1829 = vmatpush.bf16.msrb.mxu0 %v2771_v6  ;;  %v3122_v61 = vld [vmem:[%s5748_s1 + $0x4e0] sm:$0xf]  ;;  %v3709_v62 = vld [vmem:[%s5748_s1 + $0x4e4] sm:$0xf0]  ;;  %v3723_v4 = vld [vmem:[%s5748_s1 + $0x554] sm:$0xf0]  ;;  %v4369_v6 = vor.u32 %v3523_v46, %v2396_v49  ;;  %v3059_v7 = vor.u32 %v3693_v58, %v3058_v55 }
  0x39   :  { %1848 = vmatpush.bf16.msrb.mxu1 %v2835_v0  ;;  %v3250_v63 = vld [vmem:[%s5748_s1 + $0x5e0] sm:$0xf]  ;;  %v4354_v0 = vor.u32 %v3530_v31, %v2386_v30  ;;  %v3741_v2 = vld [vmem:[%s5748_s1 + $0x5e4] sm:$0xf0]  ;;  %v3691_v10 = vld [vmem:[%s5748_s1 + $0x454] sm:$0xf0]  ;;  %v3179_v12 = vor.u32 %v3723_v4, %v3178_v3 }
  0x3a   :  { %1867 = vmatpush.bf16.msrb.mxu2 %v2899_v60  ;;  %v3187_v60 = vor.u32 %v3725_v41, %v3186_v40  ;;  %v3251_v11 = vor.u32 %v3741_v2, %v3250_v63  ;;  %v3707_v14 = vld [vmem:[%s5748_s1 + $0x4d4] sm:$0xf0]  ;;  %v3242_v15 = vld [vmem:[%s5748_s1 + $0x5d0] sm:$0xf]  ;;  %v3170_v17 = vld [vmem:[%s5748_s1 + $0x540] sm:$0xf] }
  0x3b   :  { %1886 = vmatpush.bf16.msrb.mxu3 %v2963_v8  ;;  %v3123_v8 = vor.u32 %v3709_v62, %v3122_v61  ;;  %v3739_v16 = vld [vmem:[%s5748_s1 + $0x5d4] sm:$0xf0]  ;;  %v3721_v18 = vld [vmem:[%s5748_s1 + $0x544] sm:$0xf0]  ;;  %v3042_v21 = vld [vmem:[%s5748_s1 + $0x440] sm:$0xf] }
  0x3c   :  { %1830 = vmatpush.bf16.msrb.mxu0 %v2763_v20  ;;  %v3689_v22 = vld [vmem:[%s5748_s1 + $0x444] sm:$0xf0]  ;;  %v3243_v23 = vor.u32 %v3739_v16, %v3242_v15  ;;  %v3234_v27 = vld [vmem:[%s5748_s1 + $0x5c0] sm:$0xf]  ;;  %v3719_v30 = vld [vmem:[%s5748_s1 + $0x534] sm:$0xf0] }
  0x3d   :  { %1849 = vmatpush.bf16.msrb.mxu1 %v2827_v13  ;;  %v3114_v13 = vld [vmem:[%s5748_s1 + $0x4d0] sm:$0xf]  ;;  %v3705_v26 = vld [vmem:[%s5748_s1 + $0x4c4] sm:$0xf0]  ;;  %v3043_v31 = vor.u32 %v3689_v22, %v3042_v21  ;;  %v2452_v39 = vld [vmem:[%s5749_s0 + $0xd0] sm:$0xf0] }
  0x3e   :  { %1868 = vmatpush.bf16.msrb.mxu2 %v2891_v9  ;;  %v3050_v9 = vld [vmem:[%s5748_s1 + $0x450] sm:$0xf]  ;;  %v3115_v20 = vor.u32 %v3707_v14, %v3114_v13  ;;  %v3737_v28 = vld [vmem:[%s5748_s1 + $0x5c4] sm:$0xf0]  ;;  %v3735_v45 = vld [vmem:[%s5748_s1 + $0x5b4] sm:$0xf0] }
  0x3f   :  { %1887 = vmatpush.bf16.msrb.mxu3 %v2955_v24  ;;  %v3051_v19 = vor.u32 %v3691_v10, %v3050_v9  ;;  %v3171_v24 = vor.u32 %v3721_v18, %v3170_v17  ;;  %v3034_v33 = vld [vmem:[%s5748_s1 + $0x430] sm:$0xf]  ;;  %v3235_v35 = vor.u32 %v3737_v28, %v3234_v27  ;;  %v3154_v46 = vld [vmem:[%s5748_s1 + $0x520] sm:$0xf]  ;;  %v2458_v49 = vld [vmem:[%s5749_s0 + $0x98] sm:$0xf] }
  0x40   :  { %1831 = vmatpush.bf16.msrb.mxu0 %v2755_v42  ;;  %v2450_v36 = vld [vmem:[%s5749_s0 + $0x90] sm:$0xf]  ;;  %v3703_v42 = vld [vmem:[%s5748_s1 + $0x4b4] sm:$0xf0]  ;;  %v3539_v55 = vld [vmem:[%s5749_s0 + $0x9c] sm:$0xf] }
  0x41   :  { %1850 = vmatpush.bf16.msrb.mxu1 %v2819_v29  ;;  %v3162_v29 = vld [vmem:[%s5748_s1 + $0x530] sm:$0xf]  ;;  %v2460_v58 = vld [vmem:[%s5749_s0 + $0xd8] sm:$0xf0]  ;;  %v3026_v61 = vld [vmem:[%s5748_s1 + $0x420] sm:$0xf] }
  0x42   :  { %1869 = vmatpush.bf16.msrb.mxu2 %v2883_v25  ;;  %v3106_v25 = vld [vmem:[%s5748_s1 + $0x4c0] sm:$0xf]  ;;  %v3546_v37 = vld [vmem:[%s5749_s0 + $0xcc] sm:$0xf0]  ;;  %v3163_v40 = vor.u32 %v3719_v30, %v3162_v29  ;;  %v3685_v62 = vld [vmem:[%s5748_s1 + $0x424] sm:$0xf0]  ;;  %v4501_v14 = vor.u32 %v3539_v55, %v2460_v58 }
  0x43   :  { %1888 = vmatpush.bf16.msrb.mxu3 %v2947_v47  ;;  %1832 = vmatmul.bf16.vlgmr.msrb.gmra.mxu0 %v4354_v0  ;;  %v3107_v32 = vor.u32 %v3705_v26, %v3106_v25  ;;  %v3098_v41 = vld [vmem:[%s5748_s1 + $0x4b0] sm:$0xf]  ;;  %v3717_v47 = vld [vmem:[%s5748_s1 + $0x524] sm:$0xf0]  ;;  %v3090_v3 = vld [vmem:[%s5748_s1 + $0x4a0] sm:$0xf]  ;;  %v3027_v15 = vor.u32 %v3685_v62, %v3026_v61 }
  0x44   :  { %1900 = vmatpush.bf16.msra.mxu0 %v3067_v52  ;;  %1851 = vmatmul.bf16.vlgmr.msrb.gmra.mxu1 %v4356_v1  ;;  %v3226_v43 = vld [vmem:[%s5748_s1 + $0x5b0] sm:$0xf]  ;;  %v3547_v52 = vld [vmem:[%s5749_s0 + $0xd4] sm:$0xf0]  ;;  %v3155_v2 = vor.u32 %v3717_v47, %v3154_v46  ;;  %v3701_v4 = vld [vmem:[%s5748_s1 + $0x4a4] sm:$0xf0] }
  0x45   :  { %1919 = vmatpush.bf16.msra.mxu1 %v3131_v38  ;;  %1870 = vmatmul.bf16.vlgmr.msrb.gmra.mxu2 %v4367_v5  ;;  %v3538_v38 = vld [vmem:[%s5749_s0 + $0x94] sm:$0xf]  ;;  %v3227_v63 = vor.u32 %v3735_v45, %v3226_v43  ;;  %v3733_v10 = vld [vmem:[%s5748_s1 + $0x5a4] sm:$0xf0]  ;;  %v4499_v13 = vor.u32 %v3547_v52, %v2458_v49  ;;  %v3091_v16 = vor.u32 %v3701_v4, %v3090_v3  ;;  %v3018_v17 = vld [vmem:[%s5748_s1 + $0x410] sm:$0xf] }
  0x46   :  { %1938 = vmatpush.bf16.msra.mxu2 %v3195_v34  ;;  %1889 = vmatmul.bf16.vlgmr.msrb.gmra.mxu3 %v4369_v6  ;;  %v3687_v34 = vld [vmem:[%s5748_s1 + $0x434] sm:$0xf0]  ;;  %v4488_v9 = vor.u32 %v3538_v38, %v2452_v39  ;;  %v3082_v21 = vld [vmem:[%s5748_s1 + $0x490] sm:$0xf]  ;;  %v3138_v25 = vld [vmem:[%s5748_s1 + $0x500] sm:$0xf] }
  0x47   :  { %1957 = vmatpush.bf16.msra.mxu3 %v3259_v59  ;;  %v3035_v59 = vor.u32 %v3687_v34, %v3034_v33  ;;  %v3683_v18 = vld [vmem:[%s5748_s1 + $0x414] sm:$0xf0]  ;;  %v3713_v26 = vld [vmem:[%s5748_s1 + $0x504] sm:$0xf0]  ;;  %v3450_v27 = vld [vmem:[%s5748_s1 + $0x770] sm:$0xf] }
  0x48   :  { %1901 = vmatpush.bf16.msra.mxu0 %v3059_v7  ;;  %v3218_v7 = vld [vmem:[%s5748_s1 + $0x5a0] sm:$0xf]  ;;  %v3699_v22 = vld [vmem:[%s5748_s1 + $0x494] sm:$0xf0]  ;;  %v3019_v29 = vor.u32 %v3683_v18, %v3018_v17  ;;  %v3729_v38 = vld [vmem:[%s5748_s1 + $0x584] sm:$0xf0] }
  0x49   :  { %1920 = vmatpush.bf16.msra.mxu1 %v3123_v8  ;;  %v4486_v8 = vor.u32 %v3546_v37, %v2450_v36  ;;  %v3791_v28 = vld [vmem:[%s5748_s1 + $0x774] sm:$0xf0]  ;;  %v3083_v30 = vor.u32 %v3699_v22, %v3082_v21  ;;  %v3074_v33 = vld [vmem:[%s5748_s1 + $0x480] sm:$0xf]  ;;  %v3697_v36 = vld [vmem:[%s5748_s1 + $0x484] sm:$0xf0] }
  0x4a   :  { %1939 = vmatpush.bf16.msra.mxu2 %v3187_v60  ;;  %v3099_v60 = vor.u32 %v3703_v42, %v3098_v41  ;;  %v3202_v37 = vld [vmem:[%s5748_s1 + $0x580] sm:$0xf]  ;;  %v3451_v39 = vor.u32 %v3791_v28, %v3450_v27  ;;  %v3759_v41 = vld [vmem:[%s5748_s1 + $0x674] sm:$0xf0]  ;;  %v3386_v42 = vld [vmem:[%s5748_s1 + $0x6f0] sm:$0xf]  ;;  %v3075_v49 = vor.u32 %v3697_v36, %v3074_v33 }
  0x4b   :  { %1958 = vmatpush.bf16.msra.mxu3 %v3251_v11  ;;  %v3146_v11 = vld [vmem:[%s5748_s1 + $0x510] sm:$0xf]  ;;  %v3775_v43 = vld [vmem:[%s5748_s1 + $0x6f4] sm:$0xf0]  ;;  %v3442_v52 = vld [vmem:[%s5748_s1 + $0x760] sm:$0xf]  ;;  %v3203_v58 = vor.u32 %v3729_v38, %v3202_v37 }
  0x4c   :  { %1902 = vmatpush.bf16.msra.mxu0 %v3051_v19  ;;  %v3219_v19 = vor.u32 %v3733_v10, %v3218_v7  ;;  %v3514_v45 = vld [vmem:[%s5748_s1 + $0x7f0] sm:$0xf]  ;;  %v3807_v46 = vld [vmem:[%s5748_s1 + $0x7f4] sm:$0xf0]  ;;  %v3789_v55 = vld [vmem:[%s5748_s1 + $0x764] sm:$0xf0] }
  0x4d   :  { %1921 = vmatpush.bf16.msra.mxu1 %v3115_v20  ;;  %v3524_v61 = vld [vmem:[%s5749_s0 + $0x24] sm:$0xf]  ;;  %v3515_v3 = vor.u32 %v3807_v46, %v3514_v45  ;;  %v3314_v4 = vld [vmem:[%s5748_s1 + $0x660] sm:$0xf]  ;;  %v3757_v7 = vld [vmem:[%s5748_s1 + $0x664] sm:$0xf0] }
  0x4e   :  { %1940 = vmatpush.bf16.msra.mxu2 %v3179_v12  ;;  %v3715_v12 = vld [vmem:[%s5748_s1 + $0x514] sm:$0xf0]  ;;  %v2410_v10 = vld [vmem:[%s5749_s0 + $0x28] sm:$0xf]  ;;  %v3378_v17 = vld [vmem:[%s5748_s1 + $0x6e0] sm:$0xf] }
  0x4f   :  { %1959 = vmatpush.bf16.msra.mxu3 %v3243_v23  ;;  %v3147_v20 = vor.u32 %v3715_v12, %v3146_v11  ;;  %v3210_v23 = vld [vmem:[%s5748_s1 + $0x590] sm:$0xf]  ;;  %v3533_v11 = vld [vmem:[%s5749_s0 + $0x64] sm:$0xf0]  ;;  %v3525_v12 = vld [vmem:[%s5749_s0 + $0x2c] sm:$0xf] }
  0x50   :  { %1903 = vmatpush.bf16.msra.mxu0 %v3043_v31  ;;  %v3010_v31 = vld [vmem:[%s5748_s1 + $0x400] sm:$0xf]  ;;  %v3773_v18 = vld [vmem:[%s5748_s1 + $0x6e4] sm:$0xf0]  ;;  %v3434_v22 = vld [vmem:[%s5748_s1 + $0x750] sm:$0xf]  ;;  %v4637_v28 = vor.u32 %v3533_v11, %v2410_v10 }
  0x51   :  { %1922 = vmatpush.bf16.msra.mxu1 %v3107_v32  ;;  %v3681_v32 = vld [vmem:[%s5748_s1 + $0x404] sm:$0xf0]  ;;  %v3755_v27 = vld [vmem:[%s5748_s1 + $0x654] sm:$0xf0]  ;;  %v3498_v36 = vld [vmem:[%s5748_s1 + $0x7d0] sm:$0xf] }
  0x52   :  { %1941 = vmatpush.bf16.msra.mxu2 %v3171_v24  ;;  %v3731_v24 = vld [vmem:[%s5748_s1 + $0x594] sm:$0xf0]  ;;  %v3011_v47 = vor.u32 %v3681_v32, %v3010_v31  ;;  %v3805_v21 = vld [vmem:[%s5748_s1 + $0x7e4] sm:$0xf0]  ;;  %v3370_v32 = vld [vmem:[%s5748_s1 + $0x6d0] sm:$0xf] }
  0x53   :  { %1960 = vmatpush.bf16.msra.mxu3 %v3235_v35  ;;  %1837 = vmatmul.bf16.gmra.mxu0 %v4486_v8  ;;  %v3211_v34 = vor.u32 %v3731_v24, %v3210_v23  ;;  %v3139_v35 = vor.u32 %v3713_v26, %v3138_v25  ;;  %v3787_v25 = vld [vmem:[%s5748_s1 + $0x754] sm:$0xf0]  ;;  %v3306_v26 = vld [vmem:[%s5748_s1 + $0x650] sm:$0xf]  ;;  %v3426_v38 = vld [vmem:[%s5748_s1 + $0x740] sm:$0xf] }
  0x54   :  { %1904 = vmatpush.bf16.msra.mxu0 %v3035_v59  ;;  %1856 = vmatmul.bf16.gmra.mxu1 %v4488_v9  ;;  %v2402_v59 = vld [vmem:[%s5749_s0 + $0x20] sm:$0xf]  ;;  %v3771_v33 = vld [vmem:[%s5748_s1 + $0x6d4] sm:$0xf0]  ;;  %v3769_v46 = vld [vmem:[%s5748_s1 + $0x6c4] sm:$0xf0] }
  0x55   :  { %1923 = vmatpush.bf16.msra.mxu1 %v3099_v60  ;;  %1875 = vmatmul.bf16.gmra.mxu2 %v4499_v13  ;;  %v3532_v60 = vld [vmem:[%s5749_s0 + $0x5c] sm:$0xf0]  ;;  %v3803_v37 = vld [vmem:[%s5748_s1 + $0x7d4] sm:$0xf0]  ;;  %v3540_v10 = vld [vmem:[%s5749_s0 + $0xa4] sm:$0xf] }
  0x56   :  { %1942 = vmatpush.bf16.msra.mxu2 %v3163_v40  ;;  %1894 = vmatmul.bf16.gmra.mxu3 %v4501_v14  ;;  %v3322_v40 = vld [vmem:[%s5748_s1 + $0x670] sm:$0xf]  ;;  %v4624_v23 = vor.u32 %v3532_v60, %v2402_v59  ;;  %v3362_v45 = vld [vmem:[%s5748_s1 + $0x6c0] sm:$0xf]  ;;  %v3783_v59 = vld [vmem:[%s5748_s1 + $0x734] sm:$0xf0] }
  0x57   :  { %1961 = vmatpush.bf16.msra.mxu3 %v3227_v63  ;;  %v3323_v62 = vor.u32 %v3759_v41, %v3322_v40  ;;  %v2404_v63 = vld [vmem:[%s5749_s0 + $0x60] sm:$0xf0]  ;;  %v3298_v40 = vld [vmem:[%s5748_s1 + $0x640] sm:$0xf]  ;;  %v3753_v41 = vld [vmem:[%s5748_s1 + $0x644] sm:$0xf0] }
  0x58   :  { %1905 = vmatpush.bf16.msra.mxu0 %v3027_v15  ;;  %v3443_v15 = vor.u32 %v3789_v55, %v3442_v52  ;;  %v4626_v24 = vor.u32 %v3524_v61, %v2404_v63  ;;  %v3490_v52 = vld [vmem:[%s5748_s1 + $0x7c0] sm:$0xf]  ;;  %v3801_v55 = vld [vmem:[%s5748_s1 + $0x7c4] sm:$0xf0]  ;;  %v3290_v60 = vld [vmem:[%s5748_s1 + $0x630] sm:$0xf] }
  0x59   :  { %1924 = vmatpush.bf16.msra.mxu1 %v3091_v16  ;;  %v2412_v16 = vld [vmem:[%s5749_s0 + $0x68] sm:$0xf0]  ;;  %v3751_v61 = vld [vmem:[%s5748_s1 + $0x634] sm:$0xf0]  ;;  %v3491_v63 = vor.u32 %v3801_v55, %v3490_v52  ;;  %v2468_v11 = vld [vmem:[%s5749_s0 + $0xe0] sm:$0xf0] }
  0x5a   :  { %1943 = vmatpush.bf16.msra.mxu2 %v3155_v2  ;;  %v3387_v2 = vor.u32 %v3775_v43, %v3386_v42  ;;  %v3371_v42 = vor.u32 %v3771_v33, %v3370_v32  ;;  %v3499_v43 = vor.u32 %v3803_v37, %v3498_v36  ;;  %v3346_v32 = vld [vmem:[%s5748_s1 + $0x6a0] sm:$0xf]  ;;  %v3765_v33 = vld [vmem:[%s5748_s1 + $0x6a4] sm:$0xf0]  ;;  %v3338_v52 = vld [vmem:[%s5748_s1 + $0x690] sm:$0xf] }
  0x5b   :  { %1962 = vmatpush.bf16.msra.mxu3 %v3219_v19  ;;  %v3315_v19 = vor.u32 %v3757_v7, %v3314_v4  ;;  %v2466_v4 = vld [vmem:[%s5749_s0 + $0xa0] sm:$0xf]  ;;  %v3797_v37 = vld [vmem:[%s5748_s1 + $0x7a4] sm:$0xf0]  ;;  %v3763_v55 = vld [vmem:[%s5748_s1 + $0x694] sm:$0xf0] }
  0x5c   :  { %1906 = vmatpush.bf16.msra.mxu0 %v3019_v29  ;;  %v4639_v29 = vor.u32 %v3525_v12, %v2412_v16  ;;  %v3548_v7 = vld [vmem:[%s5749_s0 + $0xdc] sm:$0xf0]  ;;  %v3482_v16 = vld [vmem:[%s5748_s1 + $0x7b0] sm:$0xf] }
  0x5d   :  { %1925 = vmatpush.bf16.msra.mxu1 %v3083_v30  ;;  %v3379_v30 = vor.u32 %v3773_v18, %v3378_v17  ;;  %v3799_v17 = vld [vmem:[%s5748_s1 + $0x7b4] sm:$0xf0]  ;;  %v3410_v18 = vld [vmem:[%s5748_s1 + $0x720] sm:$0xf] }
  0x5e   :  { %1944 = vmatpush.bf16.msra.mxu2 %v3147_v20  ;;  %v3506_v20 = vld [vmem:[%s5748_s1 + $0x7e0] sm:$0xf] }
  0x5f   :  { %1963 = vmatpush.bf16.msra.mxu3 %v3211_v34  ;;  %v3507_v31 = vor.u32 %v3805_v21, %v3506_v20  ;;  %v3435_v34 = vor.u32 %v3787_v25, %v3434_v22  ;;  %v3282_v20 = vld [vmem:[%s5748_s1 + $0x620] sm:$0xf]  ;;  %v3749_v21 = vld [vmem:[%s5748_s1 + $0x624] sm:$0xf0] }
  0x60   :  { %1907 = vmatpush.bf16.msra.mxu0 %v3011_v47  ;;  %v2474_v22 = vld [vmem:[%s5749_s0 + $0xa8] sm:$0xf]  ;;  %v3474_v36 = vld [vmem:[%s5748_s1 + $0x7a0] sm:$0xf] }
  0x61   :  { %1926 = vmatpush.bf16.msra.mxu1 %v3075_v49  ;;  %v3299_v49 = vor.u32 %v3753_v41, %v3298_v40  ;;  %v3549_v25 = vld [vmem:[%s5749_s0 + $0xe4] sm:$0xf0]  ;;  %v4758_v40 = vor.u32 %v3540_v10, %v2468_v11  ;;  %v3779_v41 = vld [vmem:[%s5748_s1 + $0x714] sm:$0xf0]  ;;  %v3566_v10 = vld [vmem:[%s5748_s1 + $0x74] sm:$0xf] }
  0x62   :  { %1945 = vmatpush.bf16.msra.mxu2 %v3139_v35  ;;  %v3307_v35 = vor.u32 %v3755_v27, %v3306_v26  ;;  %v3541_v26 = vld [vmem:[%s5749_s0 + $0xac] sm:$0xf]  ;;  %v2556_v11 = vld [vmem:[%s5748_s1 + $0x78] sm:$0xf0] }
  0x63   :  { %1964 = vmatpush.bf16.msra.mxu3 %v3203_v58  ;;  %1908 = vmatmul.bf16.vlgmr.msra.gmra.mxu0 %v4624_v23  ;;  %v3418_v58 = vld [vmem:[%s5748_s1 + $0x730] sm:$0xf]  ;;  %v2476_v27 = vld [vmem:[%s5749_s0 + $0xe8] sm:$0xf0] }
  0x64   :  { %1976 = vmatpush.bf16.msrb.mxu0 %v3323_v62  ;;  %1927 = vmatmul.bf16.vlgmr.msra.gmra.mxu1 %v4626_v24  ;;  %v3363_v62 = vor.u32 %v3769_v46, %v3362_v45  ;;  %v3419_v12 = vor.u32 %v3783_v59, %v3418_v58  ;;  %v4769_v45 = vor.u32 %v3549_v25, %v2474_v22  ;;  %v3466_v58 = vld [vmem:[%s5748_s1 + $0x790] sm:$0xf]  ;;  %v3582_v22 = vld [vmem:[%s5748_s1 + $0xf4] sm:$0xf]  ;;  %v2620_v25 = vld [vmem:[%s5748_s1 + $0xf8] sm:$0xf0] }
  0x65   :  { %1995 = vmatpush.bf16.msrb.mxu1 %v3387_v2  ;;  %1946 = vmatmul.bf16.vlgmr.msra.gmra.mxu2 %v4637_v28  ;;  %v3354_v2 = vld [vmem:[%s5748_s1 + $0x6b0] sm:$0xf]  ;;  %v4771_v46 = vor.u32 %v3541_v26, %v2476_v27  ;;  %v2559_v27 = vor.u32 %v3566_v10, %v2556_v11 }
  0x66   :  { %2014 = vmatpush.bf16.msrb.mxu2 %v3451_v39  ;;  %v3785_v39 = vld [vmem:[%s5748_s1 + $0x744] sm:$0xf0]  ;;  %1965 = vmatmul.bf16.vlgmr.msra.gmra.mxu3 %v4639_v29 }
  0x67   :  { %2033 = vmatpush.bf16.msrb.mxu3 %v3515_v3  ;;  %v3427_v47 = vor.u32 %v3785_v39, %v3426_v38  ;;  %v3767_v3 = vld [vmem:[%s5748_s1 + $0x6b4] sm:$0xf0]  ;;  %v3402_v38 = vld [vmem:[%s5748_s1 + $0x710] sm:$0xf]  ;;  %v4756_v39 = vor.u32 %v3548_v7, %v2466_v4  ;;  %v3598_v4 = vld [vmem:[%s5748_s1 + $0x174] sm:$0xf] }
  0x68   :  { %1977 = vmatpush.bf16.msrb.mxu0 %v3315_v19  ;;  %v3781_v19 = vld [vmem:[%s5748_s1 + $0x724] sm:$0xf0]  ;;  %v3403_v59 = vor.u32 %v3779_v41, %v3402_v38  ;;  %v2684_v7 = vld [vmem:[%s5748_s1 + $0x178] sm:$0xf0]  ;;  %v2418_v38 = vld [vmem:[%s5749_s0 + $0x30] sm:$0xf] }
  0x69   :  { %1996 = vmatpush.bf16.msrb.mxu1 %v3379_v30  ;;  %v3355_v30 = vor.u32 %v3767_v3, %v3354_v2  ;;  %v3266_v2 = vld [vmem:[%s5748_s1 + $0x600] sm:$0xf]  ;;  %v3745_v3 = vld [vmem:[%s5748_s1 + $0x604] sm:$0xf0]  ;;  %v2687_v26 = vor.u32 %v3598_v4, %v2684_v7  ;;  %v3534_v41 = vld [vmem:[%s5749_s0 + $0x6c] sm:$0xf0] }
  0x6a   :  { %2015 = vmatpush.bf16.msrb.mxu2 %v3443_v15  ;;  %v3291_v15 = vor.u32 %v3751_v61, %v3290_v60  ;;  %v3795_v61 = vld [vmem:[%s5748_s1 + $0x794] sm:$0xf0]  ;;  %v3594_v4 = vld [vmem:[%s5748_s1 + $0x154] sm:$0xf]  ;;  %v2668_v7 = vld [vmem:[%s5748_s1 + $0x158] sm:$0xf0] }
  0x6b   :  { %2034 = vmatpush.bf16.msrb.mxu3 %v3507_v31  ;;  %v3483_v31 = vor.u32 %v3799_v17, %v3482_v16  ;;  %v3330_v16 = vld [vmem:[%s5748_s1 + $0x680] sm:$0xf]  ;;  %v3761_v17 = vld [vmem:[%s5748_s1 + $0x684] sm:$0xf0] }
  0x6c   :  { %1978 = vmatpush.bf16.msrb.mxu0 %v3307_v35  ;;  %v3283_v35 = vor.u32 %v3749_v21, %v3282_v20  ;;  %v3267_v20 = vor.u32 %v3745_v3, %v3266_v2  ;;  %v3793_v21 = vld [vmem:[%s5748_s1 + $0x784] sm:$0xf0]  ;;  %v3527_v2 = vld [vmem:[%s5749_s0 + $0x3c] sm:$0xf] }
  0x6d   :  { %1997 = vmatpush.bf16.msrb.mxu1 %v3371_v42  ;;  %v3274_v42 = vld [vmem:[%s5748_s1 + $0x610] sm:$0xf]  ;;  %v2428_v3 = vld [vmem:[%s5749_s0 + $0x78] sm:$0xf0] }
  0x6e   :  { %2016 = vmatpush.bf16.msrb.mxu2 %v3435_v34  ;;  %v3411_v34 = vor.u32 %v3781_v19, %v3410_v18  ;;  %v3458_v18 = vld [vmem:[%s5748_s1 + $0x780] sm:$0xf] }
  0x6f   :  { %2035 = vmatpush.bf16.msrb.mxu3 %v3499_v43  ;;  %v3747_v43 = vld [vmem:[%s5748_s1 + $0x614] sm:$0xf0] }
  0x70   :  { %1979 = vmatpush.bf16.msrb.mxu0 %v3299_v49  ;;  %v3475_v49 = vor.u32 %v3797_v37, %v3474_v36  ;;  %v3275_v60 = vor.u32 %v3747_v43, %v3274_v42  ;;  %v3331_v36 = vor.u32 %v3761_v17, %v3330_v16  ;;  %v3459_v37 = vor.u32 %v3793_v21, %v3458_v18  ;;  %v3526_v42 = vld [vmem:[%s5749_s0 + $0x34] sm:$0xf]  ;;  %v2732_v21 = vld [vmem:[%s5748_s1 + $0x1d8] sm:$0xf0] }
  0x71   :  { %1998 = vmatpush.bf16.msrb.mxu1 %v3363_v62  ;;  %v3394_v62 = vld [vmem:[%s5748_s1 + $0x700] sm:$0xf]  ;;  %v2420_v43 = vld [vmem:[%s5749_s0 + $0x70] sm:$0xf0]  ;;  %v4900_v17 = vor.u32 %v3534_v41, %v2418_v38  ;;  %v3608_v38 = vld [vmem:[%s5748_s1 + $0x1c4] sm:$0xf] }
  0x72   :  { %2017 = vmatpush.bf16.msrb.mxu2 %v3427_v47  ;;  %v3347_v47 = vor.u32 %v3765_v33, %v3346_v32  ;;  %v3596_v32 = vld [vmem:[%s5748_s1 + $0x164] sm:$0xf]  ;;  %v2676_v33 = vld [vmem:[%s5748_s1 + $0x168] sm:$0xf0]  ;;  %v3578_v16 = vld [vmem:[%s5748_s1 + $0xd4] sm:$0xf]  ;;  %v4902_v18 = vor.u32 %v3526_v42, %v2420_v43 }
  0x73   :  { %2036 = vmatpush.bf16.msrb.mxu3 %v3491_v63  ;;  %v3777_v63 = vld [vmem:[%s5748_s1 + $0x704] sm:$0xf0]  ;;  %1913 = vmatmul.bf16.gmra.mxu0 %v4756_v39  ;;  %v2724_v41 = vld [vmem:[%s5748_s1 + $0x1c8] sm:$0xf0] }
  0x74   :  { %1980 = vmatpush.bf16.msrb.mxu0 %v3291_v15  ;;  %1932 = vmatmul.bf16.gmra.mxu1 %v4758_v40  ;;  %v3467_v15 = vor.u32 %v3795_v61, %v3466_v58  ;;  %v3395_v19 = vor.u32 %v3777_v63, %v3394_v62  ;;  %v2740_v61 = vld [vmem:[%s5748_s1 + $0x1e8] sm:$0xf0]  ;;  %v2426_v62 = vld [vmem:[%s5749_s0 + $0x38] sm:$0xf] }
  0x75   :  { %1999 = vmatpush.bf16.msrb.mxu1 %v3355_v30  ;;  %1951 = vmatmul.bf16.gmra.mxu2 %v4769_v45  ;;  %v3614_v30 = vld [vmem:[%s5748_s1 + $0x1f4] sm:$0xf]  ;;  %v3535_v63 = vld [vmem:[%s5749_s0 + $0x74] sm:$0xf0] }
  0x76   :  { %2018 = vmatpush.bf16.msrb.mxu2 %v3419_v12  ;;  %1970 = vmatmul.bf16.gmra.mxu3 %v4771_v46  ;;  %v3339_v12 = vor.u32 %v3763_v55, %v3338_v52  ;;  %v3580_v52 = vld [vmem:[%s5748_s1 + $0xe4] sm:$0xf]  ;;  %v2679_v55 = vor.u32 %v3596_v32, %v2676_v33 }
  0x77   :  { %2037 = vmatpush.bf16.msrb.mxu3 %v3483_v31  ;;  %v2748_v31 = vld [vmem:[%s5748_s1 + $0x1f8] sm:$0xf0] }
  0x78   :  { %1981 = vmatpush.bf16.msrb.mxu0 %v3283_v35  ;;  %v2548_v35 = vld [vmem:[%s5748_s1 + $0x68] sm:$0xf0] }
  0x79   :  { %2000 = vmatpush.bf16.msrb.mxu1 %v3347_v47  ;;  %v2623_v47 = vor.u32 %v3582_v22, %v2620_v25  ;;  %v4913_v22 = vor.u32 %v3535_v63, %v2426_v62  ;;  %v4915_v25 = vor.u32 %v3527_v2, %v2428_v3  ;;  %v3606_v62 = vld [vmem:[%s5748_s1 + $0x1b4] sm:$0xf]  ;;  %v2716_v63 = vld [vmem:[%s5748_s1 + $0x1b8] sm:$0xf0] }
  0x7a   :  { %2019 = vmatpush.bf16.msrb.mxu2 %v3411_v34  ;;  %v3564_v34 = vld [vmem:[%s5748_s1 + $0x64] sm:$0xf] }
  0x7b   :  { %2038 = vmatpush.bf16.msrb.mxu3 %v3475_v49  ;;  %v2751_v49 = vor.u32 %v3614_v30, %v2748_v31  ;;  %v2551_v58 = vor.u32 %v3564_v34, %v2548_v35  ;;  %v3592_v30 = vld [vmem:[%s5748_s1 + $0x144] sm:$0xf]  ;;  %v2660_v31 = vld [vmem:[%s5748_s1 + $0x148] sm:$0xf0] }
  0x7c   :  { %1982 = vmatpush.bf16.msrb.mxu0 %v3275_v60  ;;  %v3612_v60 = vld [vmem:[%s5748_s1 + $0x1e4] sm:$0xf]  ;;  %v2532_v35 = vld [vmem:[%s5748_s1 + $0x48] sm:$0xf0]  ;;  %v2663_v42 = vor.u32 %v3592_v30, %v2660_v31 }
  0x7d   :  { %2001 = vmatpush.bf16.msrb.mxu1 %v3339_v12  ;;  %v2743_v11 = vor.u32 %v3612_v60, %v2740_v61  ;;  %v3562_v12 = vld [vmem:[%s5748_s1 + $0x54] sm:$0xf]  ;;  %v3560_v34 = vld [vmem:[%s5748_s1 + $0x44] sm:$0xf]  ;;  %v2588_v61 = vld [vmem:[%s5748_s1 + $0xb8] sm:$0xf0] }
  0x7e   :  { %2020 = vmatpush.bf16.msrb.mxu2 %v3403_v59  ;;  %v2612_v59 = vld [vmem:[%s5748_s1 + $0xe8] sm:$0xf0]  ;;  %v2535_v43 = vor.u32 %v3560_v34, %v2532_v35  ;;  %v3574_v60 = vld [vmem:[%s5748_s1 + $0xb4] sm:$0xf]  ;;  %v3604_v30 = vld [vmem:[%s5748_s1 + $0x1a4] sm:$0xf] }
  0x7f   :  { %2039 = vmatpush.bf16.msrb.mxu3 %v3467_v15  ;;  %v2615_v10 = vor.u32 %v3580_v52, %v2612_v59  ;;  %v2540_v15 = vld [vmem:[%s5748_s1 + $0x58] sm:$0xf0]  ;;  %v2708_v31 = vld [vmem:[%s5748_s1 + $0x1a8] sm:$0xf0] }
  0x80   :  { %1983 = vmatpush.bf16.msrb.mxu0 %v3267_v20  ;;  %v3610_v20 = vld [vmem:[%s5748_s1 + $0x1d4] sm:$0xf]  ;;  %v2524_v59 = vld [vmem:[%s5748_s1 + $0x38] sm:$0xf0] }
  0x81   :  { %2002 = vmatpush.bf16.msrb.mxu1 %v3331_v36  ;;  %v2735_v33 = vor.u32 %v3610_v20, %v2732_v21  ;;  %v3576_v36 = vld [vmem:[%s5748_s1 + $0xc4] sm:$0xf]  ;;  %v2516_v21 = vld [vmem:[%s5748_s1 + $0x28] sm:$0xf0]  ;;  %v3543_v34 = vld [vmem:[%s5749_s0 + $0xbc] sm:$0xf] }
  0x82   :  { %2021 = vmatpush.bf16.msrb.mxu2 %v3395_v19  ;;  %v2604_v19 = vld [vmem:[%s5748_s1 + $0xd8] sm:$0xf0]  ;;  %v3556_v20 = vld [vmem:[%s5748_s1 + $0x24] sm:$0xf] }
  0x83   :  { %2040 = vmatpush.bf16.msrb.mxu3 %v3459_v37  ;;  %v2607_v32 = vor.u32 %v3578_v16, %v2604_v19  ;;  %1984 = vmatmul.bf16.vlgmr.msrb.gmra.mxu0 %v4900_v17  ;;  %v2596_v37 = vld [vmem:[%s5748_s1 + $0xc8] sm:$0xf0]  ;;  %v2591_v16 = vor.u32 %v3574_v60, %v2588_v61  ;;  %v2719_v19 = vor.u32 %v3606_v62, %v2716_v63  ;;  %v2492_v35 = vld [vmem:[%s5749_s0 + $0xf8] sm:$0xf0]  ;;  %v3602_v60 = vld [vmem:[%s5748_s1 + $0x194] sm:$0xf] }
  0x84   :  { %2052 = vmatpush.bf16.msra.mxu0 %v2559_v27  ;;  %v2543_v27 = vor.u32 %v3562_v12, %v2540_v15  ;;  %2003 = vmatmul.bf16.vlgmr.msrb.gmra.mxu1 %v4902_v18  ;;  %v2599_v52 = vor.u32 %v3576_v36, %v2596_v37  ;;  %v3542_v12 = vld [vmem:[%s5749_s0 + $0xb4] sm:$0xf]  ;;  %v2519_v37 = vor.u32 %v3556_v20, %v2516_v21  ;;  %v2700_v61 = vld [vmem:[%s5748_s1 + $0x198] sm:$0xf0]  ;;  %v3600_v20 = vld [vmem:[%s5748_s1 + $0x184] sm:$0xf] }
  0x85   :  { %2071 = vmatpush.bf16.msra.mxu1 %v2623_v47  ;;  %2022 = vmatmul.bf16.vlgmr.msrb.gmra.mxu2 %v4913_v22  ;;  %v3590_v47 = vld [vmem:[%s5748_s1 + $0x134] sm:$0xf]  ;;  %v5047_v63 = vor.u32 %v3543_v34, %v2492_v35  ;;  %v2692_v21 = vld [vmem:[%s5748_s1 + $0x188] sm:$0xf0]  ;;  %v2876_v35 = vld [vmem:[%s5748_s1 + $0x2f8] sm:$0xf0] }
  0x86   :  { %2090 = vmatpush.bf16.msra.mxu2 %v2687_v26  ;;  %v2671_v26 = vor.u32 %v3594_v4, %v2668_v7  ;;  %2041 = vmatmul.bf16.vlgmr.msrb.gmra.mxu3 %v4915_v25  ;;  %v3588_v4 = vld [vmem:[%s5748_s1 + $0x124] sm:$0xf]  ;;  %v2644_v7 = vld [vmem:[%s5748_s1 + $0x128] sm:$0xf0]  ;;  %v2484_v15 = vld [vmem:[%s5749_s0 + $0xf0] sm:$0xf0] }
  0x87   :  { %2109 = vmatpush.bf16.msra.mxu3 %v2751_v49  ;;  %v2652_v49 = vld [vmem:[%s5748_s1 + $0x138] sm:$0xf0]  ;;  %v2647_v36 = vor.u32 %v3588_v4, %v2644_v7  ;;  %v2628_v7 = vld [vmem:[%s5748_s1 + $0x108] sm:$0xf0] }
  0x88   :  { %2053 = vmatpush.bf16.msra.mxu0 %v2551_v58  ;;  %v3558_v58 = vld [vmem:[%s5748_s1 + $0x34] sm:$0xf]  ;;  %v2655_v2 = vor.u32 %v3590_v47, %v2652_v49  ;;  %v2508_v49 = vld [vmem:[%s5748_s1 + $0x18] sm:$0xf0] }
  0x89   :  { %2072 = vmatpush.bf16.msra.mxu1 %v2615_v10  ;;  %v2527_v3 = vor.u32 %v3558_v58, %v2524_v59  ;;  %v2482_v10 = vld [vmem:[%s5749_s0 + $0xb0] sm:$0xf]  ;;  %v3554_v47 = vld [vmem:[%s5748_s1 + $0x14] sm:$0xf]  ;;  %v5034_v58 = vor.u32 %v3542_v12, %v2484_v15  ;;  %v2572_v59 = vld [vmem:[%s5748_s1 + $0x98] sm:$0xf0]  ;;  %v2703_v15 = vor.u32 %v3602_v60, %v2700_v61 }
  0x8a   :  { %2091 = vmatpush.bf16.msra.mxu2 %v2679_v55  ;;  %v2727_v55 = vor.u32 %v3608_v38, %v2724_v41  ;;  %v3586_v38 = vld [vmem:[%s5748_s1 + $0x114] sm:$0xf]  ;;  %v2636_v41 = vld [vmem:[%s5748_s1 + $0x118] sm:$0xf0]  ;;  %v2511_v4 = vor.u32 %v3554_v47, %v2508_v49  ;;  %v3660_v49 = vld [vmem:[%s5748_s1 + $0x364] sm:$0xf] }
  0x8b   :  { %2110 = vmatpush.bf16.msra.mxu3 %v2743_v11  ;;  %v3550_v11 = vld [vmem:[%s5749_s0 + $0xec] sm:$0xf0]  ;;  %v3628_v61 = vld [vmem:[%s5748_s1 + $0x264] sm:$0xf] }
  0x8c   :  { %2054 = vmatpush.bf16.msra.mxu0 %v2543_v27  ;;  %v2580_v27 = vld [vmem:[%s5748_s1 + $0xa8] sm:$0xf0] }
  0x8d   :  { %2073 = vmatpush.bf16.msra.mxu1 %v2607_v32  ;;  %v2490_v32 = vld [vmem:[%s5749_s0 + $0xb8] sm:$0xf] }
  0x8e   :  { %2092 = vmatpush.bf16.msra.mxu2 %v2671_v26  ;;  %v3572_v26 = vld [vmem:[%s5748_s1 + $0xa4] sm:$0xf] }
  0x8f   :  { %2111 = vmatpush.bf16.msra.mxu3 %v2735_v33  ;;  %v3551_v33 = vld [vmem:[%s5749_s0 + $0xf4] sm:$0xf0] }
  0x90   :  { %2055 = vmatpush.bf16.msra.mxu0 %v2535_v43  ;;  %v2711_v43 = vor.u32 %v3604_v30, %v2708_v31  ;;  %v5045_v62 = vor.u32 %v3551_v33, %v2490_v32  ;;  %v3630_v30 = vld [vmem:[%s5748_s1 + $0x274] sm:$0xf]  ;;  %v2812_v31 = vld [vmem:[%s5748_s1 + $0x278] sm:$0xf0] }
  0x91   :  { %2074 = vmatpush.bf16.msra.mxu1 %v2599_v52  ;;  %v3570_v52 = vld [vmem:[%s5748_s1 + $0x94] sm:$0xf]  ;;  %v2815_v47 = vor.u32 %v3630_v30, %v2812_v31 }
  0x92   :  { %2093 = vmatpush.bf16.msra.mxu2 %v2663_v42  ;;  %v2583_v42 = vor.u32 %v3572_v26, %v2580_v27  ;;  %v2575_v12 = vor.u32 %v3570_v52, %v2572_v59  ;;  %v3662_v26 = vld [vmem:[%s5748_s1 + $0x374] sm:$0xf]  ;;  %v2940_v27 = vld [vmem:[%s5748_s1 + $0x378] sm:$0xf0]  ;;  %v2932_v52 = vld [vmem:[%s5748_s1 + $0x368] sm:$0xf0] }
  0x93   :  { %2112 = vmatpush.bf16.msra.mxu3 %v2727_v55  ;;  %v5032_v55 = vor.u32 %v3550_v11, %v2482_v10  ;;  %v3552_v10 = vld [vmem:[%s5748_s1 + $0x4] sm:$0xf]  ;;  %v2500_v11 = vld [vmem:[%s5748_s1 + $0x8] sm:$0xf0]  ;;  %v3646_v32 = vld [vmem:[%s5748_s1 + $0x2f4] sm:$0xf] }
  0x94   :  { %2056 = vmatpush.bf16.msra.mxu0 %v2527_v3  ;;  %v2639_v3 = vor.u32 %v3586_v38, %v2636_v41  ;;  %2008 = vmatmul.bf16.gmra.mxu1 %v5034_v58  ;;  %v2503_v34 = vor.u32 %v3552_v10, %v2500_v11  ;;  %v2695_v41 = vor.u32 %v3600_v20, %v2692_v21  ;;  %v2996_v10 = vld [vmem:[%s5748_s1 + $0x3e8] sm:$0xf0]  ;;  %v3658_v20 = vld [vmem:[%s5748_s1 + $0x354] sm:$0xf]  ;;  %v2924_v21 = vld [vmem:[%s5748_s1 + $0x358] sm:$0xf0] }
  0x95   :  { %2075 = vmatpush.bf16.msra.mxu1 %v2591_v16  ;;  %v3568_v16 = vld [vmem:[%s5748_s1 + $0x84] sm:$0xf]  ;;  %1989 = vmatmul.bf16.gmra.mxu0 %v5032_v55  ;;  %v2879_v59 = vor.u32 %v3646_v32, %v2876_v35  ;;  %v2935_v11 = vor.u32 %v3660_v49, %v2932_v52  ;;  %v3642_v30 = vld [vmem:[%s5748_s1 + $0x2d4] sm:$0xf]  ;;  %v2860_v32 = vld [vmem:[%s5748_s1 + $0x2d8] sm:$0xf0] }
  0x96   :  { %2094 = vmatpush.bf16.msra.mxu2 %v2655_v2  ;;  %v3584_v2 = vld [vmem:[%s5748_s1 + $0x104] sm:$0xf]  ;;  %2046 = vmatmul.bf16.gmra.mxu3 %v5047_v63 }
  0x97   :  { %2113 = vmatpush.bf16.msra.mxu3 %v2719_v19  ;;  %v2564_v19 = vld [vmem:[%s5748_s1 + $0x88] sm:$0xf0]  ;;  %2027 = vmatmul.bf16.gmra.mxu2 %v5045_v62  ;;  %v2631_v33 = vor.u32 %v3584_v2, %v2628_v7  ;;  %v3676_v7 = vld [vmem:[%s5748_s1 + $0x3e4] sm:$0xf] }
  0x98   :  { %2057 = vmatpush.bf16.msra.mxu0 %v2519_v37  ;;  %v3004_v37 = vld [vmem:[%s5748_s1 + $0x3f8] sm:$0xf0]  ;;  %v2567_v38 = vor.u32 %v3568_v16, %v2564_v19  ;;  %v2804_v2 = vld [vmem:[%s5748_s1 + $0x268] sm:$0xf0]  ;;  %v2999_v19 = vor.u32 %v3676_v7, %v2996_v10  ;;  %v3624_v52 = vld [vmem:[%s5748_s1 + $0x244] sm:$0xf] }
  0x99   :  { %2076 = vmatpush.bf16.msra.mxu1 %v2583_v42  ;;  %v302_v42 = vld [vmem:[%s5750_s2] sm:$0x3]  ;;  %v2908_v7 = vld [vmem:[%s5748_s1 + $0x338] sm:$0xf0] }
  0x9a   :  { %2095 = vmatpush.bf16.msra.mxu2 %v2647_v36  ;;  %v3678_v36 = vld [vmem:[%s5748_s1 + $0x3f4] sm:$0xf] }
  0x9b   :  { %2114 = vmatpush.bf16.msra.mxu3 %v2711_v43  ;;  %v2943_v43 = vor.u32 %v3662_v26, %v2940_v27  ;;  %v3007_v60 = vor.u32 %v3678_v36, %v3004_v37  ;;  %v3626_v26 = vld [vmem:[%s5748_s1 + $0x254] sm:$0xf]  ;;  %v2796_v27 = vld [vmem:[%s5748_s1 + $0x258] sm:$0xf0]  ;;  %v2927_v37 = vor.u32 %v3658_v20, %v2924_v21 }
  0x9c   :  { %2058 = vmatpush.bf16.msra.mxu0 %v2511_v4  ;;  %v2868_v4 = vld [vmem:[%s5748_s1 + $0x2e8] sm:$0xf0] }
  0x9d   :  { %2077 = vmatpush.bf16.msra.mxu1 %v2575_v12  ;;  %v2807_v12 = vor.u32 %v3628_v61, %v2804_v2  ;;  %v2852_v61 = vld [vmem:[%s5748_s1 + $0x2c8] sm:$0xf0]  ;;  %v3672_v2 = vld [vmem:[%s5748_s1 + $0x3c4] sm:$0xf] }
  0x9e   :  { %2096 = vmatpush.bf16.msra.mxu2 %v2639_v3  ;;  %v3644_v3 = vld [vmem:[%s5748_s1 + $0x2e4] sm:$0xf] }
  0x9f   :  { %2115 = vmatpush.bf16.msra.mxu3 %v2703_v15  ;;  %v5128_v15 = vperm.slane %v302_v42, 0  ;;  %v2871_v16 = vor.u32 %v3644_v3, %v2868_v4  ;;  %v2916_v42 = vld [vmem:[%s5748_s1 + $0x348] sm:$0xf0]  ;;  %v3654_v4 = vld [vmem:[%s5748_s1 + $0x334] sm:$0xf] }
  0xa0   :  { %2059 = vmatpush.bf16.msra.mxu0 %v2503_v34  ;;  %v1757_v31 = vpop.f32.mrf.mxu0  ;;  %v2988_v34 = vld [vmem:[%s5748_s1 + $0x3d8] sm:$0xf0]  ;;  %v2980_v3 = vld [vmem:[%s5748_s1 + $0x3c8] sm:$0xf0] }
  0xa1   :  { %2078 = vmatpush.bf16.msra.mxu1 %v2567_v38  ;;  %v1758_v35 = vadd.f32 %v1757_v31, %v5128_v15  ;;  %v1776_v36 = vpop.f32.mrf.mxu1  ;;  %v2799_v38 = vor.u32 %v3626_v26, %v2796_v27  ;;  %v2844_v26 = vld [vmem:[%s5748_s1 + $0x2b8] sm:$0xf0]  ;;  %v3670_v27 = vld [vmem:[%s5748_s1 + $0x3b4] sm:$0xf] }
  0xa2   :  { %2097 = vmatpush.bf16.msra.mxu2 %v2631_v33  ;;  %v3674_v33 = vld [vmem:[%s5748_s1 + $0x3d4] sm:$0xf] }
  0xa3   :  { %2116 = vmatpush.bf16.msra.mxu3 %v2695_v41  ;;  %v3656_v41 = vld [vmem:[%s5748_s1 + $0x344] sm:$0xf]  ;;  %v2991_v49 = vor.u32 %v3674_v33, %v2988_v34  ;;  %v2911_v34 = vor.u32 %v3654_v4, %v2908_v7 }
  0xa4   :  { %2128 = vmatpush.bf16.msrb.mxu0 %v2815_v47  ;;  %v2863_v47 = vor.u32 %v3642_v30, %v2860_v32  ;;  %2079 = vmatmul.bf16.vlgmr.msra.gmra.mxu1 %v4077_v53  ;;  %v2972_v30 = vld [vmem:[%s5748_s1 + $0x3b8] sm:$0xf0] }
  0xa5   :  { %2147 = vmatpush.bf16.msrb.mxu1 %v2879_v59  ;;  %v2788_v59 = vld [vmem:[%s5748_s1 + $0x248] sm:$0xf0]  ;;  %2060 = vmatmul.bf16.vlgmr.msra.gmra.mxu0 %v4066_v48  ;;  %v2919_v48 = vor.u32 %v3656_v41, %v2916_v42  ;;  %v2975_v42 = vor.u32 %v3670_v27, %v2972_v30  ;;  %v3648_v30 = vld [vmem:[%s5748_s1 + $0x304] sm:$0xf] }
  0xa6   :  { %2166 = vmatpush.bf16.msrb.mxu2 %v2943_v43  ;;  %v1777_v43 = vadd.f32 %v1776_v36, %v1758_v35  ;;  %2117 = vmatmul.bf16.vlgmr.msra.gmra.mxu3 %v4087_v57  ;;  %v2791_v53 = vor.u32 %v3624_v52, %v2788_v59  ;;  %v2780_v57 = vld [vmem:[%s5748_s1 + $0x238] sm:$0xf0]  ;;  %v3652_v36 = vld [vmem:[%s5748_s1 + $0x324] sm:$0xf]  ;;  %v2836_v52 = vld [vmem:[%s5748_s1 + $0x2a8] sm:$0xf0] }
  0xa7   :  { %2185 = vmatpush.bf16.msrb.mxu3 %v3007_v60  ;;  %v3640_v60 = vld [vmem:[%s5748_s1 + $0x2c4] sm:$0xf]  ;;  %2098 = vmatmul.bf16.vlgmr.msra.gmra.mxu2 %v4079_v54  ;;  %v3622_v54 = vld [vmem:[%s5748_s1 + $0x234] sm:$0xf] }
  0xa8   :  { %2129 = vmatpush.bf16.msrb.mxu0 %v2807_v12  ;;  %v1795_v10 = vpop.f32.mrf.mxu2  ;;  %v2983_v12 = vor.u32 %v3672_v2, %v2980_v3  ;;  %v1759_v21 = vpop.f32.mrf.mxu0  ;;  %v2783_v35 = vor.u32 %v3622_v54, %v2780_v57  ;;  %v3668_v59 = vld [vmem:[%s5748_s1 + $0x3a4] sm:$0xf]  ;;  %v3650_v3 = vld [vmem:[%s5748_s1 + $0x314] sm:$0xf] }
  0xa9   :  { %2148 = vmatpush.bf16.msrb.mxu1 %v2871_v16  ;;  %v3638_v16 = vld [vmem:[%s5748_s1 + $0x2b4] sm:$0xf]  ;;  %v1814_v20 = vpop.f32.mrf.mxu3  ;;  %v1760_v31 = vadd.f32 %v1759_v21, %v5128_v15  ;;  %v1778_v32 = vpop.f32.mrf.mxu1  ;;  %v2956_v21 = vld [vmem:[%s5748_s1 + $0x398] sm:$0xf0] }
  0xaa   :  { %2167 = vmatpush.bf16.msrb.mxu2 %v2935_v11  ;;  %v2855_v11 = vor.u32 %v3640_v60, %v2852_v61  ;;  %v2847_v41 = vor.u32 %v3638_v16, %v2844_v26  ;;  %v2964_v60 = vld [vmem:[%s5748_s1 + $0x3a8] sm:$0xf0] }
  0xab   :  { %2186 = vmatpush.bf16.msrb.mxu3 %v2999_v19  ;;  %v1796_v19 = vadd.f32 %v1795_v10, %v1777_v43  ;;  %v3620_v43 = vld [vmem:[%s5748_s1 + $0x224] sm:$0xf]  ;;  %v2967_v7 = vor.u32 %v3668_v59, %v2964_v60  ;;  %v3618_v10 = vld [vmem:[%s5748_s1 + $0x214] sm:$0xf]  ;;  %v3196_v60 = vld [vmem:[%s5748_s1 + $0x578] sm:$0xf0] }
  0xac   :  { %2130 = vmatpush.bf16.msrb.mxu0 %v2799_v38  ;;  %v1779_v38 = vadd.f32 %v1778_v32, %v1760_v31  ;;  %v3726_v59 = vld [vmem:[%s5748_s1 + $0x574] sm:$0xf] }
  0xad   :  { %2149 = vmatpush.bf16.msrb.mxu1 %v2863_v47  ;;  %v5208_v33 = vadd.f32 %v1814_v20, %v1796_v19  ;;  %v2772_v47 = vld [vmem:[%s5748_s1 + $0x228] sm:$0xf0]  ;;  %v2828_v19 = vld [vmem:[%s5748_s1 + $0x298] sm:$0xf0]  ;;  %v3666_v20 = vld [vmem:[%s5748_s1 + $0x394] sm:$0xf] }
  0xae   :  { %2168 = vmatpush.bf16.msrb.mxu2 %v2927_v37  ;;  %v2900_v37 = vld [vmem:[%s5748_s1 + $0x328] sm:$0xf0]  ;;  %v2775_v2 = vor.u32 %v3620_v43, %v2772_v47  ;;  %v3632_v43 = vld [vmem:[%s5748_s1 + $0x284] sm:$0xf] }
  0xaf   :  { %2187 = vmatpush.bf16.msrb.mxu3 %v2991_v49  ;;  %v3636_v49 = vld [vmem:[%s5748_s1 + $0x2a4] sm:$0xf]  ;;  %v2903_v61 = vor.u32 %v3652_v36, %v2900_v37  ;;  %v2756_v37 = vld [vmem:[%s5748_s1 + $0x208] sm:$0xf0] }
  0xb0   :  { %2131 = vmatpush.bf16.msrb.mxu0 %v2791_v53  ;;  %v1797_v53 = vpop.f32.mrf.mxu2  ;;  %v2839_v4 = vor.u32 %v3636_v49, %v2836_v52  ;;  %v1762_v16 = vpop.f32.mrf.mxu0  ;;  %v3616_v36 = vld [vmem:[%s5748_s1 + $0x204] sm:$0xf]  ;;  %v2820_v47 = vld [vmem:[%s5748_s1 + $0x288] sm:$0xf0] }
  0xb1   :  { %2150 = vmatpush.bf16.msrb.mxu1 %v2855_v11  ;;  %v2764_v11 = vld [vmem:[%s5748_s1 + $0x218] sm:$0xf0]  ;;  %v1798_v54 = vadd.f32 %v1797_v53, %v1779_v38  ;;  %v1816_v57 = vpop.f32.mrf.mxu3  ;;  %v1763_v26 = vadd.f32 %v1762_v16, %v5128_v15  ;;  %v1781_v27 = vpop.f32.mrf.mxu1  ;;  %v3664_v49 = vld [vmem:[%s5748_s1 + $0x384] sm:$0xf]  ;;  %v2948_v52 = vld [vmem:[%s5748_s1 + $0x388] sm:$0xf0] }
  0xb2   :  { %2169 = vmatpush.bf16.msrb.mxu2 %v2919_v48  ;;  %v2892_v48 = vld [vmem:[%s5748_s1 + $0x318] sm:$0xf0]  ;;  %v3724_v16 = vld [vmem:[%s5748_s1 + $0x564] sm:$0xf] }
  0xb3   :  { %2188 = vmatpush.bf16.msrb.mxu3 %v2983_v12  ;;  %v3634_v12 = vld [vmem:[%s5748_s1 + $0x294] sm:$0xf]  ;;  %v5262_v31 = vadd.f32 %v1816_v57, %v1798_v54  ;;  %v2895_v32 = vor.u32 %v3650_v3, %v2892_v48  ;;  %v1782_v38 = vadd.f32 %v1781_v27, %v1763_v26  ;;  %v2759_v3 = vor.u32 %v3616_v36, %v2756_v37  ;;  %v3260_v48 = vld [vmem:[%s5748_s1 + $0x5f8] sm:$0xf0]  ;;  %v3740_v36 = vld [vmem:[%s5748_s1 + $0x5e4] sm:$0xf] }
  0xb4   :  { %2132 = vmatpush.bf16.msrb.mxu0 %v2783_v35  ;;  %v2884_v35 = vld [vmem:[%s5748_s1 + $0x308] sm:$0xf0]  ;;  %2084 = vmatmul.bf16.gmra.mxu1 %v4209_v50  ;;  %v3068_v50 = vld [vmem:[%s5748_s1 + $0x478] sm:$0xf0]  ;;  %v3199_v54 = vor.u32 %v3726_v59, %v3196_v60  ;;  %v3690_v60 = vld [vmem:[%s5748_s1 + $0x454] sm:$0xf] }
  0xb5   :  { %2151 = vmatpush.bf16.msrb.mxu1 %v2847_v41  ;;  %v2831_v41 = vor.u32 %v3634_v12, %v2828_v19  ;;  %2065 = vmatmul.bf16.gmra.mxu0 %v4198_v44  ;;  %v3694_v44 = vld [vmem:[%s5748_s1 + $0x474] sm:$0xf]  ;;  %v3188_v19 = vld [vmem:[%s5748_s1 + $0x568] sm:$0xf0] }
  0xb6   :  { %2170 = vmatpush.bf16.msrb.mxu2 %v2911_v34  ;;  %v2767_v34 = vor.u32 %v3618_v10, %v2764_v11  ;;  %2122 = vmatmul.bf16.gmra.mxu3 %v4219_v56  ;;  %v3742_v56 = vld [vmem:[%s5748_s1 + $0x5f4] sm:$0xf]  ;;  %v3071_v57 = vor.u32 %v3694_v44, %v3068_v50  ;;  %v3252_v37 = vld [vmem:[%s5748_s1 + $0x5e8] sm:$0xf0]  ;;  %v3052_v44 = vld [vmem:[%s5748_s1 + $0x458] sm:$0xf0] }
  0xb7   :  { %2189 = vmatpush.bf16.msrb.mxu3 %v2975_v42  ;;  %v2959_v42 = vor.u32 %v3666_v20, %v2956_v21  ;;  %2103 = vmatmul.bf16.gmra.mxu2 %v4211_v51  ;;  %v3132_v51 = vld [vmem:[%s5748_s1 + $0x4f8] sm:$0xf0]  ;;  %v3263_v27 = vor.u32 %v3742_v56, %v3260_v48  ;;  %v3706_v50 = vld [vmem:[%s5748_s1 + $0x4d4] sm:$0xf] }
  0xb8   :  { %2133 = vmatpush.bf16.msrb.mxu0 %v2775_v2  ;;  %v2887_v2 = vor.u32 %v3648_v30, %v2884_v35  ;;  %v1800_v53 = vpop.f32.mrf.mxu2  ;;  %v1764_v12 = vpop.f32.mrf.mxu0  ;;  %v3692_v30 = vld [vmem:[%s5748_s1 + $0x464] sm:$0xf]  ;;  %v3244_v56 = vld [vmem:[%s5748_s1 + $0x5d8] sm:$0xf0] }
  0xb9   :  { %2152 = vmatpush.bf16.msrb.mxu1 %v2839_v4  ;;  %v2823_v4 = vor.u32 %v3632_v43, %v2820_v47  ;;  %v1801_v10 = vadd.f32 %v1800_v53, %v1782_v38  ;;  %v1819_v11 = vpop.f32.mrf.mxu3  ;;  %v1765_v20 = vadd.f32 %v1764_v12, %v5128_v15  ;;  %v1783_v21 = vpop.f32.mrf.mxu1  ;;  %v3124_v15 = vld [vmem:[%s5748_s1 + $0x4e8] sm:$0xf0]  ;;  %v3255_v47 = vor.u32 %v3740_v36, %v3252_v37  ;;  %v3720_v12 = vld [vmem:[%s5748_s1 + $0x544] sm:$0xf]  ;;  %v3702_v37 = vld [vmem:[%s5748_s1 + $0x4b4] sm:$0xf] }
  0xba   :  { %2171 = vmatpush.bf16.msrb.mxu2 %v2903_v61  ;;  %v3710_v61 = vld [vmem:[%s5748_s1 + $0x4f4] sm:$0xf] }
  0xbb   :  { %2190 = vmatpush.bf16.msrb.mxu3 %v2967_v7  ;;  %v2951_v7 = vor.u32 %v3664_v49, %v2948_v52  ;;  %v3135_v26 = vor.u32 %v3710_v61, %v3132_v51  ;;  %v5329_v35 = vadd.f32 %v1819_v11, %v1801_v10  ;;  %v1784_v38 = vadd.f32 %v1783_v21, %v1765_v20  ;;  %v3722_v49 = vld [vmem:[%s5748_s1 + $0x554] sm:$0xf]  ;;  %v3180_v52 = vld [vmem:[%s5748_s1 + $0x558] sm:$0xf0]  ;;  %v3704_v20 = vld [vmem:[%s5748_s1 + $0x4c4] sm:$0xf] }
  0xbc   :  { %2134 = vmatpush.bf16.msrb.mxu0 %v2767_v34  ;;  %v3708_v34 = vld [vmem:[%s5748_s1 + $0x4e4] sm:$0xf]  ;;  %v3738_v51 = vld [vmem:[%s5748_s1 + $0x5d4] sm:$0xf]  ;;  %v3183_v10 = vor.u32 %v3722_v49, %v3180_v52  ;;  %v3055_v11 = vor.u32 %v3690_v60, %v3052_v44 }
  0xbd   :  { %2153 = vmatpush.bf16.msrb.mxu1 %v2831_v41  ;;  %v3191_v41 = vor.u32 %v3724_v16, %v3188_v19  ;;  %v3127_v43 = vor.u32 %v3708_v34, %v3124_v15  ;;  %v3247_v16 = vor.u32 %v3738_v51, %v3244_v56  ;;  %v3688_v19 = vld [vmem:[%s5748_s1 + $0x444] sm:$0xf]  ;;  %v3164_v34 = vld [vmem:[%s5748_s1 + $0x538] sm:$0xf0] }
  0xbe   :  { %2172 = vmatpush.bf16.msrb.mxu2 %v2895_v32  ;;  %v3060_v32 = vld [vmem:[%s5748_s1 + $0x468] sm:$0xf0] }
  0xbf   :  { %2191 = vmatpush.bf16.msrb.mxu3 %v2959_v42  ;;  %v3063_v42 = vor.u32 %v3692_v30, %v3060_v32  ;;  %v3236_v30 = vld [vmem:[%s5748_s1 + $0x5c8] sm:$0xf0]  ;;  %v3718_v32 = vld [vmem:[%s5748_s1 + $0x534] sm:$0xf] }
  0xc0   :  { %2135 = vmatpush.bf16.msrb.mxu0 %v2759_v3  ;;  %v1802_v59 = vpop.f32.mrf.mxu2  ;;  %v3116_v3 = vld [vmem:[%s5748_s1 + $0x4d8] sm:$0xf0]  ;;  %v1833_v48 = vpop.f32.mrf.mxu0  ;;  %v3167_v44 = vor.u32 %v3718_v32, %v3164_v34  ;;  %v3730_v32 = vld [vmem:[%s5748_s1 + $0x594] sm:$0xf] }
  0xc1   :  { %2154 = vmatpush.bf16.msrb.mxu1 %v2823_v4  ;;  %v1803_v61 = vadd.f32 %v1802_v59, %v1784_v38  ;;  %v1852_v53 = vpop.f32.mrf.mxu1  ;;  %v3212_v34 = vld [vmem:[%s5748_s1 + $0x598] sm:$0xf0] }
  0xc2   :  { %2173 = vmatpush.bf16.msrb.mxu2 %v2887_v2  ;;  %v1821_v2 = vpop.f32.mrf.mxu3 }
  0xc3   :  { %2192 = vmatpush.bf16.msrb.mxu3 %v2951_v7  ;;  %v5364_v4 = vadd.f32 %v1821_v2, %v1803_v61  ;;  %v1834_v7 = vadd.f32 %v1833_v48, %v5208_v33  ;;  %v3044_v33 = vld [vmem:[%s5748_s1 + $0x448] sm:$0xf0]  ;;  %v3716_v61 = vld [vmem:[%s5748_s1 + $0x524] sm:$0xf] }
  0xc4   :  { %2204 = vmatpush.bf16.msra.mxu0 %v3071_v57  ;;  %v3119_v57 = vor.u32 %v3706_v50, %v3116_v3  ;;  %2155 = vmatmul.bf16.vlgmr.msrb.gmra.mxu1 %v4356_v1  ;;  %v3047_v1 = vor.u32 %v3688_v19, %v3044_v33  ;;  %v3156_v2 = vld [vmem:[%s5748_s1 + $0x528] sm:$0xf0]  ;;  %v3148_v19 = vld [vmem:[%s5748_s1 + $0x518] sm:$0xf0] }
  0xc5   :  { %2223 = vmatpush.bf16.msra.mxu1 %v3135_v26  ;;  %v1853_v21 = vadd.f32 %v1852_v53, %v1834_v7  ;;  %2136 = vmatmul.bf16.vlgmr.msrb.gmra.mxu0 %v4354_v0  ;;  %v3108_v26 = vld [vmem:[%s5748_s1 + $0x4c8] sm:$0xf0]  ;;  %v3700_v53 = vld [vmem:[%s5748_s1 + $0x4a4] sm:$0xf] }
  0xc6   :  { %2242 = vmatpush.bf16.msra.mxu2 %v3199_v54  ;;  %v3172_v54 = vld [vmem:[%s5748_s1 + $0x548] sm:$0xf0]  ;;  %2193 = vmatmul.bf16.vlgmr.msrb.gmra.mxu3 %v4369_v6  ;;  %v3111_v15 = vor.u32 %v3704_v20, %v3108_v26  ;;  %v3036_v6 = vld [vmem:[%s5748_s1 + $0x438] sm:$0xf0] }
  0xc7   :  { %2261 = vmatpush.bf16.msra.mxu3 %v3263_v27  ;;  %v3736_v27 = vld [vmem:[%s5748_s1 + $0x5c4] sm:$0xf]  ;;  %2174 = vmatmul.bf16.vlgmr.msrb.gmra.mxu2 %v4367_v5  ;;  %v3175_v0 = vor.u32 %v3720_v12, %v3172_v54  ;;  %v3686_v5 = vld [vmem:[%s5748_s1 + $0x434] sm:$0xf]  ;;  %v3028_v48 = vld [vmem:[%s5748_s1 + $0x428] sm:$0xf0]  ;;  %v3159_v54 = vor.u32 %v3716_v61, %v3156_v2 }
  0xc8   :  { %2205 = vmatpush.bf16.msra.mxu0 %v3063_v42  ;;  %v3239_v36 = vor.u32 %v3736_v27, %v3236_v30  ;;  %v1871_v38 = vpop.f32.mrf.mxu2  ;;  %v3100_v42 = vld [vmem:[%s5748_s1 + $0x4b8] sm:$0xf0]  ;;  %v1835_v52 = vpop.f32.mrf.mxu0  ;;  %v3039_v50 = vor.u32 %v3686_v5, %v3036_v6  ;;  %v3220_v12 = vld [vmem:[%s5748_s1 + $0x5a8] sm:$0xf0]  ;;  %v3698_v27 = vld [vmem:[%s5748_s1 + $0x494] sm:$0xf] }
  0xc9   :  { %2224 = vmatpush.bf16.msra.mxu1 %v3127_v43  ;;  %v3734_v43 = vld [vmem:[%s5748_s1 + $0x5b4] sm:$0xf]  ;;  %v1872_v49 = vadd.f32 %v1871_v38, %v1853_v21  ;;  %v1854_v59 = vpop.f32.mrf.mxu1  ;;  %v1836_v60 = vadd.f32 %v1835_v52, %v5262_v31  ;;  %v3103_v51 = vor.u32 %v3702_v37, %v3100_v42  ;;  %v3684_v31 = vld [vmem:[%s5748_s1 + $0x424] sm:$0xf]  ;;  %v3020_v26 = vld [vmem:[%s5748_s1 + $0x418] sm:$0xf0]  ;;  %v3215_v52 = vor.u32 %v3730_v32, %v3212_v34 }
  0xca   :  { %2243 = vmatpush.bf16.msra.mxu2 %v3191_v41  ;;  %v1890_v41 = vpop.f32.mrf.mxu3  ;;  %v3682_v21 = vld [vmem:[%s5748_s1 + $0x414] sm:$0xf]  ;;  %v3712_v6 = vld [vmem:[%s5748_s1 + $0x504] sm:$0xf]  ;;  %v3140_v42 = vld [vmem:[%s5748_s1 + $0x508] sm:$0xf0] }
  0xcb   :  { %2262 = vmatpush.bf16.msra.mxu3 %v3255_v47  ;;  %v3228_v47 = vld [vmem:[%s5748_s1 + $0x5b8] sm:$0xf0]  ;;  %v5426_v3 = vadd.f32 %v1890_v41, %v1872_v49  ;;  %v1855_v7 = vadd.f32 %v1854_v59, %v1836_v60  ;;  %v3023_v41 = vor.u32 %v3682_v21, %v3020_v26  ;;  %v3696_v59 = vld [vmem:[%s5748_s1 + $0x484] sm:$0xf]  ;;  %v3076_v60 = vld [vmem:[%s5748_s1 + $0x488] sm:$0xf0] }
  0xcc   :  { %2206 = vmatpush.bf16.msra.mxu0 %v3055_v11  ;;  %v3231_v56 = vor.u32 %v3734_v43, %v3228_v47  ;;  %v3732_v11 = vld [vmem:[%s5748_s1 + $0x5a4] sm:$0xf]  ;;  %v3012_v47 = vld [vmem:[%s5748_s1 + $0x408] sm:$0xf0]  ;;  %v3790_v2 = vld [vmem:[%s5748_s1 + $0x774] sm:$0xf] }
  0xcd   :  { %2225 = vmatpush.bf16.msra.mxu1 %v3119_v57  ;;  %v3031_v57 = vor.u32 %v3684_v31, %v3028_v48  ;;  %v3223_v20 = vor.u32 %v3732_v11, %v3220_v12  ;;  %v3680_v43 = vld [vmem:[%s5748_s1 + $0x404] sm:$0xf]  ;;  %v3204_v61 = vld [vmem:[%s5748_s1 + $0x588] sm:$0xf0]  ;;  %v3143_v31 = vor.u32 %v3712_v6, %v3140_v42  ;;  %v3786_v42 = vld [vmem:[%s5748_s1 + $0x754] sm:$0xf] }
  0xce   :  { %2244 = vmatpush.bf16.msra.mxu2 %v3183_v10  ;;  %v3092_v10 = vld [vmem:[%s5748_s1 + $0x4a8] sm:$0xf0]  ;;  %v3015_v48 = vor.u32 %v3680_v43, %v3012_v47  ;;  %v3436_v43 = vld [vmem:[%s5748_s1 + $0x758] sm:$0xf0]  ;;  %v3754_v47 = vld [vmem:[%s5748_s1 + $0x654] sm:$0xf] }
  0xcf   :  { %2263 = vmatpush.bf16.msra.mxu3 %v3247_v16  ;;  %v3714_v16 = vld [vmem:[%s5748_s1 + $0x514] sm:$0xf]  ;;  %v3095_v33 = vor.u32 %v3700_v53, %v3092_v10  ;;  %v3516_v53 = vld [vmem:[%s5748_s1 + $0x7f8] sm:$0xf0]  ;;  %v3380_v34 = vld [vmem:[%s5748_s1 + $0x6e8] sm:$0xf0] }
  0xd0   :  { %2207 = vmatpush.bf16.msra.mxu0 %v3047_v1  ;;  %v1873_v30 = vpop.f32.mrf.mxu2  ;;  %v3084_v1 = vld [vmem:[%s5748_s1 + $0x498] sm:$0xf0]  ;;  %v3151_v38 = vor.u32 %v3714_v16, %v3148_v19  ;;  %v3788_v16 = vld [vmem:[%s5748_s1 + $0x764] sm:$0xf]  ;;  %v3444_v19 = vld [vmem:[%s5748_s1 + $0x768] sm:$0xf0] }
  0xd1   :  { %2226 = vmatpush.bf16.msra.mxu1 %v3111_v15  ;;  %v1874_v15 = vadd.f32 %v1873_v30, %v1855_v7  ;;  %v1857_v5 = vpop.f32.mrf.mxu1  ;;  %v3079_v7 = vor.u32 %v3696_v59, %v3076_v60  ;;  %v3756_v30 = vld [vmem:[%s5748_s1 + $0x664] sm:$0xf] }
  0xd2   :  { %2245 = vmatpush.bf16.msra.mxu2 %v3175_v0  ;;  %v1892_v0 = vpop.f32.mrf.mxu3 }
  0xd3   :  { %2264 = vmatpush.bf16.msra.mxu3 %v3239_v36  ;;  %v1838_v36 = vpop.f32.mrf.mxu0  ;;  %v5483_v49 = vadd.f32 %v1892_v0, %v1874_v15  ;;  %v3316_v0 = vld [vmem:[%s5748_s1 + $0x668] sm:$0xf0]  ;;  %v3804_v15 = vld [vmem:[%s5748_s1 + $0x7e4] sm:$0xf] }
  0xd4   :  { %2208 = vmatpush.bf16.msra.mxu0 %v3039_v50  ;;  %v1839_v37 = vadd.f32 %v1838_v36, %v5329_v35  ;;  %v3087_v35 = vor.u32 %v3698_v27, %v3084_v1  ;;  %2160 = vmatmul.bf16.gmra.mxu1 %v4488_v9  ;;  %v3324_v9 = vld [vmem:[%s5748_s1 + $0x678] sm:$0xf0]  ;;  %v3772_v1 = vld [vmem:[%s5748_s1 + $0x6e4] sm:$0xf]  ;;  %v3508_v36 = vld [vmem:[%s5748_s1 + $0x7e8] sm:$0xf0] }
  0xd5   :  { %2227 = vmatpush.bf16.msra.mxu1 %v3103_v51  ;;  %2141 = vmatmul.bf16.gmra.mxu0 %v4486_v8  ;;  %v3452_v51 = vld [vmem:[%s5748_s1 + $0x778] sm:$0xf0]  ;;  %v3758_v8 = vld [vmem:[%s5748_s1 + $0x674] sm:$0xf] }
  0xd6   :  { %2246 = vmatpush.bf16.msra.mxu2 %v3167_v44  ;;  %v3728_v44 = vld [vmem:[%s5748_s1 + $0x584] sm:$0xf]  ;;  %v1858_v50 = vadd.f32 %v1857_v5, %v1839_v37  ;;  %2198 = vmatmul.bf16.gmra.mxu3 %v4501_v14  ;;  %v3806_v14 = vld [vmem:[%s5748_s1 + $0x7f4] sm:$0xf]  ;;  %v3319_v37 = vor.u32 %v3756_v30, %v3316_v0  ;;  %v3356_v0 = vld [vmem:[%s5748_s1 + $0x6b8] sm:$0xf0] }
  0xd7   :  { %2265 = vmatpush.bf16.msra.mxu3 %v3231_v56  ;;  %2179 = vmatmul.bf16.gmra.mxu2 %v4499_v13  ;;  %v3774_v56 = vld [vmem:[%s5748_s1 + $0x6f4] sm:$0xf]  ;;  %v3388_v13 = vld [vmem:[%s5748_s1 + $0x6f8] sm:$0xf0]  ;;  %v3207_v10 = vor.u32 %v3728_v44, %v3204_v61  ;;  %v3519_v27 = vor.u32 %v3806_v14, %v3516_v53 }
  0xd8   :  { %2209 = vmatpush.bf16.msra.mxu0 %v3031_v57  ;;  %v1876_v11 = vpop.f32.mrf.mxu2  ;;  %v3327_v57 = vor.u32 %v3758_v8, %v3324_v9  ;;  %v3391_v26 = vor.u32 %v3774_v56, %v3388_v13  ;;  %v3372_v44 = vld [vmem:[%s5748_s1 + $0x6d8] sm:$0xf0]  ;;  %v3439_v56 = vor.u32 %v3786_v42, %v3436_v43  ;;  %v3428_v13 = vld [vmem:[%s5748_s1 + $0x748] sm:$0xf0] }
  0xd9   :  { %2228 = vmatpush.bf16.msra.mxu1 %v3095_v33  ;;  %v1877_v33 = vadd.f32 %v1876_v11, %v1858_v50  ;;  %v1859_v21 = vpop.f32.mrf.mxu1  ;;  %v3802_v50 = vld [vmem:[%s5748_s1 + $0x7d4] sm:$0xf]  ;;  %v3500_v61 = vld [vmem:[%s5748_s1 + $0x7d8] sm:$0xf0]  ;;  %v3768_v11 = vld [vmem:[%s5748_s1 + $0x6c4] sm:$0xf] }
  0xda   :  { %2247 = vmatpush.bf16.msra.mxu2 %v3159_v54  ;;  %v1895_v12 = vpop.f32.mrf.mxu3  ;;  %v3455_v54 = vor.u32 %v3790_v2, %v3452_v51 }
  0xdb   :  { %2266 = vmatpush.bf16.msra.mxu3 %v3223_v20  ;;  %v1840_v20 = vpop.f32.mrf.mxu0  ;;  %v5550_v5 = vadd.f32 %v1895_v12, %v1877_v33  ;;  %v3420_v33 = vld [vmem:[%s5748_s1 + $0x738] sm:$0xf0] }
  0xdc   :  { %2210 = vmatpush.bf16.msra.mxu0 %v3023_v41  ;;  %v1841_v32 = vadd.f32 %v1840_v20, %v5364_v4  ;;  %v3447_v4 = vor.u32 %v3788_v16, %v3444_v19  ;;  %v3511_v41 = vor.u32 %v3804_v15, %v3508_v36  ;;  %v3492_v16 = vld [vmem:[%s5748_s1 + $0x7c8] sm:$0xf0]  ;;  %v3782_v19 = vld [vmem:[%s5748_s1 + $0x734] sm:$0xf] }
  0xdd   :  { %2229 = vmatpush.bf16.msra.mxu1 %v3087_v35  ;;  %v3308_v35 = vld [vmem:[%s5748_s1 + $0x658] sm:$0xf0] }
  0xde   :  { %2248 = vmatpush.bf16.msra.mxu2 %v3151_v38  ;;  %v1860_v6 = vadd.f32 %v1859_v21, %v1841_v32  ;;  %v3383_v38 = vor.u32 %v3772_v1, %v3380_v34  ;;  %v3798_v1 = vld [vmem:[%s5748_s1 + $0x7b4] sm:$0xf]  ;;  %v3484_v32 = vld [vmem:[%s5748_s1 + $0x7b8] sm:$0xf0] }
  0xdf   :  { %2267 = vmatpush.bf16.msra.mxu3 %v3215_v52  ;;  %v3770_v52 = vld [vmem:[%s5748_s1 + $0x6d4] sm:$0xf] }
  0xe0   :  { %2211 = vmatpush.bf16.msra.mxu0 %v3015_v48  ;;  %v1878_v59 = vpop.f32.mrf.mxu2  ;;  %v3784_v48 = vld [vmem:[%s5748_s1 + $0x744] sm:$0xf]  ;;  %v3375_v53 = vor.u32 %v3770_v52, %v3372_v44 }
  0xe1   :  { %2230 = vmatpush.bf16.msra.mxu1 %v3079_v7  ;;  %v1879_v2 = vadd.f32 %v1878_v59, %v1860_v6  ;;  %v1928_v8 = vpop.f32.mrf.mxu1  ;;  %v3503_v7 = vor.u32 %v3802_v50, %v3500_v61  ;;  %v3764_v52 = vld [vmem:[%s5748_s1 + $0x6a4] sm:$0xf]  ;;  %v3476_v50 = vld [vmem:[%s5748_s1 + $0x7a8] sm:$0xf0] }
  0xe2   :  { %2249 = vmatpush.bf16.msra.mxu2 %v3143_v31  ;;  %v1897_v60 = vpop.f32.mrf.mxu3  ;;  %v3311_v31 = vor.u32 %v3754_v47, %v3308_v35  ;;  %v3487_v47 = vor.u32 %v3798_v1, %v3484_v32  ;;  %v3284_v35 = vld [vmem:[%s5748_s1 + $0x628] sm:$0xf0]  ;;  %v3796_v44 = vld [vmem:[%s5748_s1 + $0x7a4] sm:$0xf] }
  0xe3   :  { %2268 = vmatpush.bf16.msra.mxu3 %v3207_v10  ;;  %v1909_v51 = vpop.f32.mrf.mxu0  ;;  %v5583_v14 = vadd.f32 %v1897_v60, %v1879_v2  ;;  %v3752_v10 = vld [vmem:[%s5748_s1 + $0x644] sm:$0xf]  ;;  %v3348_v60 = vld [vmem:[%s5748_s1 + $0x6a8] sm:$0xf0] }
  0xe4   :  { %2280 = vmatpush.bf16.msrb.mxu0 %v3327_v57  ;;  %v1910_v9 = vadd.f32 %v1909_v51, %v5426_v3  ;;  %v3300_v3 = vld [vmem:[%s5748_s1 + $0x648] sm:$0xf0]  ;;  %2231 = vmatmul.bf16.vlgmr.msra.gmra.mxu1 %v4626_v24  ;;  %v3800_v57 = vld [vmem:[%s5748_s1 + $0x7c4] sm:$0xf]  ;;  %v3778_v51 = vld [vmem:[%s5748_s1 + $0x714] sm:$0xf] }
  0xe5   :  { %2299 = vmatpush.bf16.msrb.mxu1 %v3391_v26  ;;  %2212 = vmatmul.bf16.vlgmr.msra.gmra.mxu0 %v4624_v23  ;;  %v3431_v23 = vor.u32 %v3784_v48, %v3428_v13  ;;  %v3303_v24 = vor.u32 %v3752_v10, %v3300_v3  ;;  %v3495_v21 = vor.u32 %v3800_v57, %v3492_v16  ;;  %v3766_v26 = vld [vmem:[%s5748_s1 + $0x6b4] sm:$0xf]  ;;  %v3276_v48 = vld [vmem:[%s5748_s1 + $0x618] sm:$0xf0]  ;;  %v3460_v1 = vld [vmem:[%s5748_s1 + $0x788] sm:$0xf0] }
  0xe6   :  { %2318 = vmatpush.bf16.msrb.mxu2 %v3455_v54  ;;  %v1929_v12 = vadd.f32 %v1928_v8, %v1910_v9  ;;  %v3364_v54 = vld [vmem:[%s5748_s1 + $0x6c8] sm:$0xf0]  ;;  %2269 = vmatmul.bf16.vlgmr.msra.gmra.mxu3 %v4639_v29  ;;  %v3292_v29 = vld [vmem:[%s5748_s1 + $0x638] sm:$0xf0]  ;;  %v3359_v43 = vor.u32 %v3766_v26, %v3356_v0  ;;  %v3351_v9 = vor.u32 %v3764_v52, %v3348_v60  ;;  %v3762_v13 = vld [vmem:[%s5748_s1 + $0x694] sm:$0xf] }
  0xe7   :  { %2337 = vmatpush.bf16.msrb.mxu3 %v3519_v27  ;;  %2250 = vmatmul.bf16.vlgmr.msra.gmra.mxu2 %v4637_v28  ;;  %v3367_v20 = vor.u32 %v3768_v11, %v3364_v54  ;;  %v3750_v28 = vld [vmem:[%s5748_s1 + $0x634] sm:$0xf]  ;;  %v3404_v8 = vld [vmem:[%s5748_s1 + $0x718] sm:$0xf0]  ;;  %v3760_v26 = vld [vmem:[%s5748_s1 + $0x684] sm:$0xf] }
  0xe8   :  { %2281 = vmatpush.bf16.msrb.mxu0 %v3319_v37  ;;  %v1947_v27 = vpop.f32.mrf.mxu2  ;;  %v3295_v37 = vor.u32 %v3750_v28, %v3292_v29  ;;  %v3340_v10 = vld [vmem:[%s5748_s1 + $0x698] sm:$0xf0]  ;;  %v3794_v3 = vld [vmem:[%s5748_s1 + $0x794] sm:$0xf]  ;;  %v3268_v29 = vld [vmem:[%s5748_s1 + $0x608] sm:$0xf0] }
  0xe9   :  { %2300 = vmatpush.bf16.msrb.mxu1 %v3383_v38  ;;  %v1948_v34 = vadd.f32 %v1947_v27, %v1929_v12  ;;  %v1930_v36 = vpop.f32.mrf.mxu1  ;;  %v3780_v38 = vld [vmem:[%s5748_s1 + $0x724] sm:$0xf]  ;;  %v3468_v11 = vld [vmem:[%s5748_s1 + $0x798] sm:$0xf0] }
  0xea   :  { %2319 = vmatpush.bf16.msrb.mxu2 %v3447_v4  ;;  %v1966_v30 = vpop.f32.mrf.mxu3  ;;  %v3423_v4 = vor.u32 %v3782_v19, %v3420_v33  ;;  %v3776_v19 = vld [vmem:[%s5748_s1 + $0x704] sm:$0xf]  ;;  %v3396_v33 = vld [vmem:[%s5748_s1 + $0x708] sm:$0xf0]  ;;  %v3471_v28 = vor.u32 %v3794_v3, %v3468_v11 }
  0xeb   :  { %2338 = vmatpush.bf16.msrb.mxu3 %v3511_v41  ;;  %v1911_v15 = vpop.f32.mrf.mxu0  ;;  %v3412_v41 = vld [vmem:[%s5748_s1 + $0x728] sm:$0xf0]  ;;  %v5638_v42 = vadd.f32 %v1966_v30, %v1948_v34  ;;  %v3792_v0 = vld [vmem:[%s5748_s1 + $0x784] sm:$0xf] }
  0xec   :  { %2282 = vmatpush.bf16.msrb.mxu0 %v3311_v31  ;;  %v1912_v6 = vadd.f32 %v1911_v15, %v5483_v49  ;;  %v3748_v49 = vld [vmem:[%s5748_s1 + $0x624] sm:$0xf]  ;;  %v3415_v61 = vor.u32 %v3780_v38, %v3412_v41  ;;  %v3746_v31 = vld [vmem:[%s5748_s1 + $0x614] sm:$0xf]  ;;  %v3332_v30 = vld [vmem:[%s5748_s1 + $0x688] sm:$0xf0]  ;;  %v3463_v34 = vor.u32 %v3792_v0, %v3460_v1 }
  0xed   :  { %2301 = vmatpush.bf16.msrb.mxu1 %v3375_v53  ;;  %v3287_v2 = vor.u32 %v3748_v49, %v3284_v35  ;;  %v3335_v32 = vor.u32 %v3760_v26, %v3332_v30 }
  0xee   :  { %2320 = vmatpush.bf16.msrb.mxu2 %v3439_v56  ;;  %v1931_v59 = vadd.f32 %v1930_v36, %v1912_v6  ;;  %v3479_v56 = vor.u32 %v3796_v44, %v3476_v50 }
  0xef   :  { %2339 = vmatpush.bf16.msrb.mxu3 %v3503_v7 }
  0xf0   :  { %2283 = vmatpush.bf16.msrb.mxu0 %v3303_v24  ;;  %v1949_v53 = vpop.f32.mrf.mxu2  ;;  %v3279_v24 = vor.u32 %v3746_v31, %v3276_v48 }
  0xf1   :  { %2302 = vmatpush.bf16.msrb.mxu1 %v3367_v20  ;;  %v1950_v12 = vadd.f32 %v1949_v53, %v1931_v59  ;;  %v1933_v57 = vpop.f32.mrf.mxu1 }
  0xf2   :  { %2321 = vmatpush.bf16.msrb.mxu2 %v3431_v23  ;;  %v1968_v7 = vpop.f32.mrf.mxu3  ;;  %v3407_v23 = vor.u32 %v3778_v51, %v3404_v8 }
  0xf3   :  { %2340 = vmatpush.bf16.msrb.mxu3 %v3495_v21  ;;  %v1914_v54 = vpop.f32.mrf.mxu0  ;;  %v1969_v20 = vadd.f32 %v1968_v7, %v1950_v12  ;;  %v3343_v21 = vor.u32 %v3762_v13, %v3340_v10 }
  0xf4   :  { %2284 = vmatpush.bf16.msrb.mxu0 %v3295_v37  ;;  %v1915_v16 = vadd.f32 %v1914_v54, %v5550_v5  ;;  %v3744_v5 = vld [vmem:[%s5748_s1 + $0x604] sm:$0xf]  ;;  %2236 = vmatmul.bf16.gmra.mxu1 %v4758_v40 }
  0xf5   :  { %2303 = vmatpush.bf16.msrb.mxu1 %v3359_v43  ;;  %2217 = vmatmul.bf16.gmra.mxu0 %v4756_v39  ;;  %v3399_v39 = vor.u32 %v3776_v19, %v3396_v33  ;;  %v3271_v40 = vor.u32 %v3744_v5, %v3268_v29 }
  0xf6   :  { %2322 = vmatpush.bf16.msrb.mxu2 %v3423_v4  ;;  %v1934_v27 = vadd.f32 %v1933_v57, %v1915_v16  ;;  %2274 = vmatmul.bf16.gmra.mxu3 %v4771_v46  ;;  %v3808_v57 = vld [vmem:[%s5750_s2] sm:$0x3] }
  0xf7   :  { %2341 = vmatpush.bf16.msrb.mxu3 %v3487_v47  ;;  %2255 = vmatmul.bf16.gmra.mxu2 %v4769_v45 }
  0xf8   :  { %2285 = vmatpush.bf16.msrb.mxu0 %v3287_v2  ;;  %v1952_v15 = vpop.f32.mrf.mxu2 }
  0xf9   :  { %2304 = vmatpush.bf16.msrb.mxu1 %v3351_v9  ;;  %v1953_v6 = vadd.f32 %v1952_v15, %v1934_v27  ;;  %v1935_v37 = vpop.f32.mrf.mxu1 }
  0xfa   :  { %2323 = vmatpush.bf16.msrb.mxu2 %v3415_v61  ;;  %v1971_v36 = vpop.f32.mrf.mxu3 }
  0xfb   :  { %2342 = vmatpush.bf16.msrb.mxu3 %v3479_v56  ;;  %v1916_v4 = vpop.f32.mrf.mxu0  ;;  %v1972_v45 = vadd.f32 %v1971_v36, %v1953_v6 }
  0xfc   :  { %2286 = vmatpush.bf16.msrb.mxu0 %v3279_v24  ;;  %v1917_v38 = vadd.f32 %v1916_v4, %v5583_v14 }
  0xfd   :  { %2305 = vmatpush.bf16.msrb.mxu1 %v3343_v21 }
  0xfe   :  { %2324 = vmatpush.bf16.msrb.mxu2 %v3407_v23  ;;  %v1936_v46 = vadd.f32 %v1935_v37, %v1917_v38 }
  0xff   :  { %2343 = vmatpush.bf16.msrb.mxu3 %v3471_v28 }
 0x100   :  { %2287 = vmatpush.bf16.msrb.mxu0 %v3271_v40  ;;  %v1954_v41 = vpop.f32.mrf.mxu2 }
 0x101   :  { %2306 = vmatpush.bf16.msrb.mxu1 %v3335_v32  ;;  %v1955_v47 = vadd.f32 %v1954_v41, %v1936_v46  ;;  %v2004_v35 = vpop.f32.mrf.mxu1 }
 0x102   :  { %2325 = vmatpush.bf16.msrb.mxu2 %v3399_v39  ;;  %v1973_v43 = vpop.f32.mrf.mxu3 }
 0x103   :  { %2344 = vmatpush.bf16.msrb.mxu3 %v3463_v34  ;;  %v1985_v49 = vpop.f32.mrf.mxu0  ;;  %v1974_v59 = vadd.f32 %v1973_v43, %v1955_v47 }
 0x104   :  { %v1986_v52 = vadd.f32 %v1985_v49, %v5638_v42  ;;  %2307 = vmatmul.bf16.vlgmr.msrb.gmra.mxu1 %v4902_v18 }
 0x105   :  { %2288 = vmatmul.bf16.vlgmr.msrb.gmra.mxu0 %v4900_v17 }
 0x106   :  { %v2005_v60 = vadd.f32 %v2004_v35, %v1986_v52  ;;  %2345 = vmatmul.bf16.vlgmr.msrb.gmra.mxu3 %v4915_v25 }
 0x107   :  { %2326 = vmatmul.bf16.vlgmr.msrb.gmra.mxu2 %v4913_v22 }
 0x108   :  { %v2023_v14 = vpop.f32.mrf.mxu2 }
 0x109   :  { %v2024_v50 = vadd.f32 %v2023_v14, %v2005_v60  ;;  %v2006_v2 = vpop.f32.mrf.mxu1 }
 0x10a   :  { %v2042_v44 = vpop.f32.mrf.mxu3 }
 0x10b   :  { %v1987_v61 = vpop.f32.mrf.mxu0  ;;  %v5717_v8 = vadd.f32 %v2042_v44, %v2024_v50 }
 0x10c   :  { %v1988_v51 = vadd.f32 %v1987_v61, %v1969_v20 }
 0x10e   :  { %v2007_v9 = vadd.f32 %v2006_v2, %v1988_v51 }
 0x110   :  { %v2025_v42 = vpop.f32.mrf.mxu2 }
 0x111   :  { %v2026_v31 = vadd.f32 %v2025_v42, %v2007_v9  ;;  %v2009_v17 = vpop.f32.mrf.mxu1 }
 0x112   :  { %v2044_v56 = vpop.f32.mrf.mxu3 }
 0x113   :  { %v1990_v48 = vpop.f32.mrf.mxu0  ;;  %v5719_v18 = vadd.f32 %v2044_v56, %v2026_v31 }
 0x114   :  { %v1991_v13 = vadd.f32 %v1990_v48, %v1972_v45  ;;  %2312 = vmatmul.bf16.gmra.mxu1 %v5034_v58 }
 0x115   :  { %2293 = vmatmul.bf16.gmra.mxu0 %v5032_v55  ;;  %v305_v55 = vperm.slane %v3808_v57, 1 }
 0x116   :  { %v2010_v22 = vadd.f32 %v2009_v17, %v1991_v13  ;;  %2350 = vmatmul.bf16.gmra.mxu3 %v5047_v63 }
 0x117   :  { %2331 = vmatmul.bf16.gmra.mxu2 %v5045_v62 }
 0x119   :  { %v2011_v3 = vpop.f32.mrf.mxu1 }
 0x11a   :  { %v2028_v25 = vpop.f32.mrf.mxu2  ;;  %v2047_v53 = vpop.f32.mrf.mxu3 }
 0x11b   :  { %v2029_v7 = vadd.f32 %v2028_v25, %v2010_v22  ;;  %v1992_v10 = vpop.f32.mrf.mxu0 }
 0x11c   :  { %v1993_v11 = vadd.f32 %v1992_v10, %v1974_v59 }
 0x11d   :  { %v5725_v12 = vadd.f32 %v2047_v53, %v2029_v7 }
 0x11e   :  { %v2012_v54 = vadd.f32 %v2011_v3, %v1993_v11 }
 0x121   :  { %v2080_v24 = vpop.f32.mrf.mxu1 }
 0x122   :  { %v2030_v16 = vpop.f32.mrf.mxu2  ;;  %v2049_v58 = vpop.f32.mrf.mxu3 }
 0x123   :  { %v2031_v23 = vadd.f32 %v2030_v16, %v2012_v54  ;;  %v2061_v62 = vpop.f32.mrf.mxu0 }
 0x124   :  { %v2062_v63 = vadd.f32 %v2061_v62, %v305_v55 }
 0x125   :  { %v5730_v19 = vadd.f32 %v2049_v58, %v2031_v23 }
 0x126   :  { %v2081_v33 = vadd.f32 %v2080_v24, %v2062_v63 }
 0x129   :  { %v2082_v29 = vpop.f32.mrf.mxu1 }
 0x12a   :  { %v2099_v20 = vpop.f32.mrf.mxu2  ;;  %v2118_v21 = vpop.f32.mrf.mxu3 }
 0x12b   :  { %v2100_v28 = vadd.f32 %v2099_v20, %v2081_v33  ;;  %v2063_v5 = vpop.f32.mrf.mxu0 }
 0x12c   :  { %v2064_v26 = vadd.f32 %v2063_v5, %v305_v55 }
 0x12d   :  { %v2119_v27 = vadd.f32 %v2118_v21, %v2100_v28 }
 0x12e   :  { %v2083_v30 = vadd.f32 %v2082_v29, %v2064_v26 }
 0x131   :  { %v2085_v32 = vpop.f32.mrf.mxu1 }
 0x132   :  { %v2101_v0 = vpop.f32.mrf.mxu2  ;;  %v2120_v1 = vpop.f32.mrf.mxu3 }
 0x133   :  { %v2102_v39 = vadd.f32 %v2101_v0, %v2083_v30  ;;  %v2066_v40 = vpop.f32.mrf.mxu0 }
 0x134   :  { %v2067_v34 = vadd.f32 %v2066_v40, %v305_v55 }
 0x135   :  { %v2121_v15 = vadd.f32 %v2120_v1, %v2102_v39 }
 0x136   :  { %v2086_v36 = vadd.f32 %v2085_v32, %v2067_v34 }
 0x139   :  { %v2087_v45 = vpop.f32.mrf.mxu1 }
 0x13a   :  { %v2104_v6 = vpop.f32.mrf.mxu2  ;;  %v2123_v4 = vpop.f32.mrf.mxu3 }
 0x13b   :  { %v2105_v37 = vadd.f32 %v2104_v6, %v2086_v36  ;;  %v2068_v38 = vpop.f32.mrf.mxu0 }
 0x13c   :  { %v2069_v46 = vadd.f32 %v2068_v38, %v305_v55 }
 0x13d   :  { %v2124_v41 = vadd.f32 %v2123_v4, %v2105_v37 }
 0x13e   :  { %v2088_v43 = vadd.f32 %v2087_v45, %v2069_v46 }
 0x141   :  { %v2156_v59 = vpop.f32.mrf.mxu1 }
 0x142   :  { %v2106_v47 = vpop.f32.mrf.mxu2  ;;  %v2125_v49 = vpop.f32.mrf.mxu3 }
 0x143   :  { %v2107_v35 = vadd.f32 %v2106_v47, %v2088_v43  ;;  %v2137_v52 = vpop.f32.mrf.mxu0 }
 0x144   :  { %v2138_v54 = vadd.f32 %v2137_v52, %v2119_v27 }
 0x145   :  { %v2126_v60 = vadd.f32 %v2125_v49, %v2107_v35 }
 0x146   :  { %v2157_v57 = vadd.f32 %v2156_v59, %v2138_v54 }
 0x149   :  { %v2158_v61 = vpop.f32.mrf.mxu1 }
 0x14a   :  { %v2175_v14 = vpop.f32.mrf.mxu2  ;;  %v2194_v44 = vpop.f32.mrf.mxu3 }
 0x14b   :  { %v2139_v50 = vpop.f32.mrf.mxu0  ;;  %v2176_v58 = vadd.f32 %v2175_v14, %v2157_v57 }
 0x14c   :  { %v2140_v24 = vadd.f32 %v2139_v50, %v2121_v15 }
 0x14d   :  { %v2195_v63 = vadd.f32 %v2194_v44, %v2176_v58 }
 0x14e   :  { %v2159_v33 = vadd.f32 %v2158_v61, %v2140_v24 }
 0x151   :  { %v2161_v42 = vpop.f32.mrf.mxu1 }
 0x152   :  { %v2177_v2 = vpop.f32.mrf.mxu2  ;;  %v2196_v51 = vpop.f32.mrf.mxu3 }
 0x153   :  { %v2142_v9 = vpop.f32.mrf.mxu0  ;;  %v2178_v5 = vadd.f32 %v2177_v2, %v2159_v33 }
 0x154   :  { %v2143_v30 = vadd.f32 %v2142_v9, %v2124_v41 }
 0x155   :  { %v2197_v1 = vadd.f32 %v2196_v51, %v2178_v5 }
 0x156   :  { %v2162_v27 = vadd.f32 %v2161_v42, %v2143_v30 }
 0x159   :  { %v2163_v17 = vpop.f32.mrf.mxu1 }
 0x15a   :  { %v2180_v56 = vpop.f32.mrf.mxu2  ;;  %v2199_v31 = vpop.f32.mrf.mxu3 }
 0x15b   :  { %v2144_v48 = vpop.f32.mrf.mxu0  ;;  %v2181_v36 = vadd.f32 %v2180_v56, %v2162_v27 }
 0x15c   :  { %v2145_v37 = vadd.f32 %v2144_v48, %v2126_v60 }
 0x15d   :  { %v2200_v46 = vadd.f32 %v2199_v31, %v2181_v36 }
 0x15e   :  { %v2164_v47 = vadd.f32 %v2163_v17, %v2145_v37 }
 0x161   :  { %v2232_v53 = vpop.f32.mrf.mxu1 }
 0x162   :  { %v2182_v13 = vpop.f32.mrf.mxu2  ;;  %v2201_v22 = vpop.f32.mrf.mxu3 }
 0x163   :  { %v2213_v25 = vpop.f32.mrf.mxu0  ;;  %v2183_v59 = vadd.f32 %v2182_v13, %v2164_v47 }
 0x164   :  { %v2214_v20 = vadd.f32 %v2213_v25, %v2195_v63 }
 0x165   :  { %v2202_v42 = vadd.f32 %v2201_v22, %v2183_v59 }
 0x166   :  { %v2233_v0 = vadd.f32 %v2232_v53, %v2214_v20 }
 0x169   :  { %v2234_v11 = vpop.f32.mrf.mxu1 }
 0x16a   :  { %v2251_v7 = vpop.f32.mrf.mxu2  ;;  %v2270_v10 = vpop.f32.mrf.mxu3 }
 0x16b   :  { %v2215_v3 = vpop.f32.mrf.mxu0  ;;  %v2252_v39 = vadd.f32 %v2251_v7, %v2233_v0 }
 0x16c   :  { %v2216_v40 = vadd.f32 %v2215_v3, %v2197_v1 }
 0x16d   :  { %v2271_v6 = vadd.f32 %v2270_v10, %v2252_v39 }
 0x16e   :  { %v2235_v38 = vadd.f32 %v2234_v11, %v2216_v40 }
 0x171   :  { %v2237_v62 = vpop.f32.mrf.mxu1 }
 0x172   :  { %v2253_v55 = vpop.f32.mrf.mxu2  ;;  %v2272_v16 = vpop.f32.mrf.mxu3 }
 0x173   :  { %v2218_v23 = vpop.f32.mrf.mxu0  ;;  %v2254_v43 = vadd.f32 %v2253_v55, %v2235_v38 }
 0x174   :  { %v2219_v49 = vadd.f32 %v2218_v23, %v2200_v46 }
 0x175   :  { %v2273_v14 = vadd.f32 %v2272_v16, %v2254_v43 }
 0x176   :  { %v2238_v2 = vadd.f32 %v2237_v62, %v2219_v49 }
 0x179   :  { %v2239_v26 = vpop.f32.mrf.mxu1 }
 0x17a   :  { %v2256_v21 = vpop.f32.mrf.mxu2  ;;  %v2275_v28 = vpop.f32.mrf.mxu3 }
 0x17b   :  { %v2220_v29 = vpop.f32.mrf.mxu0  ;;  %v2257_v56 = vadd.f32 %v2256_v21, %v2238_v2 }
 0x17c   :  { %v2221_v48 = vadd.f32 %v2220_v29, %v2202_v42 }
 0x17d   :  { %v2276_v13 = vadd.f32 %v2275_v28, %v2257_v56 }
 0x17e   :  { %v2240_v10 = vadd.f32 %v2239_v26, %v2221_v48 }
 0x181   :  { %v2308_v15 = vpop.f32.mrf.mxu1 }
 0x182   :  { %v2258_v32 = vpop.f32.mrf.mxu2  ;;  %v2277_v34 = vpop.f32.mrf.mxu3 }
 0x183   :  { %v2289_v4 = vpop.f32.mrf.mxu0  ;;  %v2259_v57 = vadd.f32 %v2258_v32, %v2240_v10 }
 0x184   :  { %v2290_v45 = vadd.f32 %v2289_v4, %v2271_v6 }
 0x185   :  { %v2278_v58 = vadd.f32 %v2277_v34, %v2259_v57 }
 0x186   :  { %v2309_v35 = vadd.f32 %v2308_v15, %v2290_v45 }
 0x189   :  { %v2310_v61 = vpop.f32.mrf.mxu1 }
 0x18a   :  { %v2327_v41 = vpop.f32.mrf.mxu2  ;;  %v2346_v52 = vpop.f32.mrf.mxu3 }
 0x18b   :  { %v2328_v44 = vadd.f32 %v2327_v41, %v2309_v35  ;;  %v2291_v50 = vpop.f32.mrf.mxu0 }
 0x18c   :  { %v2292_v9 = vadd.f32 %v2291_v50, %v2273_v14 }
 0x18d   :  { %v2347_v51 = vadd.f32 %v2346_v52, %v2328_v44 }
 0x18e   :  { %v2311_v31 = vadd.f32 %v2310_v61, %v2292_v9 }
 0x18f   :  { %v2356_v60 = vpack.c.bf16 %v2347_v51, %v5717_v8 }
 0x191   :  { %2360 = vst [vmem:[%s5751_s3] sm:$0xff] %v2356_v60  ;;  %v2313_v54 = vpop.f32.mrf.mxu1 }
 0x192   :  { %v2329_v17 = vpop.f32.mrf.mxu2  ;;  %v2348_v25 = vpop.f32.mrf.mxu3 }
 0x193   :  { %v2330_v53 = vadd.f32 %v2329_v17, %v2311_v31  ;;  %v2294_v7 = vpop.f32.mrf.mxu0 }
 0x194   :  { %v2295_v11 = vadd.f32 %v2294_v7, %v2276_v13 }
 0x195   :  { %v2349_v3 = vadd.f32 %v2348_v25, %v2330_v53 }
 0x196   :  { %v2314_v8 = vadd.f32 %v2313_v54, %v2295_v11 }
 0x197   :  { %v2357_v22 = vpack.c.bf16 %v2349_v3, %v5719_v18 }
 0x199   :  { %2361 = vst [vmem:[%s5751_s3 + $0x8] sm:$0xff] %v2357_v22  ;;  %v2315_v20 = vpop.f32.mrf.mxu1 }
 0x19a   :  { %v2332_v55 = vpop.f32.mrf.mxu2  ;;  %v2351_v16 = vpop.f32.mrf.mxu3 }
 0x19b   :  { %v2333_v23 = vadd.f32 %v2332_v55, %v2314_v8  ;;  %v2296_v62 = vpop.f32.mrf.mxu0 }
 0x19c   :  { %v2297_v63 = vadd.f32 %v2296_v62, %v2278_v58 }
 0x19d   :  { %v2352_v24 = vadd.f32 %v2351_v16, %v2333_v23 }
 0x19e   :  { %v2316_v18 = vadd.f32 %v2315_v20, %v2297_v63 }
 0x19f   :  { %v2358_v33 = vpack.c.bf16 %v2352_v24, %v5725_v12 }
 0x1a1   :  { %2362 = vst [vmem:[%s5751_s3 + $0x10] sm:$0xff] %v2358_v33 }
 0x1a2   :  { %v2334_v21 = vpop.f32.mrf.mxu2  ;;  %v2353_v5 = vpop.f32.mrf.mxu3 }
 0x1a3   :  { %v2335_v28 = vadd.f32 %v2334_v21, %v2316_v18 }
 0x1a5   :  { %v2354_v29 = vadd.f32 %v2353_v5, %v2335_v28 }
 0x1a7   :  { %v2359_v26 = vpack.c.bf16 %v2354_v29, %v5730_v19 }
 0x1a9   :  { %2363 = vst [vmem:[%s5751_s3 + $0x18] sm:$0xff] %v2359_v26 }

// kernel: encoder_maxpool_forward.13
= control target key start
LH: loop header
LB: loop body
LE: loop exit
PB: predicated region body
PF: predicated region fallthrough
CT: control target
= control target key end

     0   :  { %vm877_vm0 = vcmask 850944   ;;  %vm931_vm5 = vcmask 7168   ;;  %s2116_s1 = inlined_call_operand.vmem [shape: bf16[512,360], index: 1, kind: input, shape index: {}]   ;;  %s2117_s0 = inlined_call_operand.vmem [shape: bf16[16,512], index: 0, kind: input, shape index: {}]   ;;  %s2118_s2 = inlined_call_operand.vmem [shape: f32[1,360], index: 2, kind: input, shape index: {}]   ;;  %s2119_s4 = inlined_call_operand.<no memory space> [shape: f32[1,1], index: 4, kind: input, shape index: {}]   ;;  %s2120_s3 = inlined_call_operand.vmem [shape: f32[1,360], index: 3, kind: input, shape index: {}]   ;;  %s2121_s5 = inlined_call_operand.vmem [shape: f32[16,1], index: 5, kind: output, shape index: {}]  }
   0x1   :  { %v1040_v0 = vld [vmem:[%s2116_s1 + $0xa8] sm:$0xf]  ;;  %v1364_v1 = vld [vmem:[%s2116_s1 + $0xb0] sm:$0xf0]  ;;  %v1028_v11 = vld [vmem:[%s2116_s1 + $0x90] sm:$0xf] }
   0x2   :  { %v1136_v2 = vld [vmem:[%s2116_s1 + $0x168] sm:$0xf]  ;;  %v1041_v3 = vor.u32 %v1364_v1, %v1040_v0  ;;  %v1388_v4 = vld [vmem:[%s2116_s1 + $0x170] sm:$0xf0]  ;;  %v1361_v13 = vld [vmem:[%s2116_s1 + $0x98] sm:$0xf0] }
   0x3   :  { %v1232_v5 = vld [vmem:[%s2116_s1 + $0x228] sm:$0xf]  ;;  %v1412_v6 = vld [vmem:[%s2116_s1 + $0x230] sm:$0xf0]  ;;  %v1137_v7 = vor.u32 %v1388_v4, %v1136_v2  ;;  %v1124_v14 = vld [vmem:[%s2116_s1 + $0x150] sm:$0xf]  ;;  %v1029_v16 = vor.u32 %v1361_v13, %v1028_v11 }
   0x4   :  { %v1233_v8 = vor.u32 %v1412_v6, %v1232_v5  ;;  %v1328_v9 = vld [vmem:[%s2116_s1 + $0x2e8] sm:$0xf]  ;;  %v1436_v10 = vld [vmem:[%s2116_s1 + $0x2f0] sm:$0xf0]  ;;  %694 = vmatpush.bf16.msra.mxu0 %v1041_v3  ;;  %v1385_v15 = vld [vmem:[%s2116_s1 + $0x158] sm:$0xf0] }
   0x5   :  { %v1329_v12 = vor.u32 %v1436_v10, %v1328_v9  ;;  %708 = vmatpush.bf16.msra.mxu1 %v1137_v7  ;;  %v1125_v17 = vor.u32 %v1385_v15, %v1124_v14  ;;  %v1220_v18 = vld [vmem:[%s2116_s1 + $0x210] sm:$0xf]  ;;  %v1409_v19 = vld [vmem:[%s2116_s1 + $0x218] sm:$0xf0]  ;;  %v1016_v23 = vld [vmem:[%s2116_s1 + $0x78] sm:$0xf] }
   0x6   :  { %722 = vmatpush.bf16.msra.mxu2 %v1233_v8  ;;  %v1316_v20 = vld [vmem:[%s2116_s1 + $0x2d0] sm:$0xf]  ;;  %v1221_v21 = vor.u32 %v1409_v19, %v1220_v18  ;;  %v1433_v22 = vld [vmem:[%s2116_s1 + $0x2d8] sm:$0xf0]  ;;  %v1358_v24 = vld [vmem:[%s2116_s1 + $0x80] sm:$0xf0] }
   0x7   :  { %736 = vmatpush.bf16.msra.mxu3 %v1329_v12  ;;  %v1317_v25 = vor.u32 %v1433_v22, %v1316_v20  ;;  %v1112_v26 = vld [vmem:[%s2116_s1 + $0x138] sm:$0xf]  ;;  %v1382_v27 = vld [vmem:[%s2116_s1 + $0x140] sm:$0xf0]  ;;  %v1017_v29 = vor.u32 %v1358_v24, %v1016_v23  ;;  %v1004_v35 = vld [vmem:[%s2116_s1 + $0x60] sm:$0xf] }
   0x8   :  { %v1208_v28 = vld [vmem:[%s2116_s1 + $0x1f8] sm:$0xf]  ;;  %695 = vmatpush.bf16.msra.mxu0 %v1029_v16  ;;  %v1406_v30 = vld [vmem:[%s2116_s1 + $0x200] sm:$0xf0]  ;;  %v1113_v33 = vor.u32 %v1382_v27, %v1112_v26  ;;  %v1355_v36 = vld [vmem:[%s2116_s1 + $0x68] sm:$0xf0] }
   0x9   :  { %v1304_v31 = vld [vmem:[%s2116_s1 + $0x2b8] sm:$0xf]  ;;  %v1430_v32 = vld [vmem:[%s2116_s1 + $0x2c0] sm:$0xf0]  ;;  %709 = vmatpush.bf16.msra.mxu1 %v1125_v17  ;;  %v1209_v34 = vor.u32 %v1406_v30, %v1208_v28  ;;  %v1100_v37 = vld [vmem:[%s2116_s1 + $0x120] sm:$0xf]  ;;  %v1005_v44 = vor.u32 %v1355_v36, %v1004_v35 }
   0xa   :  { %723 = vmatpush.bf16.msra.mxu2 %v1221_v21  ;;  %v1305_v38 = vor.u32 %v1430_v32, %v1304_v31  ;;  %v1379_v39 = vld [vmem:[%s2116_s1 + $0x128] sm:$0xf0]  ;;  %v1196_v40 = vld [vmem:[%s2116_s1 + $0x1e0] sm:$0xf]  ;;  %v992_v47 = vld [vmem:[%s2116_s1 + $0x48] sm:$0xf] }
   0xb   :  { %737 = vmatpush.bf16.msra.mxu3 %v1317_v25  ;;  %v1403_v41 = vld [vmem:[%s2116_s1 + $0x1e8] sm:$0xf0]  ;;  %v1292_v42 = vld [vmem:[%s2116_s1 + $0x2a0] sm:$0xf]  ;;  %v1101_v45 = vor.u32 %v1379_v39, %v1100_v37  ;;  %v1352_v48 = vld [vmem:[%s2116_s1 + $0x50] sm:$0xf0] }
   0xc   :  { %v1427_v43 = vld [vmem:[%s2116_s1 + $0x2a8] sm:$0xf0]  ;;  %696 = vmatpush.bf16.msra.mxu0 %v1017_v29  ;;  %v1197_v46 = vor.u32 %v1403_v41, %v1196_v40  ;;  %v1088_v49 = vld [vmem:[%s2116_s1 + $0x108] sm:$0xf]  ;;  %v1376_v51 = vld [vmem:[%s2116_s1 + $0x110] sm:$0xf0]  ;;  %v993_v56 = vor.u32 %v1352_v48, %v992_v47 }
   0xd   :  { %710 = vmatpush.bf16.msra.mxu1 %v1113_v33  ;;  %v1293_v50 = vor.u32 %v1427_v43, %v1292_v42  ;;  %v1184_v52 = vld [vmem:[%s2116_s1 + $0x1c8] sm:$0xf]  ;;  %v1400_v53 = vld [vmem:[%s2116_s1 + $0x1d0] sm:$0xf0]  ;;  %v1089_v57 = vor.u32 %v1376_v51, %v1088_v49  ;;  %v980_v59 = vld [vmem:[%s2116_s1 + $0x30] sm:$0xf] }
   0xe   :  { %724 = vmatpush.bf16.msra.mxu2 %v1209_v34  ;;  %v1280_v54 = vld [vmem:[%s2116_s1 + $0x288] sm:$0xf]  ;;  %v1424_v55 = vld [vmem:[%s2116_s1 + $0x290] sm:$0xf0]  ;;  %v1185_v58 = vor.u32 %v1400_v53, %v1184_v52  ;;  %v1349_v60 = vld [vmem:[%s2116_s1 + $0x38] sm:$0xf0] }
   0xf   :  { %738 = vmatpush.bf16.msra.mxu3 %v1305_v38  ;;  %v1076_v61 = vld [vmem:[%s2116_s1 + $0xf0] sm:$0xf]  ;;  %v1281_v62 = vor.u32 %v1424_v55, %v1280_v54  ;;  %v1373_v63 = vld [vmem:[%s2116_s1 + $0xf8] sm:$0xf0]  ;;  %v981_v4 = vor.u32 %v1349_v60, %v980_v59  ;;  %v968_v7 = vld [vmem:[%s2116_s1 + $0x18] sm:$0xf] }
  0x10   :  { %697 = vmatpush.bf16.msra.mxu0 %v1005_v44  ;;  %v1172_v0 = vld [vmem:[%s2116_s1 + $0x1b0] sm:$0xf]  ;;  %v1397_v1 = vld [vmem:[%s2116_s1 + $0x1b8] sm:$0xf0]  ;;  %v1077_v5 = vor.u32 %v1373_v63, %v1076_v61  ;;  %v1346_v8 = vld [vmem:[%s2116_s1 + $0x20] sm:$0xf0] }
  0x11   :  { %711 = vmatpush.bf16.msra.mxu1 %v1101_v45  ;;  %v1268_v2 = vld [vmem:[%s2116_s1 + $0x270] sm:$0xf]  ;;  %v1421_v3 = vld [vmem:[%s2116_s1 + $0x278] sm:$0xf0]  ;;  %v1173_v6 = vor.u32 %v1397_v1, %v1172_v0  ;;  %v1064_v9 = vld [vmem:[%s2116_s1 + $0xd8] sm:$0xf]  ;;  %v969_v16 = vor.u32 %v1346_v8, %v968_v7 }
  0x12   :  { %725 = vmatpush.bf16.msra.mxu2 %v1197_v46  ;;  %v1269_v10 = vor.u32 %v1421_v3, %v1268_v2  ;;  %v1370_v11 = vld [vmem:[%s2116_s1 + $0xe0] sm:$0xf0]  ;;  %v1160_v12 = vld [vmem:[%s2116_s1 + $0x198] sm:$0xf]  ;;  %v956_v17 = vld [vmem:[%s2116_s1] sm:$0xf] }
  0x13   :  { %739 = vmatpush.bf16.msra.mxu3 %v1293_v50  ;;  %v1394_v13 = vld [vmem:[%s2116_s1 + $0x1a0] sm:$0xf0]  ;;  %v1256_v14 = vld [vmem:[%s2116_s1 + $0x258] sm:$0xf]  ;;  %v1343_v18 = vld [vmem:[%s2116_s1 + $0x8] sm:$0xf0]  ;;  %v1065_v19 = vor.u32 %v1370_v11, %v1064_v9 }
  0x14   :  { %698 = vmatpush.bf16.msra.mxu0 %v993_v56  ;;  %v1418_v15 = vld [vmem:[%s2116_s1 + $0x260] sm:$0xf0]  ;;  %v1161_v20 = vor.u32 %v1394_v13, %v1160_v12  ;;  %v1052_v21 = vld [vmem:[%s2116_s1 + $0xc0] sm:$0xf]  ;;  %v1367_v22 = vld [vmem:[%s2116_s1 + $0xc8] sm:$0xf0]  ;;  %v957_v31 = vor.u32 %v1343_v18, %v956_v17 }
  0x15   :  { %712 = vmatpush.bf16.msra.mxu1 %v1089_v57  ;;  %v1148_v23 = vld [vmem:[%s2116_s1 + $0x180] sm:$0xf]  ;;  %v1257_v24 = vor.u32 %v1418_v15, %v1256_v14  ;;  %v1391_v25 = vld [vmem:[%s2116_s1 + $0x188] sm:$0xf0]  ;;  %v1042_v29 = vld [vmem:[%s2116_s1 + $0xb4] sm:$0xf0]  ;;  %v1053_v35 = vor.u32 %v1367_v22, %v1052_v21 }
  0x16   :  { %726 = vmatpush.bf16.msra.mxu2 %v1185_v58  ;;  %v1244_v26 = vld [vmem:[%s2116_s1 + $0x240] sm:$0xf]  ;;  %v1415_v27 = vld [vmem:[%s2116_s1 + $0x248] sm:$0xf0]  ;;  %v1138_v32 = vld [vmem:[%s2116_s1 + $0x174] sm:$0xf0]  ;;  %v1149_v36 = vor.u32 %v1391_v25, %v1148_v23 }
  0x17   :  { %740 = vmatpush.bf16.msra.mxu3 %v1281_v62  ;;  %v1363_v28 = vld [vmem:[%s2116_s1 + $0xac] sm:$0xf]  ;;  %v1234_v34 = vld [vmem:[%s2116_s1 + $0x234] sm:$0xf0]  ;;  %v1245_v39 = vor.u32 %v1415_v27, %v1244_v26  ;;  %v1360_v41 = vld [vmem:[%s2116_s1 + $0x94] sm:$0xf] }
  0x18   :  { %699 = vmatpush.bf16.msra.mxu0 %v981_v4  ;;  %v1387_v30 = vld [vmem:[%s2116_s1 + $0x16c] sm:$0xf]  ;;  %v1330_v38 = vld [vmem:[%s2116_s1 + $0x2f4] sm:$0xf0]  ;;  %v1045_v40 = vor.u32 %v1363_v28, %v1042_v29  ;;  %v1030_v42 = vld [vmem:[%s2116_s1 + $0x9c] sm:$0xf0] }
  0x19   :  { %713 = vmatpush.bf16.msra.mxu1 %v1077_v5  ;;  %v1411_v33 = vld [vmem:[%s2116_s1 + $0x22c] sm:$0xf]  ;;  %v1141_v43 = vor.u32 %v1387_v30, %v1138_v32  ;;  %v1384_v45 = vld [vmem:[%s2116_s1 + $0x154] sm:$0xf]  ;;  %v1126_v46 = vld [vmem:[%s2116_s1 + $0x15c] sm:$0xf0]  ;;  %v1033_v55 = vor.u32 %v1360_v41, %v1030_v42 }
  0x1a   :  { %727 = vmatpush.bf16.msra.mxu2 %v1173_v6  ;;  %v1435_v37 = vld [vmem:[%s2116_s1 + $0x2ec] sm:$0xf]  ;;  %v1237_v44 = vor.u32 %v1411_v33, %v1234_v34  ;;  %v1408_v47 = vld [vmem:[%s2116_s1 + $0x214] sm:$0xf]  ;;  %v1222_v49 = vld [vmem:[%s2116_s1 + $0x21c] sm:$0xf0]  ;;  %v1129_v60 = vor.u32 %v1384_v45, %v1126_v46 }
  0x1b   :  { %741 = vmatpush.bf16.msra.mxu3 %v1269_v10  ;;  %v1333_v48 = vor.u32 %v1435_v37, %v1330_v38  ;;  %v1432_v50 = vld [vmem:[%s2116_s1 + $0x2d4] sm:$0xf]  ;;  %v1318_v51 = vld [vmem:[%s2116_s1 + $0x2dc] sm:$0xf0]  ;;  %v1357_v52 = vld [vmem:[%s2116_s1 + $0x7c] sm:$0xf]  ;;  %v1225_v61 = vor.u32 %v1408_v47, %v1222_v49 }
  0x1c   :  { %700 = vmatpush.bf16.msra.mxu0 %v969_v16  ;;  %v948_v53 = vld [vmem:[%s2117_s0 + $0x8] sm:$0xf]  ;;  %v1341_v54 = vld [vmem:[%s2117_s0 + $0x14] sm:$0xf0]  ;;  %v1381_v57 = vld [vmem:[%s2116_s1 + $0x13c] sm:$0xf]  ;;  %v1321_v1 = vor.u32 %v1432_v50, %v1318_v51 }
  0x1d   :  { %714 = vmatpush.bf16.msra.mxu1 %v1065_v19  ;;  %v1018_v56 = vld [vmem:[%s2116_s1 + $0x84] sm:$0xf0]  ;;  %v1735_v59 = vor.u32 %v1341_v54, %v948_v53  ;;  %v1405_v62 = vld [vmem:[%s2116_s1 + $0x1fc] sm:$0xf]  ;;  %v940_v3 = vld [vmem:[%s2117_s0] sm:$0xf] }
  0x1e   :  { %728 = vmatpush.bf16.msra.mxu2 %v1161_v20  ;;  %v1114_v58 = vld [vmem:[%s2116_s1 + $0x144] sm:$0xf0]  ;;  %v1429_v0 = vld [vmem:[%s2116_s1 + $0x2bc] sm:$0xf]  ;;  %v1340_v4 = vld [vmem:[%s2117_s0 + $0xc] sm:$0xf0]  ;;  %v1021_v9 = vor.u32 %v1357_v52, %v1018_v56 }
  0x1f   :  { %742 = vmatpush.bf16.msra.mxu3 %v1257_v24  ;;  %v1210_v63 = vld [vmem:[%s2116_s1 + $0x204] sm:$0xf0]  ;;  %v1756_v5 = vor.u32 %v1340_v4, %v940_v3  ;;  %v1339_v6 = vld [vmem:[%s2117_s0 + $0xc] sm:$0xf]  ;;  %v950_v7 = vld [vmem:[%s2117_s0 + $0x18] sm:$0xf0]  ;;  %v1117_v12 = vor.u32 %v1381_v57, %v1114_v58 }
  0x20   :  { %701 = vmatpush.bf16.msra.mxu0 %v957_v31  ;;  %v1306_v2 = vld [vmem:[%s2116_s1 + $0x2c4] sm:$0xf0]  ;;  %v1338_v8 = vld [vmem:[%s2117_s0 + $0x4] sm:$0xf]  ;;  %v1767_v10 = vor.u32 %v1339_v6, %v950_v7  ;;  %v942_v11 = vld [vmem:[%s2117_s0 + $0x10] sm:$0xf0]  ;;  %v1213_v13 = vor.u32 %v1405_v62, %v1210_v63 }
  0x21   :  { %715 = vmatpush.bf16.msra.mxu1 %v1053_v35  ;;  %v1354_v14 = vld [vmem:[%s2116_s1 + $0x64] sm:$0xf]  ;;  %v1006_v15 = vld [vmem:[%s2116_s1 + $0x6c] sm:$0xf0]  ;;  %v1781_v17 = vor.u32 %v1338_v8, %v942_v11  ;;  %v1309_v18 = vor.u32 %v1429_v0, %v1306_v2  ;;  %v1351_v27 = vld [vmem:[%s2116_s1 + $0x4c] sm:$0xf] }
  0x22   :  { %729 = vmatpush.bf16.msra.mxu2 %v1149_v36  ;;  %v1378_v16 = vld [vmem:[%s2116_s1 + $0x124] sm:$0xf]  ;;  %v1102_v19 = vld [vmem:[%s2116_s1 + $0x12c] sm:$0xf0]  ;;  %v1009_v24 = vor.u32 %v1354_v14, %v1006_v15  ;;  %v994_v28 = vld [vmem:[%s2116_s1 + $0x54] sm:$0xf0] }
  0x23   :  { %743 = vmatpush.bf16.msra.mxu3 %v1245_v39  ;;  %v1402_v20 = vld [vmem:[%s2116_s1 + $0x1e4] sm:$0xf]  ;;  %v1198_v21 = vld [vmem:[%s2116_s1 + $0x1ec] sm:$0xf0]  ;;  %702 = vmatmul.bf16.vlgmr.msra.gmra.mxu0 %v1756_v5  ;;  %v1105_v25 = vor.u32 %v1378_v16, %v1102_v19  ;;  %v1375_v29 = vld [vmem:[%s2116_s1 + $0x10c] sm:$0xf]  ;;  %v997_v36 = vor.u32 %v1351_v27, %v994_v28 }
  0x24   :  { %750 = vmatpush.bf16.msrb.mxu0 %v1045_v40  ;;  %v1426_v22 = vld [vmem:[%s2116_s1 + $0x2a4] sm:$0xf]  ;;  %v1294_v23 = vld [vmem:[%s2116_s1 + $0x2ac] sm:$0xf0]  ;;  %716 = vmatmul.bf16.vlgmr.msra.gmra.mxu1 %v1781_v17  ;;  %v1201_v26 = vor.u32 %v1402_v20, %v1198_v21  ;;  %v1090_v31 = vld [vmem:[%s2116_s1 + $0x114] sm:$0xf0] }
  0x25   :  { %764 = vmatpush.bf16.msrb.mxu1 %v1141_v43  ;;  %730 = vmatmul.bf16.vlgmr.msra.gmra.mxu2 %v1735_v59  ;;  %v1297_v30 = vor.u32 %v1426_v22, %v1294_v23  ;;  %v1399_v32 = vld [vmem:[%s2116_s1 + $0x1cc] sm:$0xf]  ;;  %v1186_v33 = vld [vmem:[%s2116_s1 + $0x1d4] sm:$0xf0]  ;;  %v1093_v37 = vor.u32 %v1375_v29, %v1090_v31  ;;  %v1348_v39 = vld [vmem:[%s2116_s1 + $0x34] sm:$0xf] }
  0x26   :  { %778 = vmatpush.bf16.msrb.mxu2 %v1237_v44  ;;  %744 = vmatmul.bf16.vlgmr.msra.gmra.mxu3 %v1767_v10  ;;  %v1423_v34 = vld [vmem:[%s2116_s1 + $0x28c] sm:$0xf]  ;;  %v1282_v35 = vld [vmem:[%s2116_s1 + $0x294] sm:$0xf0]  ;;  %v1189_v38 = vor.u32 %v1399_v32, %v1186_v33  ;;  %v982_v40 = vld [vmem:[%s2116_s1 + $0x3c] sm:$0xf0] }
  0x27   :  { %792 = vmatpush.bf16.msrb.mxu3 %v1333_v48  ;;  %v1372_v41 = vld [vmem:[%s2116_s1 + $0xf4] sm:$0xf]  ;;  %v1285_v42 = vor.u32 %v1423_v34, %v1282_v35  ;;  %v1078_v43 = vld [vmem:[%s2116_s1 + $0xfc] sm:$0xf0]  ;;  %v985_v48 = vor.u32 %v1348_v39, %v982_v40  ;;  %v1345_v51 = vld [vmem:[%s2116_s1 + $0x1c] sm:$0xf] }
  0x28   :  { %751 = vmatpush.bf16.msrb.mxu0 %v1033_v55  ;;  %v1396_v44 = vld [vmem:[%s2116_s1 + $0x1b4] sm:$0xf]  ;;  %v1174_v45 = vld [vmem:[%s2116_s1 + $0x1bc] sm:$0xf0]  ;;  %v1081_v49 = vor.u32 %v1372_v41, %v1078_v43  ;;  %v970_v52 = vld [vmem:[%s2116_s1 + $0x24] sm:$0xf0] }
  0x29   :  { %765 = vmatpush.bf16.msrb.mxu1 %v1129_v60  ;;  %v1420_v46 = vld [vmem:[%s2116_s1 + $0x274] sm:$0xf]  ;;  %v1270_v47 = vld [vmem:[%s2116_s1 + $0x27c] sm:$0xf0]  ;;  %v1177_v50 = vor.u32 %v1396_v44, %v1174_v45  ;;  %v1369_v53 = vld [vmem:[%s2116_s1 + $0xdc] sm:$0xf] }
  0x2a   :  { %779 = vmatpush.bf16.msrb.mxu2 %v1225_v61  ;;  %v1273_v54 = vor.u32 %v1420_v46, %v1270_v47  ;;  %v1066_v55 = vld [vmem:[%s2116_s1 + $0xe4] sm:$0xf0]  ;;  %v1393_v56 = vld [vmem:[%s2116_s1 + $0x19c] sm:$0xf]  ;;  %v973_v61 = vor.u32 %v1345_v51, %v970_v52  ;;  %v1342_v62 = vld [vmem:[%s2116_s1 + $0x4] sm:$0xf] }
  0x2b   :  { %793 = vmatpush.bf16.msrb.mxu3 %v1321_v1  ;;  %v1162_v57 = vld [vmem:[%s2116_s1 + $0x1a4] sm:$0xf0]  ;;  %v1417_v58 = vld [vmem:[%s2116_s1 + $0x25c] sm:$0xf]  ;;  %v958_v63 = vld [vmem:[%s2116_s1 + $0xc] sm:$0xf0]  ;;  %v1069_v0 = vor.u32 %v1369_v53, %v1066_v55 }
  0x2c   :  { %752 = vmatpush.bf16.msrb.mxu0 %v1021_v9  ;;  %v1258_v60 = vld [vmem:[%s2116_s1 + $0x264] sm:$0xf0]  ;;  %v1165_v1 = vor.u32 %v1393_v56, %v1162_v57  ;;  %v1366_v2 = vld [vmem:[%s2116_s1 + $0xc4] sm:$0xf]  ;;  %v1054_v3 = vld [vmem:[%s2116_s1 + $0xcc] sm:$0xf0]  ;;  %v961_v14 = vor.u32 %v1342_v62, %v958_v63 }
  0x2d   :  { %766 = vmatpush.bf16.msrb.mxu1 %v1117_v12  ;;  %v1390_v4 = vld [vmem:[%s2116_s1 + $0x184] sm:$0xf]  ;;  %v1261_v6 = vor.u32 %v1417_v58, %v1258_v60  ;;  %v1150_v7 = vld [vmem:[%s2116_s1 + $0x18c] sm:$0xf0]  ;;  %v1365_v12 = vld [vmem:[%s2116_s1 + $0xb8] sm:$0xf0]  ;;  %v1057_v19 = vor.u32 %v1366_v2, %v1054_v3 }
  0x2e   :  { %780 = vmatpush.bf16.msrb.mxu2 %v1213_v13  ;;  %v1414_v8 = vld [vmem:[%s2116_s1 + $0x244] sm:$0xf]  ;;  %v1246_v9 = vld [vmem:[%s2116_s1 + $0x24c] sm:$0xf0]  ;;  %v1389_v15 = vld [vmem:[%s2116_s1 + $0x178] sm:$0xf0]  ;;  %v1153_v20 = vor.u32 %v1390_v4, %v1150_v7 }
  0x2f   :  { %794 = vmatpush.bf16.msrb.mxu3 %v1309_v18  ;;  %v1048_v11 = vld [vmem:[%s2116_s1 + $0xb0] sm:$0xf]  ;;  %v1413_v18 = vld [vmem:[%s2116_s1 + $0x238] sm:$0xf0]  ;;  %v1249_v23 = vor.u32 %v1414_v8, %v1246_v9  ;;  %v1036_v27 = vld [vmem:[%s2116_s1 + $0x98] sm:$0xf] }
  0x30   :  { %753 = vmatpush.bf16.msrb.mxu0 %v1009_v24  ;;  %v1144_v13 = vld [vmem:[%s2116_s1 + $0x170] sm:$0xf]  ;;  %v1437_v22 = vld [vmem:[%s2116_s1 + $0x2f8] sm:$0xf0]  ;;  %v1049_v24 = vor.u32 %v1365_v12, %v1048_v11  ;;  %v1362_v28 = vld [vmem:[%s2116_s1 + $0xa0] sm:$0xf0] }
  0x31   :  { %767 = vmatpush.bf16.msrb.mxu1 %v1105_v25  ;;  %v1240_v16 = vld [vmem:[%s2116_s1 + $0x230] sm:$0xf]  ;;  %v1145_v25 = vor.u32 %v1389_v15, %v1144_v13  ;;  %v1132_v29 = vld [vmem:[%s2116_s1 + $0x158] sm:$0xf]  ;;  %v1386_v31 = vld [vmem:[%s2116_s1 + $0x160] sm:$0xf0] }
  0x32   :  { %781 = vmatpush.bf16.msrb.mxu2 %v1201_v26  ;;  %v1336_v21 = vld [vmem:[%s2116_s1 + $0x2f0] sm:$0xf]  ;;  %v1241_v26 = vor.u32 %v1413_v18, %v1240_v16  ;;  %v1228_v32 = vld [vmem:[%s2116_s1 + $0x218] sm:$0xf]  ;;  %v1410_v33 = vld [vmem:[%s2116_s1 + $0x220] sm:$0xf0] }
  0x33   :  { %795 = vmatpush.bf16.msrb.mxu3 %v1297_v30  ;;  %v1337_v30 = vor.u32 %v1437_v22, %v1336_v21  ;;  %v1324_v34 = vld [vmem:[%s2116_s1 + $0x2d8] sm:$0xf]  ;;  %v1434_v35 = vld [vmem:[%s2116_s1 + $0x2e0] sm:$0xf0]  ;;  %v1024_v39 = vld [vmem:[%s2116_s1 + $0x80] sm:$0xf] }
  0x34   :  { %754 = vmatpush.bf16.msrb.mxu0 %v997_v36  ;;  %v1037_v36 = vor.u32 %v1362_v28, %v1036_v27  ;;  %v1359_v40 = vld [vmem:[%s2116_s1 + $0x88] sm:$0xf0]  ;;  %v1120_v41 = vld [vmem:[%s2116_s1 + $0x140] sm:$0xf]  ;;  %v1012_v51 = vld [vmem:[%s2116_s1 + $0x68] sm:$0xf] }
  0x35   :  { %768 = vmatpush.bf16.msrb.mxu1 %v1093_v37  ;;  %v1133_v37 = vor.u32 %v1386_v31, %v1132_v29  ;;  %v1383_v43 = vld [vmem:[%s2116_s1 + $0x148] sm:$0xf0]  ;;  %v1216_v44 = vld [vmem:[%s2116_s1 + $0x200] sm:$0xf]  ;;  %v1356_v52 = vld [vmem:[%s2116_s1 + $0x70] sm:$0xf0] }
  0x36   :  { %782 = vmatpush.bf16.msrb.mxu2 %v1189_v38  ;;  %v1229_v38 = vor.u32 %v1410_v33, %v1228_v32  ;;  %v1407_v45 = vld [vmem:[%s2116_s1 + $0x208] sm:$0xf0]  ;;  %v1312_v46 = vld [vmem:[%s2116_s1 + $0x2c0] sm:$0xf]  ;;  %v1108_v53 = vld [vmem:[%s2116_s1 + $0x128] sm:$0xf] }
  0x37   :  { %796 = vmatpush.bf16.msrb.mxu3 %v1285_v42  ;;  %v1325_v42 = vor.u32 %v1434_v35, %v1324_v34  ;;  %v1431_v47 = vld [vmem:[%s2116_s1 + $0x2c8] sm:$0xf0]  ;;  %v1380_v55 = vld [vmem:[%s2116_s1 + $0x130] sm:$0xf0]  ;;  %v1204_v56 = vld [vmem:[%s2116_s1 + $0x1e8] sm:$0xf] }
  0x38   :  { %755 = vmatpush.bf16.msrb.mxu0 %v985_v48  ;;  %v1025_v48 = vor.u32 %v1359_v40, %v1024_v39  ;;  %v1404_v57 = vld [vmem:[%s2116_s1 + $0x1f0] sm:$0xf0]  ;;  %v1300_v58 = vld [vmem:[%s2116_s1 + $0x2a8] sm:$0xf]  ;;  %v1109_v62 = vor.u32 %v1380_v55, %v1108_v53  ;;  %v1096_v2 = vld [vmem:[%s2116_s1 + $0x110] sm:$0xf] }
  0x39   :  { %769 = vmatpush.bf16.msrb.mxu1 %v1081_v49  ;;  %v1121_v49 = vor.u32 %v1383_v43, %v1120_v41  ;;  %v1428_v60 = vld [vmem:[%s2116_s1 + $0x2b0] sm:$0xf0]  ;;  %v1205_v63 = vor.u32 %v1404_v57, %v1204_v56  ;;  %v1377_v4 = vld [vmem:[%s2116_s1 + $0x118] sm:$0xf0]  ;;  %v1288_v8 = vld [vmem:[%s2116_s1 + $0x290] sm:$0xf] }
  0x3a   :  { %783 = vmatpush.bf16.msrb.mxu2 %v1177_v50  ;;  %v1217_v50 = vor.u32 %v1407_v45, %v1216_v44  ;;  %v1301_v3 = vor.u32 %v1428_v60, %v1300_v58  ;;  %v1401_v7 = vld [vmem:[%s2116_s1 + $0x1d8] sm:$0xf0]  ;;  %v1097_v12 = vor.u32 %v1377_v4, %v1096_v2  ;;  %v1350_v15 = vld [vmem:[%s2116_s1 + $0x40] sm:$0xf0]  ;;  %v1084_v16 = vld [vmem:[%s2116_s1 + $0xf8] sm:$0xf]  ;;  %v10_v2 = vstv %s2119_s4 }
  0x3b   :  { %797 = vmatpush.bf16.msrb.mxu3 %v1273_v54  ;;  %v1313_v54 = vor.u32 %v1431_v47, %v1312_v46  ;;  %v1425_v9 = vld [vmem:[%s2116_s1 + $0x298] sm:$0xf0]  ;;  %v1398_v21 = vld [vmem:[%s2116_s1 + $0x1c0] sm:$0xf0]  ;;  %v1276_v22 = vld [vmem:[%s2116_s1 + $0x278] sm:$0xf] }
  0x3c   :  { %756 = vmatpush.bf16.msrb.mxu0 %v973_v61  ;;  %v1013_v61 = vor.u32 %v1356_v52, %v1012_v51  ;;  %v1289_v18 = vor.u32 %v1425_v9, %v1288_v8  ;;  %v976_v27 = vld [vmem:[%s2116_s1 + $0x20] sm:$0xf]  ;;  %v1347_v28 = vld [vmem:[%s2116_s1 + $0x28] sm:$0xf0]  ;;  %v964_v39 = vld [vmem:[%s2116_s1 + $0x8] sm:$0xf] }
  0x3d   :  { %770 = vmatpush.bf16.msrb.mxu1 %v1069_v0  ;;  %v1000_v0 = vld [vmem:[%s2116_s1 + $0x50] sm:$0xf]  ;;  %v1072_v29 = vld [vmem:[%s2116_s1 + $0xe0] sm:$0xf]  ;;  %v1371_v31 = vld [vmem:[%s2116_s1 + $0xe8] sm:$0xf0] }
  0x3e   :  { %784 = vmatpush.bf16.msrb.mxu2 %v1165_v1  ;;  %v1353_v1 = vld [vmem:[%s2116_s1 + $0x58] sm:$0xf0]  ;;  %v1168_v32 = vld [vmem:[%s2116_s1 + $0x1a0] sm:$0xf]  ;;  %v1395_v33 = vld [vmem:[%s2116_s1 + $0x1a8] sm:$0xf0] }
  0x3f   :  { %798 = vmatpush.bf16.msrb.mxu3 %v1261_v6  ;;  %v1192_v6 = vld [vmem:[%s2116_s1 + $0x1d0] sm:$0xf]  ;;  %v1001_v11 = vor.u32 %v1353_v1, %v1000_v0  ;;  %v1264_v34 = vld [vmem:[%s2116_s1 + $0x260] sm:$0xf]  ;;  %v1419_v35 = vld [vmem:[%s2116_s1 + $0x268] sm:$0xf0] }
  0x40   :  { %757 = vmatpush.bf16.msrb.mxu0 %v961_v14  ;;  %v1193_v13 = vor.u32 %v1401_v7, %v1192_v6  ;;  %v988_v14 = vld [vmem:[%s2116_s1 + $0x38] sm:$0xf]  ;;  %v1344_v40 = vld [vmem:[%s2116_s1 + $0x10] sm:$0xf0]  ;;  %v1060_v41 = vld [vmem:[%s2116_s1 + $0xc8] sm:$0xf] }
  0x41   :  { %771 = vmatpush.bf16.msrb.mxu1 %v1057_v19  ;;  %v1374_v19 = vld [vmem:[%s2116_s1 + $0x100] sm:$0xf0]  ;;  %v1368_v43 = vld [vmem:[%s2116_s1 + $0xd0] sm:$0xf0]  ;;  %v1156_v44 = vld [vmem:[%s2116_s1 + $0x188] sm:$0xf] }
  0x42   :  { %785 = vmatpush.bf16.msrb.mxu2 %v1153_v20  ;;  %v1180_v20 = vld [vmem:[%s2116_s1 + $0x1b8] sm:$0xf]  ;;  %v1392_v45 = vld [vmem:[%s2116_s1 + $0x190] sm:$0xf0]  ;;  %v1252_v46 = vld [vmem:[%s2116_s1 + $0x248] sm:$0xf] }
  0x43   :  { %799 = vmatpush.bf16.msrb.mxu3 %v1249_v23  ;;  %758 = vmatmul.bf16.vlgmr.msrb.gmra.mxu0 %v1756_v5  ;;  %v1422_v23 = vld [vmem:[%s2116_s1 + $0x280] sm:$0xf0]  ;;  %v1416_v47 = vld [vmem:[%s2116_s1 + $0x250] sm:$0xf0]  ;;  %11 = vst [vmem:[#allocation2] sm:$0x1] %v10_v2 }
  0x44   :  { %806 = vmatpush.bf16.msra.mxu0 %v1049_v24  ;;  %772 = vmatmul.bf16.vlgmr.msrb.gmra.mxu1 %v1781_v17  ;;  %v989_v24 = vor.u32 %v1350_v15, %v988_v14  ;;  %v1253_v51 = vor.u32 %v1416_v47, %v1252_v46 }
  0x45   :  { %820 = vmatpush.bf16.msra.mxu1 %v1145_v25  ;;  %786 = vmatmul.bf16.vlgmr.msrb.gmra.mxu2 %v1735_v59  ;;  %v1085_v25 = vor.u32 %v1374_v19, %v1084_v16 }
  0x46   :  { %834 = vmatpush.bf16.msra.mxu2 %v1241_v26  ;;  %800 = vmatmul.bf16.vlgmr.msrb.gmra.mxu3 %v1767_v10  ;;  %v1181_v26 = vor.u32 %v1398_v21, %v1180_v20  ;;  %v862_v20 = vld [vmem:[%s2120_s3] sm:$0x7] }
  0x47   :  { %848 = vmatpush.bf16.msra.mxu3 %v1337_v30  ;;  %v1277_v30 = vor.u32 %v1422_v23, %v1276_v22  ;;  %v865_v23 = vperm.slane %v862_v20, 1 }
  0x48   :  { %807 = vmatpush.bf16.msra.mxu0 %v1037_v36  ;;  %v977_v36 = vor.u32 %v1347_v28, %v976_v27 }
  0x49   :  { %821 = vmatpush.bf16.msra.mxu1 %v1133_v37  ;;  %v1073_v37 = vor.u32 %v1371_v31, %v1072_v29  ;;  %v866_v31 = vperm.slane %v862_v20, 2 }
  0x4a   :  { %835 = vmatpush.bf16.msra.mxu2 %v1229_v38  ;;  %v1169_v38 = vor.u32 %v1395_v33, %v1168_v32 }
  0x4b   :  { %849 = vmatpush.bf16.msra.mxu3 %v1325_v42  ;;  %v1265_v42 = vor.u32 %v1419_v35, %v1264_v34 }
  0x4c   :  { %808 = vmatpush.bf16.msra.mxu0 %v1025_v48  ;;  %v965_v48 = vor.u32 %v1344_v40, %v964_v39 }
  0x4d   :  { %822 = vmatpush.bf16.msra.mxu1 %v1121_v49  ;;  %v1061_v49 = vor.u32 %v1368_v43, %v1060_v41 }
  0x4e   :  { %836 = vmatpush.bf16.msra.mxu2 %v1217_v50  ;;  %v1157_v50 = vor.u32 %v1392_v45, %v1156_v44 }
  0x4f   :  { %850 = vmatpush.bf16.msra.mxu3 %v1313_v54 }
  0x50   :  { %809 = vmatpush.bf16.msra.mxu0 %v1013_v61 }
  0x51   :  { %823 = vmatpush.bf16.msra.mxu1 %v1109_v62 }
  0x52   :  { %837 = vmatpush.bf16.msra.mxu2 %v1205_v63 }
  0x53   :  { %851 = vmatpush.bf16.msra.mxu3 %v1301_v3 }
  0x54   :  { %810 = vmatpush.bf16.msra.mxu0 %v1001_v11 }
  0x55   :  { %824 = vmatpush.bf16.msra.mxu1 %v1097_v12 }
  0x56   :  { %838 = vmatpush.bf16.msra.mxu2 %v1193_v13 }
  0x57   :  { %852 = vmatpush.bf16.msra.mxu3 %v1289_v18 }
  0x58   :  { %811 = vmatpush.bf16.msra.mxu0 %v989_v24 }
  0x59   :  { %825 = vmatpush.bf16.msra.mxu1 %v1085_v25 }
  0x5a   :  { %839 = vmatpush.bf16.msra.mxu2 %v1181_v26  ;;  %v864_v26 = vperm.slane %v862_v20, 0 }
  0x5b   :  { %853 = vmatpush.bf16.msra.mxu3 %v1277_v30 }
  0x5c   :  { %812 = vmatpush.bf16.msra.mxu0 %v977_v36 }
  0x5d   :  { %826 = vmatpush.bf16.msra.mxu1 %v1073_v37 }
  0x5e   :  { %840 = vmatpush.bf16.msra.mxu2 %v1169_v38 }
  0x5f   :  { %854 = vmatpush.bf16.msra.mxu3 %v1265_v42 }
  0x60   :  { %813 = vmatpush.bf16.msra.mxu0 %v965_v48 }
  0x61   :  { %827 = vmatpush.bf16.msra.mxu1 %v1061_v49 }
  0x62   :  { %841 = vmatpush.bf16.msra.mxu2 %v1157_v50 }
  0x63   :  { %855 = vmatpush.bf16.msra.mxu3 %v1253_v51  ;;  %814 = vmatmul.bf16.vlgmr.msra.gmra.mxu0 %v1756_v5  ;;  %v154_v5 = vld [vmem:[%s2118_s2] sm:$0x7] }
  0x64   :  { %828 = vmatmul.bf16.vlgmr.msra.gmra.mxu1 %v1781_v17  ;;  %v157_v63 = vperm.slane %v154_v5, 1  ;;  %v158_v7 = vperm.slane %v154_v5, 2 }
  0x65   :  { %842 = vmatmul.bf16.vlgmr.msra.gmra.mxu2 %v1735_v59  ;;  %v156_v59 = vperm.slane %v154_v5, 0 }
  0x66   :  { %856 = vmatmul.bf16.vlgmr.msra.gmra.mxu3 %v1767_v10 }
  0xa0   :  { %v703_v52 = vpop.f32.mrf.mxu0 }
  0xa1   :  { %v717_v53 = vpop.f32.mrf.mxu1  ;;  %v704_v3 = vadd.f32 %v703_v52, %v156_v59 }
  0xa3   :  { %v718_v8 = vadd.f32 %v717_v53, %v704_v3 }
  0xa8   :  { %v731_v54 = vpop.f32.mrf.mxu2  ;;  %v705_v56 = vpop.f32.mrf.mxu0 }
  0xa9   :  { %v745_v55 = vpop.f32.mrf.mxu3  ;;  %v719_v57 = vpop.f32.mrf.mxu1  ;;  %v732_v16 = vadd.f32 %v731_v54, %v718_v8  ;;  %v706_v18 = vadd.f32 %v705_v56, %v156_v59 }
  0xab   :  { %v746_v25 = vadd.f32 %v745_v55, %v732_v16  ;;  %v720_v27 = vadd.f32 %v719_v57, %v706_v18  ;;  %v1438_v57 = vld [vmem:[#allocation2] ss:$0 sm:$0xff] }
  0xad   :  { %v870_v37 = vmul.f32 %v864_v26, %v746_v25 }
  0xb0   :  { %v733_v58 = vpop.f32.mrf.mxu2 }
  0xb1   :  { %v747_v60 = vpop.f32.mrf.mxu3  ;;  %v734_v38 = vadd.f32 %v733_v58, %v720_v27 }
  0xb3   :  { %v748_v45 = vadd.f32 %v747_v60, %v734_v38 }
  0xb5   :  { %v873_v52 = vmul.f32 %v864_v26, %v748_v45 }
  0xc0   :  { %v759_v61 = vpop.f32.mrf.mxu0 }
  0xc1   :  { %v773_v62 = vpop.f32.mrf.mxu1  ;;  %v760_v10 = vadd.f32 %v759_v61, %v157_v63 }
  0xc3   :  { %v774_v6 = vadd.f32 %v773_v62, %v760_v10 }
  0xc8   :  { %v787_v17 = vpop.f32.mrf.mxu2  ;;  %v761_v1 = vpop.f32.mrf.mxu0 }
  0xc9   :  { %v801_v0 = vpop.f32.mrf.mxu3  ;;  %v775_v4 = vpop.f32.mrf.mxu1  ;;  %v788_v13 = vadd.f32 %v787_v17, %v774_v6  ;;  %v762_v14 = vadd.f32 %v761_v1, %v157_v63 }
  0xcb   :  { %v802_v22 = vadd.f32 %v801_v0, %v788_v13  ;;  %v776_v24 = vadd.f32 %v775_v4, %v762_v14 }
  0xcd   :  { %v871_v33 = vmul.f32 %v865_v23, %v802_v22 }
  0xcf   :  { %v876_v42 = vadd.f32 %v871_v33, %v870_v37 }
  0xd0   :  { %v789_v9 = vpop.f32.mrf.mxu2 }
  0xd1   :  { %v803_v11 = vpop.f32.mrf.mxu3  ;;  %v790_v34 = vadd.f32 %v789_v9, %v776_v24 }
  0xd3   :  { %v804_v40 = vadd.f32 %v803_v11, %v790_v34 }
  0xd5   :  { %v874_v49 = vmul.f32 %v865_v23, %v804_v40 }
  0xd7   :  { %v882_v54 = vadd.f32 %v874_v49, %v873_v52 }
  0xe0   :  { %v815_v12 = vpop.f32.mrf.mxu0 }
  0xe1   :  { %v816_v15 = vadd.f32 %v815_v12, %v158_v7  ;;  %v829_v19 = vpop.f32.mrf.mxu1 }
  0xe3   :  { %v830_v21 = vadd.f32 %v829_v19, %v816_v15 }
  0xe8   :  { %v843_v28 = vpop.f32.mrf.mxu2  ;;  %v817_v32 = vpop.f32.mrf.mxu0 }
  0xe9   :  { %v844_v29 = vadd.f32 %v843_v28, %v830_v21  ;;  %v857_v30 = vpop.f32.mrf.mxu3  ;;  %v818_v36 = vadd.f32 %v817_v32, %v158_v7  ;;  %v831_v41 = vpop.f32.mrf.mxu1 }
  0xeb   :  { %v858_v35 = vadd.f32 %v857_v30, %v844_v29  ;;  %v832_v43 = vadd.f32 %v831_v41, %v818_v36 }
  0xed   :  { %v872_v39 = vmul.f32 %v866_v31, %v858_v35 }
  0xef   :  { %v878_v44 = vsel %vm877_vm0, %v872_v39, 0.0 }
  0xf0   :  { %v845_v46 = vpop.f32.mrf.mxu2  ;;  %v879_v47 = vadd.f32 %v878_v44, %v876_v42 }
  0xf1   :  { %v846_v48 = vadd.f32 %v845_v46, %v832_v43  ;;  %v859_v50 = vpop.f32.mrf.mxu3 }
  0xf2   :  { %880 = vadd.xlane.f32.xlu0 %v879_v47 }
  0xf3   :  { %v860_v51 = vadd.f32 %v859_v50, %v846_v48 }
  0xf5   :  { %v875_v53 = vmul.f32 %v866_v31, %v860_v51 }
  0xf7   :  { %v883_v55 = vsel %vm877_vm0, %v875_v53, 0.0 }
  0xf8   :  { %v884_v56 = vadd.f32 %v883_v55, %v882_v54 }
  0xfa   :  { %885 = vadd.xlane.f32.xlu0 %v884_v56 }
 0x165   :  { %v881_v58 = vpop.xlane.xlu0 %880 }
 0x166   :  { %v891_v61 = vadd.f32 %v1438_v57, %v881_v58 }
 0x168   :  { %v893_v62 = vsub.f32 0.0, %v891_v61 }
 0x16a   :  { %v895_v5 = vmul.f32 1.442695, %v893_v62 }
 0x16c   :  { %1439 = vpow2.f32 %v895_v5 }
 0x16d   :  { %v886_v60 = vpop.xlane.xlu0 %885 }
 0x16e   :  { %v892_v63 = vadd.f32 %v1438_v57, %v886_v60 }
 0x170   :  { %v894_v17 = vsub.f32 0.0, %v892_v63 }
 0x172   :  { %v1440_v0 = vpop.eup %1439  ;;  %v897_v59 = vmul.f32 1.442695, %v894_v17 }
 0x173   :  { %v899_v1 = vadd.f32 1.0, %v1440_v0 }
 0x174   :  { %1441 = vpow2.f32 %v897_v59 }
 0x175   :  { %1443 = vrcp.f32 %v899_v1  ;;  %v912_v7 = vand.u32 2147483648, %v899_v1  ;;  %v910_v9 = vand.u32 2147483647, %v899_v1  ;;  %vm906_vm2 = vweird.f32 %v899_v1 }
 0x177   :  { %v913_v13 = vor.u32 1.1754944e-38, %v912_v7  ;;  %vm911_vm4 = vcmp.eq.f32.partialorder %v910_v9, 8.507059e+37 }
 0x17a   :  { %v1442_v10 = vpop.eup %1441 }
 0x17b   :  { %v1444_v2 = vpop.eup %1443  ;;  %v900_v3 = vadd.f32 1.0, %v1442_v10 }
 0x17c   :  { %v902_v4 = vmul.f32 %v1444_v2, %v899_v1  ;;  %vm907_vm1 = vweird.f32 %v1444_v2 }
 0x17d   :  { %1445 = vrcp.f32 %v900_v3  ;;  %vm908_vm3 = vmor %vm906_vm2, %vm907_vm1  ;;  %v927_v20 = vand.u32 2147483648, %v900_v3  ;;  %v925_v22 = vand.u32 2147483647, %v900_v3  ;;  %vm921_vm7 = vweird.f32 %v900_v3 }
 0x17e   :  { %v903_v6 = vsub.f32 1.0, %v902_v4 }
 0x17f   :  { %v928_v24 = vor.u32 1.1754944e-38, %v927_v20  ;;  %vm926_vm9 = vcmp.eq.f32.partialorder %v925_v22, 8.507059e+37 }
 0x180   :  { %v904_v8 = vmul.f32 %v1444_v2, %v903_v6 }
 0x182   :  { %v905_v11 = vadd.f32 %v1444_v2, %v904_v8 }
 0x183   :  { %v1446_v12 = vpop.eup %1445 }
 0x184   :  { %v909_v14 = vsel %vm908_vm3, %v1444_v2, %v905_v11  ;;  %v917_v15 = vmul.f32 %v1446_v12, %v900_v3  ;;  %vm922_vm6 = vweird.f32 %v1446_v12 }
 0x185   :  { %v914_v16 = vsel %vm911_vm4, %v913_v13, %v909_v14  ;;  %vm923_vm8 = vmor %vm921_vm7, %vm922_vm6 }
 0x186   :  { %v915_v18 = vmul.f32 360.0, %v914_v16  ;;  %v918_v19 = vsub.f32 1.0, %v917_v15 }
 0x188   :  { %932 = vst.msk [vmem:[%s2121_s5] sm:$0xff] %vm931_vm5, %v915_v18  ;;  %v919_v21 = vmul.f32 %v1446_v12, %v918_v19 }
 0x18a   :  { %v920_v23 = vadd.f32 %v1446_v12, %v919_v21 }
 0x18c   :  { %v924_v25 = vsel %vm923_vm8, %v1446_v12, %v920_v23 }
 0x18d   :  { %v929_v26 = vsel %vm926_vm9, %v928_v24, %v924_v25 }
 0x18e   :  { %v930_v27 = vmul.f32 360.0, %v929_v26 }
 0x190   :  { %933 = vst.msk [vmem:[%s2121_s5 + $0x8] sm:$0xff] %vm931_vm5, %v930_v27 }

// kernel: encoder_maxpool_forward.12
= control target key start
LH: loop header
LB: loop body
LE: loop exit
PB: predicated region body
PF: predicated region fallthrough
CT: control target
= control target key end

     0   :  { %s11464_s1 = inlined_call_operand.vmem [shape: bf16[2304,512], index: 1, kind: input, shape index: {}]   ;;  %s11465_s0 = inlined_call_operand.vmem [shape: bf16[16,2304], index: 0, kind: input, shape index: {}]   ;;  %s11466_s2 = inlined_call_operand.vmem [shape: f32[1,512], index: 2, kind: input, shape index: {}]   ;;  %s11467_s3 = inlined_call_operand.vmem [shape: bf16[16,512], index: 3, kind: output, shape index: {}]  }
   0x1   :  { %v4794_v0 = vld [vmem:[%s11464_s1 + $0xe0] sm:$0xf]  ;;  %v7032_v1 = vld [vmem:[%s11464_s1 + $0xec] sm:$0xf0] }
   0x2   :  { %v4922_v2 = vld [vmem:[%s11464_s1 + $0x1e0] sm:$0xf]  ;;  %v4795_v3 = vor.u32 %v7032_v1, %v4794_v0  ;;  %v7064_v4 = vld [vmem:[%s11464_s1 + $0x1ec] sm:$0xf0] }
   0x3   :  { %v5050_v5 = vld [vmem:[%s11464_s1 + $0x2e0] sm:$0xf]  ;;  %v7096_v6 = vld [vmem:[%s11464_s1 + $0x2ec] sm:$0xf0]  ;;  %v4923_v7 = vor.u32 %v7064_v4, %v4922_v2 }
   0x4   :  { %v5051_v8 = vor.u32 %v7096_v6, %v5050_v5  ;;  %v5178_v9 = vld [vmem:[%s11464_s1 + $0x3e0] sm:$0xf]  ;;  %v7128_v10 = vld [vmem:[%s11464_s1 + $0x3ec] sm:$0xf0]  ;;  %3588 = vmatpush.bf16.msra.mxu0 %v4795_v3 }
   0x5   :  { %v4778_v11 = vld [vmem:[%s11464_s1 + $0xc0] sm:$0xf]  ;;  %v5179_v12 = vor.u32 %v7128_v10, %v5178_v9  ;;  %v7028_v13 = vld [vmem:[%s11464_s1 + $0xcc] sm:$0xf0]  ;;  %3602 = vmatpush.bf16.msra.mxu1 %v4923_v7 }
   0x6   :  { %v4906_v14 = vld [vmem:[%s11464_s1 + $0x1c0] sm:$0xf]  ;;  %v7060_v15 = vld [vmem:[%s11464_s1 + $0x1cc] sm:$0xf0]  ;;  %3616 = vmatpush.bf16.msra.mxu2 %v5051_v8  ;;  %v4779_v16 = vor.u32 %v7028_v13, %v4778_v11 }
   0x7   :  { %v4907_v17 = vor.u32 %v7060_v15, %v4906_v14  ;;  %v5034_v18 = vld [vmem:[%s11464_s1 + $0x2c0] sm:$0xf]  ;;  %v7092_v19 = vld [vmem:[%s11464_s1 + $0x2cc] sm:$0xf0]  ;;  %3630 = vmatpush.bf16.msra.mxu3 %v5179_v12 }
   0x8   :  { %v5162_v20 = vld [vmem:[%s11464_s1 + $0x3c0] sm:$0xf]  ;;  %v5035_v21 = vor.u32 %v7092_v19, %v5034_v18  ;;  %v7124_v22 = vld [vmem:[%s11464_s1 + $0x3cc] sm:$0xf0]  ;;  %3589 = vmatpush.bf16.msra.mxu0 %v4779_v16 }
   0x9   :  { %v4762_v23 = vld [vmem:[%s11464_s1 + $0xa0] sm:$0xf]  ;;  %v7024_v24 = vld [vmem:[%s11464_s1 + $0xac] sm:$0xf0]  ;;  %v5163_v25 = vor.u32 %v7124_v22, %v5162_v20  ;;  %3603 = vmatpush.bf16.msra.mxu1 %v4907_v17 }
   0xa   :  { %v4890_v26 = vld [vmem:[%s11464_s1 + $0x1a0] sm:$0xf]  ;;  %v7056_v27 = vld [vmem:[%s11464_s1 + $0x1ac] sm:$0xf0]  ;;  %v4763_v29 = vor.u32 %v7024_v24, %v4762_v23  ;;  %3617 = vmatpush.bf16.msra.mxu2 %v5035_v21 }
   0xb   :  { %v5018_v28 = vld [vmem:[%s11464_s1 + $0x2a0] sm:$0xf]  ;;  %v7088_v30 = vld [vmem:[%s11464_s1 + $0x2ac] sm:$0xf0]  ;;  %v4891_v33 = vor.u32 %v7056_v27, %v4890_v26  ;;  %3631 = vmatpush.bf16.msra.mxu3 %v5163_v25 }
   0xc   :  { %v5146_v31 = vld [vmem:[%s11464_s1 + $0x3a0] sm:$0xf]  ;;  %v7120_v32 = vld [vmem:[%s11464_s1 + $0x3ac] sm:$0xf0]  ;;  %v5019_v34 = vor.u32 %v7088_v30, %v5018_v28  ;;  %3590 = vmatpush.bf16.msra.mxu0 %v4763_v29 }
   0xd   :  { %v4746_v35 = vld [vmem:[%s11464_s1 + $0x80] sm:$0xf]  ;;  %v7020_v36 = vld [vmem:[%s11464_s1 + $0x8c] sm:$0xf0]  ;;  %v5147_v38 = vor.u32 %v7120_v32, %v5146_v31  ;;  %3604 = vmatpush.bf16.msra.mxu1 %v4891_v33 }
   0xe   :  { %v4874_v37 = vld [vmem:[%s11464_s1 + $0x180] sm:$0xf]  ;;  %v7052_v39 = vld [vmem:[%s11464_s1 + $0x18c] sm:$0xf0]  ;;  %v4747_v44 = vor.u32 %v7020_v36, %v4746_v35  ;;  %3618 = vmatpush.bf16.msra.mxu2 %v5019_v34 }
   0xf   :  { %v5002_v40 = vld [vmem:[%s11464_s1 + $0x280] sm:$0xf]  ;;  %v7084_v41 = vld [vmem:[%s11464_s1 + $0x28c] sm:$0xf0]  ;;  %v4875_v45 = vor.u32 %v7052_v39, %v4874_v37  ;;  %3632 = vmatpush.bf16.msra.mxu3 %v5147_v38 }
  0x10   :  { %v5130_v42 = vld [vmem:[%s11464_s1 + $0x380] sm:$0xf]  ;;  %v7116_v43 = vld [vmem:[%s11464_s1 + $0x38c] sm:$0xf0]  ;;  %v5003_v46 = vor.u32 %v7084_v41, %v5002_v40  ;;  %3591 = vmatpush.bf16.msra.mxu0 %v4747_v44 }
  0x11   :  { %v4730_v47 = vld [vmem:[%s11464_s1 + $0x60] sm:$0xf]  ;;  %v7016_v48 = vld [vmem:[%s11464_s1 + $0x6c] sm:$0xf0]  ;;  %v5131_v50 = vor.u32 %v7116_v43, %v5130_v42  ;;  %3605 = vmatpush.bf16.msra.mxu1 %v4875_v45 }
  0x12   :  { %v4858_v49 = vld [vmem:[%s11464_s1 + $0x160] sm:$0xf]  ;;  %v7048_v51 = vld [vmem:[%s11464_s1 + $0x16c] sm:$0xf0]  ;;  %v4731_v56 = vor.u32 %v7016_v48, %v4730_v47  ;;  %3619 = vmatpush.bf16.msra.mxu2 %v5003_v46 }
  0x13   :  { %v4986_v52 = vld [vmem:[%s11464_s1 + $0x260] sm:$0xf]  ;;  %v7080_v53 = vld [vmem:[%s11464_s1 + $0x26c] sm:$0xf0]  ;;  %v4859_v57 = vor.u32 %v7048_v51, %v4858_v49  ;;  %3633 = vmatpush.bf16.msra.mxu3 %v5131_v50 }
  0x14   :  { %v5114_v54 = vld [vmem:[%s11464_s1 + $0x360] sm:$0xf]  ;;  %v7112_v55 = vld [vmem:[%s11464_s1 + $0x36c] sm:$0xf0]  ;;  %v4987_v58 = vor.u32 %v7080_v53, %v4986_v52  ;;  %3592 = vmatpush.bf16.msra.mxu0 %v4731_v56  ;;  %v6993_v53 = vld [vmem:[%s11465_s0 + $0x44] sm:$0xf0] }
  0x15   :  { %v4714_v59 = vld [vmem:[%s11464_s1 + $0x40] sm:$0xf]  ;;  %v7012_v60 = vld [vmem:[%s11464_s1 + $0x4c] sm:$0xf0]  ;;  %v5115_v62 = vor.u32 %v7112_v55, %v5114_v54  ;;  %3606 = vmatpush.bf16.msra.mxu1 %v4859_v57  ;;  %v4618_v54 = vld [vmem:[%s11465_s0 + $0x8] sm:$0xf] }
  0x16   :  { %v4842_v61 = vld [vmem:[%s11464_s1 + $0x140] sm:$0xf]  ;;  %v7044_v63 = vld [vmem:[%s11464_s1 + $0x14c] sm:$0xf0]  ;;  %v4715_v4 = vor.u32 %v7012_v60, %v4714_v59  ;;  %3620 = vmatpush.bf16.msra.mxu2 %v4987_v58 }
  0x17   :  { %v4970_v0 = vld [vmem:[%s11464_s1 + $0x240] sm:$0xf]  ;;  %v7076_v1 = vld [vmem:[%s11464_s1 + $0x24c] sm:$0xf0]  ;;  %v4843_v5 = vor.u32 %v7044_v63, %v4842_v61  ;;  %3634 = vmatpush.bf16.msra.mxu3 %v5115_v62 }
  0x18   :  { %v5098_v2 = vld [vmem:[%s11464_s1 + $0x340] sm:$0xf]  ;;  %v7108_v3 = vld [vmem:[%s11464_s1 + $0x34c] sm:$0xf0]  ;;  %v4971_v6 = vor.u32 %v7076_v1, %v4970_v0  ;;  %3593 = vmatpush.bf16.msra.mxu0 %v4715_v4 }
  0x19   :  { %v4698_v7 = vld [vmem:[%s11464_s1 + $0x20] sm:$0xf]  ;;  %v7008_v8 = vld [vmem:[%s11464_s1 + $0x2c] sm:$0xf0]  ;;  %v5099_v10 = vor.u32 %v7108_v3, %v5098_v2  ;;  %3607 = vmatpush.bf16.msra.mxu1 %v4843_v5 }
  0x1a   :  { %v4826_v9 = vld [vmem:[%s11464_s1 + $0x120] sm:$0xf]  ;;  %v7040_v11 = vld [vmem:[%s11464_s1 + $0x12c] sm:$0xf0]  ;;  %v4699_v16 = vor.u32 %v7008_v8, %v4698_v7  ;;  %3621 = vmatpush.bf16.msra.mxu2 %v4971_v6  ;;  %v6984_v6 = vld [vmem:[%s11465_s0 + $0x4] sm:$0xf] }
  0x1b   :  { %v4954_v12 = vld [vmem:[%s11464_s1 + $0x220] sm:$0xf]  ;;  %v7072_v13 = vld [vmem:[%s11464_s1 + $0x22c] sm:$0xf0]  ;;  %v4827_v19 = vor.u32 %v7040_v11, %v4826_v9  ;;  %3635 = vmatpush.bf16.msra.mxu3 %v5099_v10  ;;  %v4612_v7 = vld [vmem:[%s11465_s0 + $0x48] sm:$0xf0] }
  0x1c   :  { %v5082_v14 = vld [vmem:[%s11464_s1 + $0x320] sm:$0xf]  ;;  %v7104_v15 = vld [vmem:[%s11464_s1 + $0x32c] sm:$0xf0]  ;;  %v4955_v20 = vor.u32 %v7072_v13, %v4954_v12  ;;  %3594 = vmatpush.bf16.msra.mxu0 %v4699_v16  ;;  %v6985_v8 = vld [vmem:[%s11465_s0 + $0xc] sm:$0xf]  ;;  %v7891_v10 = vor.u32 %v6984_v6, %v4612_v7 }
  0x1d   :  { %v4682_v17 = vld [vmem:[%s11464_s1] sm:$0xf]  ;;  %v7004_v18 = vld [vmem:[%s11464_s1 + $0xc] sm:$0xf0]  ;;  %v5083_v24 = vor.u32 %v7104_v15, %v5082_v14  ;;  %3608 = vmatpush.bf16.msra.mxu1 %v4827_v19  ;;  %v4620_v11 = vld [vmem:[%s11465_s0 + $0x50] sm:$0xf0] }
  0x1e   :  { %v4810_v21 = vld [vmem:[%s11464_s1 + $0x100] sm:$0xf]  ;;  %v7036_v22 = vld [vmem:[%s11464_s1 + $0x10c] sm:$0xf0]  ;;  %v4683_v31 = vor.u32 %v7004_v18, %v4682_v17  ;;  %3622 = vmatpush.bf16.msra.mxu2 %v4955_v20  ;;  %11483 = vst [vmem:[#allocation4_spill] sm:$0xff] %v7891_v10  ;;  %v7905_v17 = vor.u32 %v6985_v8, %v4620_v11 }
  0x1f   :  { %v4938_v23 = vld [vmem:[%s11464_s1 + $0x200] sm:$0xf]  ;;  %v7068_v25 = vld [vmem:[%s11464_s1 + $0x20c] sm:$0xf0]  ;;  %v4811_v35 = vor.u32 %v7036_v22, %v4810_v21  ;;  %3636 = vmatpush.bf16.msra.mxu3 %v5083_v24 }
  0x20   :  { %v5066_v26 = vld [vmem:[%s11464_s1 + $0x300] sm:$0xf]  ;;  %v7100_v27 = vld [vmem:[%s11464_s1 + $0x30c] sm:$0xf0]  ;;  %v4939_v36 = vor.u32 %v7068_v25, %v4938_v23  ;;  %3595 = vmatpush.bf16.msra.mxu0 %v4683_v31  ;;  %11484 = vst [vmem:[#allocation5_spill] sm:$0xff] %v7905_v17 }
  0x21   :  { %v5306_v28 = vld [vmem:[%s11464_s1 + $0x4e0] sm:$0xf]  ;;  %v7160_v29 = vld [vmem:[%s11464_s1 + $0x4ec] sm:$0xf0]  ;;  %v5067_v39 = vor.u32 %v7100_v27, %v5066_v26  ;;  %3609 = vmatpush.bf16.msra.mxu1 %v4811_v35 }
  0x22   :  { %v5434_v30 = vld [vmem:[%s11464_s1 + $0x5e0] sm:$0xf]  ;;  %v7192_v32 = vld [vmem:[%s11464_s1 + $0x5ec] sm:$0xf0]  ;;  %v5307_v40 = vor.u32 %v7160_v29, %v5306_v28  ;;  %3623 = vmatpush.bf16.msra.mxu2 %v4939_v36 }
  0x23   :  { %v5562_v33 = vld [vmem:[%s11464_s1 + $0x6e0] sm:$0xf]  ;;  %v7224_v34 = vld [vmem:[%s11464_s1 + $0x6ec] sm:$0xf0]  ;;  %v5435_v43 = vor.u32 %v7192_v32, %v5434_v30  ;;  %3637 = vmatpush.bf16.msra.mxu3 %v5067_v39 }
  0x24   :  { %v5690_v37 = vld [vmem:[%s11464_s1 + $0x7e0] sm:$0xf]  ;;  %v7256_v38 = vld [vmem:[%s11464_s1 + $0x7ec] sm:$0xf0]  ;;  %v5563_v44 = vor.u32 %v7224_v34, %v5562_v33  ;;  %3644 = vmatpush.bf16.msrb.mxu0 %v5307_v40  ;;  %3610 = vmatmul.bf16.vlgmr.msra.gmra.mxu1 %v7891_v10 }
  0x25   :  { %v5290_v41 = vld [vmem:[%s11464_s1 + $0x4c0] sm:$0xf]  ;;  %v7156_v42 = vld [vmem:[%s11464_s1 + $0x4cc] sm:$0xf0]  ;;  %v5691_v48 = vor.u32 %v7256_v38, %v5690_v37  ;;  %3658 = vmatpush.bf16.msrb.mxu1 %v5435_v43 }
  0x26   :  { %v5418_v45 = vld [vmem:[%s11464_s1 + $0x5c0] sm:$0xf]  ;;  %v7188_v46 = vld [vmem:[%s11464_s1 + $0x5cc] sm:$0xf0]  ;;  %v5291_v55 = vor.u32 %v7156_v42, %v5290_v41  ;;  %3672 = vmatpush.bf16.msrb.mxu2 %v5563_v44  ;;  %3638 = vmatmul.bf16.vlgmr.msra.gmra.mxu3 %v7905_v17 }
  0x27   :  { %v5546_v47 = vld [vmem:[%s11464_s1 + $0x6c0] sm:$0xf]  ;;  %v7220_v49 = vld [vmem:[%s11464_s1 + $0x6cc] sm:$0xf0]  ;;  %v5419_v60 = vor.u32 %v7188_v46, %v5418_v45  ;;  %3686 = vmatpush.bf16.msrb.mxu3 %v5691_v48 }
  0x28   :  { %v5674_v50 = vld [vmem:[%s11464_s1 + $0x7c0] sm:$0xf]  ;;  %v7252_v51 = vld [vmem:[%s11464_s1 + $0x7cc] sm:$0xf0]  ;;  %v5547_v61 = vor.u32 %v7220_v49, %v5546_v47  ;;  %3645 = vmatpush.bf16.msrb.mxu0 %v5291_v55 }
  0x29   :  { %v4610_v52 = vld [vmem:[%s11465_s0] sm:$0xf]  ;;  %v7152_v57 = vld [vmem:[%s11464_s1 + $0x4ac] sm:$0xf0]  ;;  %v5675_v2 = vor.u32 %v7252_v51, %v5674_v50  ;;  %3659 = vmatpush.bf16.msrb.mxu1 %v5419_v60 }
  0x2a   :  { %v5274_v56 = vld [vmem:[%s11464_s1 + $0x4a0] sm:$0xf]  ;;  %v7855_v58 = vor.u32 %v6993_v53, %v4610_v52  ;;  %v6994_v59 = vld [vmem:[%s11465_s0 + $0x4c] sm:$0xf0]  ;;  %3673 = vmatpush.bf16.msrb.mxu2 %v5547_v61 }
  0x2b   :  { %v5402_v62 = vld [vmem:[%s11464_s1 + $0x5a0] sm:$0xf]  ;;  %v7184_v63 = vld [vmem:[%s11464_s1 + $0x5ac] sm:$0xf0]  ;;  %v7869_v1 = vor.u32 %v6994_v59, %v4618_v54  ;;  %v5275_v9 = vor.u32 %v7152_v57, %v5274_v56  ;;  %3687 = vmatpush.bf16.msrb.mxu3 %v5675_v2 }
  0x2c   :  { %11481 = vst [vmem:[#allocation2_spill] sm:$0xff] %v7855_v58  ;;  %v5530_v0 = vld [vmem:[%s11464_s1 + $0x6a0] sm:$0xf]  ;;  %v7216_v3 = vld [vmem:[%s11464_s1 + $0x6ac] sm:$0xf0]  ;;  %3596 = vmatmul.bf16.vlgmr.msra.gmra.mxu0 %v7855_v58  ;;  %v5403_v12 = vor.u32 %v7184_v63, %v5402_v62 }
  0x2d   :  { %11482 = vst [vmem:[#allocation3_spill] sm:$0xff] %v7869_v1  ;;  %v5658_v4 = vld [vmem:[%s11464_s1 + $0x7a0] sm:$0xf]  ;;  %v7248_v5 = vld [vmem:[%s11464_s1 + $0x7ac] sm:$0xf0]  ;;  %3624 = vmatmul.bf16.vlgmr.msra.gmra.mxu2 %v7869_v1  ;;  %v5531_v13 = vor.u32 %v7216_v3, %v5530_v0  ;;  %3646 = vmatpush.bf16.msrb.mxu0 %v5275_v9 }
  0x2e   :  { %v5258_v14 = vld [vmem:[%s11464_s1 + $0x480] sm:$0xf]  ;;  %v7148_v15 = vld [vmem:[%s11464_s1 + $0x48c] sm:$0xf0]  ;;  %v5659_v18 = vor.u32 %v7248_v5, %v5658_v4  ;;  %3660 = vmatpush.bf16.msrb.mxu1 %v5403_v12 }
  0x2f   :  { %v5386_v16 = vld [vmem:[%s11464_s1 + $0x580] sm:$0xf]  ;;  %v7180_v19 = vld [vmem:[%s11464_s1 + $0x58c] sm:$0xf0]  ;;  %v5259_v24 = vor.u32 %v7148_v15, %v5258_v14  ;;  %3674 = vmatpush.bf16.msrb.mxu2 %v5531_v13 }
  0x30   :  { %v5514_v20 = vld [vmem:[%s11464_s1 + $0x680] sm:$0xf]  ;;  %v7212_v21 = vld [vmem:[%s11464_s1 + $0x68c] sm:$0xf0]  ;;  %v5387_v25 = vor.u32 %v7180_v19, %v5386_v16  ;;  %3688 = vmatpush.bf16.msrb.mxu3 %v5659_v18 }
  0x31   :  { %v5642_v22 = vld [vmem:[%s11464_s1 + $0x780] sm:$0xf]  ;;  %v7244_v23 = vld [vmem:[%s11464_s1 + $0x78c] sm:$0xf0]  ;;  %v5515_v26 = vor.u32 %v7212_v21, %v5514_v20  ;;  %3647 = vmatpush.bf16.msrb.mxu0 %v5259_v24 }
  0x32   :  { %v5242_v27 = vld [vmem:[%s11464_s1 + $0x460] sm:$0xf]  ;;  %v7144_v28 = vld [vmem:[%s11464_s1 + $0x46c] sm:$0xf0]  ;;  %v5643_v30 = vor.u32 %v7244_v23, %v5642_v22  ;;  %3661 = vmatpush.bf16.msrb.mxu1 %v5387_v25  ;;  %v6995_v22 = vld [vmem:[%s11465_s0 + $0x54] sm:$0xf0] }
  0x33   :  { %v5370_v29 = vld [vmem:[%s11464_s1 + $0x560] sm:$0xf]  ;;  %v7176_v31 = vld [vmem:[%s11464_s1 + $0x56c] sm:$0xf0]  ;;  %v5243_v36 = vor.u32 %v7144_v28, %v5242_v27  ;;  %3675 = vmatpush.bf16.msrb.mxu2 %v5515_v26  ;;  %v4634_v25 = vld [vmem:[%s11465_s0 + $0x18] sm:$0xf] }
  0x34   :  { %v5498_v32 = vld [vmem:[%s11464_s1 + $0x660] sm:$0xf]  ;;  %v7208_v33 = vld [vmem:[%s11464_s1 + $0x66c] sm:$0xf0]  ;;  %v5371_v37 = vor.u32 %v7176_v31, %v5370_v29  ;;  %3689 = vmatpush.bf16.msrb.mxu3 %v5643_v30  ;;  %v6986_v27 = vld [vmem:[%s11465_s0 + $0x14] sm:$0xf] }
  0x35   :  { %v5626_v34 = vld [vmem:[%s11464_s1 + $0x760] sm:$0xf]  ;;  %v7240_v35 = vld [vmem:[%s11464_s1 + $0x76c] sm:$0xf0]  ;;  %v5499_v38 = vor.u32 %v7208_v33, %v5498_v32  ;;  %3648 = vmatpush.bf16.msrb.mxu0 %v5243_v36  ;;  %v4628_v30 = vld [vmem:[%s11465_s0 + $0x58] sm:$0xf0] }
  0x36   :  { %v5226_v39 = vld [vmem:[%s11464_s1 + $0x440] sm:$0xf]  ;;  %v7140_v40 = vld [vmem:[%s11464_s1 + $0x44c] sm:$0xf0]  ;;  %v5627_v42 = vor.u32 %v7240_v35, %v5626_v34  ;;  %3662 = vmatpush.bf16.msrb.mxu1 %v5371_v37  ;;  %v6987_v31 = vld [vmem:[%s11465_s0 + $0x1c] sm:$0xf] }
  0x37   :  { %v5354_v41 = vld [vmem:[%s11464_s1 + $0x540] sm:$0xf]  ;;  %v7172_v43 = vld [vmem:[%s11464_s1 + $0x54c] sm:$0xf0]  ;;  %v5227_v48 = vor.u32 %v7140_v40, %v5226_v39  ;;  %3676 = vmatpush.bf16.msrb.mxu2 %v5499_v38  ;;  %v4636_v32 = vld [vmem:[%s11465_s0 + $0x60] sm:$0xf0] }
  0x38   :  { %v5482_v44 = vld [vmem:[%s11464_s1 + $0x640] sm:$0xf]  ;;  %v7204_v45 = vld [vmem:[%s11464_s1 + $0x64c] sm:$0xf0]  ;;  %v5355_v50 = vor.u32 %v7172_v43, %v5354_v41  ;;  %3690 = vmatpush.bf16.msrb.mxu3 %v5627_v42 }
  0x39   :  { %v5610_v46 = vld [vmem:[%s11464_s1 + $0x740] sm:$0xf]  ;;  %v7236_v47 = vld [vmem:[%s11464_s1 + $0x74c] sm:$0xf0]  ;;  %v5483_v51 = vor.u32 %v7204_v45, %v5482_v44  ;;  %3649 = vmatpush.bf16.msrb.mxu0 %v5227_v48  ;;  %v8090_v44 = vor.u32 %v6986_v27, %v4628_v30 }
  0x3a   :  { %v5210_v49 = vld [vmem:[%s11464_s1 + $0x420] sm:$0xf]  ;;  %v7136_v52 = vld [vmem:[%s11464_s1 + $0x42c] sm:$0xf0]  ;;  %v5611_v55 = vor.u32 %v7236_v47, %v5610_v46  ;;  %3663 = vmatpush.bf16.msrb.mxu1 %v5355_v50  ;;  %v8098_v47 = vor.u32 %v6987_v31, %v4636_v32 }
  0x3b   :  { %v5338_v53 = vld [vmem:[%s11464_s1 + $0x520] sm:$0xf]  ;;  %v7168_v54 = vld [vmem:[%s11464_s1 + $0x52c] sm:$0xf0]  ;;  %v5211_v63 = vor.u32 %v7136_v52, %v5210_v49  ;;  %3677 = vmatpush.bf16.msrb.mxu2 %v5483_v51  ;;  %11487 = vst [vmem:[#allocation8_spill] sm:$0xff] %v8090_v44 }
  0x3c   :  { %v5466_v56 = vld [vmem:[%s11464_s1 + $0x620] sm:$0xf]  ;;  %v7200_v57 = vld [vmem:[%s11464_s1 + $0x62c] sm:$0xf0]  ;;  %v5339_v5 = vor.u32 %v7168_v54, %v5338_v53  ;;  %3691 = vmatpush.bf16.msrb.mxu3 %v5611_v55  ;;  %11488 = vst [vmem:[#allocation9_spill] sm:$0xff] %v8098_v47 }
  0x3d   :  { %v5594_v59 = vld [vmem:[%s11464_s1 + $0x720] sm:$0xf]  ;;  %v7232_v60 = vld [vmem:[%s11464_s1 + $0x72c] sm:$0xf0]  ;;  %v5467_v6 = vor.u32 %v7200_v57, %v5466_v56  ;;  %3650 = vmatpush.bf16.msrb.mxu0 %v5211_v63 }
  0x3e   :  { %v5194_v61 = vld [vmem:[%s11464_s1 + $0x400] sm:$0xf]  ;;  %v7132_v62 = vld [vmem:[%s11464_s1 + $0x40c] sm:$0xf0]  ;;  %v5595_v11 = vor.u32 %v7232_v60, %v5594_v59  ;;  %3664 = vmatpush.bf16.msrb.mxu1 %v5339_v5 }
  0x3f   :  { %v5322_v0 = vld [vmem:[%s11464_s1 + $0x500] sm:$0xf]  ;;  %v7164_v2 = vld [vmem:[%s11464_s1 + $0x50c] sm:$0xf0]  ;;  %v5195_v19 = vor.u32 %v7132_v62, %v5194_v61  ;;  %3678 = vmatpush.bf16.msrb.mxu2 %v5467_v6 }
  0x40   :  { %v5450_v3 = vld [vmem:[%s11464_s1 + $0x600] sm:$0xf]  ;;  %v7196_v4 = vld [vmem:[%s11464_s1 + $0x60c] sm:$0xf0]  ;;  %v5323_v23 = vor.u32 %v7164_v2, %v5322_v0  ;;  %3692 = vmatpush.bf16.msrb.mxu3 %v5595_v11 }
  0x41   :  { %v5578_v7 = vld [vmem:[%s11464_s1 + $0x700] sm:$0xf]  ;;  %v7228_v8 = vld [vmem:[%s11464_s1 + $0x70c] sm:$0xf0]  ;;  %v5451_v24 = vor.u32 %v7196_v4, %v5450_v3  ;;  %3651 = vmatpush.bf16.msrb.mxu0 %v5195_v19 }
  0x42   :  { %v5818_v9 = vld [vmem:[%s11464_s1 + $0x8e0] sm:$0xf]  ;;  %v7288_v12 = vld [vmem:[%s11464_s1 + $0x8ec] sm:$0xf0]  ;;  %v5579_v28 = vor.u32 %v7228_v8, %v5578_v7  ;;  %3665 = vmatpush.bf16.msrb.mxu1 %v5323_v23 }
  0x43   :  { %v5946_v13 = vld [vmem:[%s11464_s1 + $0x9e0] sm:$0xf]  ;;  %v7320_v14 = vld [vmem:[%s11464_s1 + $0x9ec] sm:$0xf0]  ;;  %v5819_v29 = vor.u32 %v7288_v12, %v5818_v9  ;;  %3679 = vmatpush.bf16.msrb.mxu2 %v5451_v24 }
  0x44   :  { %v6074_v15 = vld [vmem:[%s11464_s1 + $0xae0] sm:$0xf]  ;;  %v7352_v16 = vld [vmem:[%s11464_s1 + $0xaec] sm:$0xf0]  ;;  %v5947_v33 = vor.u32 %v7320_v14, %v5946_v13  ;;  %3693 = vmatpush.bf16.msrb.mxu3 %v5579_v28 }
  0x45   :  { %v6202_v18 = vld [vmem:[%s11464_s1 + $0xbe0] sm:$0xf]  ;;  %v7384_v20 = vld [vmem:[%s11464_s1 + $0xbec] sm:$0xf0]  ;;  %v6075_v34 = vor.u32 %v7352_v16, %v6074_v15  ;;  %3700 = vmatpush.bf16.msra.mxu0 %v5819_v29  ;;  %3666 = vmatmul.bf16.vlgmr.msrb.gmra.mxu1 %v8090_v44 }
  0x46   :  { %v4626_v21 = vld [vmem:[%s11465_s0 + $0x10] sm:$0xf]  ;;  %v6996_v26 = vld [vmem:[%s11465_s0 + $0x5c] sm:$0xf0]  ;;  %v6203_v38 = vor.u32 %v7384_v20, %v6202_v18  ;;  %3714 = vmatpush.bf16.msra.mxu1 %v5947_v33 }
  0x47   :  { %v5802_v35 = vld [vmem:[%s11464_s1 + $0x8c0] sm:$0xf]  ;;  %v7284_v36 = vld [vmem:[%s11464_s1 + $0x8cc] sm:$0xf0]  ;;  %v8077_v39 = vor.u32 %v6995_v22, %v4626_v21  ;;  %v8088_v43 = vor.u32 %v6996_v26, %v4634_v25  ;;  %3728 = vmatpush.bf16.msra.mxu2 %v6075_v34  ;;  %3694 = vmatmul.bf16.vlgmr.msrb.gmra.mxu3 %v8098_v47 }
  0x48   :  { %v5930_v37 = vld [vmem:[%s11464_s1 + $0x9c0] sm:$0xf]  ;;  %v7316_v40 = vld [vmem:[%s11464_s1 + $0x9cc] sm:$0xf0]  ;;  %v5803_v48 = vor.u32 %v7284_v36, %v5802_v35  ;;  %3742 = vmatpush.bf16.msra.mxu3 %v6203_v38 }
  0x49   :  { %11485 = vst [vmem:[#allocation6_spill] sm:$0xff] %v8077_v39  ;;  %v6058_v41 = vld [vmem:[%s11464_s1 + $0xac0] sm:$0xf]  ;;  %v7348_v42 = vld [vmem:[%s11464_s1 + $0xacc] sm:$0xf0]  ;;  %v5931_v49 = vor.u32 %v7316_v40, %v5930_v37  ;;  %3652 = vmatmul.bf16.vlgmr.msrb.gmra.mxu0 %v8077_v39  ;;  %3680 = vmatmul.bf16.vlgmr.msrb.gmra.mxu2 %v8088_v43 }
  0x4a   :  { %11486 = vst [vmem:[#allocation7_spill] sm:$0xff] %v8088_v43  ;;  %v6186_v45 = vld [vmem:[%s11464_s1 + $0xbc0] sm:$0xf]  ;;  %v7380_v46 = vld [vmem:[%s11464_s1 + $0xbcc] sm:$0xf0]  ;;  %v6059_v50 = vor.u32 %v7348_v42, %v6058_v41  ;;  %3701 = vmatpush.bf16.msra.mxu0 %v5803_v48 }
  0x4b   :  { %v5786_v51 = vld [vmem:[%s11464_s1 + $0x8a0] sm:$0xf]  ;;  %v7280_v52 = vld [vmem:[%s11464_s1 + $0x8ac] sm:$0xf0]  ;;  %v6187_v54 = vor.u32 %v7380_v46, %v6186_v45  ;;  %3715 = vmatpush.bf16.msra.mxu1 %v5931_v49 }
  0x4c   :  { %v5914_v53 = vld [vmem:[%s11464_s1 + $0x9a0] sm:$0xf]  ;;  %v7312_v55 = vld [vmem:[%s11464_s1 + $0x9ac] sm:$0xf0]  ;;  %v5787_v61 = vor.u32 %v7280_v52, %v5786_v51  ;;  %3729 = vmatpush.bf16.msra.mxu2 %v6059_v50 }
  0x4d   :  { %v6042_v56 = vld [vmem:[%s11464_s1 + $0xaa0] sm:$0xf]  ;;  %v7344_v57 = vld [vmem:[%s11464_s1 + $0xaac] sm:$0xf0]  ;;  %v5915_v62 = vor.u32 %v7312_v55, %v5914_v53  ;;  %3743 = vmatpush.bf16.msra.mxu3 %v6187_v54 }
  0x4e   :  { %v6170_v59 = vld [vmem:[%s11464_s1 + $0xba0] sm:$0xf]  ;;  %v7376_v60 = vld [vmem:[%s11464_s1 + $0xbac] sm:$0xf0]  ;;  %v6043_v63 = vor.u32 %v7344_v57, %v6042_v56  ;;  %3702 = vmatpush.bf16.msra.mxu0 %v5787_v61 }
  0x4f   :  { %v5770_v0 = vld [vmem:[%s11464_s1 + $0x880] sm:$0xf]  ;;  %v7276_v2 = vld [vmem:[%s11464_s1 + $0x88c] sm:$0xf0]  ;;  %v6171_v4 = vor.u32 %v7376_v60, %v6170_v59  ;;  %3716 = vmatpush.bf16.msra.mxu1 %v5915_v62 }
  0x50   :  { %v5898_v3 = vld [vmem:[%s11464_s1 + $0x980] sm:$0xf]  ;;  %v7308_v5 = vld [vmem:[%s11464_s1 + $0x98c] sm:$0xf0]  ;;  %v5771_v11 = vor.u32 %v7276_v2, %v5770_v0  ;;  %3730 = vmatpush.bf16.msra.mxu2 %v6043_v63 }
  0x51   :  { %v6026_v6 = vld [vmem:[%s11464_s1 + $0xa80] sm:$0xf]  ;;  %v7340_v7 = vld [vmem:[%s11464_s1 + $0xa8c] sm:$0xf0]  ;;  %v5899_v12 = vor.u32 %v7308_v5, %v5898_v3  ;;  %3744 = vmatpush.bf16.msra.mxu3 %v6171_v4 }
  0x52   :  { %v6154_v8 = vld [vmem:[%s11464_s1 + $0xb80] sm:$0xf]  ;;  %v7372_v9 = vld [vmem:[%s11464_s1 + $0xb8c] sm:$0xf0]  ;;  %v6027_v13 = vor.u32 %v7340_v7, %v6026_v6  ;;  %3703 = vmatpush.bf16.msra.mxu0 %v5771_v11 }
  0x53   :  { %v5754_v14 = vld [vmem:[%s11464_s1 + $0x860] sm:$0xf]  ;;  %v7272_v15 = vld [vmem:[%s11464_s1 + $0x86c] sm:$0xf0]  ;;  %v6155_v18 = vor.u32 %v7372_v9, %v6154_v8  ;;  %3717 = vmatpush.bf16.msra.mxu1 %v5899_v12 }
  0x54   :  { %v5882_v16 = vld [vmem:[%s11464_s1 + $0x960] sm:$0xf]  ;;  %v7304_v19 = vld [vmem:[%s11464_s1 + $0x96c] sm:$0xf0]  ;;  %v5755_v24 = vor.u32 %v7272_v15, %v5754_v14  ;;  %3731 = vmatpush.bf16.msra.mxu2 %v6027_v13  ;;  %v6997_v13 = vld [vmem:[%s11465_s0 + $0x64] sm:$0xf0] }
  0x55   :  { %v6010_v20 = vld [vmem:[%s11464_s1 + $0xa60] sm:$0xf]  ;;  %v7336_v21 = vld [vmem:[%s11464_s1 + $0xa6c] sm:$0xf0]  ;;  %v5883_v25 = vor.u32 %v7304_v19, %v5882_v16  ;;  %3745 = vmatpush.bf16.msra.mxu3 %v6155_v18  ;;  %v4650_v16 = vld [vmem:[%s11465_s0 + $0x28] sm:$0xf] }
  0x56   :  { %v6138_v22 = vld [vmem:[%s11464_s1 + $0xb60] sm:$0xf]  ;;  %v7368_v23 = vld [vmem:[%s11464_s1 + $0xb6c] sm:$0xf0]  ;;  %v6011_v26 = vor.u32 %v7336_v21, %v6010_v20  ;;  %3704 = vmatpush.bf16.msra.mxu0 %v5755_v24  ;;  %v6988_v19 = vld [vmem:[%s11465_s0 + $0x24] sm:$0xf] }
  0x57   :  { %v5738_v27 = vld [vmem:[%s11464_s1 + $0x840] sm:$0xf]  ;;  %v7268_v28 = vld [vmem:[%s11464_s1 + $0x84c] sm:$0xf0]  ;;  %v6139_v30 = vor.u32 %v7368_v23, %v6138_v22  ;;  %3718 = vmatpush.bf16.msra.mxu1 %v5883_v25  ;;  %v4644_v22 = vld [vmem:[%s11465_s0 + $0x68] sm:$0xf0] }
  0x58   :  { %v5866_v29 = vld [vmem:[%s11464_s1 + $0x940] sm:$0xf]  ;;  %v7300_v31 = vld [vmem:[%s11464_s1 + $0x94c] sm:$0xf0]  ;;  %v5739_v36 = vor.u32 %v7268_v28, %v5738_v27  ;;  %3732 = vmatpush.bf16.msra.mxu2 %v6011_v26  ;;  %v6989_v23 = vld [vmem:[%s11465_s0 + $0x2c] sm:$0xf] }
  0x59   :  { %v5994_v32 = vld [vmem:[%s11464_s1 + $0xa40] sm:$0xf]  ;;  %v7332_v33 = vld [vmem:[%s11464_s1 + $0xa4c] sm:$0xf0]  ;;  %v5867_v38 = vor.u32 %v7300_v31, %v5866_v29  ;;  %3746 = vmatpush.bf16.msra.mxu3 %v6139_v30  ;;  %v4652_v24 = vld [vmem:[%s11465_s0 + $0x70] sm:$0xf0] }
  0x5a   :  { %v6122_v34 = vld [vmem:[%s11464_s1 + $0xb40] sm:$0xf]  ;;  %v7364_v35 = vld [vmem:[%s11464_s1 + $0xb4c] sm:$0xf0]  ;;  %v5995_v40 = vor.u32 %v7332_v33, %v5994_v32  ;;  %3705 = vmatpush.bf16.msra.mxu0 %v5739_v36  ;;  %v8318_v36 = vor.u32 %v6988_v19, %v4644_v22 }
  0x5b   :  { %v5722_v37 = vld [vmem:[%s11464_s1 + $0x820] sm:$0xf]  ;;  %v7264_v41 = vld [vmem:[%s11464_s1 + $0x82c] sm:$0xf0]  ;;  %v6123_v46 = vor.u32 %v7364_v35, %v6122_v34  ;;  %3719 = vmatpush.bf16.msra.mxu1 %v5867_v38 }
  0x5c   :  { %v5850_v42 = vld [vmem:[%s11464_s1 + $0x920] sm:$0xf]  ;;  %v7296_v45 = vld [vmem:[%s11464_s1 + $0x92c] sm:$0xf0]  ;;  %v5723_v54 = vor.u32 %v7264_v41, %v5722_v37  ;;  %3733 = vmatpush.bf16.msra.mxu2 %v5995_v40  ;;  %v8326_v40 = vor.u32 %v6989_v23, %v4652_v24 }
  0x5d   :  { %v5978_v48 = vld [vmem:[%s11464_s1 + $0xa20] sm:$0xf]  ;;  %v7328_v49 = vld [vmem:[%s11464_s1 + $0xa2c] sm:$0xf0]  ;;  %v5851_v60 = vor.u32 %v7296_v45, %v5850_v42  ;;  %3747 = vmatpush.bf16.msra.mxu3 %v6123_v46 }
  0x5e   :  { %v6106_v50 = vld [vmem:[%s11464_s1 + $0xb20] sm:$0xf]  ;;  %v7360_v51 = vld [vmem:[%s11464_s1 + $0xb2c] sm:$0xf0]  ;;  %v5979_v61 = vor.u32 %v7328_v49, %v5978_v48  ;;  %3706 = vmatpush.bf16.msra.mxu0 %v5723_v54 }
  0x5f   :  { %v5706_v52 = vld [vmem:[%s11464_s1 + $0x800] sm:$0xf]  ;;  %v7260_v53 = vld [vmem:[%s11464_s1 + $0x80c] sm:$0xf0]  ;;  %v6107_v2 = vor.u32 %v7360_v51, %v6106_v50  ;;  %3720 = vmatpush.bf16.msra.mxu1 %v5851_v60 }
  0x60   :  { %v5834_v55 = vld [vmem:[%s11464_s1 + $0x900] sm:$0xf]  ;;  %v7292_v56 = vld [vmem:[%s11464_s1 + $0x90c] sm:$0xf0]  ;;  %v5707_v9 = vor.u32 %v7260_v53, %v5706_v52  ;;  %3734 = vmatpush.bf16.msra.mxu2 %v5979_v61 }
  0x61   :  { %v5962_v57 = vld [vmem:[%s11464_s1 + $0xa00] sm:$0xf]  ;;  %v7324_v59 = vld [vmem:[%s11464_s1 + $0xa0c] sm:$0xf0]  ;;  %v5835_v14 = vor.u32 %v7292_v56, %v5834_v55  ;;  %3748 = vmatpush.bf16.msra.mxu3 %v6107_v2 }
  0x62   :  { %v6090_v62 = vld [vmem:[%s11464_s1 + $0xb00] sm:$0xf]  ;;  %v7356_v63 = vld [vmem:[%s11464_s1 + $0xb0c] sm:$0xf0]  ;;  %v5963_v15 = vor.u32 %v7324_v59, %v5962_v57  ;;  %3707 = vmatpush.bf16.msra.mxu0 %v5707_v9 }
  0x63   :  { %v6330_v0 = vld [vmem:[%s11464_s1 + $0xce0] sm:$0xf]  ;;  %v7416_v3 = vld [vmem:[%s11464_s1 + $0xcec] sm:$0xf0]  ;;  %v6091_v20 = vor.u32 %v7356_v63, %v6090_v62  ;;  %3721 = vmatpush.bf16.msra.mxu1 %v5835_v14 }
  0x64   :  { %v6458_v4 = vld [vmem:[%s11464_s1 + $0xde0] sm:$0xf]  ;;  %v7448_v5 = vld [vmem:[%s11464_s1 + $0xdec] sm:$0xf0]  ;;  %v6331_v21 = vor.u32 %v7416_v3, %v6330_v0  ;;  %3735 = vmatpush.bf16.msra.mxu2 %v5963_v15 }
  0x65   :  { %v6586_v6 = vld [vmem:[%s11464_s1 + $0xee0] sm:$0xf]  ;;  %v7480_v7 = vld [vmem:[%s11464_s1 + $0xeec] sm:$0xf0]  ;;  %v6459_v25 = vor.u32 %v7448_v5, %v6458_v4  ;;  %3749 = vmatpush.bf16.msra.mxu3 %v6091_v20 }
  0x66   :  { %v6714_v8 = vld [vmem:[%s11464_s1 + $0xfe0] sm:$0xf]  ;;  %v7512_v11 = vld [vmem:[%s11464_s1 + $0xfec] sm:$0xf0]  ;;  %v6587_v26 = vor.u32 %v7480_v7, %v6586_v6  ;;  %3756 = vmatpush.bf16.msrb.mxu0 %v6331_v21  ;;  %3722 = vmatmul.bf16.vlgmr.msra.gmra.mxu1 %v8318_v36 }
  0x67   :  { %v4642_v12 = vld [vmem:[%s11465_s0 + $0x20] sm:$0xf]  ;;  %v6998_v18 = vld [vmem:[%s11465_s0 + $0x6c] sm:$0xf0]  ;;  %v6715_v30 = vor.u32 %v7512_v11, %v6714_v8  ;;  %3770 = vmatpush.bf16.msrb.mxu1 %v6459_v25 }
  0x68   :  { %v6314_v27 = vld [vmem:[%s11464_s1 + $0xcc0] sm:$0xf]  ;;  %v7412_v28 = vld [vmem:[%s11464_s1 + $0xccc] sm:$0xf0]  ;;  %v8305_v31 = vor.u32 %v6997_v13, %v4642_v12  ;;  %v8316_v35 = vor.u32 %v6998_v18, %v4650_v16  ;;  %3784 = vmatpush.bf16.msrb.mxu2 %v6587_v26  ;;  %3750 = vmatmul.bf16.vlgmr.msra.gmra.mxu3 %v8326_v40 }
  0x69   :  { %v6442_v29 = vld [vmem:[%s11464_s1 + $0xdc0] sm:$0xf]  ;;  %v7444_v32 = vld [vmem:[%s11464_s1 + $0xdcc] sm:$0xf0]  ;;  %v6315_v41 = vor.u32 %v7412_v28, %v6314_v27  ;;  %3798 = vmatpush.bf16.msrb.mxu3 %v6715_v30 }
  0x6a   :  { %v6570_v33 = vld [vmem:[%s11464_s1 + $0xec0] sm:$0xf]  ;;  %v7476_v34 = vld [vmem:[%s11464_s1 + $0xecc] sm:$0xf0]  ;;  %v6443_v42 = vor.u32 %v7444_v32, %v6442_v29  ;;  %3708 = vmatmul.bf16.vlgmr.msra.gmra.mxu0 %v8305_v31  ;;  %3736 = vmatmul.bf16.vlgmr.msra.gmra.mxu2 %v8316_v35 }
  0x6b   :  { %v6698_v37 = vld [vmem:[%s11464_s1 + $0xfc0] sm:$0xf]  ;;  %v7508_v38 = vld [vmem:[%s11464_s1 + $0xfcc] sm:$0xf0]  ;;  %v6571_v45 = vor.u32 %v7476_v34, %v6570_v33  ;;  %3757 = vmatpush.bf16.msrb.mxu0 %v6315_v41 }
  0x6c   :  { %v6298_v46 = vld [vmem:[%s11464_s1 + $0xca0] sm:$0xf]  ;;  %v7408_v48 = vld [vmem:[%s11464_s1 + $0xcac] sm:$0xf0]  ;;  %v6699_v50 = vor.u32 %v7508_v38, %v6698_v37  ;;  %3771 = vmatpush.bf16.msrb.mxu1 %v6443_v42 }
  0x6d   :  { %v6426_v49 = vld [vmem:[%s11464_s1 + $0xda0] sm:$0xf]  ;;  %v7440_v51 = vld [vmem:[%s11464_s1 + $0xdac] sm:$0xf0]  ;;  %v6299_v56 = vor.u32 %v7408_v48, %v6298_v46  ;;  %3785 = vmatpush.bf16.msrb.mxu2 %v6571_v45 }
  0x6e   :  { %v6554_v52 = vld [vmem:[%s11464_s1 + $0xea0] sm:$0xf]  ;;  %v7472_v53 = vld [vmem:[%s11464_s1 + $0xeac] sm:$0xf0]  ;;  %v6427_v57 = vor.u32 %v7440_v51, %v6426_v49  ;;  %3799 = vmatpush.bf16.msrb.mxu3 %v6699_v50 }
  0x6f   :  { %v6682_v54 = vld [vmem:[%s11464_s1 + $0xfa0] sm:$0xf]  ;;  %v7504_v55 = vld [vmem:[%s11464_s1 + $0xfac] sm:$0xf0]  ;;  %v6555_v59 = vor.u32 %v7472_v53, %v6554_v52  ;;  %3758 = vmatpush.bf16.msrb.mxu0 %v6299_v56 }
  0x70   :  { %v6282_v60 = vld [vmem:[%s11464_s1 + $0xc80] sm:$0xf]  ;;  %v7404_v61 = vld [vmem:[%s11464_s1 + $0xc8c] sm:$0xf0]  ;;  %v6683_v63 = vor.u32 %v7504_v55, %v6682_v54  ;;  %3772 = vmatpush.bf16.msrb.mxu1 %v6427_v57 }
  0x71   :  { %v6410_v62 = vld [vmem:[%s11464_s1 + $0xd80] sm:$0xf]  ;;  %v7436_v0 = vld [vmem:[%s11464_s1 + $0xd8c] sm:$0xf0]  ;;  %v6283_v6 = vor.u32 %v7404_v61, %v6282_v60  ;;  %3786 = vmatpush.bf16.msrb.mxu2 %v6555_v59 }
  0x72   :  { %v6538_v2 = vld [vmem:[%s11464_s1 + $0xe80] sm:$0xf]  ;;  %v7468_v3 = vld [vmem:[%s11464_s1 + $0xe8c] sm:$0xf0]  ;;  %v6411_v7 = vor.u32 %v7436_v0, %v6410_v62  ;;  %3800 = vmatpush.bf16.msrb.mxu3 %v6683_v63 }
  0x73   :  { %v6666_v4 = vld [vmem:[%s11464_s1 + $0xf80] sm:$0xf]  ;;  %v7500_v5 = vld [vmem:[%s11464_s1 + $0xf8c] sm:$0xf0]  ;;  %v6539_v8 = vor.u32 %v7468_v3, %v6538_v2  ;;  %3759 = vmatpush.bf16.msrb.mxu0 %v6283_v6  ;;  %v7030_v6 = vld [vmem:[%s11464_s1 + $0xe4] sm:$0xf] }
  0x74   :  { %v6266_v9 = vld [vmem:[%s11464_s1 + $0xc60] sm:$0xf]  ;;  %v7400_v11 = vld [vmem:[%s11464_s1 + $0xc6c] sm:$0xf0]  ;;  %v6667_v13 = vor.u32 %v7500_v5, %v6666_v4  ;;  %3773 = vmatpush.bf16.msrb.mxu1 %v6411_v7  ;;  %v4796_v7 = vld [vmem:[%s11464_s1 + $0xf0] sm:$0xf0] }
  0x75   :  { %v6394_v12 = vld [vmem:[%s11464_s1 + $0xd60] sm:$0xf]  ;;  %v7432_v14 = vld [vmem:[%s11464_s1 + $0xd6c] sm:$0xf0]  ;;  %v6267_v20 = vor.u32 %v7400_v11, %v6266_v9  ;;  %3787 = vmatpush.bf16.msrb.mxu2 %v6539_v8  ;;  %v7062_v8 = vld [vmem:[%s11464_s1 + $0x1e4] sm:$0xf] }
  0x76   :  { %v6522_v15 = vld [vmem:[%s11464_s1 + $0xe60] sm:$0xf]  ;;  %v7464_v16 = vld [vmem:[%s11464_s1 + $0xe6c] sm:$0xf0]  ;;  %v6395_v21 = vor.u32 %v7432_v14, %v6394_v12  ;;  %3801 = vmatpush.bf16.msrb.mxu3 %v6667_v13  ;;  %v4924_v11 = vld [vmem:[%s11464_s1 + $0x1f0] sm:$0xf0] }
  0x77   :  { %v6650_v18 = vld [vmem:[%s11464_s1 + $0xf60] sm:$0xf]  ;;  %v7496_v19 = vld [vmem:[%s11464_s1 + $0xf6c] sm:$0xf0]  ;;  %v6523_v22 = vor.u32 %v7464_v16, %v6522_v15  ;;  %3760 = vmatpush.bf16.msrb.mxu0 %v6267_v20  ;;  %v6999_v13 = vld [vmem:[%s11465_s0 + $0x74] sm:$0xf0] }
  0x78   :  { %v6250_v23 = vld [vmem:[%s11464_s1 + $0xc40] sm:$0xf]  ;;  %v7396_v24 = vld [vmem:[%s11464_s1 + $0xc4c] sm:$0xf0]  ;;  %v6651_v26 = vor.u32 %v7496_v19, %v6650_v18  ;;  %3774 = vmatpush.bf16.msrb.mxu1 %v6395_v21  ;;  %v4666_v16 = vld [vmem:[%s11465_s0 + $0x38] sm:$0xf] }
  0x79   :  { %v6378_v25 = vld [vmem:[%s11464_s1 + $0xd40] sm:$0xf]  ;;  %v7428_v27 = vld [vmem:[%s11464_s1 + $0xd4c] sm:$0xf0]  ;;  %v6251_v33 = vor.u32 %v7396_v24, %v6250_v23  ;;  %3788 = vmatpush.bf16.msrb.mxu2 %v6523_v22  ;;  %v6990_v19 = vld [vmem:[%s11465_s0 + $0x34] sm:$0xf] }
  0x7a   :  { %v6506_v28 = vld [vmem:[%s11464_s1 + $0xe40] sm:$0xf]  ;;  %v7460_v29 = vld [vmem:[%s11464_s1 + $0xe4c] sm:$0xf0]  ;;  %v6379_v37 = vor.u32 %v7428_v27, %v6378_v25  ;;  %3802 = vmatpush.bf16.msrb.mxu3 %v6651_v26  ;;  %v4660_v22 = vld [vmem:[%s11465_s0 + $0x78] sm:$0xf0]  ;;  %v4799_v26 = vor.u32 %v7030_v6, %v4796_v7 }
  0x7b   :  { %v6634_v30 = vld [vmem:[%s11464_s1 + $0xf40] sm:$0xf]  ;;  %v7492_v32 = vld [vmem:[%s11464_s1 + $0xf4c] sm:$0xf0]  ;;  %v6507_v38 = vor.u32 %v7460_v29, %v6506_v28  ;;  %3761 = vmatpush.bf16.msrb.mxu0 %v6251_v33  ;;  %v6991_v23 = vld [vmem:[%s11465_s0 + $0x3c] sm:$0xf] }
  0x7c   :  { %v6234_v34 = vld [vmem:[%s11464_s1 + $0xc20] sm:$0xf]  ;;  %v7392_v41 = vld [vmem:[%s11464_s1 + $0xc2c] sm:$0xf0]  ;;  %v6635_v46 = vor.u32 %v7492_v32, %v6634_v30  ;;  %3775 = vmatpush.bf16.msrb.mxu1 %v6379_v37  ;;  %v4668_v24 = vld [vmem:[%s11465_s0 + $0x80] sm:$0xf0]  ;;  %v4927_v30 = vor.u32 %v7062_v8, %v4924_v11 }
  0x7d   :  { %v6362_v42 = vld [vmem:[%s11464_s1 + $0xd20] sm:$0xf]  ;;  %v7424_v45 = vld [vmem:[%s11464_s1 + $0xd2c] sm:$0xf0]  ;;  %v6235_v54 = vor.u32 %v7392_v41, %v6234_v34  ;;  %3789 = vmatpush.bf16.msrb.mxu2 %v6507_v38  ;;  %v7026_v34 = vld [vmem:[%s11464_s1 + $0xc4] sm:$0xf]  ;;  %v8546_v41 = vor.u32 %v6990_v19, %v4660_v22 }
  0x7e   :  { %v6490_v48 = vld [vmem:[%s11464_s1 + $0xe20] sm:$0xf]  ;;  %v7456_v49 = vld [vmem:[%s11464_s1 + $0xe2c] sm:$0xf0]  ;;  %v6363_v60 = vor.u32 %v7424_v45, %v6362_v42  ;;  %3803 = vmatpush.bf16.msrb.mxu3 %v6635_v46  ;;  %v4780_v37 = vld [vmem:[%s11464_s1 + $0xd0] sm:$0xf0]  ;;  %v8554_v46 = vor.u32 %v6991_v23, %v4668_v24 }
  0x7f   :  { %v6618_v50 = vld [vmem:[%s11464_s1 + $0xf20] sm:$0xf]  ;;  %v7488_v51 = vld [vmem:[%s11464_s1 + $0xf2c] sm:$0xf0]  ;;  %v6491_v61 = vor.u32 %v7456_v49, %v6490_v48  ;;  %3762 = vmatpush.bf16.msrb.mxu0 %v6235_v54  ;;  %v7058_v42 = vld [vmem:[%s11464_s1 + $0x1c4] sm:$0xf] }
  0x80   :  { %v6218_v52 = vld [vmem:[%s11464_s1 + $0xc00] sm:$0xf]  ;;  %v7388_v53 = vld [vmem:[%s11464_s1 + $0xc0c] sm:$0xf0]  ;;  %v6619_v2 = vor.u32 %v7488_v51, %v6618_v50  ;;  %3776 = vmatpush.bf16.msrb.mxu1 %v6363_v60  ;;  %v4908_v45 = vld [vmem:[%s11464_s1 + $0x1d0] sm:$0xf0]  ;;  %v4783_v50 = vor.u32 %v7026_v34, %v4780_v37 }
  0x81   :  { %v6346_v55 = vld [vmem:[%s11464_s1 + $0xd00] sm:$0xf]  ;;  %v7420_v56 = vld [vmem:[%s11464_s1 + $0xd0c] sm:$0xf0]  ;;  %v6219_v9 = vor.u32 %v7388_v53, %v6218_v52  ;;  %3790 = vmatpush.bf16.msrb.mxu2 %v6491_v61  ;;  %v4911_v54 = vor.u32 %v7058_v42, %v4908_v45  ;;  %v4892_v60 = vld [vmem:[%s11464_s1 + $0x1b0] sm:$0xf0] }
  0x82   :  { %v6474_v57 = vld [vmem:[%s11464_s1 + $0xe00] sm:$0xf]  ;;  %v7452_v59 = vld [vmem:[%s11464_s1 + $0xe0c] sm:$0xf0]  ;;  %v6347_v14 = vor.u32 %v7420_v56, %v6346_v55  ;;  %3804 = vmatpush.bf16.msrb.mxu3 %v6619_v2  ;;  %v7022_v56 = vld [vmem:[%s11464_s1 + $0xa4] sm:$0xf] }
  0x83   :  { %v6602_v62 = vld [vmem:[%s11464_s1 + $0xf00] sm:$0xf]  ;;  %v7484_v63 = vld [vmem:[%s11464_s1 + $0xf0c] sm:$0xf0]  ;;  %v6475_v15 = vor.u32 %v7452_v59, %v6474_v57  ;;  %3763 = vmatpush.bf16.msrb.mxu0 %v6219_v9  ;;  %v4764_v57 = vld [vmem:[%s11464_s1 + $0xb0] sm:$0xf0] }
  0x84   :  { %v6842_v0 = vld [vmem:[%s11464_s1 + $0x10e0] sm:$0xf]  ;;  %v7544_v3 = vld [vmem:[%s11464_s1 + $0x10ec] sm:$0xf0]  ;;  %v6603_v20 = vor.u32 %v7484_v63, %v6602_v62  ;;  %3777 = vmatpush.bf16.msrb.mxu1 %v6347_v14  ;;  %v7054_v59 = vld [vmem:[%s11464_s1 + $0x1a4] sm:$0xf]  ;;  %v4767_v63 = vor.u32 %v7022_v56, %v4764_v57 }
  0x85   :  { %v6970_v4 = vld [vmem:[%s11464_s1 + $0x11e0] sm:$0xf]  ;;  %v7576_v5 = vld [vmem:[%s11464_s1 + $0x11ec] sm:$0xf0]  ;;  %v6843_v21 = vor.u32 %v7544_v3, %v6842_v0  ;;  %3791 = vmatpush.bf16.msrb.mxu2 %v6475_v15  ;;  %v7018_v6 = vld [vmem:[%s11464_s1 + $0x84] sm:$0xf] }
  0x86   :  { %v4658_v12 = vld [vmem:[%s11465_s0 + $0x30] sm:$0xf]  ;;  %v7000_v18 = vld [vmem:[%s11465_s0 + $0x7c] sm:$0xf0]  ;;  %v6971_v25 = vor.u32 %v7576_v5, %v6970_v4  ;;  %3805 = vmatpush.bf16.msrb.mxu3 %v6603_v20  ;;  %v4895_v4 = vor.u32 %v7054_v59, %v4892_v60  ;;  %v4748_v7 = vld [vmem:[%s11464_s1 + $0x90] sm:$0xf0] }
  0x87   :  { %v6826_v27 = vld [vmem:[%s11464_s1 + $0x10c0] sm:$0xf]  ;;  %v7540_v28 = vld [vmem:[%s11464_s1 + $0x10cc] sm:$0xf0]  ;;  %v8533_v32 = vor.u32 %v6999_v13, %v4658_v12  ;;  %v8544_v38 = vor.u32 %v7000_v18, %v4666_v16  ;;  %3812 = vmatpush.bf16.msra.mxu0 %v6843_v21  ;;  %3778 = vmatmul.bf16.vlgmr.msrb.gmra.mxu1 %v8546_v41  ;;  %v7050_v8 = vld [vmem:[%s11464_s1 + $0x184] sm:$0xf]  ;;  %v4751_v13 = vor.u32 %v7018_v6, %v4748_v7 }
  0x88   :  { %v6954_v29 = vld [vmem:[%s11464_s1 + $0x11c0] sm:$0xf]  ;;  %v7572_v33 = vld [vmem:[%s11464_s1 + $0x11cc] sm:$0xf0]  ;;  %v6827_v48 = vor.u32 %v7540_v28, %v6826_v27  ;;  %3826 = vmatpush.bf16.msra.mxu1 %v6971_v25  ;;  %v4876_v9 = vld [vmem:[%s11464_s1 + $0x190] sm:$0xf0] }
  0x89   :  { %3840 = vmatpush.bf16.msra.mxu2 %v4799_v26  ;;  %v6955_v49 = vor.u32 %v7572_v33, %v6954_v29  ;;  %v6810_v51 = vld [vmem:[%s11464_s1 + $0x10a0] sm:$0xf]  ;;  %v7536_v52 = vld [vmem:[%s11464_s1 + $0x10ac] sm:$0xf0]  ;;  %3764 = vmatmul.bf16.vlgmr.msrb.gmra.mxu0 %v8533_v32  ;;  %v4879_v18 = vor.u32 %v7050_v8, %v4876_v9  ;;  %v7014_v20 = vld [vmem:[%s11464_s1 + $0x64] sm:$0xf] }
  0x8a   :  { %v6938_v53 = vld [vmem:[%s11464_s1 + $0x11a0] sm:$0xf]  ;;  %3854 = vmatpush.bf16.msra.mxu3 %v4927_v30  ;;  %v7568_v55 = vld [vmem:[%s11464_s1 + $0x11ac] sm:$0xf0]  ;;  %3792 = vmatmul.bf16.vlgmr.msrb.gmra.mxu2 %v8544_v38  ;;  %v6811_v61 = vor.u32 %v7536_v52, %v6810_v51  ;;  %v4732_v21 = vld [vmem:[%s11464_s1 + $0x70] sm:$0xf0] }
  0x8b   :  { %3806 = vmatmul.bf16.vlgmr.msrb.gmra.mxu3 %v8554_v46  ;;  %3813 = vmatpush.bf16.msra.mxu0 %v6827_v48  ;;  %v6939_v62 = vor.u32 %v7568_v55, %v6938_v53  ;;  %v6794_v0 = vld [vmem:[%s11464_s1 + $0x1080] sm:$0xf]  ;;  %v7532_v2 = vld [vmem:[%s11464_s1 + $0x108c] sm:$0xf0]  ;;  %v7046_v22 = vld [vmem:[%s11464_s1 + $0x164] sm:$0xf]  ;;  %v4735_v26 = vor.u32 %v7014_v20, %v4732_v21 }
  0x8c   :  { %3827 = vmatpush.bf16.msra.mxu1 %v6955_v49  ;;  %v6922_v3 = vld [vmem:[%s11464_s1 + $0x1180] sm:$0xf]  ;;  %v7564_v5 = vld [vmem:[%s11464_s1 + $0x118c] sm:$0xf0]  ;;  %v6795_v11 = vor.u32 %v7532_v2, %v6794_v0  ;;  %v4860_v23 = vld [vmem:[%s11464_s1 + $0x170] sm:$0xf0] }
  0x8d   :  { %3841 = vmatpush.bf16.msra.mxu2 %v4783_v50  ;;  %v6923_v12 = vor.u32 %v7564_v5, %v6922_v3  ;;  %v6778_v14 = vld [vmem:[%s11464_s1 + $0x1060] sm:$0xf]  ;;  %v7528_v15 = vld [vmem:[%s11464_s1 + $0x106c] sm:$0xf0]  ;;  %v4863_v30 = vor.u32 %v7046_v22, %v4860_v23  ;;  %v7010_v34 = vld [vmem:[%s11464_s1 + $0x44] sm:$0xf] }
  0x8e   :  { %3855 = vmatpush.bf16.msra.mxu3 %v4911_v54  ;;  %v6906_v16 = vld [vmem:[%s11464_s1 + $0x1160] sm:$0xf]  ;;  %v7560_v19 = vld [vmem:[%s11464_s1 + $0x116c] sm:$0xf0]  ;;  %v6779_v24 = vor.u32 %v7528_v15, %v6778_v14  ;;  %v4716_v37 = vld [vmem:[%s11464_s1 + $0x50] sm:$0xf0] }
  0x8f   :  { %3814 = vmatpush.bf16.msra.mxu0 %v6811_v61  ;;  %v6907_v25 = vor.u32 %v7560_v19, %v6906_v16  ;;  %v6762_v27 = vld [vmem:[%s11464_s1 + $0x1040] sm:$0xf]  ;;  %v7524_v28 = vld [vmem:[%s11464_s1 + $0x104c] sm:$0xf0]  ;;  %v7042_v42 = vld [vmem:[%s11464_s1 + $0x144] sm:$0xf]  ;;  %v4719_v50 = vor.u32 %v7010_v34, %v4716_v37 }
  0x90   :  { %3828 = vmatpush.bf16.msra.mxu1 %v6939_v62  ;;  %v6890_v29 = vld [vmem:[%s11464_s1 + $0x1140] sm:$0xf]  ;;  %v7556_v33 = vld [vmem:[%s11464_s1 + $0x114c] sm:$0xf0]  ;;  %v4844_v45 = vld [vmem:[%s11464_s1 + $0x150] sm:$0xf0]  ;;  %v6763_v48 = vor.u32 %v7524_v28, %v6762_v27 }
  0x91   :  { %3842 = vmatpush.bf16.msra.mxu2 %v4767_v63  ;;  %v6891_v49 = vor.u32 %v7556_v33, %v6890_v29  ;;  %v6746_v51 = vld [vmem:[%s11464_s1 + $0x1020] sm:$0xf]  ;;  %v7520_v52 = vld [vmem:[%s11464_s1 + $0x102c] sm:$0xf0]  ;;  %v4847_v54 = vor.u32 %v7042_v42, %v4844_v45  ;;  %v7006_v56 = vld [vmem:[%s11464_s1 + $0x24] sm:$0xf] }
  0x92   :  { %3856 = vmatpush.bf16.msra.mxu3 %v4895_v4  ;;  %v6874_v53 = vld [vmem:[%s11464_s1 + $0x1120] sm:$0xf]  ;;  %v7552_v55 = vld [vmem:[%s11464_s1 + $0x112c] sm:$0xf0]  ;;  %v4700_v57 = vld [vmem:[%s11464_s1 + $0x30] sm:$0xf0]  ;;  %v6747_v61 = vor.u32 %v7520_v52, %v6746_v51 }
  0x93   :  { %3815 = vmatpush.bf16.msra.mxu0 %v6795_v11  ;;  %v7038_v59 = vld [vmem:[%s11464_s1 + $0x124] sm:$0xf]  ;;  %v4828_v60 = vld [vmem:[%s11464_s1 + $0x130] sm:$0xf0]  ;;  %v6730_v62 = vld [vmem:[%s11464_s1 + $0x1000] sm:$0xf]  ;;  %v6875_v2 = vor.u32 %v7552_v55, %v6874_v53  ;;  %v4703_v3 = vor.u32 %v7006_v56, %v4700_v57 }
  0x94   :  { %3829 = vmatpush.bf16.msra.mxu1 %v6923_v12  ;;  %v7516_v63 = vld [vmem:[%s11464_s1 + $0x100c] sm:$0xf0]  ;;  %v6858_v0 = vld [vmem:[%s11464_s1 + $0x1100] sm:$0xf]  ;;  %v7002_v5 = vld [vmem:[%s11464_s1 + $0x4] sm:$0xf]  ;;  %v4831_v7 = vor.u32 %v7038_v59, %v4828_v60 }
  0x95   :  { %3843 = vmatpush.bf16.msra.mxu2 %v4751_v13  ;;  %v7548_v4 = vld [vmem:[%s11464_s1 + $0x110c] sm:$0xf0]  ;;  %v4684_v6 = vld [vmem:[%s11464_s1 + $0x10] sm:$0xf0]  ;;  %v7034_v8 = vld [vmem:[%s11464_s1 + $0x104] sm:$0xf]  ;;  %v6731_v15 = vor.u32 %v7516_v63, %v6730_v62 }
  0x96   :  { %3857 = vmatpush.bf16.msra.mxu3 %v4879_v18  ;;  %v4812_v9 = vld [vmem:[%s11464_s1 + $0x110] sm:$0xf0]  ;;  %v7094_v11 = vld [vmem:[%s11464_s1 + $0x2e4] sm:$0xf]  ;;  %v6859_v20 = vor.u32 %v7548_v4, %v6858_v0  ;;  %v4687_v21 = vor.u32 %v7002_v5, %v4684_v6  ;;  %v4674_v23 = vld [vmem:[%s11465_s0 + $0x40] sm:$0xf] }
  0x97   :  { %3816 = vmatpush.bf16.msra.mxu0 %v6779_v24  ;;  %v5052_v12 = vld [vmem:[%s11464_s1 + $0x2f0] sm:$0xf0]  ;;  %v7126_v13 = vld [vmem:[%s11464_s1 + $0x3e4] sm:$0xf]  ;;  %v7001_v24 = vld [vmem:[%s11465_s0 + $0x84] sm:$0xf0] }
  0x98   :  { %3830 = vmatpush.bf16.msra.mxu1 %v6907_v25  ;;  %v5180_v14 = vld [vmem:[%s11464_s1 + $0x3f0] sm:$0xf0]  ;;  %v7158_v16 = vld [vmem:[%s11464_s1 + $0x4e4] sm:$0xf]  ;;  %v4815_v25 = vor.u32 %v7034_v8, %v4812_v9  ;;  %v4676_v28 = vld [vmem:[%s11465_s0 + $0x88] sm:$0xf0]  ;;  %v8749_v45 = vor.u32 %v7001_v24, %v4674_v23 }
  0x99   :  { %3844 = vmatpush.bf16.msra.mxu2 %v4735_v26  ;;  %v5308_v18 = vld [vmem:[%s11464_s1 + $0x4f0] sm:$0xf0]  ;;  %v7190_v19 = vld [vmem:[%s11464_s1 + $0x5e4] sm:$0xf]  ;;  %v5055_v26 = vor.u32 %v7094_v11, %v5052_v12  ;;  %v5183_v29 = vor.u32 %v7126_v13, %v5180_v14 }
  0x9a   :  { %3858 = vmatpush.bf16.msra.mxu3 %v4863_v30  ;;  %v5436_v22 = vld [vmem:[%s11464_s1 + $0x5f0] sm:$0xf0]  ;;  %v6992_v27 = vld [vmem:[%s11465_s0 + $0x44] sm:$0xf]  ;;  %v5311_v30 = vor.u32 %v7158_v16, %v5308_v18  ;;  %11489 = vst [vmem:[#allocation10_spill] sm:$0xff] %v8749_v45 }
  0x9b   :  { %3817 = vmatpush.bf16.msra.mxu0 %v6763_v48  ;;  %v7090_v33 = vld [vmem:[%s11464_s1 + $0x2c4] sm:$0xf]  ;;  %v5036_v34 = vld [vmem:[%s11464_s1 + $0x2d0] sm:$0xf0]  ;;  %v5439_v42 = vor.u32 %v7190_v19, %v5436_v22  ;;  %v8760_v51 = vor.u32 %v6992_v27, %v4676_v28 }
  0x9c   :  { %3831 = vmatpush.bf16.msra.mxu1 %v6891_v49  ;;  %v7122_v37 = vld [vmem:[%s11464_s1 + $0x3c4] sm:$0xf]  ;;  %v5164_v48 = vld [vmem:[%s11464_s1 + $0x3d0] sm:$0xf0] }
  0x9d   :  { %3845 = vmatpush.bf16.msra.mxu2 %v4719_v50  ;;  %v7154_v49 = vld [vmem:[%s11464_s1 + $0x4c4] sm:$0xf]  ;;  %v5292_v50 = vld [vmem:[%s11464_s1 + $0x4d0] sm:$0xf0]  ;;  %11490 = vst [vmem:[#allocation11_spill] sm:$0xff] %v8760_v51  ;;  %v5167_v56 = vor.u32 %v7122_v37, %v5164_v48 }
  0x9e   :  { %3859 = vmatpush.bf16.msra.mxu3 %v4847_v54  ;;  %v7186_v52 = vld [vmem:[%s11464_s1 + $0x5c4] sm:$0xf]  ;;  %v5420_v53 = vld [vmem:[%s11464_s1 + $0x5d0] sm:$0xf0]  ;;  %v5039_v54 = vor.u32 %v7090_v33, %v5036_v34  ;;  %v5295_v57 = vor.u32 %v7154_v49, %v5292_v50 }
  0x9f   :  { %3818 = vmatpush.bf16.msra.mxu0 %v6747_v61  ;;  %v7086_v55 = vld [vmem:[%s11464_s1 + $0x2a4] sm:$0xf]  ;;  %v5020_v59 = vld [vmem:[%s11464_s1 + $0x2b0] sm:$0xf0]  ;;  %v8780_v61 = vld [vmem:[%s11466_s2] sm:$0xf]  ;;  %v5423_v62 = vor.u32 %v7186_v52, %v5420_v53 }
  0xa0   :  { %3832 = vmatpush.bf16.msra.mxu1 %v6875_v2  ;;  %v7118_v60 = vld [vmem:[%s11464_s1 + $0x3a4] sm:$0xf]  ;;  %v5148_v63 = vld [vmem:[%s11464_s1 + $0x3b0] sm:$0xf0]  ;;  %v5023_v5 = vor.u32 %v7086_v55, %v5020_v59  ;;  %v11468_v6 = vperm.slane %v8780_v61, 0 }
  0xa1   :  { %3846 = vmatpush.bf16.msra.mxu2 %v4703_v3  ;;  %v7150_v0 = vld [vmem:[%s11464_s1 + $0x4a4] sm:$0xf]  ;;  %v5276_v2 = vld [vmem:[%s11464_s1 + $0x4b0] sm:$0xf0] }
  0xa2   :  { %3860 = vmatpush.bf16.msra.mxu3 %v4831_v7  ;;  %v7182_v3 = vld [vmem:[%s11464_s1 + $0x5a4] sm:$0xf]  ;;  %v5404_v4 = vld [vmem:[%s11464_s1 + $0x5b0] sm:$0xf0]  ;;  %v5151_v7 = vor.u32 %v7118_v60, %v5148_v63  ;;  %v5279_v8 = vor.u32 %v7150_v0, %v5276_v2 }
  0xa3   :  { %3819 = vmatpush.bf16.msra.mxu0 %v6731_v15  ;;  %v7082_v9 = vld [vmem:[%s11464_s1 + $0x284] sm:$0xf]  ;;  %v5004_v11 = vld [vmem:[%s11464_s1 + $0x290] sm:$0xf0]  ;;  %v5407_v13 = vor.u32 %v7182_v3, %v5404_v4 }
  0xa4   :  { %3833 = vmatpush.bf16.msra.mxu1 %v6859_v20  ;;  %v7114_v12 = vld [vmem:[%s11464_s1 + $0x384] sm:$0xf]  ;;  %v5132_v14 = vld [vmem:[%s11464_s1 + $0x390] sm:$0xf0] }
  0xa5   :  { %3847 = vmatpush.bf16.msra.mxu2 %v4687_v21  ;;  %v7146_v15 = vld [vmem:[%s11464_s1 + $0x484] sm:$0xf]  ;;  %v5260_v16 = vld [vmem:[%s11464_s1 + $0x490] sm:$0xf0]  ;;  %v5007_v21 = vor.u32 %v7082_v9, %v5004_v11  ;;  %v5135_v23 = vor.u32 %v7114_v12, %v5132_v14 }
  0xa6   :  { %3861 = vmatpush.bf16.msra.mxu3 %v4815_v25  ;;  %3820 = vmatmul.bf16.vlgmr.msra.gmra.mxu0 %v8749_v45  ;;  %v7178_v18 = vld [vmem:[%s11464_s1 + $0x584] sm:$0xf]  ;;  %v5388_v19 = vld [vmem:[%s11464_s1 + $0x590] sm:$0xf0]  ;;  %v5263_v24 = vor.u32 %v7146_v15, %v5260_v16 }
  0xa7   :  { %3868 = vmatpush.bf16.msrb.mxu0 %v5055_v26  ;;  %3834 = vmatmul.bf16.vlgmr.msra.gmra.mxu1 %v8760_v51  ;;  %v7078_v25 = vld [vmem:[%s11464_s1 + $0x264] sm:$0xf]  ;;  %v4988_v26 = vld [vmem:[%s11464_s1 + $0x270] sm:$0xf0]  ;;  %v5391_v28 = vor.u32 %v7178_v18, %v5388_v19 }
  0xa8   :  { %3882 = vmatpush.bf16.msrb.mxu1 %v5183_v29  ;;  %3848 = vmatmul.bf16.vlgmr.msra.gmra.mxu2 %v7855_v58  ;;  %v7110_v27 = vld [vmem:[%s11464_s1 + $0x364] sm:$0xf]  ;;  %v5116_v29 = vld [vmem:[%s11464_s1 + $0x370] sm:$0xf0]  ;;  %v4991_v48 = vor.u32 %v7078_v25, %v4988_v26 }
  0xa9   :  { %3896 = vmatpush.bf16.msrb.mxu2 %v5311_v30  ;;  %3862 = vmatmul.bf16.vlgmr.msra.gmra.mxu3 %v7891_v10  ;;  %v3597_v20 = vpop.f32.mrf.mxu0  ;;  %v7142_v30 = vld [vmem:[%s11464_s1 + $0x464] sm:$0xf]  ;;  %v5244_v33 = vld [vmem:[%s11464_s1 + $0x470] sm:$0xf0]  ;;  %v5119_v50 = vor.u32 %v7110_v27, %v5116_v29  ;;  %v3639_v15 = vpop.f32.mrf.mxu3 }
  0xaa   :  { %3910 = vmatpush.bf16.msrb.mxu3 %v5439_v42  ;;  %v3598_v22 = vadd.f32 %v3597_v20, %v11468_v6  ;;  %v7174_v34 = vld [vmem:[%s11464_s1 + $0x564] sm:$0xf]  ;;  %v5372_v37 = vld [vmem:[%s11464_s1 + $0x570] sm:$0xf0]  ;;  %v3611_v42 = vpop.f32.mrf.mxu1  ;;  %v5247_v52 = vor.u32 %v7142_v30, %v5244_v33 }
  0xab   :  { %3869 = vmatpush.bf16.msrb.mxu0 %v5039_v54  ;;  %v7074_v53 = vld [vmem:[%s11464_s1 + $0x244] sm:$0xf]  ;;  %v4972_v54 = vld [vmem:[%s11464_s1 + $0x250] sm:$0xf0] }
  0xac   :  { %3883 = vmatpush.bf16.msrb.mxu1 %v5167_v56  ;;  %v3612_v49 = vadd.f32 %v3611_v42, %v3598_v22  ;;  %v7106_v55 = vld [vmem:[%s11464_s1 + $0x344] sm:$0xf]  ;;  %v5375_v56 = vor.u32 %v7174_v34, %v5372_v37  ;;  %v5228_v60 = vld [vmem:[%s11464_s1 + $0x450] sm:$0xf0]  ;;  %v4975_v3 = vor.u32 %v7074_v53, %v4972_v54 }
  0xad   :  { %3897 = vmatpush.bf16.msrb.mxu2 %v5295_v57  ;;  %v5100_v57 = vld [vmem:[%s11464_s1 + $0x350] sm:$0xf0]  ;;  %v7138_v59 = vld [vmem:[%s11464_s1 + $0x444] sm:$0xf] }
  0xae   :  { %3911 = vmatpush.bf16.msrb.mxu3 %v5423_v62  ;;  %v7170_v63 = vld [vmem:[%s11464_s1 + $0x544] sm:$0xf]  ;;  %v5356_v0 = vld [vmem:[%s11464_s1 + $0x550] sm:$0xf0]  ;;  %v5103_v4 = vor.u32 %v7106_v55, %v5100_v57 }
  0xaf   :  { %3870 = vmatpush.bf16.msrb.mxu0 %v5023_v5  ;;  %v5231_v5 = vor.u32 %v7138_v59, %v5228_v60  ;;  %v7102_v9 = vld [vmem:[%s11464_s1 + $0x324] sm:$0xf]  ;;  %v5359_v11 = vor.u32 %v7170_v63, %v5356_v0  ;;  %v5084_v12 = vld [vmem:[%s11464_s1 + $0x330] sm:$0xf0] }
  0xb0   :  { %3884 = vmatpush.bf16.msrb.mxu1 %v5151_v7  ;;  %v3625_v62 = vpop.f32.mrf.mxu2  ;;  %v7070_v7 = vld [vmem:[%s11464_s1 + $0x224] sm:$0xf]  ;;  %v5212_v14 = vld [vmem:[%s11464_s1 + $0x430] sm:$0xf0] }
  0xb1   :  { %3898 = vmatpush.bf16.msrb.mxu2 %v5279_v8  ;;  %v3626_v2 = vadd.f32 %v3625_v62, %v3612_v49  ;;  %v4956_v8 = vld [vmem:[%s11464_s1 + $0x230] sm:$0xf0]  ;;  %v7166_v16 = vld [vmem:[%s11464_s1 + $0x524] sm:$0xf]  ;;  %v8950_v63 = vpop.f32.mrf.mxu0 }
  0xb2   :  { %3912 = vmatpush.bf16.msrb.mxu3 %v5407_v13  ;;  %v7134_v13 = vld [vmem:[%s11464_s1 + $0x424] sm:$0xf]  ;;  %v5340_v18 = vld [vmem:[%s11464_s1 + $0x530] sm:$0xf0]  ;;  %v4959_v20 = vor.u32 %v7070_v7, %v4956_v8 }
  0xb3   :  { %3871 = vmatpush.bf16.msrb.mxu0 %v5007_v21  ;;  %v8900_v19 = vadd.f32 %v3639_v15, %v3626_v2  ;;  %v7066_v21 = vld [vmem:[%s11464_s1 + $0x204] sm:$0xf]  ;;  %v4940_v22 = vld [vmem:[%s11464_s1 + $0x210] sm:$0xf0] }
  0xb4   :  { %3885 = vmatpush.bf16.msrb.mxu1 %v5135_v23  ;;  %v5087_v23 = vor.u32 %v7102_v9, %v5084_v12  ;;  %v7098_v25 = vld [vmem:[%s11464_s1 + $0x304] sm:$0xf]  ;;  %v5068_v26 = vld [vmem:[%s11464_s1 + $0x310] sm:$0xf0]  ;;  %v8976_v12 = vpop.f32.mrf.mxu1 }
  0xb5   :  { %3899 = vmatpush.bf16.msrb.mxu2 %v5263_v24  ;;  %v5215_v24 = vor.u32 %v7134_v13, %v5212_v14  ;;  %v7130_v27 = vld [vmem:[%s11464_s1 + $0x404] sm:$0xf]  ;;  %v5196_v29 = vld [vmem:[%s11464_s1 + $0x410] sm:$0xf0]  ;;  %v5071_v53 = vor.u32 %v7098_v25, %v5068_v26 }
  0xb6   :  { %3913 = vmatpush.bf16.msrb.mxu3 %v5391_v28  ;;  %v5343_v28 = vor.u32 %v7166_v16, %v5340_v18  ;;  %v7162_v30 = vld [vmem:[%s11464_s1 + $0x504] sm:$0xf]  ;;  %v5324_v33 = vld [vmem:[%s11464_s1 + $0x510] sm:$0xf0]  ;;  %v5199_v54 = vor.u32 %v7130_v27, %v5196_v29 }
  0xb7   :  { %3872 = vmatpush.bf16.msrb.mxu0 %v4991_v48  ;;  %v7222_v34 = vld [vmem:[%s11464_s1 + $0x6e4] sm:$0xf]  ;;  %v5564_v37 = vld [vmem:[%s11464_s1 + $0x6f0] sm:$0xf0]  ;;  %v4943_v48 = vor.u32 %v7066_v21, %v4940_v22  ;;  %v5327_v57 = vor.u32 %v7162_v30, %v5324_v33 }
  0xb8   :  { %3886 = vmatpush.bf16.msrb.mxu1 %v5119_v50  ;;  %v7254_v42 = vld [vmem:[%s11464_s1 + $0x7e4] sm:$0xf]  ;;  %v5692_v49 = vld [vmem:[%s11464_s1 + $0x7f0] sm:$0xf0]  ;;  %v5567_v59 = vor.u32 %v7222_v34, %v5564_v37 }
  0xb9   :  { %3900 = vmatpush.bf16.msrb.mxu2 %v5247_v52  ;;  %v7286_v50 = vld [vmem:[%s11464_s1 + $0x8e4] sm:$0xf]  ;;  %v5820_v52 = vld [vmem:[%s11464_s1 + $0x8f0] sm:$0xf0]  ;;  %v5695_v60 = vor.u32 %v7254_v42, %v5692_v49 }
  0xba   :  { %3914 = vmatpush.bf16.msrb.mxu3 %v5375_v56  ;;  %v7318_v55 = vld [vmem:[%s11464_s1 + $0x9e4] sm:$0xf]  ;;  %v5948_v56 = vld [vmem:[%s11464_s1 + $0x9f0] sm:$0xf0]  ;;  %v5823_v62 = vor.u32 %v7286_v50, %v5820_v52 }
  0xbb   :  { %3873 = vmatpush.bf16.msrb.mxu0 %v4975_v3  ;;  %v7218_v0 = vld [vmem:[%s11464_s1 + $0x6c4] sm:$0xf]  ;;  %v5548_v2 = vld [vmem:[%s11464_s1 + $0x6d0] sm:$0xf0] }
  0xbc   :  { %3887 = vmatpush.bf16.msrb.mxu1 %v5103_v4  ;;  %v7250_v3 = vld [vmem:[%s11464_s1 + $0x7c4] sm:$0xf]  ;;  %v5951_v4 = vor.u32 %v7318_v55, %v5948_v56  ;;  %v5804_v8 = vld [vmem:[%s11464_s1 + $0x8d0] sm:$0xf0]  ;;  %v5551_v13 = vor.u32 %v7218_v0, %v5548_v2 }
  0xbd   :  { %3901 = vmatpush.bf16.msrb.mxu2 %v5231_v5  ;;  %v5676_v5 = vld [vmem:[%s11464_s1 + $0x7d0] sm:$0xf0]  ;;  %v7282_v7 = vld [vmem:[%s11464_s1 + $0x8c4] sm:$0xf] }
  0xbe   :  { %3915 = vmatpush.bf16.msrb.mxu3 %v5359_v11  ;;  %v7314_v9 = vld [vmem:[%s11464_s1 + $0x9c4] sm:$0xf]  ;;  %v5932_v11 = vld [vmem:[%s11464_s1 + $0x9d0] sm:$0xf0]  ;;  %v5679_v14 = vor.u32 %v7250_v3, %v5676_v5  ;;  %v5807_v15 = vor.u32 %v7282_v7, %v5804_v8 }
  0xbf   :  { %3874 = vmatpush.bf16.msrb.mxu0 %v4959_v20  ;;  %v7214_v16 = vld [vmem:[%s11464_s1 + $0x6a4] sm:$0xf]  ;;  %v5532_v18 = vld [vmem:[%s11464_s1 + $0x6b0] sm:$0xf0]  ;;  %v5935_v21 = vor.u32 %v7314_v9, %v5932_v11 }
  0xc0   :  { %3888 = vmatpush.bf16.msrb.mxu1 %v5087_v23  ;;  %v7246_v20 = vld [vmem:[%s11464_s1 + $0x7a4] sm:$0xf]  ;;  %v5660_v22 = vld [vmem:[%s11464_s1 + $0x7b0] sm:$0xf0]  ;;  %v5535_v27 = vor.u32 %v7214_v16, %v5532_v18 }
  0xc1   :  { %3902 = vmatpush.bf16.msrb.mxu2 %v5215_v24  ;;  %v7278_v23 = vld [vmem:[%s11464_s1 + $0x8a4] sm:$0xf]  ;;  %v5788_v24 = vld [vmem:[%s11464_s1 + $0x8b0] sm:$0xf0]  ;;  %v5663_v29 = vor.u32 %v7246_v20, %v5660_v22 }
  0xc2   :  { %3916 = vmatpush.bf16.msrb.mxu3 %v5343_v28  ;;  %v7310_v25 = vld [vmem:[%s11464_s1 + $0x9a4] sm:$0xf]  ;;  %v5916_v26 = vld [vmem:[%s11464_s1 + $0x9b0] sm:$0xf0]  ;;  %v9006_v28 = vpop.f32.mrf.mxu2  ;;  %v5791_v30 = vor.u32 %v7278_v23, %v5788_v24 }
  0xc3   :  { %3875 = vmatpush.bf16.msrb.mxu0 %v4943_v48  ;;  %v7210_v33 = vld [vmem:[%s11464_s1 + $0x684] sm:$0xf]  ;;  %v5516_v34 = vld [vmem:[%s11464_s1 + $0x690] sm:$0xf0]  ;;  %v5919_v42 = vor.u32 %v7310_v25, %v5916_v26  ;;  %v9017_v48 = vpop.f32.mrf.mxu3 }
  0xc4   :  { %3889 = vmatpush.bf16.msrb.mxu1 %v5071_v53  ;;  %v7242_v37 = vld [vmem:[%s11464_s1 + $0x784] sm:$0xf]  ;;  %v5644_v49 = vld [vmem:[%s11464_s1 + $0x790] sm:$0xf0] }
  0xc5   :  { %3903 = vmatpush.bf16.msrb.mxu2 %v5199_v54  ;;  %v7274_v50 = vld [vmem:[%s11464_s1 + $0x884] sm:$0xf]  ;;  %v5772_v52 = vld [vmem:[%s11464_s1 + $0x890] sm:$0xf0] }
  0xc6   :  { %3917 = vmatpush.bf16.msrb.mxu3 %v5327_v57  ;;  %3876 = vmatmul.bf16.vlgmr.msrb.gmra.mxu0 %v7869_v1  ;;  %v3653_v53 = vpop.f32.mrf.mxu0  ;;  %v7306_v54 = vld [vmem:[%s11464_s1 + $0x984] sm:$0xf]  ;;  %v5900_v55 = vld [vmem:[%s11464_s1 + $0x990] sm:$0xf0]  ;;  %v5519_v57 = vor.u32 %v7210_v33, %v5516_v34 }
  0xc7   :  { %3924 = vmatpush.bf16.msra.mxu0 %v5567_v59  ;;  %3890 = vmatmul.bf16.vlgmr.msrb.gmra.mxu1 %v7905_v17  ;;  %v3654_v56 = vadd.f32 %v3653_v53, %v8900_v19  ;;  %v5647_v59 = vor.u32 %v7242_v37, %v5644_v49  ;;  %v7206_v0 = vld [vmem:[%s11464_s1 + $0x664] sm:$0xf]  ;;  %v5500_v2 = vld [vmem:[%s11464_s1 + $0x670] sm:$0xf0]  ;;  %v5903_v19 = vor.u32 %v7306_v54, %v5900_v55 }
  0xc8   :  { %3938 = vmatpush.bf16.msra.mxu1 %v5695_v60  ;;  %3904 = vmatmul.bf16.vlgmr.msrb.gmra.mxu2 %v8077_v39  ;;  %v5775_v60 = vor.u32 %v7274_v50, %v5772_v52  ;;  %v7238_v3 = vld [vmem:[%s11464_s1 + $0x764] sm:$0xf]  ;;  %v5628_v5 = vld [vmem:[%s11464_s1 + $0x770] sm:$0xf0] }
  0xc9   :  { %3952 = vmatpush.bf16.msra.mxu2 %v5823_v62  ;;  %3918 = vmatmul.bf16.vlgmr.msrb.gmra.mxu3 %v8090_v44  ;;  %v3667_v62 = vpop.f32.mrf.mxu1  ;;  %v7270_v7 = vld [vmem:[%s11464_s1 + $0x864] sm:$0xf]  ;;  %v5756_v8 = vld [vmem:[%s11464_s1 + $0x870] sm:$0xf0] }
  0xca   :  { %3966 = vmatpush.bf16.msra.mxu3 %v5951_v4  ;;  %v3668_v4 = vadd.f32 %v3667_v62, %v3654_v56  ;;  %v7302_v9 = vld [vmem:[%s11464_s1 + $0x964] sm:$0xf]  ;;  %v5884_v11 = vld [vmem:[%s11464_s1 + $0x970] sm:$0xf0] }
  0xcb   :  { %3925 = vmatpush.bf16.msra.mxu0 %v5551_v13  ;;  %v5503_v13 = vor.u32 %v7206_v0, %v5500_v2  ;;  %v7202_v16 = vld [vmem:[%s11464_s1 + $0x644] sm:$0xf]  ;;  %v5484_v18 = vld [vmem:[%s11464_s1 + $0x650] sm:$0xf0] }
  0xcc   :  { %3939 = vmatpush.bf16.msra.mxu1 %v5679_v14  ;;  %v5631_v14 = vor.u32 %v7238_v3, %v5628_v5  ;;  %v7234_v20 = vld [vmem:[%s11464_s1 + $0x744] sm:$0xf]  ;;  %v3681_v22 = vpop.f32.mrf.mxu2  ;;  %v5612_v23 = vld [vmem:[%s11464_s1 + $0x750] sm:$0xf0]  ;;  %v5487_v33 = vor.u32 %v7202_v16, %v5484_v18 }
  0xcd   :  { %3953 = vmatpush.bf16.msra.mxu2 %v5807_v15  ;;  %v5759_v15 = vor.u32 %v7270_v7, %v5756_v8  ;;  %v7266_v24 = vld [vmem:[%s11464_s1 + $0x844] sm:$0xf]  ;;  %v5740_v25 = vld [vmem:[%s11464_s1 + $0x850] sm:$0xf0]  ;;  %v3682_v26 = vadd.f32 %v3681_v22, %v3668_v4  ;;  %v5615_v37 = vor.u32 %v7234_v20, %v5612_v23 }
  0xce   :  { %3967 = vmatpush.bf16.msra.mxu3 %v5935_v21  ;;  %v5887_v21 = vor.u32 %v7302_v9, %v5884_v11  ;;  %v7198_v49 = vld [vmem:[%s11464_s1 + $0x624] sm:$0xf]  ;;  %v5468_v50 = vld [vmem:[%s11464_s1 + $0x630] sm:$0xf0] }
  0xcf   :  { %3926 = vmatpush.bf16.msra.mxu0 %v5535_v27  ;;  %v7298_v27 = vld [vmem:[%s11464_s1 + $0x944] sm:$0xf]  ;;  %v5596_v54 = vld [vmem:[%s11464_s1 + $0x730] sm:$0xf0] }
  0xd0   :  { %3940 = vmatpush.bf16.msra.mxu1 %v5663_v29  ;;  %v5868_v29 = vld [vmem:[%s11464_s1 + $0x950] sm:$0xf0]  ;;  %v7230_v52 = vld [vmem:[%s11464_s1 + $0x724] sm:$0xf] }
  0xd1   :  { %3954 = vmatpush.bf16.msra.mxu2 %v5791_v30  ;;  %v3695_v30 = vpop.f32.mrf.mxu3  ;;  %v5871_v53 = vor.u32 %v7298_v27, %v5868_v29  ;;  %v7262_v55 = vld [vmem:[%s11464_s1 + $0x824] sm:$0xf]  ;;  %v5724_v56 = vld [vmem:[%s11464_s1 + $0x830] sm:$0xf0]  ;;  %v5599_v2 = vor.u32 %v7230_v52, %v5596_v54  ;;  %v9175_v54 = vpop.f32.mrf.mxu0 }
  0xd2   :  { %3968 = vmatpush.bf16.msra.mxu3 %v5919_v42  ;;  %v9083_v34 = vadd.f32 %v3695_v30, %v3682_v26  ;;  %v5743_v42 = vor.u32 %v7266_v24, %v5740_v25  ;;  %v7194_v62 = vld [vmem:[%s11464_s1 + $0x604] sm:$0xf]  ;;  %v5452_v0 = vld [vmem:[%s11464_s1 + $0x610] sm:$0xf0]  ;;  %v5727_v3 = vor.u32 %v7262_v55, %v5724_v56 }
  0xd3   :  { %3927 = vmatpush.bf16.msra.mxu0 %v5519_v57  ;;  %v7294_v57 = vld [vmem:[%s11464_s1 + $0x924] sm:$0xf]  ;;  %v5580_v4 = vld [vmem:[%s11464_s1 + $0x710] sm:$0xf0]  ;;  %v5455_v16 = vor.u32 %v7194_v62, %v5452_v0 }
  0xd4   :  { %3941 = vmatpush.bf16.msra.mxu1 %v5647_v59  ;;  %v5852_v59 = vld [vmem:[%s11464_s1 + $0x930] sm:$0xf0]  ;;  %v7258_v5 = vld [vmem:[%s11464_s1 + $0x804] sm:$0xf] }
  0xd5   :  { %3955 = vmatpush.bf16.msra.mxu2 %v5775_v60  ;;  %v5471_v60 = vor.u32 %v7198_v49, %v5468_v50  ;;  %v5855_v7 = vor.u32 %v7294_v57, %v5852_v59  ;;  %v5708_v8 = vld [vmem:[%s11464_s1 + $0x810] sm:$0xf0]  ;;  %v7290_v9 = vld [vmem:[%s11464_s1 + $0x904] sm:$0xf]  ;;  %v9183_v57 = vpop.f32.mrf.mxu1 }
  0xd6   :  { %3969 = vmatpush.bf16.msra.mxu3 %v5903_v19  ;;  %v7226_v19 = vld [vmem:[%s11464_s1 + $0x704] sm:$0xf]  ;;  %v5836_v11 = vld [vmem:[%s11464_s1 + $0x910] sm:$0xf0]  ;;  %v5711_v23 = vor.u32 %v7258_v5, %v5708_v8 }
  0xd7   :  { %3928 = vmatpush.bf16.msra.mxu0 %v5503_v13  ;;  %v7350_v13 = vld [vmem:[%s11464_s1 + $0xae4] sm:$0xf]  ;;  %v6204_v18 = vld [vmem:[%s11464_s1 + $0xbf0] sm:$0xf0]  ;;  %v5583_v22 = vor.u32 %v7226_v19, %v5580_v4  ;;  %v5839_v26 = vor.u32 %v7290_v9, %v5836_v11 }
  0xd8   :  { %3942 = vmatpush.bf16.msra.mxu1 %v5631_v14  ;;  %v6076_v14 = vld [vmem:[%s11464_s1 + $0xaf0] sm:$0xf0]  ;;  %v7414_v20 = vld [vmem:[%s11464_s1 + $0xce4] sm:$0xf] }
  0xd9   :  { %3956 = vmatpush.bf16.msra.mxu2 %v5759_v15  ;;  %v7382_v15 = vld [vmem:[%s11464_s1 + $0xbe4] sm:$0xf]  ;;  %v6460_v25 = vld [vmem:[%s11464_s1 + $0xdf0] sm:$0xf0]  ;;  %v6079_v27 = vor.u32 %v7350_v13, %v6076_v14 }
  0xda   :  { %3970 = vmatpush.bf16.msra.mxu3 %v5887_v21  ;;  %v6332_v21 = vld [vmem:[%s11464_s1 + $0xcf0] sm:$0xf0]  ;;  %v7446_v24 = vld [vmem:[%s11464_s1 + $0xde4] sm:$0xf]  ;;  %v6207_v29 = vor.u32 %v7382_v15, %v6204_v18 }
  0xdb   :  { %3929 = vmatpush.bf16.msra.mxu0 %v5487_v33  ;;  %v6335_v30 = vor.u32 %v7414_v20, %v6332_v21  ;;  %v7346_v33 = vld [vmem:[%s11464_s1 + $0xac4] sm:$0xf]  ;;  %v6463_v49 = vor.u32 %v7446_v24, %v6460_v25  ;;  %v6188_v50 = vld [vmem:[%s11464_s1 + $0xbd0] sm:$0xf0]  ;;  %v9222_v20 = vpop.f32.mrf.mxu2  ;;  %v9233_v25 = vpop.f32.mrf.mxu3 }
  0xdc   :  { %3943 = vmatpush.bf16.msra.mxu1 %v5615_v37  ;;  %v6060_v37 = vld [vmem:[%s11464_s1 + $0xad0] sm:$0xf0]  ;;  %v7410_v52 = vld [vmem:[%s11464_s1 + $0xcc4] sm:$0xf] }
  0xdd   :  { %3957 = vmatpush.bf16.msra.mxu2 %v5743_v42  ;;  %v7378_v42 = vld [vmem:[%s11464_s1 + $0xbc4] sm:$0xf]  ;;  %v6444_v56 = vld [vmem:[%s11464_s1 + $0xdd0] sm:$0xf0]  ;;  %v6063_v59 = vor.u32 %v7346_v33, %v6060_v37 }
  0xde   :  { %3971 = vmatpush.bf16.msra.mxu3 %v5871_v53  ;;  %v6316_v53 = vld [vmem:[%s11464_s1 + $0xcd0] sm:$0xf0]  ;;  %v7442_v55 = vld [vmem:[%s11464_s1 + $0xdc4] sm:$0xf] }
  0xdf   :  { %3930 = vmatpush.bf16.msra.mxu0 %v5471_v60  ;;  %v6191_v60 = vor.u32 %v7378_v42, %v6188_v50  ;;  %v6319_v62 = vor.u32 %v7410_v52, %v6316_v53  ;;  %v7342_v0 = vld [vmem:[%s11464_s1 + $0xaa4] sm:$0xf]  ;;  %v6447_v19 = vor.u32 %v7442_v55, %v6444_v56  ;;  %v6172_v4 = vld [vmem:[%s11464_s1 + $0xbb0] sm:$0xf0] }
  0xe0   :  { %3944 = vmatpush.bf16.msra.mxu1 %v5599_v2  ;;  %v6044_v2 = vld [vmem:[%s11464_s1 + $0xab0] sm:$0xf0]  ;;  %v7406_v5 = vld [vmem:[%s11464_s1 + $0xca4] sm:$0xf] }
  0xe1   :  { %3958 = vmatpush.bf16.msra.mxu2 %v5727_v3  ;;  %v7374_v3 = vld [vmem:[%s11464_s1 + $0xba4] sm:$0xf]  ;;  %v6428_v9 = vld [vmem:[%s11464_s1 + $0xdb0] sm:$0xf0]  ;;  %v6047_v11 = vor.u32 %v7342_v0, %v6044_v2 }
  0xe2   :  { %3972 = vmatpush.bf16.msra.mxu3 %v5855_v7  ;;  %v6300_v7 = vld [vmem:[%s11464_s1 + $0xcb0] sm:$0xf0]  ;;  %v7438_v8 = vld [vmem:[%s11464_s1 + $0xda4] sm:$0xf]  ;;  %v6175_v13 = vor.u32 %v7374_v3, %v6172_v4 }
  0xe3   :  { %3931 = vmatpush.bf16.msra.mxu0 %v5455_v16  ;;  %v6303_v14 = vor.u32 %v7406_v5, %v6300_v7  ;;  %v7338_v15 = vld [vmem:[%s11464_s1 + $0xa84] sm:$0xf]  ;;  %v6028_v16 = vld [vmem:[%s11464_s1 + $0xa90] sm:$0xf0]  ;;  %v6431_v21 = vor.u32 %v7438_v8, %v6428_v9  ;;  %v3723_v37 = vpop.f32.mrf.mxu1 }
  0xe4   :  { %3945 = vmatpush.bf16.msra.mxu1 %v5583_v22  ;;  %v7370_v18 = vld [vmem:[%s11464_s1 + $0xb84] sm:$0xf]  ;;  %v6156_v22 = vld [vmem:[%s11464_s1 + $0xb90] sm:$0xf0]  ;;  %v6031_v33 = vor.u32 %v7338_v15, %v6028_v16 }
  0xe5   :  { %3959 = vmatpush.bf16.msra.mxu2 %v5711_v23  ;;  %v7402_v23 = vld [vmem:[%s11464_s1 + $0xc84] sm:$0xf]  ;;  %v6284_v24 = vld [vmem:[%s11464_s1 + $0xc90] sm:$0xf0]  ;;  %v6159_v42 = vor.u32 %v7370_v18, %v6156_v22 }
  0xe6   :  { %3973 = vmatpush.bf16.msra.mxu3 %v5839_v26  ;;  %3932 = vmatmul.bf16.vlgmr.msra.gmra.mxu0 %v8088_v43  ;;  %v7334_v50 = vld [vmem:[%s11464_s1 + $0xa64] sm:$0xf]  ;;  %v6012_v52 = vld [vmem:[%s11464_s1 + $0xa70] sm:$0xf0] }
  0xe7   :  { %3980 = vmatpush.bf16.msrb.mxu0 %v6079_v27  ;;  %3946 = vmatmul.bf16.vlgmr.msra.gmra.mxu1 %v8098_v47  ;;  %v3709_v26 = vpop.f32.mrf.mxu0  ;;  %v7434_v27 = vld [vmem:[%s11464_s1 + $0xd84] sm:$0xf]  ;;  %v6140_v56 = vld [vmem:[%s11464_s1 + $0xb70] sm:$0xf0]  ;;  %v6015_v2 = vor.u32 %v7334_v50, %v6012_v52 }
  0xe8   :  { %3994 = vmatpush.bf16.msrb.mxu1 %v6207_v29  ;;  %3960 = vmatmul.bf16.vlgmr.msra.gmra.mxu2 %v8305_v31  ;;  %v6412_v29 = vld [vmem:[%s11464_s1 + $0xd90] sm:$0xf0]  ;;  %v7366_v53 = vld [vmem:[%s11464_s1 + $0xb64] sm:$0xf] }
  0xe9   :  { %4008 = vmatpush.bf16.msrb.mxu2 %v6335_v30  ;;  %3974 = vmatmul.bf16.vlgmr.msra.gmra.mxu3 %v8318_v36  ;;  %v3710_v30 = vadd.f32 %v3709_v26, %v9083_v34  ;;  %v6415_v34 = vor.u32 %v7434_v27, %v6412_v29  ;;  %v6396_v0 = vld [vmem:[%s11464_s1 + $0xd70] sm:$0xf0]  ;;  %v6143_v3 = vor.u32 %v7366_v53, %v6140_v56  ;;  %v7330_v4 = vld [vmem:[%s11464_s1 + $0xa44] sm:$0xf] }
  0xea   :  { %4022 = vmatpush.bf16.msrb.mxu3 %v6463_v49  ;;  %v6287_v49 = vor.u32 %v7402_v23, %v6284_v24  ;;  %v5996_v5 = vld [vmem:[%s11464_s1 + $0xa50] sm:$0xf0]  ;;  %v7362_v7 = vld [vmem:[%s11464_s1 + $0xb44] sm:$0xf] }
  0xeb   :  { %3981 = vmatpush.bf16.msrb.mxu0 %v6063_v59  ;;  %v3724_v55 = vadd.f32 %v3723_v37, %v3710_v30  ;;  %v7398_v59 = vld [vmem:[%s11464_s1 + $0xc64] sm:$0xf]  ;;  %v3751_v16 = vpop.f32.mrf.mxu3  ;;  %v5999_v22 = vor.u32 %v7330_v4, %v5996_v5  ;;  %v5980_v29 = vld [vmem:[%s11464_s1 + $0xa30] sm:$0xf0] }
  0xec   :  { %3995 = vmatpush.bf16.msrb.mxu1 %v6191_v60  ;;  %v6268_v60 = vld [vmem:[%s11464_s1 + $0xc70] sm:$0xf0]  ;;  %v7426_v18 = vld [vmem:[%s11464_s1 + $0xd44] sm:$0xf] }
  0xed   :  { %4009 = vmatpush.bf16.msrb.mxu2 %v6319_v62  ;;  %v7430_v62 = vld [vmem:[%s11464_s1 + $0xd64] sm:$0xf]  ;;  %v3737_v9 = vpop.f32.mrf.mxu2  ;;  %v6108_v37 = vld [vmem:[%s11464_s1 + $0xb30] sm:$0xf0] }
  0xee   :  { %4023 = vmatpush.bf16.msrb.mxu3 %v6447_v19  ;;  %v6271_v19 = vor.u32 %v7398_v59, %v6268_v60  ;;  %v6399_v8 = vor.u32 %v7430_v62, %v6396_v0  ;;  %v3738_v15 = vadd.f32 %v3737_v9, %v3724_v55  ;;  %v7326_v27 = vld [vmem:[%s11464_s1 + $0xa24] sm:$0xf]  ;;  %v6364_v52 = vld [vmem:[%s11464_s1 + $0xd30] sm:$0xf0] }
  0xef   :  { %3982 = vmatpush.bf16.msrb.mxu0 %v6047_v11  ;;  %v6124_v11 = vld [vmem:[%s11464_s1 + $0xb50] sm:$0xf0]  ;;  %v7358_v30 = vld [vmem:[%s11464_s1 + $0xb24] sm:$0xf]  ;;  %v5983_v53 = vor.u32 %v7326_v27, %v5980_v29 }
  0xf0   :  { %3996 = vmatpush.bf16.msrb.mxu1 %v6175_v13  ;;  %v7394_v13 = vld [vmem:[%s11464_s1 + $0xc44] sm:$0xf]  ;;  %v9290_v23 = vadd.f32 %v3751_v16, %v3738_v15  ;;  %v6127_v24 = vor.u32 %v7362_v7, %v6124_v11  ;;  %v5964_v55 = vld [vmem:[%s11464_s1 + $0xa10] sm:$0xf0]  ;;  %v6111_v56 = vor.u32 %v7358_v30, %v6108_v37 }
  0xf1   :  { %4010 = vmatpush.bf16.msrb.mxu2 %v6303_v14  ;;  %v6252_v14 = vld [vmem:[%s11464_s1 + $0xc50] sm:$0xf0]  ;;  %v7422_v50 = vld [vmem:[%s11464_s1 + $0xd24] sm:$0xf] }
  0xf2   :  { %4024 = vmatpush.bf16.msrb.mxu3 %v6431_v21  ;;  %v6380_v21 = vld [vmem:[%s11464_s1 + $0xd50] sm:$0xf0]  ;;  %v6255_v26 = vor.u32 %v7394_v13, %v6252_v14  ;;  %v7354_v60 = vld [vmem:[%s11464_s1 + $0xb04] sm:$0xf] }
  0xf3   :  { %3983 = vmatpush.bf16.msrb.mxu0 %v6031_v33  ;;  %v6383_v33 = vor.u32 %v7426_v18, %v6380_v21  ;;  %v6092_v62 = vld [vmem:[%s11464_s1 + $0xb10] sm:$0xf0]  ;;  %v7386_v0 = vld [vmem:[%s11464_s1 + $0xc04] sm:$0xf] }
  0xf4   :  { %3997 = vmatpush.bf16.msrb.mxu1 %v6159_v42  ;;  %v7390_v42 = vld [vmem:[%s11464_s1 + $0xc24] sm:$0xf]  ;;  %v6348_v4 = vld [vmem:[%s11464_s1 + $0xd10] sm:$0xf0]  ;;  %v6095_v15 = vor.u32 %v7354_v60, %v6092_v62 }
  0xf5   :  { %4011 = vmatpush.bf16.msrb.mxu2 %v6287_v49  ;;  %v6236_v49 = vld [vmem:[%s11464_s1 + $0xc30] sm:$0xf0]  ;;  %v7478_v5 = vld [vmem:[%s11464_s1 + $0xee4] sm:$0xf] }
  0xf6   :  { %4025 = vmatpush.bf16.msrb.mxu3 %v6415_v34  ;;  %v7322_v34 = vld [vmem:[%s11464_s1 + $0xa04] sm:$0xf]  ;;  %v6239_v59 = vor.u32 %v7390_v42, %v6236_v49  ;;  %v6588_v7 = vld [vmem:[%s11464_s1 + $0xef0] sm:$0xf0] }
  0xf7   :  { %3984 = vmatpush.bf16.msrb.mxu0 %v6015_v2  ;;  %v6367_v2 = vor.u32 %v7422_v50, %v6364_v52  ;;  %v5967_v9 = vor.u32 %v7322_v34, %v5964_v55  ;;  %v6716_v11 = vld [vmem:[%s11464_s1 + $0xff0] sm:$0xf0]  ;;  %v7542_v13 = vld [vmem:[%s11464_s1 + $0x10e4] sm:$0xf]  ;;  %v9382_v52 = vpop.f32.mrf.mxu0  ;;  %v9390_v55 = vpop.f32.mrf.mxu1 }
  0xf8   :  { %3998 = vmatpush.bf16.msrb.mxu1 %v6143_v3  ;;  %v6220_v3 = vld [vmem:[%s11464_s1 + $0xc10] sm:$0xf0]  ;;  %v7574_v18 = vld [vmem:[%s11464_s1 + $0x11e4] sm:$0xf] }
  0xf9   :  { %4012 = vmatpush.bf16.msrb.mxu2 %v6271_v19  ;;  %v7418_v19 = vld [vmem:[%s11464_s1 + $0xd04] sm:$0xf]  ;;  %v6844_v14 = vld [vmem:[%s11464_s1 + $0x10f0] sm:$0xf0]  ;;  %v6223_v16 = vor.u32 %v7386_v0, %v6220_v3 }
  0xfa   :  { %4026 = vmatpush.bf16.msrb.mxu3 %v6399_v8  ;;  %v7510_v8 = vld [vmem:[%s11464_s1 + $0xfe4] sm:$0xf]  ;;  %v6972_v21 = vld [vmem:[%s11464_s1 + $0x11f0] sm:$0xf0]  ;;  %v6847_v27 = vor.u32 %v7542_v13, %v6844_v14 }
  0xfb   :  { %3985 = vmatpush.bf16.msrb.mxu0 %v5999_v22  ;;  %v6351_v22 = vor.u32 %v7418_v19, %v6348_v4  ;;  %v7474_v29 = vld [vmem:[%s11464_s1 + $0xec4] sm:$0xf]  ;;  %v6572_v30 = vld [vmem:[%s11464_s1 + $0xed0] sm:$0xf0]  ;;  %v6975_v37 = vor.u32 %v7574_v18, %v6972_v21  ;;  %v9429_v18 = vpop.f32.mrf.mxu2 }
  0xfc   :  { %3999 = vmatpush.bf16.msrb.mxu1 %v6127_v24  ;;  %v6591_v24 = vor.u32 %v7478_v5, %v6588_v7  ;;  %v6700_v42 = vld [vmem:[%s11464_s1 + $0xfd0] sm:$0xf0]  ;;  %v7538_v49 = vld [vmem:[%s11464_s1 + $0x10c4] sm:$0xf] }
  0xfd   :  { %4013 = vmatpush.bf16.msrb.mxu2 %v6255_v26  ;;  %v6719_v26 = vor.u32 %v7510_v8, %v6716_v11  ;;  %v6828_v50 = vld [vmem:[%s11464_s1 + $0x10d0] sm:$0xf0]  ;;  %v7470_v62 = vld [vmem:[%s11464_s1 + $0xea4] sm:$0xf] }
  0xfe   :  { %4027 = vmatpush.bf16.msrb.mxu3 %v6383_v33  ;;  %v7506_v33 = vld [vmem:[%s11464_s1 + $0xfc4] sm:$0xf]  ;;  %v6956_v34 = vld [vmem:[%s11464_s1 + $0x11d0] sm:$0xf0]  ;;  %v6831_v60 = vor.u32 %v7538_v49, %v6828_v50 }
  0xff   :  { %3986 = vmatpush.bf16.msrb.mxu0 %v5983_v53  ;;  %v7570_v53 = vld [vmem:[%s11464_s1 + $0x11c4] sm:$0xf]  ;;  %v6556_v0 = vld [vmem:[%s11464_s1 + $0xeb0] sm:$0xf0] }
 0x100   :  { %4000 = vmatpush.bf16.msrb.mxu1 %v6111_v56  ;;  %v6575_v56 = vor.u32 %v7474_v29, %v6572_v30  ;;  %v6959_v3 = vor.u32 %v7570_v53, %v6956_v34  ;;  %v6684_v19 = vld [vmem:[%s11464_s1 + $0xfb0] sm:$0xf0]  ;;  %v7534_v4 = vld [vmem:[%s11464_s1 + $0x10a4] sm:$0xf] }
 0x101   :  { %4014 = vmatpush.bf16.msrb.mxu2 %v6239_v59  ;;  %v6703_v59 = vor.u32 %v7506_v33, %v6700_v42  ;;  %v6812_v5 = vld [vmem:[%s11464_s1 + $0x10b0] sm:$0xf0]  ;;  %v7566_v7 = vld [vmem:[%s11464_s1 + $0x11a4] sm:$0xf] }
 0x102   :  { %4028 = vmatpush.bf16.msrb.mxu3 %v6367_v2  ;;  %v7502_v2 = vld [vmem:[%s11464_s1 + $0xfa4] sm:$0xf]  ;;  %v6940_v8 = vld [vmem:[%s11464_s1 + $0x11b0] sm:$0xf0]  ;;  %v6815_v13 = vor.u32 %v7534_v4, %v6812_v5 }
 0x103   :  { %3987 = vmatpush.bf16.msrb.mxu0 %v5967_v9  ;;  %v6559_v9 = vor.u32 %v7470_v62, %v6556_v0  ;;  %v6687_v11 = vor.u32 %v7502_v2, %v6684_v19  ;;  %v7466_v14 = vld [vmem:[%s11464_s1 + $0xe84] sm:$0xf]  ;;  %v6943_v21 = vor.u32 %v7566_v7, %v6940_v8  ;;  %v6924_v33 = vld [vmem:[%s11464_s1 + $0x1190] sm:$0xf0] }
 0x104   :  { %4001 = vmatpush.bf16.msrb.mxu1 %v6095_v15  ;;  %v6540_v15 = vld [vmem:[%s11464_s1 + $0xe90] sm:$0xf0]  ;;  %v7562_v30 = vld [vmem:[%s11464_s1 + $0x1184] sm:$0xf]  ;;  %v3779_v49 = vpop.f32.mrf.mxu1 }
 0x105   :  { %4015 = vmatpush.bf16.msrb.mxu2 %v6223_v16  ;;  %v7498_v16 = vld [vmem:[%s11464_s1 + $0xf84] sm:$0xf]  ;;  %v6543_v42 = vor.u32 %v7466_v14, %v6540_v15  ;;  %v6652_v62 = vld [vmem:[%s11464_s1 + $0xf70] sm:$0xf0] }
 0x106   :  { %4029 = vmatpush.bf16.msrb.mxu3 %v6351_v22  ;;  %3988 = vmatmul.bf16.vlgmr.msrb.gmra.mxu0 %v8316_v35  ;;  %v6668_v22 = vld [vmem:[%s11464_s1 + $0xf90] sm:$0xf0]  ;;  %v3765_v29 = vpop.f32.mrf.mxu0  ;;  %v7462_v34 = vld [vmem:[%s11464_s1 + $0xe64] sm:$0xf] }
 0x107   :  { %4036 = vmatpush.bf16.msra.mxu0 %v6591_v24  ;;  %4002 = vmatmul.bf16.vlgmr.msrb.gmra.mxu1 %v8326_v40  ;;  %v7530_v24 = vld [vmem:[%s11464_s1 + $0x1084] sm:$0xf]  ;;  %v6671_v50 = vor.u32 %v7498_v16, %v6668_v22  ;;  %v6780_v2 = vld [vmem:[%s11464_s1 + $0x1070] sm:$0xf0] }
 0x108   :  { %4050 = vmatpush.bf16.msra.mxu1 %v6719_v26  ;;  %4016 = vmatmul.bf16.vlgmr.msrb.gmra.mxu2 %v8533_v32  ;;  %v6796_v26 = vld [vmem:[%s11464_s1 + $0x1090] sm:$0xf0]  ;;  %v7526_v0 = vld [vmem:[%s11464_s1 + $0x1064] sm:$0xf] }
 0x109   :  { %4064 = vmatpush.bf16.msra.mxu2 %v6847_v27  ;;  %4030 = vmatmul.bf16.vlgmr.msrb.gmra.mxu3 %v8546_v41  ;;  %v9440_v27 = vpop.f32.mrf.mxu3  ;;  %v6799_v53 = vor.u32 %v7530_v24, %v6796_v26  ;;  %v6908_v19 = vld [vmem:[%s11464_s1 + $0x1170] sm:$0xf0]  ;;  %v6783_v7 = vor.u32 %v7526_v0, %v6780_v2  ;;  %v7458_v8 = vld [vmem:[%s11464_s1 + $0xe44] sm:$0xf] }
 0x10a   :  { %4078 = vmatpush.bf16.msra.mxu3 %v6975_v37  ;;  %v3766_v37 = vadd.f32 %v3765_v29, %v9290_v23  ;;  %v6927_v23 = vor.u32 %v7562_v30, %v6924_v33  ;;  %v6636_v15 = vld [vmem:[%s11464_s1 + $0xf50] sm:$0xf0]  ;;  %v7522_v16 = vld [vmem:[%s11464_s1 + $0x1044] sm:$0xf] }
 0x10b   :  { %4037 = vmatpush.bf16.msra.mxu0 %v6575_v56  ;;  %v6524_v56 = vld [vmem:[%s11464_s1 + $0xe70] sm:$0xf0]  ;;  %v7554_v26 = vld [vmem:[%s11464_s1 + $0x1144] sm:$0xf] }
 0x10c   :  { %4051 = vmatpush.bf16.msra.mxu1 %v6703_v59  ;;  %v7494_v59 = vld [vmem:[%s11464_s1 + $0xf64] sm:$0xf]  ;;  %v6527_v4 = vor.u32 %v7462_v34, %v6524_v56  ;;  %v6892_v29 = vld [vmem:[%s11464_s1 + $0x1150] sm:$0xf0] }
 0x10d   :  { %4065 = vmatpush.bf16.msra.mxu2 %v6831_v60  ;;  %v3780_v60 = vadd.f32 %v3779_v49, %v3766_v37  ;;  %v6655_v5 = vor.u32 %v7494_v59, %v6652_v62  ;;  %v3793_v14 = vpop.f32.mrf.mxu2  ;;  %v7454_v49 = vld [vmem:[%s11464_s1 + $0xe24] sm:$0xf]  ;;  %v6895_v34 = vor.u32 %v7554_v26, %v6892_v29  ;;  %v6620_v56 = vld [vmem:[%s11464_s1 + $0xf30] sm:$0xf0]  ;;  %v5058_v26 = vld [vmem:[%s11464_s1 + $0x2e8] sm:$0xf] }
 0x10e   :  { %4079 = vmatpush.bf16.msra.mxu3 %v6959_v3  ;;  %v7558_v3 = vld [vmem:[%s11464_s1 + $0x1164] sm:$0xf]  ;;  %v6876_v62 = vld [vmem:[%s11464_s1 + $0x1130] sm:$0xf0]  ;;  %v7097_v29 = vld [vmem:[%s11464_s1 + $0x2f4] sm:$0xf0] }
 0x10f   :  { %4038 = vmatpush.bf16.msra.mxu0 %v6559_v9  ;;  %v6508_v9 = vld [vmem:[%s11464_s1 + $0xe50] sm:$0xf0]  ;;  %v3794_v22 = vadd.f32 %v3793_v14, %v3780_v60  ;;  %v7518_v59 = vld [vmem:[%s11464_s1 + $0x1024] sm:$0xf] }
 0x110   :  { %4052 = vmatpush.bf16.msra.mxu1 %v6687_v11  ;;  %v7490_v11 = vld [vmem:[%s11464_s1 + $0xf44] sm:$0xf]  ;;  %v6511_v30 = vor.u32 %v7458_v8, %v6508_v9  ;;  %v6860_v14 = vld [vmem:[%s11464_s1 + $0x1110] sm:$0xf0] }
 0x111   :  { %4066 = vmatpush.bf16.msra.mxu2 %v6815_v13  ;;  %v6911_v13 = vor.u32 %v7558_v3, %v6908_v19  ;;  %v3807_v24 = vpop.f32.mrf.mxu3  ;;  %v6639_v37 = vor.u32 %v7490_v11, %v6636_v15  ;;  %v7550_v60 = vld [vmem:[%s11464_s1 + $0x1124] sm:$0xf]  ;;  %v6476_v3 = vld [vmem:[%s11464_s1 + $0xe10] sm:$0xf0]  ;;  %v4802_v15 = vld [vmem:[%s11464_s1 + $0xe8] sm:$0xf] }
 0x112   :  { %4080 = vmatpush.bf16.msra.mxu3 %v6943_v21  ;;  %v6764_v21 = vld [vmem:[%s11464_s1 + $0x1050] sm:$0xf0]  ;;  %v9497_v33 = vadd.f32 %v3807_v24, %v3794_v22  ;;  %v7450_v2 = vld [vmem:[%s11464_s1 + $0xe04] sm:$0xf]  ;;  %v6879_v9 = vor.u32 %v7550_v60, %v6876_v62  ;;  %v7065_v24 = vld [vmem:[%s11464_s1 + $0x1f4] sm:$0xf0] }
 0x113   :  { %4039 = vmatpush.bf16.msra.mxu0 %v6543_v42  ;;  %v6767_v42 = vor.u32 %v7522_v16, %v6764_v21  ;;  %v7514_v8 = vld [vmem:[%s11464_s1 + $0x1004] sm:$0xf]  ;;  %v6732_v11 = vld [vmem:[%s11464_s1 + $0x1010] sm:$0xf0]  ;;  %v7033_v16 = vld [vmem:[%s11464_s1 + $0xf4] sm:$0xf0]  ;;  %v6479_v22 = vor.u32 %v7450_v2, %v6476_v3 }
 0x114   :  { %4053 = vmatpush.bf16.msra.mxu1 %v6671_v50  ;;  %v6492_v50 = vld [vmem:[%s11464_s1 + $0xe30] sm:$0xf0]  ;;  %v4930_v21 = vld [vmem:[%s11464_s1 + $0x1e8] sm:$0xf]  ;;  %v7093_v3 = vld [vmem:[%s11464_s1 + $0x2d4] sm:$0xf0] }
 0x115   :  { %4067 = vmatpush.bf16.msra.mxu2 %v6799_v53  ;;  %v7486_v53 = vld [vmem:[%s11464_s1 + $0xf24] sm:$0xf]  ;;  %v6495_v0 = vor.u32 %v7454_v49, %v6492_v50  ;;  %v7129_v49 = vld [vmem:[%s11464_s1 + $0x3f4] sm:$0xf0]  ;;  %v4914_v60 = vld [vmem:[%s11464_s1 + $0x1c8] sm:$0xf] }
 0x116   :  { %4081 = vmatpush.bf16.msra.mxu3 %v6927_v23  ;;  %v6748_v23 = vld [vmem:[%s11464_s1 + $0x1030] sm:$0xf0]  ;;  %v6623_v19 = vor.u32 %v7486_v53, %v6620_v56  ;;  %v4803_v53 = vor.u32 %v7033_v16, %v4802_v15  ;;  %v5059_v56 = vor.u32 %v7097_v29, %v5058_v26  ;;  %v5042_v2 = vld [vmem:[%s11464_s1 + $0x2c8] sm:$0xf]  ;;  %v7121_v29 = vld [vmem:[%s11464_s1 + $0x3b4] sm:$0xf0] }
 0x117   :  { %4040 = vmatpush.bf16.msra.mxu0 %v6527_v4  ;;  %v6751_v4 = vor.u32 %v7518_v59, %v6748_v23  ;;  %v4786_v59 = vld [vmem:[%s11464_s1 + $0xc8] sm:$0xf]  ;;  %v7029_v23 = vld [vmem:[%s11464_s1 + $0xd4] sm:$0xf0] }
 0x118   :  { %4054 = vmatpush.bf16.msra.mxu1 %v6655_v5  ;;  %v7482_v5 = vld [vmem:[%s11464_s1 + $0xf04] sm:$0xf]  ;;  %v4898_v15 = vld [vmem:[%s11464_s1 + $0x1a8] sm:$0xf] }
 0x119   :  { %4068 = vmatpush.bf16.msra.mxu2 %v6783_v7  ;;  %v6604_v7 = vld [vmem:[%s11464_s1 + $0xf10] sm:$0xf0]  ;;  %v5154_v26 = vld [vmem:[%s11464_s1 + $0x3a8] sm:$0xf] }
 0x11a   :  { %4082 = vmatpush.bf16.msra.mxu3 %v6911_v13  ;;  %v7546_v13 = vld [vmem:[%s11464_s1 + $0x1104] sm:$0xf] }
 0x11b   :  { %4041 = vmatpush.bf16.msra.mxu0 %v6511_v30  ;;  %v6607_v30 = vor.u32 %v7482_v5, %v6604_v7  ;;  %v6863_v50 = vor.u32 %v7546_v13, %v6860_v14  ;;  %v7125_v5 = vld [vmem:[%s11464_s1 + $0x3d4] sm:$0xf0]  ;;  %v9597_v7 = vpop.f32.mrf.mxu1  ;;  %v4770_v13 = vld [vmem:[%s11464_s1 + $0xa8] sm:$0xf] }
 0x11c   :  { %4055 = vmatpush.bf16.msra.mxu1 %v6639_v37  ;;  %v6735_v37 = vor.u32 %v7514_v8, %v6732_v11  ;;  %v4787_v8 = vor.u32 %v7029_v23, %v4786_v59  ;;  %v5043_v11 = vor.u32 %v7093_v3, %v5042_v2  ;;  %v7025_v14 = vld [vmem:[%s11464_s1 + $0xb4] sm:$0xf0]  ;;  %v5010_v59 = vld [vmem:[%s11464_s1 + $0x288] sm:$0xf] }
 0x11d   :  { %4069 = vmatpush.bf16.msra.mxu2 %v6767_v42  ;;  %v5186_v42 = vld [vmem:[%s11464_s1 + $0x3e8] sm:$0xf]  ;;  %v7085_v23 = vld [vmem:[%s11464_s1 + $0x294] sm:$0xf0] }
 0x11e   :  { %4083 = vmatpush.bf16.msra.mxu3 %v6895_v34  ;;  %v4931_v34 = vor.u32 %v7065_v24, %v4930_v21  ;;  %v5187_v62 = vor.u32 %v7129_v49, %v5186_v42  ;;  %v7057_v21 = vld [vmem:[%s11464_s1 + $0x1b4] sm:$0xf0]  ;;  %v4754_v49 = vld [vmem:[%s11464_s1 + $0x88] sm:$0xf] }
 0x11f   :  { %4042 = vmatpush.bf16.msra.mxu0 %v6495_v0  ;;  %v7061_v0 = vld [vmem:[%s11464_s1 + $0x1d4] sm:$0xf0] }
 0x120   :  { %4056 = vmatpush.bf16.msra.mxu1 %v6623_v19  ;;  %v9589_v19 = vpop.f32.mrf.mxu0  ;;  %v7089_v24 = vld [vmem:[%s11464_s1 + $0x2b4] sm:$0xf0] }
 0x121   :  { %4070 = vmatpush.bf16.msra.mxu2 %v6751_v4  ;;  %v5170_v4 = vld [vmem:[%s11464_s1 + $0x3c8] sm:$0xf] }
 0x122   :  { %4084 = vmatpush.bf16.msra.mxu3 %v6879_v9  ;;  %v4915_v9 = vor.u32 %v7061_v0, %v4914_v60  ;;  %v5171_v16 = vor.u32 %v7125_v5, %v5170_v4  ;;  %v7117_v0 = vld [vmem:[%s11464_s1 + $0x394] sm:$0xf0] }
 0x123   :  { %4043 = vmatpush.bf16.msra.mxu0 %v6479_v22  ;;  %v5026_v22 = vld [vmem:[%s11464_s1 + $0x2a8] sm:$0xf] }
 0x124   :  { %4057 = vmatpush.bf16.msra.mxu1 %v6607_v30  ;;  %v4771_v30 = vor.u32 %v7025_v14, %v4770_v13  ;;  %v5027_v42 = vor.u32 %v7089_v24, %v5026_v22  ;;  %v3835_v4 = vpop.f32.mrf.mxu1  ;;  %v4866_v13 = vld [vmem:[%s11464_s1 + $0x168] sm:$0xf]  ;;  %v7113_v24 = vld [vmem:[%s11464_s1 + $0x374] sm:$0xf0] }
 0x125   :  { %4071 = vmatpush.bf16.msra.mxu2 %v6735_v37  ;;  %v4899_v37 = vor.u32 %v7057_v21, %v4898_v15  ;;  %v7049_v15 = vld [vmem:[%s11464_s1 + $0x174] sm:$0xf0]  ;;  %v5122_v22 = vld [vmem:[%s11464_s1 + $0x368] sm:$0xf] }
 0x126   :  { %4085 = vmatpush.bf16.msra.mxu3 %v6863_v50  ;;  %4044 = vmatmul.bf16.vlgmr.msra.gmra.mxu0 %v8544_v38  ;;  %v7021_v50 = vld [vmem:[%s11464_s1 + $0x94] sm:$0xf0] }
 0x127   :  { %4092 = vmatpush.bf16.msrb.mxu0 %v4803_v53  ;;  %4058 = vmatmul.bf16.vlgmr.msra.gmra.mxu1 %v8554_v46  ;;  %v4882_v53 = vld [vmem:[%s11464_s1 + $0x188] sm:$0xf]  ;;  %v4755_v3 = vor.u32 %v7021_v50, %v4754_v49  ;;  %v7081_v21 = vld [vmem:[%s11464_s1 + $0x274] sm:$0xf0]  ;;  %v5123_v50 = vor.u32 %v7113_v24, %v5122_v22 }
 0x128   :  { %4106 = vmatpush.bf16.msrb.mxu1 %v4931_v34  ;;  %4072 = vmatmul.bf16.vlgmr.msra.gmra.mxu2 %v8749_v45  ;;  %v5155_v34 = vor.u32 %v7121_v29, %v5154_v26  ;;  %v3821_v60 = vpop.f32.mrf.mxu0  ;;  %v4867_v29 = vor.u32 %v7049_v15, %v4866_v13  ;;  %v4850_v49 = vld [vmem:[%s11464_s1 + $0x148] sm:$0xf] }
 0x129   :  { %4120 = vmatpush.bf16.msrb.mxu2 %v5059_v56  ;;  %4086 = vmatmul.bf16.vlgmr.msra.gmra.mxu3 %v8760_v51  ;;  %v7053_v56 = vld [vmem:[%s11464_s1 + $0x194] sm:$0xf0]  ;;  %v3822_v2 = vadd.f32 %v3821_v60, %v9497_v33  ;;  %v5090_v13 = vld [vmem:[%s11464_s1 + $0x328] sm:$0xf] }
 0x12a   :  { %4134 = vmatpush.bf16.msrb.mxu3 %v5187_v62  ;;  %v5138_v62 = vld [vmem:[%s11464_s1 + $0x388] sm:$0xf]  ;;  %v4883_v5 = vor.u32 %v7053_v56, %v4882_v53  ;;  %v7045_v53 = vld [vmem:[%s11464_s1 + $0x154] sm:$0xf0] }
 0x12b   :  { %4093 = vmatpush.bf16.msrb.mxu0 %v4787_v8  ;;  %v5011_v8 = vor.u32 %v7085_v23, %v5010_v59  ;;  %v5139_v33 = vor.u32 %v7117_v0, %v5138_v62  ;;  %v9661_v14 = vadd.f32 %v3835_v4, %v3822_v2  ;;  %v7077_v56 = vld [vmem:[%s11464_s1 + $0x254] sm:$0xf0]  ;;  %v5106_v59 = vld [vmem:[%s11464_s1 + $0x348] sm:$0xf]  ;;  %v4851_v62 = vor.u32 %v7045_v53, %v4850_v49 }
 0x12c   :  { %4107 = vmatpush.bf16.msrb.mxu1 %v4915_v9  ;;  %v4738_v9 = vld [vmem:[%s11464_s1 + $0x68] sm:$0xf]  ;;  %v7109_v23 = vld [vmem:[%s11464_s1 + $0x354] sm:$0xf0] }
 0x12d   :  { %4121 = vmatpush.bf16.msrb.mxu2 %v5043_v11  ;;  %v7017_v11 = vld [vmem:[%s11464_s1 + $0x74] sm:$0xf0]  ;;  %v4706_v2 = vld [vmem:[%s11464_s1 + $0x28] sm:$0xf] }
 0x12e   :  { %4135 = vmatpush.bf16.msrb.mxu3 %v5171_v16  ;;  %v4994_v16 = vld [vmem:[%s11464_s1 + $0x268] sm:$0xf]  ;;  %v4739_v26 = vor.u32 %v7017_v11, %v4738_v9  ;;  %v7073_v11 = vld [vmem:[%s11464_s1 + $0x234] sm:$0xf0] }
 0x12f   :  { %4094 = vmatpush.bf16.msrb.mxu0 %v4771_v30  ;;  %v4995_v30 = vor.u32 %v7081_v21, %v4994_v16  ;;  %v4834_v4 = vld [vmem:[%s11464_s1 + $0x128] sm:$0xf]  ;;  %v7005_v21 = vld [vmem:[%s11464_s1 + $0x14] sm:$0xf0] }
 0x130   :  { %4108 = vmatpush.bf16.msrb.mxu1 %v4899_v37  ;;  %v4722_v37 = vld [vmem:[%s11464_s1 + $0x48] sm:$0xf] }
 0x131   :  { %4122 = vmatpush.bf16.msrb.mxu2 %v5027_v42  ;;  %v7013_v42 = vld [vmem:[%s11464_s1 + $0x54] sm:$0xf0]  ;;  %v4962_v9 = vld [vmem:[%s11464_s1 + $0x228] sm:$0xf] }
 0x132   :  { %4136 = vmatpush.bf16.msrb.mxu3 %v5155_v34  ;;  %v4978_v34 = vld [vmem:[%s11464_s1 + $0x248] sm:$0xf]  ;;  %v4723_v60 = vor.u32 %v7013_v42, %v4722_v37  ;;  %v4963_v24 = vor.u32 %v7073_v11, %v4962_v9  ;;  %v7069_v42 = vld [vmem:[%s11464_s1 + $0x214] sm:$0xf0] }
 0x133   :  { %4095 = vmatpush.bf16.msrb.mxu0 %v4755_v3  ;;  %v4979_v0 = vor.u32 %v7077_v56, %v4978_v34  ;;  %v7009_v3 = vld [vmem:[%s11464_s1 + $0x34] sm:$0xf0]  ;;  %v4690_v16 = vld [vmem:[%s11464_s1 + $0x8] sm:$0xf] }
 0x134   :  { %4109 = vmatpush.bf16.msrb.mxu1 %v4883_v5  ;;  %v5107_v5 = vor.u32 %v7109_v23, %v5106_v59  ;;  %v4707_v15 = vor.u32 %v7009_v3, %v4706_v2  ;;  %v5074_v49 = vld [vmem:[%s11464_s1 + $0x308] sm:$0xf]  ;;  %v7161_v34 = vld [vmem:[%s11464_s1 + $0x4f4] sm:$0xf0]  ;;  %v4691_v59 = vor.u32 %v7005_v21, %v4690_v16 }
 0x135   :  { %4123 = vmatpush.bf16.msrb.mxu2 %v5011_v8  ;;  %v7041_v8 = vld [vmem:[%s11464_s1 + $0x134] sm:$0xf0]  ;;  %v5314_v53 = vld [vmem:[%s11464_s1 + $0x4e8] sm:$0xf] }
 0x136   :  { %4137 = vmatpush.bf16.msrb.mxu3 %v5139_v33  ;;  %v7105_v33 = vld [vmem:[%s11464_s1 + $0x334] sm:$0xf0]  ;;  %v4835_v22 = vor.u32 %v7041_v8, %v4834_v4  ;;  %v5442_v56 = vld [vmem:[%s11464_s1 + $0x5e8] sm:$0xf]  ;;  %v5315_v8 = vor.u32 %v7161_v34, %v5314_v53 }
 0x137   :  { %4096 = vmatpush.bf16.msrb.mxu0 %v4739_v26  ;;  %v4818_v26 = vld [vmem:[%s11464_s1 + $0x108] sm:$0xf]  ;;  %v5091_v37 = vor.u32 %v7105_v33, %v5090_v13  ;;  %v7193_v23 = vld [vmem:[%s11464_s1 + $0x5f4] sm:$0xf0] }
 0x138   :  { %4110 = vmatpush.bf16.msrb.mxu1 %v4867_v29  ;;  %v7037_v29 = vld [vmem:[%s11464_s1 + $0x114] sm:$0xf0]  ;;  %v5698_v3 = vld [vmem:[%s11464_s1 + $0x7e8] sm:$0xf]  ;;  %v5443_v9 = vor.u32 %v7193_v23, %v5442_v56 }
 0x139   :  { %4124 = vmatpush.bf16.msrb.mxu2 %v4995_v30  ;;  %v4946_v30 = vld [vmem:[%s11464_s1 + $0x208] sm:$0xf]  ;;  %v7257_v4 = vld [vmem:[%s11464_s1 + $0x7f4] sm:$0xf0] }
 0x13a   :  { %4138 = vmatpush.bf16.msrb.mxu3 %v5123_v50  ;;  %v7101_v50 = vld [vmem:[%s11464_s1 + $0x314] sm:$0xf0]  ;;  %v4947_v2 = vor.u32 %v7069_v42, %v4946_v30  ;;  %v5298_v13 = vld [vmem:[%s11464_s1 + $0x4c8] sm:$0xf]  ;;  %v5699_v16 = vor.u32 %v7257_v4, %v5698_v3 }
 0x13b   :  { %4097 = vmatpush.bf16.msrb.mxu0 %v4723_v60  ;;  %v5570_v60 = vld [vmem:[%s11464_s1 + $0x6e8] sm:$0xf]  ;;  %v7157_v33 = vld [vmem:[%s11464_s1 + $0x4d4] sm:$0xf0] }
 0x13c   :  { %4111 = vmatpush.bf16.msrb.mxu1 %v4851_v62  ;;  %v7225_v62 = vld [vmem:[%s11464_s1 + $0x6f4] sm:$0xf0]  ;;  %v5299_v30 = vor.u32 %v7157_v33, %v5298_v13  ;;  %v5410_v53 = vld [vmem:[%s11464_s1 + $0x5a8] sm:$0xf] }
 0x13d   :  { %4125 = vmatpush.bf16.msrb.mxu2 %v4979_v0  ;;  %v4819_v0 = vor.u32 %v7037_v29, %v4818_v26  ;;  %v5571_v11 = vor.u32 %v7225_v62, %v5570_v60  ;;  %v7189_v21 = vld [vmem:[%s11464_s1 + $0x5d4] sm:$0xf0]  ;;  %v5682_v26 = vld [vmem:[%s11464_s1 + $0x7c8] sm:$0xf] }
 0x13e   :  { %4139 = vmatpush.bf16.msrb.mxu3 %v5107_v5  ;;  %v5075_v5 = vor.u32 %v7101_v50, %v5074_v49  ;;  %v7253_v29 = vld [vmem:[%s11464_s1 + $0x7d4] sm:$0xf0]  ;;  %v5282_v49 = vld [vmem:[%s11464_s1 + $0x4a8] sm:$0xf] }
 0x13f   :  { %4098 = vmatpush.bf16.msrb.mxu0 %v4707_v15  ;;  %v5426_v15 = vld [vmem:[%s11464_s1 + $0x5c8] sm:$0xf]  ;;  %v7153_v50 = vld [vmem:[%s11464_s1 + $0x4b4] sm:$0xf0]  ;;  %v5683_v34 = vor.u32 %v7253_v29, %v5682_v26 }
 0x140   :  { %4112 = vmatpush.bf16.msrb.mxu1 %v4835_v22  ;;  %v5554_v22 = vld [vmem:[%s11464_s1 + $0x6c8] sm:$0xf]  ;;  %v7185_v56 = vld [vmem:[%s11464_s1 + $0x5b4] sm:$0xf0] }
 0x141   :  { %4126 = vmatpush.bf16.msrb.mxu2 %v4963_v24  ;;  %v7221_v24 = vld [vmem:[%s11464_s1 + $0x6d4] sm:$0xf0]  ;;  %v5666_v60 = vld [vmem:[%s11464_s1 + $0x7a8] sm:$0xf] }
 0x142   :  { %4140 = vmatpush.bf16.msrb.mxu3 %v5091_v37  ;;  %v5427_v37 = vor.u32 %v7189_v21, %v5426_v15  ;;  %v5555_v42 = vor.u32 %v7221_v24, %v5554_v22  ;;  %v7217_v23 = vld [vmem:[%s11464_s1 + $0x6b4] sm:$0xf0]  ;;  %v5266_v4 = vld [vmem:[%s11464_s1 + $0x488] sm:$0xf] }
 0x143   :  { %4099 = vmatpush.bf16.msrb.mxu0 %v4691_v59  ;;  %v5538_v59 = vld [vmem:[%s11464_s1 + $0x6a8] sm:$0xf]  ;;  %v7249_v62 = vld [vmem:[%s11464_s1 + $0x7b4] sm:$0xf0] }
 0x144   :  { %4113 = vmatpush.bf16.msrb.mxu1 %v4819_v0  ;;  %v5283_v0 = vor.u32 %v7153_v50, %v5282_v49  ;;  %v5539_v3 = vor.u32 %v7217_v23, %v5538_v59  ;;  %v5522_v13 = vld [vmem:[%s11464_s1 + $0x688] sm:$0xf]  ;;  %v7213_v33 = vld [vmem:[%s11464_s1 + $0x694] sm:$0xf0] }
 0x145   :  { %4127 = vmatpush.bf16.msrb.mxu2 %v4947_v2  ;;  %v5411_v2 = vor.u32 %v7185_v56, %v5410_v53  ;;  %v5650_v15 = vld [vmem:[%s11464_s1 + $0x788] sm:$0xf]  ;;  %v5523_v24 = vor.u32 %v7213_v33, %v5522_v13  ;;  %v7145_v29 = vld [vmem:[%s11464_s1 + $0x474] sm:$0xf0] }
 0x146   :  { %4141 = vmatpush.bf16.msrb.mxu3 %v5075_v5  ;;  %4100 = vmatmul.bf16.vlgmr.msrb.gmra.mxu0 %v7855_v58  ;;  %v7149_v5 = vld [vmem:[%s11464_s1 + $0x494] sm:$0xf0]  ;;  %v5250_v26 = vld [vmem:[%s11464_s1 + $0x468] sm:$0xf] }
 0x147   :  { %4148 = vmatpush.bf16.msra.mxu0 %v5315_v8  ;;  %4114 = vmatmul.bf16.vlgmr.msrb.gmra.mxu1 %v7891_v10  ;;  %v5394_v8 = vld [vmem:[%s11464_s1 + $0x588] sm:$0xf]  ;;  %v5267_v21 = vor.u32 %v7149_v5, %v5266_v4  ;;  %v7209_v50 = vld [vmem:[%s11464_s1 + $0x674] sm:$0xf0]  ;;  %v5251_v56 = vor.u32 %v7145_v29, %v5250_v26 }
 0x148   :  { %4162 = vmatpush.bf16.msra.mxu1 %v5443_v9  ;;  %4128 = vmatmul.bf16.vlgmr.msrb.gmra.mxu2 %v7869_v1  ;;  %v5667_v9 = vor.u32 %v7249_v62, %v5666_v60  ;;  %v5506_v49 = vld [vmem:[%s11464_s1 + $0x668] sm:$0xf]  ;;  %v7141_v62 = vld [vmem:[%s11464_s1 + $0x454] sm:$0xf0] }
 0x149   :  { %4176 = vmatpush.bf16.msra.mxu2 %v5571_v11  ;;  %4142 = vmatmul.bf16.vlgmr.msrb.gmra.mxu3 %v7905_v17  ;;  %v7181_v11 = vld [vmem:[%s11464_s1 + $0x594] sm:$0xf0]  ;;  %v5634_v53 = vld [vmem:[%s11464_s1 + $0x768] sm:$0xf]  ;;  %v5507_v23 = vor.u32 %v7209_v50, %v5506_v49 }
 0x14a   :  { %4190 = vmatpush.bf16.msra.mxu3 %v5699_v16  ;;  %v7245_v16 = vld [vmem:[%s11464_s1 + $0x794] sm:$0xf0]  ;;  %v5395_v22 = vor.u32 %v7181_v11, %v5394_v8  ;;  %v5234_v60 = vld [vmem:[%s11464_s1 + $0x448] sm:$0xf] }
 0x14b   :  { %4149 = vmatpush.bf16.msra.mxu0 %v5299_v30  ;;  %v5378_v30 = vld [vmem:[%s11464_s1 + $0x568] sm:$0xf]  ;;  %v7205_v5 = vld [vmem:[%s11464_s1 + $0x654] sm:$0xf0]  ;;  %v5235_v11 = vor.u32 %v7141_v62, %v5234_v60  ;;  %v9937_v60 = vpop.f32.mrf.mxu2 }
 0x14c   :  { %4163 = vmatpush.bf16.msra.mxu1 %v5427_v37  ;;  %v5651_v37 = vor.u32 %v7245_v16, %v5650_v15  ;;  %v5490_v4 = vld [vmem:[%s11464_s1 + $0x648] sm:$0xf]  ;;  %v7137_v16 = vld [vmem:[%s11464_s1 + $0x434] sm:$0xf0] }
 0x14d   :  { %4177 = vmatpush.bf16.msra.mxu2 %v5555_v42  ;;  %v7177_v42 = vld [vmem:[%s11464_s1 + $0x574] sm:$0xf0]  ;;  %v5618_v8 = vld [vmem:[%s11464_s1 + $0x748] sm:$0xf]  ;;  %v5491_v33 = vor.u32 %v7205_v5, %v5490_v4  ;;  %v9948_v4 = vpop.f32.mrf.mxu3 }
 0x14e   :  { %4191 = vmatpush.bf16.msra.mxu3 %v5683_v34  ;;  %v7241_v34 = vld [vmem:[%s11464_s1 + $0x774] sm:$0xf0]  ;;  %v5379_v59 = vor.u32 %v7177_v42, %v5378_v30  ;;  %v5218_v15 = vld [vmem:[%s11464_s1 + $0x428] sm:$0xf] }
 0x14f   :  { %4150 = vmatpush.bf16.msra.mxu0 %v5283_v0  ;;  %v5362_v0 = vld [vmem:[%s11464_s1 + $0x548] sm:$0xf]  ;;  %v7201_v29 = vld [vmem:[%s11464_s1 + $0x634] sm:$0xf0]  ;;  %v5219_v42 = vor.u32 %v7137_v16, %v5218_v15 }
 0x150   :  { %4164 = vmatpush.bf16.msra.mxu1 %v5411_v2  ;;  %v5635_v2 = vor.u32 %v7241_v34, %v5634_v53  ;;  %v5474_v26 = vld [vmem:[%s11464_s1 + $0x628] sm:$0xf]  ;;  %v7133_v50 = vld [vmem:[%s11464_s1 + $0x414] sm:$0xf0] }
 0x151   :  { %4178 = vmatpush.bf16.msra.mxu2 %v5539_v3  ;;  %v7173_v3 = vld [vmem:[%s11464_s1 + $0x554] sm:$0xf0]  ;;  %v5602_v30 = vld [vmem:[%s11464_s1 + $0x728] sm:$0xf]  ;;  %v5475_v34 = vor.u32 %v7201_v29, %v5474_v26 }
 0x152   :  { %4192 = vmatpush.bf16.msra.mxu3 %v5667_v9  ;;  %v7237_v9 = vld [vmem:[%s11464_s1 + $0x754] sm:$0xf0]  ;;  %v5363_v13 = vor.u32 %v7173_v3, %v5362_v0  ;;  %v5202_v49 = vld [vmem:[%s11464_s1 + $0x408] sm:$0xf] }
 0x153   :  { %4151 = vmatpush.bf16.msra.mxu0 %v5267_v21  ;;  %v5346_v21 = vld [vmem:[%s11464_s1 + $0x528] sm:$0xf]  ;;  %v7197_v0 = vld [vmem:[%s11464_s1 + $0x614] sm:$0xf0] }
 0x154   :  { %4165 = vmatpush.bf16.msra.mxu1 %v5395_v22  ;;  %v5619_v22 = vor.u32 %v7237_v9, %v5618_v8  ;;  %v7229_v3 = vld [vmem:[%s11464_s1 + $0x714] sm:$0xf0]  ;;  %v5826_v5 = vld [vmem:[%s11464_s1 + $0x8e8] sm:$0xf] }
 0x155   :  { %4179 = vmatpush.bf16.msra.mxu2 %v5523_v24  ;;  %v7169_v24 = vld [vmem:[%s11464_s1 + $0x534] sm:$0xf0]  ;;  %v5954_v9 = vld [vmem:[%s11464_s1 + $0x9e8] sm:$0xf] }
 0x156   :  { %4193 = vmatpush.bf16.msra.mxu3 %v5651_v37  ;;  %v7233_v37 = vld [vmem:[%s11464_s1 + $0x734] sm:$0xf0]  ;;  %v5347_v53 = vor.u32 %v7169_v24, %v5346_v21 }
 0x157   :  { %4152 = vmatpush.bf16.msra.mxu0 %v5251_v56  ;;  %v5330_v56 = vld [vmem:[%s11464_s1 + $0x508] sm:$0xf]  ;;  %v5603_v62 = vor.u32 %v7233_v37, %v5602_v30  ;;  %v7289_v8 = vld [vmem:[%s11464_s1 + $0x8f4] sm:$0xf0] }
 0x158   :  { %4166 = vmatpush.bf16.msra.mxu1 %v5379_v59  ;;  %v7165_v59 = vld [vmem:[%s11464_s1 + $0x514] sm:$0xf0]  ;;  %v5827_v29 = vor.u32 %v7289_v8, %v5826_v5 }
 0x159   :  { %4180 = vmatpush.bf16.msra.mxu2 %v5507_v23  ;;  %v5458_v23 = vld [vmem:[%s11464_s1 + $0x608] sm:$0xf]  ;;  %v7353_v15 = vld [vmem:[%s11464_s1 + $0xaf4] sm:$0xf0]  ;;  %v5331_v16 = vor.u32 %v7165_v59, %v5330_v56 }
 0x15a   :  { %4194 = vmatpush.bf16.msra.mxu3 %v5635_v2  ;;  %v5586_v2 = vld [vmem:[%s11464_s1 + $0x708] sm:$0xf]  ;;  %v5459_v21 = vor.u32 %v7197_v0, %v5458_v23  ;;  %v7385_v24 = vld [vmem:[%s11464_s1 + $0xbf4] sm:$0xf0]  ;;  %v9998_v0 = vpop.f32.mrf.mxu2 }
 0x15b   :  { %4153 = vmatpush.bf16.msra.mxu0 %v5235_v11  ;;  %v5203_v11 = vor.u32 %v7133_v50, %v5202_v49  ;;  %v5587_v26 = vor.u32 %v7229_v3, %v5586_v2  ;;  %v7285_v49 = vld [vmem:[%s11464_s1 + $0x8d4] sm:$0xf0]  ;;  %v5938_v50 = vld [vmem:[%s11464_s1 + $0x9c8] sm:$0xf]  ;;  %v10000_v3 = vpop.f32.mrf.mxu3 }
 0x15c   :  { %4167 = vmatpush.bf16.msra.mxu1 %v5363_v13  ;;  %v7321_v13 = vld [vmem:[%s11464_s1 + $0x9f4] sm:$0xf0]  ;;  %v6066_v56 = vld [vmem:[%s11464_s1 + $0xac8] sm:$0xf] }
 0x15d   :  { %4181 = vmatpush.bf16.msra.mxu2 %v5491_v33  ;;  %v6082_v33 = vld [vmem:[%s11464_s1 + $0xae8] sm:$0xf]  ;;  %v5955_v30 = vor.u32 %v7321_v13, %v5954_v9  ;;  %v7349_v59 = vld [vmem:[%s11464_s1 + $0xad4] sm:$0xf0] }
 0x15e   :  { %4195 = vmatpush.bf16.msra.mxu3 %v5619_v22  ;;  %v6210_v22 = vld [vmem:[%s11464_s1 + $0xbe8] sm:$0xf]  ;;  %v6083_v37 = vor.u32 %v7353_v15, %v6082_v33  ;;  %v6067_v8 = vor.u32 %v7349_v59, %v6066_v56  ;;  %v7313_v15 = vld [vmem:[%s11464_s1 + $0x9b4] sm:$0xf0] }
 0x15f   :  { %4154 = vmatpush.bf16.msra.mxu0 %v5219_v42  ;;  %v5810_v42 = vld [vmem:[%s11464_s1 + $0x8c8] sm:$0xf]  ;;  %v7309_v56 = vld [vmem:[%s11464_s1 + $0x994] sm:$0xf0] }
 0x160   :  { %4168 = vmatpush.bf16.msra.mxu1 %v5347_v53  ;;  %v6211_v53 = vor.u32 %v7385_v24, %v6210_v22  ;;  %v6194_v23 = vld [vmem:[%s11464_s1 + $0xbc8] sm:$0xf]  ;;  %v5811_v2 = vor.u32 %v7285_v49, %v5810_v42  ;;  %v7377_v24 = vld [vmem:[%s11464_s1 + $0xbb4] sm:$0xf0] }
 0x161   :  { %4182 = vmatpush.bf16.msra.mxu2 %v5475_v34  ;;  %v7317_v34 = vld [vmem:[%s11464_s1 + $0x9d4] sm:$0xf0]  ;;  %v5794_v9 = vld [vmem:[%s11464_s1 + $0x8a8] sm:$0xf] }
 0x162   :  { %4196 = vmatpush.bf16.msra.mxu3 %v5603_v62  ;;  %v7381_v62 = vld [vmem:[%s11464_s1 + $0xbd4] sm:$0xf0]  ;;  %v5939_v5 = vor.u32 %v7317_v34, %v5938_v50  ;;  %v5922_v13 = vld [vmem:[%s11464_s1 + $0x9a8] sm:$0xf] }
 0x163   :  { %4155 = vmatpush.bf16.msra.mxu0 %v5203_v11  ;;  %v7281_v11 = vld [vmem:[%s11464_s1 + $0x8b4] sm:$0xf0]  ;;  %v6195_v33 = vor.u32 %v7381_v62, %v6194_v23  ;;  %v6178_v22 = vld [vmem:[%s11464_s1 + $0xba8] sm:$0xf] }
 0x164   :  { %4169 = vmatpush.bf16.msra.mxu1 %v5331_v16  ;;  %v6050_v16 = vld [vmem:[%s11464_s1 + $0xaa8] sm:$0xf]  ;;  %v7277_v49 = vld [vmem:[%s11464_s1 + $0x894] sm:$0xf0]  ;;  %v6179_v34 = vor.u32 %v7377_v24, %v6178_v22 }
 0x165   :  { %4183 = vmatpush.bf16.msra.mxu2 %v5459_v21  ;;  %v7345_v21 = vld [vmem:[%s11464_s1 + $0xab4] sm:$0xf0]  ;;  %v5778_v42 = vld [vmem:[%s11464_s1 + $0x888] sm:$0xf] }
 0x166   :  { %4197 = vmatpush.bf16.msra.mxu3 %v5587_v26  ;;  %4156 = vmatmul.bf16.vlgmr.msra.gmra.mxu0 %v8077_v39  ;;  %v5795_v26 = vor.u32 %v7281_v11, %v5794_v9  ;;  %v5906_v50 = vld [vmem:[%s11464_s1 + $0x988] sm:$0xf]  ;;  %v7341_v23 = vld [vmem:[%s11464_s1 + $0xa94] sm:$0xf0] }
 0x167   :  { %4204 = vmatpush.bf16.msrb.mxu0 %v5827_v29  ;;  %4170 = vmatmul.bf16.vlgmr.msra.gmra.mxu1 %v8090_v44  ;;  %v10030_v29 = vpop.f32.mrf.mxu0  ;;  %v6034_v59 = vld [vmem:[%s11464_s1 + $0xa88] sm:$0xf]  ;;  %v7337_v24 = vld [vmem:[%s11464_s1 + $0xa74] sm:$0xf0] }
 0x168   :  { %4218 = vmatpush.bf16.msrb.mxu1 %v5955_v30  ;;  %4184 = vmatmul.bf16.vlgmr.msra.gmra.mxu2 %v8088_v43  ;;  %v5923_v30 = vor.u32 %v7313_v15, %v5922_v13  ;;  %v6162_v62 = vld [vmem:[%s11464_s1 + $0xb88] sm:$0xf]  ;;  %v6035_v9 = vor.u32 %v7341_v23, %v6034_v59  ;;  %v7273_v13 = vld [vmem:[%s11464_s1 + $0x874] sm:$0xf0]  ;;  %v10067_v15 = vpop.f32.mrf.mxu2 }
 0x169   :  { %4232 = vmatpush.bf16.msrb.mxu2 %v6083_v37  ;;  %4198 = vmatmul.bf16.vlgmr.msra.gmra.mxu3 %v8098_v47  ;;  %v6051_v37 = vor.u32 %v7345_v21, %v6050_v16  ;;  %v5762_v11 = vld [vmem:[%s11464_s1 + $0x868] sm:$0xf]  ;;  %v7305_v21 = vld [vmem:[%s11464_s1 + $0x974] sm:$0xf0] }
 0x16a   :  { %4246 = vmatpush.bf16.msrb.mxu3 %v6211_v53  ;;  %v10041_v53 = vpop.f32.mrf.mxu1  ;;  %v6018_v22 = vld [vmem:[%s11464_s1 + $0xa68] sm:$0xf]  ;;  %v7269_v59 = vld [vmem:[%s11464_s1 + $0x854] sm:$0xf0] }
 0x16b   :  { %4205 = vmatpush.bf16.msrb.mxu0 %v5811_v2  ;;  %v7373_v2 = vld [vmem:[%s11464_s1 + $0xb94] sm:$0xf0]  ;;  %v5874_v23 = vld [vmem:[%s11464_s1 + $0x948] sm:$0xf] }
 0x16c   :  { %4219 = vmatpush.bf16.msrb.mxu1 %v5939_v5  ;;  %v5779_v5 = vor.u32 %v7277_v49, %v5778_v42  ;;  %v6163_v16 = vor.u32 %v7373_v2, %v6162_v62  ;;  %v5763_v42 = vor.u32 %v7273_v13, %v5762_v11  ;;  %v6130_v11 = vld [vmem:[%s11464_s1 + $0xb48] sm:$0xf]  ;;  %v7365_v13 = vld [vmem:[%s11464_s1 + $0xb54] sm:$0xf0] }
 0x16d   :  { %4233 = vmatpush.bf16.msrb.mxu2 %v6067_v8  ;;  %v5907_v8 = vor.u32 %v7309_v56, %v5906_v50  ;;  %v5746_v56 = vld [vmem:[%s11464_s1 + $0x848] sm:$0xf]  ;;  %v7481_v17 = vld [vmem:[%s11464_s1 + $0xef4] sm:$0xf0] }
 0x16e   :  { %4247 = vmatpush.bf16.msrb.mxu3 %v6195_v33  ;;  %v5890_v33 = vld [vmem:[%s11464_s1 + $0x968] sm:$0xf] }
 0x16f   :  { %4206 = vmatpush.bf16.msrb.mxu0 %v5795_v26  ;;  %v10078_v26 = vpop.f32.mrf.mxu3  ;;  %v10086_v49 = vpop.f32.mrf.mxu0  ;;  %v5891_v50 = vor.u32 %v7305_v21, %v5890_v33  ;;  %v5747_v33 = vor.u32 %v7269_v59, %v5746_v56  ;;  %v10135_v56 = vld [vmem:[%s11466_s2] sm:$0xf]  ;;  %v5842_v47 = vld [vmem:[%s11464_s1 + $0x908] sm:$0xf] }
 0x170   :  { %4220 = vmatpush.bf16.msrb.mxu1 %v5923_v30  ;;  %v6146_v30 = vld [vmem:[%s11464_s1 + $0xb68] sm:$0xf] }
 0x171   :  { %4234 = vmatpush.bf16.msrb.mxu2 %v6051_v37  ;;  %v7369_v37 = vld [vmem:[%s11464_s1 + $0xb74] sm:$0xf0] }
 0x172   :  { %4248 = vmatpush.bf16.msrb.mxu3 %v6179_v34  ;;  %v6019_v34 = vor.u32 %v7337_v24, %v6018_v22  ;;  %v10097_v62 = vpop.f32.mrf.mxu1  ;;  %v6147_v2 = vor.u32 %v7369_v37, %v6146_v30  ;;  %v5730_v22 = vld [vmem:[%s11464_s1 + $0x828] sm:$0xf]  ;;  %v7265_v24 = vld [vmem:[%s11464_s1 + $0x834] sm:$0xf0]  ;;  %v6131_v37 = vor.u32 %v7365_v13, %v6130_v11 }
 0x173   :  { %4207 = vmatpush.bf16.msrb.mxu0 %v5779_v5  ;;  %v7301_v5 = vld [vmem:[%s11464_s1 + $0x954] sm:$0xf0]  ;;  %v5858_v30 = vld [vmem:[%s11464_s1 + $0x928] sm:$0xf] }
 0x174   :  { %4221 = vmatpush.bf16.msrb.mxu1 %v5907_v8  ;;  %v6002_v8 = vld [vmem:[%s11464_s1 + $0xa48] sm:$0xf]  ;;  %v7261_v11 = vld [vmem:[%s11464_s1 + $0x814] sm:$0xf0] }
 0x175   :  { %4235 = vmatpush.bf16.msrb.mxu2 %v6035_v9  ;;  %v7333_v9 = vld [vmem:[%s11464_s1 + $0xa54] sm:$0xf0] }
 0x176   :  { %4249 = vmatpush.bf16.msrb.mxu3 %v6163_v16  ;;  %v5875_v16 = vor.u32 %v7301_v5, %v5874_v23  ;;  %v6003_v21 = vor.u32 %v7333_v9, %v6002_v8  ;;  %v6114_v23 = vld [vmem:[%s11464_s1 + $0xb28] sm:$0xf]  ;;  %v10144_v5 = vpop.f32.mrf.mxu2  ;;  %v5731_v8 = vor.u32 %v7265_v24, %v5730_v22 }
 0x177   :  { %4208 = vmatpush.bf16.msrb.mxu0 %v5763_v42  ;;  %v7297_v42 = vld [vmem:[%s11464_s1 + $0x934] sm:$0xf0]  ;;  %v5714_v9 = vld [vmem:[%s11464_s1 + $0x808] sm:$0xf]  ;;  %v10152_v13 = vpop.f32.mrf.mxu3 }
 0x178   :  { %4222 = vmatpush.bf16.msrb.mxu1 %v5891_v50  ;;  %v5986_v50 = vld [vmem:[%s11464_s1 + $0xa28] sm:$0xf]  ;;  %v5859_v6 = vor.u32 %v7297_v42, %v5858_v30  ;;  %v7357_v30 = vld [vmem:[%s11464_s1 + $0xb14] sm:$0xf0]  ;;  %v11491_v42 = vperm.slane %v10135_v56, 1  ;;  %v5715_v44 = vor.u32 %v7261_v11, %v5714_v9 }
 0x179   :  { %4236 = vmatpush.bf16.msrb.mxu2 %v6019_v34  ;;  %v7329_v34 = vld [vmem:[%s11464_s1 + $0xa34] sm:$0xf0]  ;;  %v5970_v22 = vld [vmem:[%s11464_s1 + $0xa08] sm:$0xf] }
 0x17a   :  { %4250 = vmatpush.bf16.msrb.mxu3 %v6147_v2  ;;  %v7361_v2 = vld [vmem:[%s11464_s1 + $0xb34] sm:$0xf0]  ;;  %v5987_v59 = vor.u32 %v7329_v34, %v5986_v50  ;;  %v3850_v50 = vadd.f32 %v9998_v0, %v11491_v42  ;;  %v10175_v34 = vpop.f32.mrf.mxu0  ;;  %v10186_v43 = vpop.f32.mrf.mxu1  ;;  %v6594_v42 = vld [vmem:[%s11464_s1 + $0xee8] sm:$0xf] }
 0x17b   :  { %4209 = vmatpush.bf16.msrb.mxu0 %v5747_v33  ;;  %v7293_v33 = vld [vmem:[%s11464_s1 + $0x914] sm:$0xf0]  ;;  %v6115_v24 = vor.u32 %v7361_v2, %v6114_v23  ;;  %v6466_v2 = vld [vmem:[%s11464_s1 + $0xde8] sm:$0xf]  ;;  %v6595_v45 = vor.u32 %v7481_v17, %v6594_v42 }
 0x17c   :  { %4223 = vmatpush.bf16.msrb.mxu1 %v5875_v16  ;;  %v7325_v16 = vld [vmem:[%s11464_s1 + $0xa14] sm:$0xf0]  ;;  %v5843_v39 = vor.u32 %v7293_v33, %v5842_v47  ;;  %v3864_v58 = vadd.f32 %v10000_v3, %v3850_v50  ;;  %v6322_v47 = vld [vmem:[%s11464_s1 + $0xcc8] sm:$0xf]  ;;  %v11492_v33 = vperm.slane %v8780_v61, 0 }
 0x17d   :  { %4237 = vmatpush.bf16.msrb.mxu2 %v6003_v21  ;;  %v6098_v21 = vld [vmem:[%s11464_s1 + $0xb08] sm:$0xf]  ;;  %v7417_v23 = vld [vmem:[%s11464_s1 + $0xcf4] sm:$0xf0]  ;;  %v5971_v1 = vor.u32 %v7325_v16, %v5970_v22 }
 0x17e   :  { %4251 = vmatpush.bf16.msrb.mxu3 %v6131_v37  ;;  %v6338_v37 = vld [vmem:[%s11464_s1 + $0xce8] sm:$0xf]  ;;  %v7449_v0 = vld [vmem:[%s11464_s1 + $0xdf4] sm:$0xf0]  ;;  %v6099_v11 = vor.u32 %v7357_v30, %v6098_v21  ;;  %v3600_v22 = vadd.f32 %v8950_v63, %v11492_v33  ;;  %v10231_v63 = vpop.f32.mrf.mxu2  ;;  %v3878_v30 = vadd.f32 %v10086_v49, %v3864_v58  ;;  %v11493_v49 = vperm.slane %v10135_v56, 1 }
 0x17f   :  { %4210 = vmatpush.bf16.msrb.mxu0 %v5731_v8  ;;  %v6722_v8 = vld [vmem:[%s11464_s1 + $0xfe8] sm:$0xf]  ;;  %v7513_v9 = vld [vmem:[%s11464_s1 + $0xff4] sm:$0xf0]  ;;  %v6339_v10 = vor.u32 %v7417_v23, %v6338_v37  ;;  %v6467_v51 = vor.u32 %v7449_v0, %v6466_v2  ;;  %v10234_v50 = vpop.f32.mrf.mxu3 }
 0x180   :  { %4224 = vmatpush.bf16.msrb.mxu1 %v5859_v6  ;;  %v7413_v6 = vld [vmem:[%s11464_s1 + $0xcd4] sm:$0xf0]  ;;  %v6723_v3 = vor.u32 %v7513_v9, %v6722_v8  ;;  %v6706_v61 = vld [vmem:[%s11464_s1 + $0xfc8] sm:$0xf] }
 0x181   :  { %4238 = vmatpush.bf16.msrb.mxu2 %v5987_v59  ;;  %v6450_v59 = vld [vmem:[%s11464_s1 + $0xdc8] sm:$0xf]  ;;  %v7445_v17 = vld [vmem:[%s11464_s1 + $0xdd4] sm:$0xf0]  ;;  %v6323_v21 = vor.u32 %v7413_v6, %v6322_v47  ;;  %v3892_v47 = vadd.f32 %v10097_v62, %v3878_v30 }
 0x182   :  { %4252 = vmatpush.bf16.msrb.mxu3 %v6115_v24  ;;  %v6578_v24 = vld [vmem:[%s11464_s1 + $0xec8] sm:$0xf]  ;;  %v7477_v16 = vld [vmem:[%s11464_s1 + $0xed4] sm:$0xf0]  ;;  %v10236_v37 = vpop.f32.mrf.mxu0 }
 0x183   :  { %4211 = vmatpush.bf16.msrb.mxu0 %v5715_v44  ;;  %v7509_v44 = vld [vmem:[%s11464_s1 + $0xfd4] sm:$0xf0]  ;;  %v6306_v23 = vld [vmem:[%s11464_s1 + $0xca8] sm:$0xf] }
 0x184   :  { %4225 = vmatpush.bf16.msrb.mxu1 %v5843_v39  ;;  %v6579_v39 = vor.u32 %v7477_v16, %v6578_v24  ;;  %v7409_v2 = vld [vmem:[%s11464_s1 + $0xcb4] sm:$0xf0]  ;;  %v6434_v58 = vld [vmem:[%s11464_s1 + $0xda8] sm:$0xf]  ;;  %v6707_v0 = vor.u32 %v7509_v44, %v6706_v61 }
 0x185   :  { %4239 = vmatpush.bf16.msrb.mxu2 %v5971_v1  ;;  %v6451_v1 = vor.u32 %v7445_v17, %v6450_v59  ;;  %v7441_v42 = vld [vmem:[%s11464_s1 + $0xdb4] sm:$0xf0]  ;;  %v6562_v8 = vld [vmem:[%s11464_s1 + $0xea8] sm:$0xf] }
 0x186   :  { %4253 = vmatpush.bf16.msrb.mxu3 %v6099_v11  ;;  %4212 = vmatmul.bf16.vlgmr.msrb.gmra.mxu0 %v8305_v31  ;;  %v7505_v9 = vld [vmem:[%s11464_s1 + $0xfb4] sm:$0xf0]  ;;  %v6307_v11 = vor.u32 %v7409_v2, %v6306_v23  ;;  %v6435_v6 = vor.u32 %v7441_v42, %v6434_v58  ;;  %v6290_v33 = vld [vmem:[%s11464_s1 + $0xc88] sm:$0xf] }
 0x187   :  { %4260 = vmatpush.bf16.msra.mxu0 %v6339_v10  ;;  %v3614_v10 = vadd.f32 %v8976_v12, %v3600_v22  ;;  %v7473_v12 = vld [vmem:[%s11464_s1 + $0xeb4] sm:$0xf0]  ;;  %4226 = vmatmul.bf16.vlgmr.msrb.gmra.mxu1 %v8318_v36  ;;  %v6546_v61 = vld [vmem:[%s11464_s1 + $0xe88] sm:$0xf] }
 0x188   :  { %4274 = vmatpush.bf16.msra.mxu1 %v6467_v51  ;;  %v10251_v51 = vpop.f32.mrf.mxu1  ;;  %4240 = vmatmul.bf16.vlgmr.msrb.gmra.mxu2 %v8316_v35  ;;  %v6563_v59 = vor.u32 %v7473_v12, %v6562_v8  ;;  %v7405_v22 = vld [vmem:[%s11464_s1 + $0xc94] sm:$0xf0]  ;;  %v6274_v58 = vld [vmem:[%s11464_s1 + $0xc68] sm:$0xf] }
 0x189   :  { %4288 = vmatpush.bf16.msra.mxu2 %v6595_v45  ;;  %v3852_v45 = vadd.f32 %v10067_v15, %v11493_v49  ;;  %v6690_v15 = vld [vmem:[%s11464_s1 + $0xfa8] sm:$0xf]  ;;  %4254 = vmatmul.bf16.vlgmr.msrb.gmra.mxu3 %v8326_v40  ;;  %v3628_v17 = vadd.f32 %v9006_v28, %v3614_v10  ;;  %v7437_v16 = vld [vmem:[%s11464_s1 + $0xd94] sm:$0xf0]  ;;  %v6291_v30 = vor.u32 %v7405_v22, %v6290_v33 }
 0x18a   :  { %4302 = vmatpush.bf16.msra.mxu3 %v6723_v3  ;;  %v6418_v3 = vld [vmem:[%s11464_s1 + $0xd88] sm:$0xf]  ;;  %v6691_v24 = vor.u32 %v7505_v9, %v6690_v15  ;;  %v7469_v44 = vld [vmem:[%s11464_s1 + $0xe94] sm:$0xf0]  ;;  %v10324_v15 = vpop.f32.mrf.mxu0 }
 0x18b   :  { %4261 = vmatpush.bf16.msra.mxu0 %v6323_v21  ;;  %v3866_v62 = vadd.f32 %v10078_v26, %v3852_v45  ;;  %v6674_v28 = vld [vmem:[%s11464_s1 + $0xf88] sm:$0xf]  ;;  %v7501_v26 = vld [vmem:[%s11464_s1 + $0xf94] sm:$0xf0]  ;;  %v10299_v21 = vpop.f32.mrf.mxu2  ;;  %v6419_v23 = vor.u32 %v7437_v16, %v6418_v3  ;;  %v6547_v2 = vor.u32 %v7469_v44, %v6546_v61 }
 0x18c   :  { %4275 = vmatpush.bf16.msra.mxu1 %v6451_v1  ;;  %v3906_v1 = vadd.f32 %v10144_v5, %v3892_v47  ;;  %v7401_v10 = vld [vmem:[%s11464_s1 + $0xc74] sm:$0xf0]  ;;  %v6402_v49 = vld [vmem:[%s11464_s1 + $0xd68] sm:$0xf]  ;;  %v3642_v5 = vadd.f32 %v9017_v48, %v3628_v17 }
 0x18d   :  { %4289 = vmatpush.bf16.msra.mxu2 %v6579_v39  ;;  %v10302_v39 = vpop.f32.mrf.mxu3  ;;  %v3880_v45 = vadd.f32 %v10175_v34, %v3866_v62  ;;  %v7433_v42 = vld [vmem:[%s11464_s1 + $0xd74] sm:$0xf0]  ;;  %v6530_v8 = vld [vmem:[%s11464_s1 + $0xe68] sm:$0xf] }
 0x18e   :  { %4303 = vmatpush.bf16.msra.mxu3 %v6707_v0  ;;  %v6675_v0 = vor.u32 %v7501_v26, %v6674_v28  ;;  %v7465_v12 = vld [vmem:[%s11464_s1 + $0xe74] sm:$0xf0]  ;;  %v6658_v48 = vld [vmem:[%s11464_s1 + $0xf68] sm:$0xf]  ;;  %v3920_v47 = vadd.f32 %v10152_v13, %v3906_v1  ;;  %v3656_v17 = vadd.f32 %v9175_v54, %v3642_v5 }
 0x18f   :  { %4262 = vmatpush.bf16.msra.mxu0 %v6307_v11  ;;  %v7497_v34 = vld [vmem:[%s11464_s1 + $0xf74] sm:$0xf0]  ;;  %v6275_v11 = vor.u32 %v7401_v10, %v6274_v58  ;;  %v6258_v33 = vld [vmem:[%s11464_s1 + $0xc48] sm:$0xf]  ;;  %v3894_v13 = vadd.f32 %v10186_v43, %v3880_v45 }
 0x190   :  { %4276 = vmatpush.bf16.msra.mxu1 %v6435_v6  ;;  %v10332_v9 = vpop.f32.mrf.mxu1  ;;  %v6403_v6 = vor.u32 %v7433_v42, %v6402_v49  ;;  %v7397_v22 = vld [vmem:[%s11464_s1 + $0xc54] sm:$0xf0]  ;;  %v6386_v3 = vld [vmem:[%s11464_s1 + $0xd48] sm:$0xf]  ;;  %v6659_v62 = vor.u32 %v7497_v34, %v6658_v48  ;;  %v3934_v44 = vadd.f32 %v10236_v37, %v3920_v47 }
 0x191   :  { %4290 = vmatpush.bf16.msra.mxu2 %v6563_v59  ;;  %v6531_v59 = vor.u32 %v7465_v12, %v6530_v8  ;;  %v6514_v16 = vld [vmem:[%s11464_s1 + $0xe48] sm:$0xf]  ;;  %v7461_v61 = vld [vmem:[%s11464_s1 + $0xe54] sm:$0xf0]  ;;  %v3908_v28 = vadd.f32 %v10231_v63, %v3894_v13  ;;  %v6259_v26 = vor.u32 %v7397_v22, %v6258_v33  ;;  %v3670_v63 = vadd.f32 %v9183_v57, %v3656_v17 }
 0x192   :  { %4304 = vmatpush.bf16.msra.mxu3 %v6691_v24  ;;  %v7429_v24 = vld [vmem:[%s11464_s1 + $0xd54] sm:$0xf0]  ;;  %v6642_v43 = vld [vmem:[%s11464_s1 + $0xf48] sm:$0xf]  ;;  %v6515_v1 = vor.u32 %v7461_v61, %v6514_v16  ;;  %v3989_v57 = vpop.f32.mrf.mxu0 }
 0x193   :  { %4263 = vmatpush.bf16.msra.mxu0 %v6291_v30  ;;  %v7493_v54 = vld [vmem:[%s11464_s1 + $0xf54] sm:$0xf0]  ;;  %v6387_v30 = vor.u32 %v7429_v24, %v6386_v3  ;;  %v6242_v37 = vld [vmem:[%s11464_s1 + $0xc28] sm:$0xf]  ;;  %v10373_v58 = vpop.f32.mrf.mxu2  ;;  %v3684_v48 = vadd.f32 %v9222_v20, %v3670_v63  ;;  %v3922_v34 = vadd.f32 %v10234_v50, %v3908_v28  ;;  %v7031_v28 = vld [vmem:[%s11464_s1 + $0xec] sm:$0xf] }
 0x194   :  { %4277 = vmatpush.bf16.msra.mxu1 %v6419_v23  ;;  %v7393_v23 = vld [vmem:[%s11464_s1 + $0xc34] sm:$0xf0]  ;;  %v6643_v10 = vor.u32 %v7493_v54, %v6642_v43  ;;  %v6498_v5 = vld [vmem:[%s11464_s1 + $0xe28] sm:$0xf] }
 0x195   :  { %4291 = vmatpush.bf16.msra.mxu2 %v6547_v2  ;;  %v6370_v2 = vld [vmem:[%s11464_s1 + $0xd28] sm:$0xf]  ;;  %v7425_v49 = vld [vmem:[%s11464_s1 + $0xd34] sm:$0xf0]  ;;  %v10385_v42 = vpop.f32.mrf.mxu3  ;;  %v6243_v47 = vor.u32 %v7393_v23, %v6242_v37  ;;  %v3936_v24 = vadd.f32 %v10324_v15, %v3922_v34  ;;  %v3698_v43 = vadd.f32 %v9233_v25, %v3684_v48  ;;  %v7063_v37 = vld [vmem:[%s11464_s1 + $0x1ec] sm:$0xf] }
 0x196   :  { %4305 = vmatpush.bf16.msra.mxu3 %v6675_v0  ;;  %v7457_v45 = vld [vmem:[%s11464_s1 + $0xe34] sm:$0xf0]  ;;  %v3948_v0 = vadd.f32 %v10251_v51, %v3934_v44  ;;  %v6626_v8 = vld [vmem:[%s11464_s1 + $0xf28] sm:$0xf]  ;;  %v6371_v33 = vor.u32 %v7425_v49, %v6370_v2  ;;  %v4932_v23 = vld [vmem:[%s11464_s1 + $0x1f8] sm:$0xf0] }
 0x197   :  { %4264 = vmatpush.bf16.msra.mxu0 %v6275_v11  ;;  %v7489_v12 = vld [vmem:[%s11464_s1 + $0xf34] sm:$0xf0]  ;;  %v6226_v51 = vld [vmem:[%s11464_s1 + $0xc08] sm:$0xf]  ;;  %v6499_v20 = vor.u32 %v7457_v45, %v6498_v5  ;;  %v3712_v2 = vadd.f32 %v9382_v52, %v3698_v43  ;;  %v4935_v34 = vor.u32 %v7063_v37, %v4932_v23 }
 0x198   :  { %4278 = vmatpush.bf16.msra.mxu1 %v6403_v6  ;;  %v10395_v11 = vpop.f32.mrf.mxu1  ;;  %v7389_v6 = vld [vmem:[%s11464_s1 + $0xc14] sm:$0xf0]  ;;  %v6354_v50 = vld [vmem:[%s11464_s1 + $0xd08] sm:$0xf]  ;;  %v6627_v17 = vor.u32 %v7489_v12, %v6626_v8 }
 0x199   :  { %4292 = vmatpush.bf16.msra.mxu2 %v6531_v59  ;;  %v3962_v59 = vadd.f32 %v10299_v21, %v3948_v0  ;;  %v7421_v22 = vld [vmem:[%s11464_s1 + $0xd14] sm:$0xf0]  ;;  %v6482_v3 = vld [vmem:[%s11464_s1 + $0xe08] sm:$0xf]  ;;  %v6227_v54 = vor.u32 %v7389_v6, %v6226_v51 }
 0x19a   :  { %4306 = vmatpush.bf16.msra.mxu3 %v6659_v62  ;;  %v7453_v21 = vld [vmem:[%s11464_s1 + $0xe14] sm:$0xf0]  ;;  %v6610_v13 = vld [vmem:[%s11464_s1 + $0xf08] sm:$0xf]  ;;  %v3991_v6 = vpop.f32.mrf.mxu0 }
 0x19b   :  { %4265 = vmatpush.bf16.msra.mxu0 %v6259_v26  ;;  %v7485_v62 = vld [vmem:[%s11464_s1 + $0xf14] sm:$0xf0]  ;;  %v6850_v16 = vld [vmem:[%s11464_s1 + $0x10e8] sm:$0xf]  ;;  %v4804_v26 = vld [vmem:[%s11464_s1 + $0xf8] sm:$0xf0]  ;;  %v6483_v25 = vor.u32 %v7453_v21, %v6482_v3  ;;  %v4017_v63 = vpop.f32.mrf.mxu2 }
 0x19c   :  { %4279 = vmatpush.bf16.msra.mxu1 %v6387_v30  ;;  %v7545_v61 = vld [vmem:[%s11464_s1 + $0x10f4] sm:$0xf0]  ;;  %v6978_v44 = vld [vmem:[%s11464_s1 + $0x11e8] sm:$0xf]  ;;  %v3976_v30 = vadd.f32 %v10302_v39, %v3962_v59  ;;  %v3950_v39 = vadd.f32 %v10332_v9, %v3936_v24  ;;  %v4807_v8 = vor.u32 %v7031_v28, %v4804_v26  ;;  %v7059_v59 = vld [vmem:[%s11464_s1 + $0x1cc] sm:$0xf] }
 0x19d   :  { %4293 = vmatpush.bf16.msra.mxu2 %v6515_v1  ;;  %v7577_v15 = vld [vmem:[%s11464_s1 + $0x11f4] sm:$0xf0]  ;;  %v6355_v1 = vor.u32 %v7421_v22, %v6354_v50  ;;  %v6851_v49 = vor.u32 %v7545_v61, %v6850_v16  ;;  %v4031_v45 = vpop.f32.mrf.mxu3  ;;  %v6834_v12 = vld [vmem:[%s11464_s1 + $0x10c8] sm:$0xf]  ;;  %v7023_v16 = vld [vmem:[%s11464_s1 + $0xac] sm:$0xf] }
 0x19e   :  { %4307 = vmatpush.bf16.msra.mxu3 %v6643_v10  ;;  %v6611_v10 = vor.u32 %v7485_v62, %v6610_v13  ;;  %v3990_v5 = vadd.f32 %v3989_v57, %v3976_v30  ;;  %v6979_v0 = vor.u32 %v7577_v15, %v6978_v44  ;;  %v7541_v48 = vld [vmem:[%s11464_s1 + $0x10d4] sm:$0xf0]  ;;  %v6962_v52 = vld [vmem:[%s11464_s1 + $0x11c8] sm:$0xf]  ;;  %v7027_v57 = vld [vmem:[%s11464_s1 + $0xcc] sm:$0xf]  ;;  %v3964_v51 = vadd.f32 %v10373_v58, %v3950_v39 }
 0x19f   :  { %4266 = vmatpush.bf16.msra.mxu0 %v6243_v47  ;;  %v7573_v9 = vld [vmem:[%s11464_s1 + $0x11d4] sm:$0xf0]  ;;  %v4788_v47 = vld [vmem:[%s11464_s1 + $0xd8] sm:$0xf0]  ;;  %v6835_v22 = vor.u32 %v7541_v48, %v6834_v12  ;;  %v6818_v21 = vld [vmem:[%s11464_s1 + $0x10a8] sm:$0xf] }
 0x1a0   :  { %4280 = vmatpush.bf16.msra.mxu1 %v6371_v33  ;;  %v4916_v33 = vld [vmem:[%s11464_s1 + $0x1d8] sm:$0xf0]  ;;  %v4005_v50 = vpop.f32.mrf.mxu1  ;;  %v4004_v3 = vadd.f32 %v10395_v11, %v3990_v5  ;;  %v6963_v58 = vor.u32 %v7573_v9, %v6962_v52  ;;  %v7537_v13 = vld [vmem:[%s11464_s1 + $0x10b4] sm:$0xf0]  ;;  %v3978_v44 = vadd.f32 %v10385_v42, %v3964_v51  ;;  %v6802_v42 = vld [vmem:[%s11464_s1 + $0x1088] sm:$0xf] }
 0x1a1   :  { %4294 = vmatpush.bf16.msra.mxu2 %v6499_v20  ;;  %v3726_v20 = vadd.f32 %v9390_v55, %v3712_v2  ;;  %v6946_v55 = vld [vmem:[%s11464_s1 + $0x11a8] sm:$0xf]  ;;  %v4919_v11 = vor.u32 %v7059_v59, %v4916_v33  ;;  %v7569_v24 = vld [vmem:[%s11464_s1 + $0x11b4] sm:$0xf0]  ;;  %v4772_v61 = vld [vmem:[%s11464_s1 + $0xb8] sm:$0xf0]  ;;  %v6819_v15 = vor.u32 %v7537_v13, %v6818_v21 }
 0x1a2   :  { %4308 = vmatpush.bf16.msra.mxu3 %v6627_v17  ;;  %v4791_v17 = vor.u32 %v7027_v57, %v4788_v47  ;;  %v4018_v43 = vadd.f32 %v4017_v63, %v4004_v3  ;;  %v3992_v28 = vadd.f32 %v3991_v6, %v3978_v44  ;;  %v6947_v26 = vor.u32 %v7569_v24, %v6946_v55  ;;  %v7565_v37 = vld [vmem:[%s11464_s1 + $0x1194] sm:$0xf0]  ;;  %v6786_v47 = vld [vmem:[%s11464_s1 + $0x1068] sm:$0xf]  ;;  %v7015_v33 = vld [vmem:[%s11464_s1 + $0x6c] sm:$0xf] }
 0x1a3   :  { %4267 = vmatpush.bf16.msra.mxu0 %v6227_v54  ;;  %v3740_v62 = vadd.f32 %v9429_v18, %v3726_v20  ;;  %v7055_v18 = vld [vmem:[%s11464_s1 + $0x1ac] sm:$0xf]  ;;  %v4900_v54 = vld [vmem:[%s11464_s1 + $0x1b8] sm:$0xf0]  ;;  %v4775_v30 = vor.u32 %v7023_v16, %v4772_v61  ;;  %v4019_v2 = vpop.f32.mrf.mxu2  ;;  %v7529_v51 = vld [vmem:[%s11464_s1 + $0x1074] sm:$0xf0] }
 0x1a4   :  { %4281 = vmatpush.bf16.msra.mxu1 %v6355_v1  ;;  %v7533_v1 = vld [vmem:[%s11464_s1 + $0x1094] sm:$0xf0]  ;;  %v4903_v63 = vor.u32 %v7055_v18, %v4900_v54  ;;  %v4032_v39 = vadd.f32 %v4031_v45, %v4018_v43  ;;  %v4006_v9 = vadd.f32 %v4005_v50, %v3992_v28  ;;  %v4740_v20 = vld [vmem:[%s11464_s1 + $0x78] sm:$0xf0]  ;;  %v6770_v21 = vld [vmem:[%s11464_s1 + $0x1048] sm:$0xf] }
 0x1a5   :  { %4295 = vmatpush.bf16.msra.mxu2 %v6483_v25  ;;  %v6930_v25 = vld [vmem:[%s11464_s1 + $0x1188] sm:$0xf]  ;;  %v3754_v23 = vadd.f32 %v9440_v27, %v3740_v62  ;;  %v4033_v5 = vpop.f32.mrf.mxu3  ;;  %v4884_v27 = vld [vmem:[%s11464_s1 + $0x198] sm:$0xf0]  ;;  %v6803_v48 = vor.u32 %v7533_v1, %v6802_v42  ;;  %v7561_v59 = vld [vmem:[%s11464_s1 + $0x1174] sm:$0xf0]  ;;  %v4743_v62 = vor.u32 %v7015_v33, %v4740_v20 }
 0x1a6   :  { %4309 = vmatpush.bf16.msra.mxu3 %v6611_v10  ;;  %4268 = vmatmul.bf16.vlgmr.msra.gmra.mxu0 %v8533_v32  ;;  %v7019_v10 = vld [vmem:[%s11464_s1 + $0x8c] sm:$0xf]  ;;  %v6931_v52 = vor.u32 %v7565_v37, %v6930_v25  ;;  %v4020_v50 = vadd.f32 %v4019_v2, %v4006_v9  ;;  %v4868_v3 = vld [vmem:[%s11464_s1 + $0x178] sm:$0xf0]  ;;  %v6898_v24 = vld [vmem:[%s11464_s1 + $0x1148] sm:$0xf] }
 0x1a7   :  { %4316 = vmatpush.bf16.msrb.mxu0 %v6851_v49  ;;  %4282 = vmatmul.bf16.vlgmr.msra.gmra.mxu1 %v8546_v41  ;;  %v4756_v49 = vld [vmem:[%s11464_s1 + $0x98] sm:$0xf0]  ;;  %v3768_v12 = vadd.f32 %v9589_v19, %v3754_v23  ;;  %v6914_v19 = vld [vmem:[%s11464_s1 + $0x1168] sm:$0xf]  ;;  %v7011_v43 = vld [vmem:[%s11464_s1 + $0x4c] sm:$0xf] }
 0x1a8   :  { %4330 = vmatpush.bf16.msrb.mxu1 %v6979_v0  ;;  %4296 = vmatmul.bf16.vlgmr.msra.gmra.mxu2 %v8544_v38  ;;  %v4045_v0 = vpop.f32.mrf.mxu0  ;;  %v4759_v57 = vor.u32 %v7019_v10, %v4756_v49  ;;  %v6915_v55 = vor.u32 %v7561_v59, %v6914_v19  ;;  %v4724_v18 = vld [vmem:[%s11464_s1 + $0x58] sm:$0xf0]  ;;  %v4034_v54 = vadd.f32 %v4033_v5, %v4020_v50  ;;  %v6754_v2 = vld [vmem:[%s11464_s1 + $0x1028] sm:$0xf]  ;;  %v7003_v19 = vld [vmem:[%s11464_s1 + $0xc] sm:$0xf] }
 0x1a9   :  { %4344 = vmatpush.bf16.msrb.mxu2 %v4807_v8  ;;  %4310 = vmatmul.bf16.vlgmr.msra.gmra.mxu3 %v8554_v46  ;;  %v7051_v8 = vld [vmem:[%s11464_s1 + $0x18c] sm:$0xf]  ;;  %v4046_v45 = vadd.f32 %v4045_v0, %v4032_v39  ;;  %v4727_v23 = vor.u32 %v7011_v43, %v4724_v18  ;;  %v6882_v10 = vld [vmem:[%s11464_s1 + $0x1128] sm:$0xf]  ;;  %v7553_v0 = vld [vmem:[%s11464_s1 + $0x1134] sm:$0xf0] }
 0x1aa   :  { %4358 = vmatpush.bf16.msrb.mxu3 %v4935_v34  ;;  %v4059_v34 = vpop.f32.mrf.mxu1  ;;  %v4887_v6 = vor.u32 %v7051_v8, %v4884_v27  ;;  %v7007_v8 = vld [vmem:[%s11464_s1 + $0x2c] sm:$0xf]  ;;  %v4708_v27 = vld [vmem:[%s11464_s1 + $0x38] sm:$0xf0]  ;;  %v6738_v9 = vld [vmem:[%s11464_s1 + $0x1008] sm:$0xf] }
 0x1ab   :  { %4317 = vmatpush.bf16.msrb.mxu0 %v6835_v22  ;;  %v7047_v22 = vld [vmem:[%s11464_s1 + $0x16c] sm:$0xf]  ;;  %v4060_v13 = vadd.f32 %v4059_v34, %v4046_v45  ;;  %v4073_v44 = vpop.f32.mrf.mxu2  ;;  %v4692_v33 = vld [vmem:[%s11464_s1 + $0x18] sm:$0xf0] }
 0x1ac   :  { %4331 = vmatpush.bf16.msrb.mxu1 %v6963_v58  ;;  %v3782_v58 = vadd.f32 %v9597_v7, %v3768_v12  ;;  %v7557_v7 = vld [vmem:[%s11464_s1 + $0x1154] sm:$0xf0]  ;;  %v4871_v61 = vor.u32 %v7047_v22, %v4868_v3  ;;  %v7035_v20 = vld [vmem:[%s11464_s1 + $0x10c] sm:$0xf]  ;;  %v4820_v50 = vld [vmem:[%s11464_s1 + $0x118] sm:$0xf0] }
 0x1ad   :  { %4345 = vmatpush.bf16.msrb.mxu2 %v4791_v17  ;;  %v6787_v17 = vor.u32 %v7529_v51, %v6786_v47  ;;  %v4087_v28 = vpop.f32.mrf.mxu3  ;;  %v6899_v1 = vor.u32 %v7557_v7, %v6898_v24  ;;  %v4711_v47 = vor.u32 %v7007_v8, %v4708_v27  ;;  %v7549_v51 = vld [vmem:[%s11464_s1 + $0x1114] sm:$0xf0]  ;;  %v5316_v24 = vld [vmem:[%s11464_s1 + $0x4f8] sm:$0xf0]  ;;  %v4823_v43 = vor.u32 %v7035_v20, %v4820_v50  ;;  %v11494_v8 = vld [vmem:[#allocation10_spill] sm:$0xff] }
 0x1ae   :  { %4359 = vmatpush.bf16.msrb.mxu3 %v4919_v11  ;;  %v7525_v11 = vld [vmem:[%s11464_s1 + $0x1054] sm:$0xf0]  ;;  %v3796_v16 = vadd.f32 %v9937_v60, %v3782_v58  ;;  %v4852_v60 = vld [vmem:[%s11464_s1 + $0x158] sm:$0xf0]  ;;  %v7095_v58 = vld [vmem:[%s11464_s1 + $0x2ec] sm:$0xf] }
 0x1af   :  { %4318 = vmatpush.bf16.msrb.mxu0 %v6819_v15  ;;  %v4074_v15 = vadd.f32 %v4073_v44, %v4060_v13  ;;  %v5444_v44 = vld [vmem:[%s11464_s1 + $0x5f8] sm:$0xf0]  ;;  %v7147_v20 = vld [vmem:[%s11464_s1 + $0x48c] sm:$0xf] }
 0x1b0   :  { %4332 = vmatpush.bf16.msrb.mxu1 %v6947_v26  ;;  %v4047_v42 = vpop.f32.mrf.mxu0  ;;  %v7043_v26 = vld [vmem:[%s11464_s1 + $0x14c] sm:$0xf]  ;;  %v3810_v49 = vadd.f32 %v9948_v4, %v3796_v16  ;;  %v5268_v50 = vld [vmem:[%s11464_s1 + $0x498] sm:$0xf0] }
 0x1b1   :  { %4346 = vmatpush.bf16.msrb.mxu2 %v4775_v30  ;;  %v6771_v30 = vor.u32 %v7525_v11, %v6770_v21  ;;  %v4048_v25 = vadd.f32 %v4047_v42, %v4034_v54  ;;  %v4088_v37 = vadd.f32 %v4087_v28, %v4074_v15  ;;  %v4855_v39 = vor.u32 %v7043_v26, %v4852_v60  ;;  %v7039_v4 = vld [vmem:[%s11464_s1 + $0x12c] sm:$0xf]  ;;  %v5044_v26 = vld [vmem:[%s11464_s1 + $0x2d8] sm:$0xf0] }
 0x1b2   :  { %4360 = vmatpush.bf16.msrb.mxu3 %v4903_v63  ;;  %v7521_v63 = vld [vmem:[%s11464_s1 + $0x1034] sm:$0xf0]  ;;  %v4061_v5 = vpop.f32.mrf.mxu1  ;;  %v7127_v21 = vld [vmem:[%s11464_s1 + $0x3ec] sm:$0xf] }
 0x1b3   :  { %4319 = vmatpush.bf16.msrb.mxu0 %v6803_v48  ;;  %v4596_v12 = vpack.c.bf16 %v4088_v37, %v9661_v14  ;;  %v4836_v48 = vld [vmem:[%s11464_s1 + $0x138] sm:$0xf0]  ;;  %v6755_v34 = vor.u32 %v7521_v63, %v6754_v2  ;;  %v7517_v14 = vld [vmem:[%s11464_s1 + $0x1014] sm:$0xf0]  ;;  %v4062_v45 = vadd.f32 %v4061_v5, %v4048_v25  ;;  %v4075_v59 = vpop.f32.mrf.mxu2  ;;  %v7159_v11 = vld [vmem:[%s11464_s1 + $0x4ec] sm:$0xf] }
 0x1b4   :  { %4333 = vmatpush.bf16.msrb.mxu1 %v6931_v52  ;;  %v3824_v52 = vadd.f32 %v10030_v29, %v3810_v49  ;;  %v6866_v29 = vld [vmem:[%s11464_s1 + $0x1108] sm:$0xf]  ;;  %v5319_v42 = vor.u32 %v7159_v11, %v5316_v24  ;;  %v7091_v28 = vld [vmem:[%s11464_s1 + $0x2cc] sm:$0xf]  ;;  %v5300_v37 = vld [vmem:[%s11464_s1 + $0x4d8] sm:$0xf0] }
 0x1b5   :  { %4347 = vmatpush.bf16.msrb.mxu2 %v4759_v57  ;;  %4600 = vst [vmem:[%s11467_s3] sm:$0xff] %v4596_v12  ;;  %v6883_v57 = vor.u32 %v7553_v0, %v6882_v10  ;;  %v4076_v22 = vadd.f32 %v4075_v59, %v4062_v45  ;;  %v4089_v3 = vpop.f32.mrf.mxu3  ;;  %v6867_v16 = vor.u32 %v7549_v51, %v6866_v29  ;;  %v7123_v60 = vld [vmem:[%s11464_s1 + $0x3cc] sm:$0xf]  ;;  %v5428_v2 = vld [vmem:[%s11464_s1 + $0x5d8] sm:$0xf0] }
 0x1b6   :  { %4361 = vmatpush.bf16.msrb.mxu3 %v4887_v6  ;;  %v4839_v6 = vor.u32 %v7039_v4, %v4836_v48  ;;  %v3838_v13 = vadd.f32 %v10041_v53, %v3824_v52  ;;  %v7191_v53 = vld [vmem:[%s11464_s1 + $0x5ec] sm:$0xf]  ;;  %v5047_v63 = vor.u32 %v7091_v28, %v5044_v26  ;;  %v5028_v5 = vld [vmem:[%s11464_s1 + $0x2b8] sm:$0xf0] }
 0x1b7   :  { %4320 = vmatpush.bf16.msrb.mxu0 %v6787_v17  ;;  %v5060_v17 = vld [vmem:[%s11464_s1 + $0x2f8] sm:$0xf0]  ;;  %v4090_v7 = vadd.f32 %v4089_v3, %v4076_v22  ;;  %v7155_v25 = vld [vmem:[%s11464_s1 + $0x4cc] sm:$0xf] }
 0x1b8   :  { %4334 = vmatpush.bf16.msrb.mxu1 %v6915_v55  ;;  %v6739_v55 = vor.u32 %v7517_v14, %v6738_v9  ;;  %v5063_v18 = vor.u32 %v7095_v58, %v5060_v17  ;;  %v5303_v49 = vor.u32 %v7155_v25, %v5300_v37  ;;  %v7119_v0 = vld [vmem:[%s11464_s1 + $0x3ac] sm:$0xf]  ;;  %v5156_v12 = vld [vmem:[%s11464_s1 + $0x3b8] sm:$0xf0]  ;;  %v11496_v14 = vld [vmem:[#allocation2_spill] sm:$0xff] }
 0x1b9   :  { %4348 = vmatpush.bf16.msrb.mxu2 %v4743_v62  ;;  %v5188_v62 = vld [vmem:[%s11464_s1 + $0x3f8] sm:$0xf0]  ;;  %v4598_v54 = vpack.c.bf16 %v4090_v7, %v3838_v13  ;;  %v7151_v4 = vld [vmem:[%s11464_s1 + $0x4ac] sm:$0xf]  ;;  %v5159_v29 = vor.u32 %v7119_v0, %v5156_v12 }
 0x1ba   :  { %4362 = vmatpush.bf16.msrb.mxu3 %v4871_v61  ;;  %v4695_v61 = vor.u32 %v7003_v19, %v4692_v33  ;;  %v5191_v15 = vor.u32 %v7127_v21, %v5188_v62  ;;  %v5284_v48 = vld [vmem:[%s11464_s1 + $0x4b8] sm:$0xf0]  ;;  %v11495_v52 = vld [vmem:[#allocation11_spill] sm:$0xff]  ;;  %v5271_v62 = vor.u32 %v7147_v20, %v5268_v50 }
 0x1bb   :  { %4321 = vmatpush.bf16.msrb.mxu0 %v6771_v30  ;;  %v5447_v30 = vor.u32 %v7191_v53, %v5444_v44  ;;  %4602 = vst [vmem:[%s11467_s3 + $0x10] sm:$0xff] %v4598_v54  ;;  %v5412_v9 = vld [vmem:[%s11464_s1 + $0x5b8] sm:$0xf0]  ;;  %v5287_v51 = vor.u32 %v7151_v4, %v5284_v48  ;;  %v7083_v19 = vld [vmem:[%s11464_s1 + $0x28c] sm:$0xf] }
 0x1bc   :  { %4335 = vmatpush.bf16.msrb.mxu1 %v6899_v1  ;;  %v5172_v1 = vld [vmem:[%s11464_s1 + $0x3d8] sm:$0xf0]  ;;  %v7115_v59 = vld [vmem:[%s11464_s1 + $0x38c] sm:$0xf] }
 0x1bd   :  { %4349 = vmatpush.bf16.msrb.mxu2 %v4727_v23  ;;  %v7187_v23 = vld [vmem:[%s11464_s1 + $0x5cc] sm:$0xf]  ;;  %v5175_v10 = vor.u32 %v7123_v60, %v5172_v1  ;;  %v5396_v3 = vld [vmem:[%s11464_s1 + $0x598] sm:$0xf0] }
 0x1be   :  { %4363 = vmatpush.bf16.msrb.mxu3 %v4855_v39  ;;  %v7087_v39 = vld [vmem:[%s11464_s1 + $0x2ac] sm:$0xf]  ;;  %v5431_v27 = vor.u32 %v7187_v23, %v5428_v2  ;;  %v4996_v24 = vld [vmem:[%s11464_s1 + $0x278] sm:$0xf0] }
 0x1bf   :  { %4322 = vmatpush.bf16.msrb.mxu0 %v6755_v34  ;;  %v7183_v34 = vld [vmem:[%s11464_s1 + $0x5ac] sm:$0xf]  ;;  %v5031_v45 = vor.u32 %v7087_v39, %v5028_v5  ;;  %v5252_v44 = vld [vmem:[%s11464_s1 + $0x478] sm:$0xf0] }
 0x1c0   :  { %4336 = vmatpush.bf16.msrb.mxu1 %v6883_v57  ;;  %v11497_v57 = vld [vmem:[#allocation4_spill] sm:$0xff]  ;;  %v5415_v33 = vor.u32 %v7183_v34, %v5412_v9  ;;  %v7179_v22 = vld [vmem:[%s11464_s1 + $0x58c] sm:$0xf]  ;;  %v5380_v54 = vld [vmem:[%s11464_s1 + $0x578] sm:$0xf0] }
 0x1c1   :  { %4350 = vmatpush.bf16.msrb.mxu2 %v4711_v47  ;;  %v612_v47 = vperm.slane %v10135_v56, 2  ;;  %v5140_v56 = vld [vmem:[%s11464_s1 + $0x398] sm:$0xf0]  ;;  %v7079_v11 = vld [vmem:[%s11464_s1 + $0x26c] sm:$0xf] }
 0x1c2   :  { %4364 = vmatpush.bf16.msrb.mxu3 %v4839_v6  ;;  %v5012_v6 = vld [vmem:[%s11464_s1 + $0x298] sm:$0xf0]  ;;  %v7111_v7 = vld [vmem:[%s11464_s1 + $0x36c] sm:$0xf] }
 0x1c3   :  { %4323 = vmatpush.bf16.msrb.mxu0 %v6739_v55  ;;  %v4101_v58 = vpop.f32.mrf.mxu0  ;;  %v5015_v17 = vor.u32 %v7083_v19, %v5012_v6  ;;  %v5143_v55 = vor.u32 %v7115_v59, %v5140_v56  ;;  %v7143_v53 = vld [vmem:[%s11464_s1 + $0x46c] sm:$0xf]  ;;  %v4980_v60 = vld [vmem:[%s11464_s1 + $0x258] sm:$0xf0] }
 0x1c4   :  { %4337 = vmatpush.bf16.msrb.mxu1 %v6867_v16  ;;  %v4102_v21 = vadd.f32 %v4101_v58, %v612_v47  ;;  %v4115_v13 = vpop.f32.mrf.mxu1  ;;  %v5399_v16 = vor.u32 %v7179_v22, %v5396_v3  ;;  %v5255_v28 = vor.u32 %v7143_v53, %v5252_v44  ;;  %v7075_v26 = vld [vmem:[%s11464_s1 + $0x24c] sm:$0xf]  ;;  %v5108_v25 = vld [vmem:[%s11464_s1 + $0x358] sm:$0xf0] }
 0x1c5   :  { %4351 = vmatpush.bf16.msrb.mxu2 %v4695_v61  ;;  %v5124_v61 = vld [vmem:[%s11464_s1 + $0x378] sm:$0xf0]  ;;  %v7139_v37 = vld [vmem:[%s11464_s1 + $0x44c] sm:$0xf]  ;;  %v4983_v0 = vor.u32 %v7075_v26, %v4980_v60 }
 0x1c6   :  { %4365 = vmatpush.bf16.msrb.mxu3 %v4823_v43  ;;  %4324 = vmatmul.bf16.vlgmr.msrb.gmra.mxu0 %v11494_v8  ;;  %v4116_v43 = vadd.f32 %v4115_v13, %v4102_v21  ;;  %v5236_v23 = vld [vmem:[%s11464_s1 + $0x458] sm:$0xf0]  ;;  %v7071_v48 = vld [vmem:[%s11464_s1 + $0x22c] sm:$0xf] }
 0x1c7   :  { %4372 = vmatpush.bf16.msra.mxu0 %v5063_v18  ;;  %4338 = vmatmul.bf16.vlgmr.msrb.gmra.mxu1 %v11495_v52  ;;  %v7175_v18 = vld [vmem:[%s11464_s1 + $0x56c] sm:$0xf]  ;;  %v5239_v4 = vor.u32 %v7139_v37, %v5236_v23  ;;  %v4964_v34 = vld [vmem:[%s11464_s1 + $0x238] sm:$0xf0] }
 0x1c8   :  { %4386 = vmatpush.bf16.msra.mxu1 %v5191_v15  ;;  %4352 = vmatmul.bf16.vlgmr.msrb.gmra.mxu2 %v11496_v14  ;;  %v4999_v15 = vor.u32 %v7079_v11, %v4996_v24  ;;  %v5383_v1 = vor.u32 %v7175_v18, %v5380_v54  ;;  %v7103_v9 = vld [vmem:[%s11464_s1 + $0x32c] sm:$0xf]  ;;  %v5348_v59 = vld [vmem:[%s11464_s1 + $0x538] sm:$0xf0] }
 0x1c9   :  { %4400 = vmatpush.bf16.msra.mxu2 %v5319_v42  ;;  %4366 = vmatmul.bf16.vlgmr.msrb.gmra.mxu3 %v11497_v57  ;;  %v5127_v42 = vor.u32 %v7111_v7, %v5124_v61  ;;  %v7167_v6 = vld [vmem:[%s11464_s1 + $0x52c] sm:$0xf]  ;;  %v4948_v20 = vld [vmem:[%s11464_s1 + $0x218] sm:$0xf0] }
 0x1ca   :  { %4414 = vmatpush.bf16.msra.mxu3 %v5447_v30  ;;  %v7107_v30 = vld [vmem:[%s11464_s1 + $0x34c] sm:$0xf]  ;;  %v5076_v58 = vld [vmem:[%s11464_s1 + $0x318] sm:$0xf0]  ;;  %v5351_v21 = vor.u32 %v7167_v6, %v5348_v59  ;;  %v11499_v6 = vld [vmem:[#allocation6_spill] sm:$0xff] }
 0x1cb   :  { %4373 = vmatpush.bf16.msra.mxu0 %v5047_v63  ;;  %v4129_v2 = vpop.f32.mrf.mxu2  ;;  %v7171_v63 = vld [vmem:[%s11464_s1 + $0x54c] sm:$0xf]  ;;  %v4103_v39 = vpop.f32.mrf.mxu0  ;;  %v5111_v12 = vor.u32 %v7107_v30, %v5108_v25  ;;  %v5204_v13 = vld [vmem:[%s11464_s1 + $0x418] sm:$0xf0] }
 0x1cc   :  { %4387 = vmatpush.bf16.msra.mxu1 %v5175_v10  ;;  %v5364_v10 = vld [vmem:[%s11464_s1 + $0x558] sm:$0xf0]  ;;  %v4143_v5 = vpop.f32.mrf.mxu3  ;;  %v7067_v56 = vld [vmem:[%s11464_s1 + $0x20c] sm:$0xf] }
 0x1cd   :  { %4401 = vmatpush.bf16.msra.mxu2 %v5303_v49  ;;  %v4130_v49 = vadd.f32 %v4129_v2, %v4116_v43  ;;  %v5367_v57 = vor.u32 %v7171_v63, %v5364_v10  ;;  %v7099_v3 = vld [vmem:[%s11464_s1 + $0x30c] sm:$0xf]  ;;  %v5572_v7 = vld [vmem:[%s11464_s1 + $0x6f8] sm:$0xf0]  ;;  %v4951_v53 = vor.u32 %v7067_v56, %v4948_v20  ;;  %v11501_v20 = vld [vmem:[#allocation8_spill] sm:$0xff] }
 0x1ce   :  { %4415 = vmatpush.bf16.msra.mxu3 %v5431_v27  ;;  %v4104_v27 = vadd.f32 %v4103_v39, %v612_v47  ;;  %v5092_v47 = vld [vmem:[%s11464_s1 + $0x338] sm:$0xf0]  ;;  %v7223_v24 = vld [vmem:[%s11464_s1 + $0x6ec] sm:$0xf] }
 0x1cf   :  { %4374 = vmatpush.bf16.msra.mxu0 %v5031_v45  ;;  %v10800_v14 = vadd.f32 %v4143_v5, %v4130_v49  ;;  %v4117_v45 = vpop.f32.mrf.mxu1  ;;  %v5095_v50 = vor.u32 %v7103_v9, %v5092_v47  ;;  %v5700_v44 = vld [vmem:[%s11464_s1 + $0x7f8] sm:$0xf0]  ;;  %v7287_v43 = vld [vmem:[%s11464_s1 + $0x8ec] sm:$0xf] }
 0x1d0   :  { %4388 = vmatpush.bf16.msra.mxu1 %v5159_v29  ;;  %v7135_v29 = vld [vmem:[%s11464_s1 + $0x42c] sm:$0xf]  ;;  %v4118_v19 = vadd.f32 %v4117_v45, %v4104_v27  ;;  %v5828_v18 = vld [vmem:[%s11464_s1 + $0x8f8] sm:$0xf0] }
 0x1d1   :  { %4402 = vmatpush.bf16.msra.mxu2 %v5287_v51  ;;  %v5220_v51 = vld [vmem:[%s11464_s1 + $0x438] sm:$0xf0]  ;;  %v5831_v37 = vor.u32 %v7287_v43, %v5828_v18  ;;  %v7219_v23 = vld [vmem:[%s11464_s1 + $0x6cc] sm:$0xf] }
 0x1d2   :  { %4416 = vmatpush.bf16.msra.mxu3 %v5415_v33  ;;  %v4967_v33 = vor.u32 %v7071_v48, %v4964_v34  ;;  %v5223_v22 = vor.u32 %v7135_v29, %v5220_v51  ;;  %v5956_v26 = vld [vmem:[%s11464_s1 + $0x9f8] sm:$0xf0]  ;;  %v7251_v63 = vld [vmem:[%s11464_s1 + $0x7cc] sm:$0xf] }
 0x1d3   :  { %4375 = vmatpush.bf16.msra.mxu0 %v5015_v17  ;;  %v7131_v17 = vld [vmem:[%s11464_s1 + $0x40c] sm:$0xf]  ;;  %v4131_v11 = vpop.f32.mrf.mxu2  ;;  %v5556_v2 = vld [vmem:[%s11464_s1 + $0x6d8] sm:$0xf0] }
 0x1d4   :  { %4389 = vmatpush.bf16.msra.mxu1 %v5143_v55  ;;  %v7163_v55 = vld [vmem:[%s11464_s1 + $0x50c] sm:$0xf]  ;;  %v4132_v61 = vadd.f32 %v4131_v11, %v4118_v19  ;;  %v4145_v54 = vpop.f32.mrf.mxu3  ;;  %v5684_v49 = vld [vmem:[%s11464_s1 + $0x7d8] sm:$0xf0] }
 0x1d5   :  { %4403 = vmatpush.bf16.msra.mxu2 %v5271_v62  ;;  %v5332_v62 = vld [vmem:[%s11464_s1 + $0x518] sm:$0xf0]  ;;  %v7283_v39 = vld [vmem:[%s11464_s1 + $0x8cc] sm:$0xf] }
 0x1d6   :  { %4417 = vmatpush.bf16.msra.mxu3 %v5399_v16  ;;  %v7255_v16 = vld [vmem:[%s11464_s1 + $0x7ec] sm:$0xf]  ;;  %v10865_v60 = vadd.f32 %v4145_v54, %v4132_v61  ;;  %v5335_v30 = vor.u32 %v7163_v55, %v5332_v62  ;;  %v5812_v5 = vld [vmem:[%s11464_s1 + $0x8d8] sm:$0xf0] }
 0x1d7   :  { %4376 = vmatpush.bf16.msra.mxu0 %v4999_v15  ;;  %v5079_v15 = vor.u32 %v7099_v3, %v5076_v58  ;;  %v5703_v25 = vor.u32 %v7255_v16, %v5700_v44  ;;  %v5940_v27 = vld [vmem:[%s11464_s1 + $0x9d8] sm:$0xf0]  ;;  %v5815_v48 = vor.u32 %v7283_v39, %v5812_v5  ;;  %v7215_v34 = vld [vmem:[%s11464_s1 + $0x6ac] sm:$0xf] }
 0x1d8   :  { %4390 = vmatpush.bf16.msra.mxu1 %v5127_v42  ;;  %v5207_v42 = vor.u32 %v7131_v17, %v5204_v13  ;;  %v5540_v9 = vld [vmem:[%s11464_s1 + $0x6b8] sm:$0xf0]  ;;  %v7247_v45 = vld [vmem:[%s11464_s1 + $0x7ac] sm:$0xf] }
 0x1d9   :  { %4404 = vmatpush.bf16.msra.mxu2 %v5255_v28  ;;  %v7319_v28 = vld [vmem:[%s11464_s1 + $0x9ec] sm:$0xf]  ;;  %v5668_v29 = vld [vmem:[%s11464_s1 + $0x7b8] sm:$0xf0] }
 0x1da   :  { %4418 = vmatpush.bf16.msra.mxu3 %v5383_v1  ;;  %v5575_v1 = vor.u32 %v7223_v24, %v5572_v7  ;;  %v5959_v10 = vor.u32 %v7319_v28, %v5956_v26  ;;  %v7279_v51 = vld [vmem:[%s11464_s1 + $0x8ac] sm:$0xf]  ;;  %v5796_v19 = vld [vmem:[%s11464_s1 + $0x8b8] sm:$0xf0] }
 0x1db   :  { %4377 = vmatpush.bf16.msra.mxu0 %v4983_v0  ;;  %v7315_v0 = vld [vmem:[%s11464_s1 + $0x9cc] sm:$0xf]  ;;  %v11500_v59 = vld [vmem:[#allocation5_spill] sm:$0xff]  ;;  %v5799_v3 = vor.u32 %v7279_v51, %v5796_v19 }
 0x1dc   :  { %4391 = vmatpush.bf16.msra.mxu1 %v5111_v12  ;;  %v5559_v12 = vor.u32 %v7219_v23, %v5556_v2  ;;  %v5943_v47 = vor.u32 %v7315_v0, %v5940_v27  ;;  %v5924_v56 = vld [vmem:[%s11464_s1 + $0x9b8] sm:$0xf0]  ;;  %v7211_v58 = vld [vmem:[%s11464_s1 + $0x68c] sm:$0xf] }
 0x1dd   :  { %4405 = vmatpush.bf16.msra.mxu2 %v5239_v4  ;;  %v5687_v4 = vor.u32 %v7251_v63, %v5684_v49  ;;  %v5524_v17 = vld [vmem:[%s11464_s1 + $0x698] sm:$0xf0]  ;;  %v7275_v62 = vld [vmem:[%s11464_s1 + $0x88c] sm:$0xf] }
 0x1de   :  { %4419 = vmatpush.bf16.msra.mxu3 %v5367_v57  ;;  %v11498_v57 = vld [vmem:[#allocation3_spill] sm:$0xff]  ;;  %v5652_v55 = vld [vmem:[%s11464_s1 + $0x798] sm:$0xf0] }
 0x1df   :  { %4378 = vmatpush.bf16.msra.mxu0 %v4967_v33  ;;  %v7311_v33 = vld [vmem:[%s11464_s1 + $0x9ac] sm:$0xf]  ;;  %v5780_v11 = vld [vmem:[%s11464_s1 + $0x898] sm:$0xf0] }
 0x1e0   :  { %4392 = vmatpush.bf16.msra.mxu1 %v5095_v50  ;;  %v5543_v50 = vor.u32 %v7215_v34, %v5540_v9  ;;  %v5927_v13 = vor.u32 %v7311_v33, %v5924_v56  ;;  %v7307_v7 = vld [vmem:[%s11464_s1 + $0x98c] sm:$0xf]  ;;  %v5908_v16 = vld [vmem:[%s11464_s1 + $0x998] sm:$0xf0]  ;;  %v5783_v18 = vor.u32 %v7275_v62, %v5780_v11 }
 0x1e1   :  { %4406 = vmatpush.bf16.msra.mxu2 %v5223_v22  ;;  %v5671_v22 = vor.u32 %v7247_v45, %v5668_v29  ;;  %v7207_v54 = vld [vmem:[%s11464_s1 + $0x66c] sm:$0xf]  ;;  %v5636_v26 = vld [vmem:[%s11464_s1 + $0x778] sm:$0xf0] }
 0x1e2   :  { %4420 = vmatpush.bf16.msra.mxu3 %v5351_v21  ;;  %v7243_v21 = vld [vmem:[%s11464_s1 + $0x78c] sm:$0xf]  ;;  %v5492_v49 = vld [vmem:[%s11464_s1 + $0x658] sm:$0xf0] }
 0x1e3   :  { %4379 = vmatpush.bf16.msra.mxu0 %v4951_v53  ;;  %v4157_v24 = vpop.f32.mrf.mxu0  ;;  %v5527_v53 = vor.u32 %v7211_v58, %v5524_v17  ;;  %v5655_v43 = vor.u32 %v7243_v21, %v5652_v55  ;;  %v7235_v39 = vld [vmem:[%s11464_s1 + $0x74c] sm:$0xf]  ;;  %v5620_v27 = vld [vmem:[%s11464_s1 + $0x758] sm:$0xf0] }
 0x1e4   :  { %4393 = vmatpush.bf16.msra.mxu1 %v5079_v15  ;;  %v4158_v61 = vadd.f32 %v4157_v24, %v10800_v14  ;;  %v4171_v44 = vpop.f32.mrf.mxu1  ;;  %v5508_v15 = vld [vmem:[%s11464_s1 + $0x678] sm:$0xf0]  ;;  %v5911_v14 = vor.u32 %v7307_v7, %v5908_v16  ;;  %v7299_v45 = vld [vmem:[%s11464_s1 + $0x94c] sm:$0xf] }
 0x1e5   :  { %4407 = vmatpush.bf16.msra.mxu2 %v5207_v42  ;;  %v7239_v42 = vld [vmem:[%s11464_s1 + $0x76c] sm:$0xf]  ;;  %v5511_v23 = vor.u32 %v7207_v54, %v5508_v15  ;;  %v5476_v56 = vld [vmem:[%s11464_s1 + $0x638] sm:$0xf0] }
 0x1e6   :  { %4421 = vmatpush.bf16.msra.mxu3 %v5335_v30  ;;  %4380 = vmatmul.bf16.vlgmr.msra.gmra.mxu0 %v11498_v57  ;;  %v4172_v28 = vadd.f32 %v4171_v44, %v4158_v61  ;;  %v7271_v30 = vld [vmem:[%s11464_s1 + $0x86c] sm:$0xf]  ;;  %v5639_v2 = vor.u32 %v7239_v42, %v5636_v26  ;;  %v5876_v57 = vld [vmem:[%s11464_s1 + $0x958] sm:$0xf0] }
 0x1e7   :  { %4428 = vmatpush.bf16.msrb.mxu0 %v5575_v1  ;;  %4394 = vmatmul.bf16.vlgmr.msra.gmra.mxu1 %v11500_v59  ;;  %v5764_v1 = vld [vmem:[%s11464_s1 + $0x878] sm:$0xf0]  ;;  %v7199_v33 = vld [vmem:[%s11464_s1 + $0x62c] sm:$0xf] }
 0x1e8   :  { %4442 = vmatpush.bf16.msrb.mxu1 %v5703_v25  ;;  %4408 = vmatmul.bf16.vlgmr.msra.gmra.mxu2 %v11499_v6  ;;  %v7303_v25 = vld [vmem:[%s11464_s1 + $0x96c] sm:$0xf]  ;;  %v5767_v63 = vor.u32 %v7271_v30, %v5764_v1  ;;  %v5623_v6 = vor.u32 %v7235_v39, %v5620_v27  ;;  %v5732_v58 = vld [vmem:[%s11464_s1 + $0x838] sm:$0xf0] }
 0x1e9   :  { %4456 = vmatpush.bf16.msrb.mxu2 %v5831_v37  ;;  %4422 = vmatmul.bf16.vlgmr.msra.gmra.mxu3 %v11501_v20  ;;  %v5892_v37 = vld [vmem:[%s11464_s1 + $0x978] sm:$0xf0]  ;;  %v5879_v20 = vor.u32 %v7299_v45, %v5876_v57  ;;  %v7295_v17 = vld [vmem:[%s11464_s1 + $0x92c] sm:$0xf] }
 0x1ea   :  { %4470 = vmatpush.bf16.msrb.mxu3 %v5959_v10  ;;  %v7203_v10 = vld [vmem:[%s11464_s1 + $0x64c] sm:$0xf]  ;;  %v5895_v5 = vor.u32 %v7303_v25, %v5892_v37  ;;  %v5860_v21 = vld [vmem:[%s11464_s1 + $0x938] sm:$0xf0] }
 0x1eb   :  { %4429 = vmatpush.bf16.msrb.mxu0 %v5559_v12  ;;  %v4185_v0 = vpop.f32.mrf.mxu2  ;;  %v7267_v12 = vld [vmem:[%s11464_s1 + $0x84c] sm:$0xf]  ;;  %v4159_v34 = vpop.f32.mrf.mxu0  ;;  %v5495_v29 = vor.u32 %v7203_v10, %v5492_v49  ;;  %v5460_v62 = vld [vmem:[%s11464_s1 + $0x618] sm:$0xf0] }
 0x1ec   :  { %4443 = vmatpush.bf16.msrb.mxu1 %v5687_v4  ;;  %v5748_v4 = vld [vmem:[%s11464_s1 + $0x858] sm:$0xf0]  ;;  %v4199_v9 = vpop.f32.mrf.mxu3  ;;  %v4173_v51 = vpop.f32.mrf.mxu1  ;;  %v7195_v55 = vld [vmem:[%s11464_s1 + $0x60c] sm:$0xf] }
 0x1ed   :  { %4457 = vmatpush.bf16.msrb.mxu2 %v5815_v48  ;;  %v4186_v48 = vadd.f32 %v4185_v0, %v4172_v28  ;;  %v5751_v59 = vor.u32 %v7267_v12, %v5748_v4  ;;  %v7227_v7 = vld [vmem:[%s11464_s1 + $0x70c] sm:$0xf]  ;;  %v5588_v16 = vld [vmem:[%s11464_s1 + $0x718] sm:$0xf0]  ;;  %v5463_v30 = vor.u32 %v7195_v55, %v5460_v62 }
 0x1ee   :  { %4471 = vmatpush.bf16.msrb.mxu3 %v5943_v47  ;;  %v4160_v47 = vadd.f32 %v4159_v34, %v10865_v60  ;;  %v7231_v60 = vld [vmem:[%s11464_s1 + $0x72c] sm:$0xf]  ;;  %v5844_v54 = vld [vmem:[%s11464_s1 + $0x918] sm:$0xf0] }
 0x1ef   :  { %4430 = vmatpush.bf16.msrb.mxu0 %v5543_v50  ;;  %v10993_v19 = vadd.f32 %v4199_v9, %v4186_v48  ;;  %v7259_v61 = vld [vmem:[%s11464_s1 + $0x80c] sm:$0xf]  ;;  %v6084_v28 = vld [vmem:[%s11464_s1 + $0xaf8] sm:$0xf0] }
 0x1f0   :  { %4444 = vmatpush.bf16.msrb.mxu1 %v5671_v22  ;;  %v4174_v50 = vadd.f32 %v4173_v51, %v4160_v47  ;;  %v5604_v22 = vld [vmem:[%s11464_s1 + $0x738] sm:$0xf0]  ;;  %v7383_v26 = vld [vmem:[%s11464_s1 + $0xbec] sm:$0xf] }
 0x1f1   :  { %4458 = vmatpush.bf16.msrb.mxu2 %v5799_v3  ;;  %v7263_v3 = vld [vmem:[%s11464_s1 + $0x82c] sm:$0xf]  ;;  %v5607_v11 = vor.u32 %v7231_v60, %v5604_v22  ;;  %v6212_v1 = vld [vmem:[%s11464_s1 + $0xbf8] sm:$0xf0] }
 0x1f2   :  { %4472 = vmatpush.bf16.msrb.mxu3 %v5927_v13  ;;  %v5479_v13 = vor.u32 %v7199_v33, %v5476_v56  ;;  %v5735_v24 = vor.u32 %v7263_v3, %v5732_v58  ;;  %v7415_v25 = vld [vmem:[%s11464_s1 + $0xcec] sm:$0xf]  ;;  %v6340_v37 = vld [vmem:[%s11464_s1 + $0xcf8] sm:$0xf0]  ;;  %v6215_v0 = vor.u32 %v7383_v26, %v6212_v1 }
 0x1f3   :  { %4431 = vmatpush.bf16.msrb.mxu0 %v5527_v53  ;;  %v5863_v53 = vor.u32 %v7295_v17, %v5860_v21  ;;  %v4187_v44 = vpop.f32.mrf.mxu2  ;;  %v7447_v10 = vld [vmem:[%s11464_s1 + $0xdec] sm:$0xf]  ;;  %v6468_v49 = vld [vmem:[%s11464_s1 + $0xdf8] sm:$0xf0]  ;;  %v6343_v27 = vor.u32 %v7415_v25, %v6340_v37 }
 0x1f4   :  { %4445 = vmatpush.bf16.msrb.mxu1 %v5655_v43  ;;  %v5716_v43 = vld [vmem:[%s11464_s1 + $0x818] sm:$0xf0]  ;;  %v4188_v15 = vadd.f32 %v4187_v44, %v4174_v50  ;;  %v4201_v42 = vpop.f32.mrf.mxu3  ;;  %v7347_v12 = vld [vmem:[%s11464_s1 + $0xacc] sm:$0xf]  ;;  %v6471_v34 = vor.u32 %v7447_v10, %v6468_v49 }
 0x1f5   :  { %4459 = vmatpush.bf16.msrb.mxu2 %v5783_v18  ;;  %v7291_v18 = vld [vmem:[%s11464_s1 + $0x90c] sm:$0xf]  ;;  %v6068_v4 = vld [vmem:[%s11464_s1 + $0xad8] sm:$0xf0] }
 0x1f6   :  { %4473 = vmatpush.bf16.msrb.mxu3 %v5911_v14  ;;  %v7351_v14 = vld [vmem:[%s11464_s1 + $0xaec] sm:$0xf]  ;;  %v5847_v39 = vor.u32 %v7291_v18, %v5844_v54  ;;  %v6196_v9 = vld [vmem:[%s11464_s1 + $0xbd8] sm:$0xf0]  ;;  %v6071_v51 = vor.u32 %v7347_v12, %v6068_v4 }
 0x1f7   :  { %4432 = vmatpush.bf16.msrb.mxu0 %v5511_v23  ;;  %v11061_v23 = vadd.f32 %v4201_v42, %v4188_v15  ;;  %v7379_v48 = vld [vmem:[%s11464_s1 + $0xbcc] sm:$0xf]  ;;  %v6324_v57 = vld [vmem:[%s11464_s1 + $0xcd8] sm:$0xf0] }
 0x1f8   :  { %4446 = vmatpush.bf16.msrb.mxu1 %v5639_v2  ;;  %v5591_v2 = vor.u32 %v7227_v7, %v5588_v16  ;;  %v7411_v45 = vld [vmem:[%s11464_s1 + $0xccc] sm:$0xf]  ;;  %v6052_v56 = vld [vmem:[%s11464_s1 + $0xab8] sm:$0xf0] }
 0x1f9   :  { %4460 = vmatpush.bf16.msrb.mxu2 %v5767_v63  ;;  %v5719_v63 = vor.u32 %v7259_v61, %v5716_v43  ;;  %v7443_v47 = vld [vmem:[%s11464_s1 + $0xdcc] sm:$0xf]  ;;  %v6180_v22 = vld [vmem:[%s11464_s1 + $0xbb8] sm:$0xf0] }
 0x1fa   :  { %4474 = vmatpush.bf16.msrb.mxu3 %v5895_v5  ;;  %v6087_v5 = vor.u32 %v7351_v14, %v6084_v28  ;;  %v7343_v33 = vld [vmem:[%s11464_s1 + $0xaac] sm:$0xf]  ;;  %v6308_v58 = vld [vmem:[%s11464_s1 + $0xcb8] sm:$0xf0] }
 0x1fb   :  { %4433 = vmatpush.bf16.msrb.mxu0 %v5495_v29  ;;  %v6452_v29 = vld [vmem:[%s11464_s1 + $0xdd8] sm:$0xf0]  ;;  %v7375_v60 = vld [vmem:[%s11464_s1 + $0xbac] sm:$0xf]  ;;  %v6055_v55 = vor.u32 %v7343_v33, %v6052_v56 }
 0x1fc   :  { %4447 = vmatpush.bf16.msrb.mxu1 %v5623_v6  ;;  %v6199_v6 = vor.u32 %v7379_v48, %v6196_v9  ;;  %v6455_v50 = vor.u32 %v7443_v47, %v6452_v29  ;;  %v7407_v3 = vld [vmem:[%s11464_s1 + $0xcac] sm:$0xf]  ;;  %v11503_v17 = vld [vmem:[#allocation9_spill] sm:$0xff]  ;;  %v6183_v62 = vor.u32 %v7375_v60, %v6180_v22 }
 0x1fd   :  { %4461 = vmatpush.bf16.msrb.mxu2 %v5751_v59  ;;  %v6327_v59 = vor.u32 %v7411_v45, %v6324_v57  ;;  %v7439_v21 = vld [vmem:[%s11464_s1 + $0xdac] sm:$0xf]  ;;  %v6164_v16 = vld [vmem:[%s11464_s1 + $0xb98] sm:$0xf0] }
 0x1fe   :  { %4475 = vmatpush.bf16.msrb.mxu3 %v5879_v20  ;;  %v11502_v20 = vld [vmem:[#allocation7_spill] sm:$0xff]  ;;  %v6420_v18 = vld [vmem:[%s11464_s1 + $0xd98] sm:$0xf0] }
 0x1ff   :  { %4434 = vmatpush.bf16.msrb.mxu0 %v5479_v13  ;;  %v6436_v13 = vld [vmem:[%s11464_s1 + $0xdb8] sm:$0xf0]  ;;  %v7371_v7 = vld [vmem:[%s11464_s1 + $0xb8c] sm:$0xf] }
 0x200   :  { %4448 = vmatpush.bf16.msrb.mxu1 %v5607_v11  ;;  %v6311_v11 = vor.u32 %v7407_v3, %v6308_v58  ;;  %v7403_v61 = vld [vmem:[%s11464_s1 + $0xc8c] sm:$0xf]  ;;  %v6167_v14 = vor.u32 %v7371_v7, %v6164_v16  ;;  %v6148_v37 = vld [vmem:[%s11464_s1 + $0xb78] sm:$0xf0] }
 0x201   :  { %4462 = vmatpush.bf16.msrb.mxu2 %v5735_v24  ;;  %v6036_v24 = vld [vmem:[%s11464_s1 + $0xa98] sm:$0xf0]  ;;  %v7435_v43 = vld [vmem:[%s11464_s1 + $0xd8c] sm:$0xf] }
 0x202   :  { %4476 = vmatpush.bf16.msrb.mxu3 %v5863_v53  ;;  %v6292_v53 = vld [vmem:[%s11464_s1 + $0xc98] sm:$0xf0]  ;;  %v7335_v26 = vld [vmem:[%s11464_s1 + $0xa6c] sm:$0xf] }
 0x203   :  { %4435 = vmatpush.bf16.msrb.mxu0 %v5463_v30  ;;  %v4213_v44 = vpop.f32.mrf.mxu0  ;;  %v6295_v28 = vor.u32 %v7403_v61, %v6292_v53  ;;  %v6020_v30 = vld [vmem:[%s11464_s1 + $0xa78] sm:$0xf0]  ;;  %v7367_v1 = vld [vmem:[%s11464_s1 + $0xb6c] sm:$0xf] }
 0x204   :  { %4449 = vmatpush.bf16.msrb.mxu1 %v5591_v2  ;;  %v4214_v54 = vadd.f32 %v4213_v44, %v10993_v19  ;;  %v4227_v42 = vpop.f32.mrf.mxu1  ;;  %v6423_v19 = vor.u32 %v7435_v43, %v6420_v18  ;;  %v7399_v2 = vld [vmem:[%s11464_s1 + $0xc6c] sm:$0xf]  ;;  %v6404_v49 = vld [vmem:[%s11464_s1 + $0xd78] sm:$0xf0] }
 0x205   :  { %4463 = vmatpush.bf16.msrb.mxu2 %v5719_v63  ;;  %v6276_v63 = vld [vmem:[%s11464_s1 + $0xc78] sm:$0xf0]  ;;  %v7431_v10 = vld [vmem:[%s11464_s1 + $0xd6c] sm:$0xf] }
 0x206   :  { %4477 = vmatpush.bf16.msrb.mxu3 %v5847_v39  ;;  %4436 = vmatmul.bf16.vlgmr.msrb.gmra.mxu0 %v11502_v20  ;;  %v4228_v25 = vadd.f32 %v4227_v42, %v4214_v54  ;;  %v6023_v39 = vor.u32 %v7335_v26, %v6020_v30  ;;  %v6004_v12 = vld [vmem:[%s11464_s1 + $0xa58] sm:$0xf0]  ;;  %v7363_v4 = vld [vmem:[%s11464_s1 + $0xb4c] sm:$0xf]  ;;  %v6407_v48 = vor.u32 %v7431_v10, %v6404_v49 }
 0x207   :  { %4484 = vmatpush.bf16.msra.mxu0 %v6087_v5  ;;  %4450 = vmatmul.bf16.vlgmr.msrb.gmra.mxu1 %v11503_v17  ;;  %v6151_v5 = vor.u32 %v7367_v1, %v6148_v37  ;;  %v6132_v9 = vld [vmem:[%s11464_s1 + $0xb58] sm:$0xf0]  ;;  %v7395_v45 = vld [vmem:[%s11464_s1 + $0xc4c] sm:$0xf] }
 0x208   :  { %4498 = vmatpush.bf16.msra.mxu1 %v6215_v0  ;;  %4464 = vmatmul.bf16.vlgmr.msrb.gmra.mxu2 %v8305_v31  ;;  %v7339_v31 = vld [vmem:[%s11464_s1 + $0xa8c] sm:$0xf]  ;;  %v6279_v0 = vor.u32 %v7399_v2, %v6276_v63  ;;  %v6260_v57 = vld [vmem:[%s11464_s1 + $0xc58] sm:$0xf0] }
 0x209   :  { %4512 = vmatpush.bf16.msra.mxu2 %v6343_v27  ;;  %4478 = vmatmul.bf16.vlgmr.msrb.gmra.mxu3 %v8318_v36  ;;  %v6439_v36 = vor.u32 %v7439_v21, %v6436_v13  ;;  %v6039_v15 = vor.u32 %v7339_v31, %v6036_v24  ;;  %v7331_v27 = vld [vmem:[%s11464_s1 + $0xa4c] sm:$0xf]  ;;  %v6263_v22 = vor.u32 %v7395_v45, %v6260_v57  ;;  %v5988_v58 = vld [vmem:[%s11464_s1 + $0xa38] sm:$0xf0] }
 0x20a   :  { %4526 = vmatpush.bf16.msra.mxu3 %v6471_v34  ;;  %v6007_v56 = vor.u32 %v7331_v27, %v6004_v12  ;;  %v7327_v3 = vld [vmem:[%s11464_s1 + $0xa2c] sm:$0xf]  ;;  %v6116_v13 = vld [vmem:[%s11464_s1 + $0xb38] sm:$0xf0] }
 0x20b   :  { %4485 = vmatpush.bf16.msra.mxu0 %v6071_v51  ;;  %v4241_v34 = vpop.f32.mrf.mxu2  ;;  %v4215_v29 = vpop.f32.mrf.mxu0  ;;  %v6372_v31 = vld [vmem:[%s11464_s1 + $0xd38] sm:$0xf0]  ;;  %v5991_v24 = vor.u32 %v7327_v3, %v5988_v58  ;;  %v7323_v7 = vld [vmem:[%s11464_s1 + $0xa0c] sm:$0xf] }
 0x20c   :  { %4499 = vmatpush.bf16.msra.mxu1 %v6199_v6  ;;  %v4242_v47 = vadd.f32 %v4241_v34, %v4228_v25  ;;  %v4255_v51 = vpop.f32.mrf.mxu3  ;;  %v7427_v6 = vld [vmem:[%s11464_s1 + $0xd4c] sm:$0xf]  ;;  %v4216_v33 = vadd.f32 %v4215_v29, %v11061_v23  ;;  %v4229_v60 = vpop.f32.mrf.mxu1  ;;  %v6100_v44 = vld [vmem:[%s11464_s1 + $0xb18] sm:$0xf0] }
 0x20d   :  { %4513 = vmatpush.bf16.msra.mxu2 %v6327_v59  ;;  %v6388_v59 = vld [vmem:[%s11464_s1 + $0xd58] sm:$0xf0]  ;;  %v7359_v23 = vld [vmem:[%s11464_s1 + $0xb2c] sm:$0xf] }
 0x20e   :  { %4527 = vmatpush.bf16.msra.mxu3 %v6455_v50  ;;  %v11195_v20 = vadd.f32 %v4255_v51, %v4242_v47  ;;  %v6135_v50 = vor.u32 %v7363_v4, %v6132_v9  ;;  %v6391_v17 = vor.u32 %v7427_v6, %v6388_v59  ;;  %v4230_v21 = vadd.f32 %v4229_v60, %v4216_v33  ;;  %v7355_v53 = vld [vmem:[%s11464_s1 + $0xb0c] sm:$0xf]  ;;  %v6596_v1 = vld [vmem:[%s11464_s1 + $0xef8] sm:$0xf0] }
 0x20f   :  { %4486 = vmatpush.bf16.msra.mxu0 %v6055_v55  ;;  %v7391_v55 = vld [vmem:[%s11464_s1 + $0xc2c] sm:$0xf]  ;;  %v6119_v16 = vor.u32 %v7359_v23, %v6116_v13  ;;  %v6724_v37 = vld [vmem:[%s11464_s1 + $0xff8] sm:$0xf0]  ;;  %v6103_v49 = vor.u32 %v7355_v53, %v6100_v44 }
 0x210   :  { %4500 = vmatpush.bf16.msra.mxu1 %v6183_v62  ;;  %v6244_v62 = vld [vmem:[%s11464_s1 + $0xc38] sm:$0xf0]  ;;  %v7387_v43 = vld [vmem:[%s11464_s1 + $0xc0c] sm:$0xf] }
 0x211   :  { %4514 = vmatpush.bf16.msra.mxu2 %v6311_v11  ;;  %v7423_v11 = vld [vmem:[%s11464_s1 + $0xd2c] sm:$0xf]  ;;  %v6247_v61 = vor.u32 %v7391_v55, %v6244_v62  ;;  %v6852_v63 = vld [vmem:[%s11464_s1 + $0x10f8] sm:$0xf0] }
 0x212   :  { %4528 = vmatpush.bf16.msra.mxu3 %v6439_v36  ;;  %v5972_v36 = vld [vmem:[%s11464_s1 + $0xa18] sm:$0xf0]  ;;  %v6375_v18 = vor.u32 %v7423_v11, %v6372_v31  ;;  %v7419_v42 = vld [vmem:[%s11464_s1 + $0xd0c] sm:$0xf] }
 0x213   :  { %4487 = vmatpush.bf16.msra.mxu0 %v6039_v15  ;;  %v4243_v54 = vpop.f32.mrf.mxu2  ;;  %v6228_v15 = vld [vmem:[%s11464_s1 + $0xc18] sm:$0xf0]  ;;  %v7479_v30 = vld [vmem:[%s11464_s1 + $0xeec] sm:$0xf]  ;;  %v5975_v25 = vor.u32 %v7323_v7, %v5972_v36 }
 0x214   :  { %4501 = vmatpush.bf16.msra.mxu1 %v6167_v14  ;;  %v6356_v14 = vld [vmem:[%s11464_s1 + $0xd18] sm:$0xf0]  ;;  %v4257_v26 = vpop.f32.mrf.mxu3  ;;  %v7543_v2 = vld [vmem:[%s11464_s1 + $0x10ec] sm:$0xf]  ;;  %v6599_v12 = vor.u32 %v7479_v30, %v6596_v1 }
 0x215   :  { %4515 = vmatpush.bf16.msra.mxu2 %v6295_v28  ;;  %v4244_v28 = vadd.f32 %v4243_v54, %v4230_v21  ;;  %v6359_v27 = vor.u32 %v7419_v42, %v6356_v14  ;;  %v7475_v34 = vld [vmem:[%s11464_s1 + $0xecc] sm:$0xf]  ;;  %v6580_v9 = vld [vmem:[%s11464_s1 + $0xed8] sm:$0xf0] }
 0x216   :  { %4529 = vmatpush.bf16.msra.mxu3 %v6423_v19  ;;  %v7511_v19 = vld [vmem:[%s11464_s1 + $0xfec] sm:$0xf]  ;;  %v6708_v47 = vld [vmem:[%s11464_s1 + $0xfd8] sm:$0xf0]  ;;  %v6583_v33 = vor.u32 %v7475_v34, %v6580_v9 }
 0x217   :  { %4488 = vmatpush.bf16.msra.mxu0 %v6023_v39  ;;  %v11263_v10 = vadd.f32 %v4257_v26, %v4244_v28  ;;  %v6231_v39 = vor.u32 %v7387_v43, %v6228_v15  ;;  %v6727_v4 = vor.u32 %v7511_v19, %v6724_v37  ;;  %v7507_v45 = vld [vmem:[%s11464_s1 + $0xfcc] sm:$0xf]  ;;  %v6836_v51 = vld [vmem:[%s11464_s1 + $0x10d8] sm:$0xf0] }
 0x218   :  { %4502 = vmatpush.bf16.msra.mxu1 %v6151_v5  ;;  %v7575_v5 = vld [vmem:[%s11464_s1 + $0x11ec] sm:$0xf]  ;;  %v6964_v59 = vld [vmem:[%s11464_s1 + $0x11d8] sm:$0xf0] }
 0x219   :  { %4516 = vmatpush.bf16.msra.mxu2 %v6279_v0  ;;  %v6980_v0 = vld [vmem:[%s11464_s1 + $0x11f8] sm:$0xf0]  ;;  %v7539_v29 = vld [vmem:[%s11464_s1 + $0x10cc] sm:$0xf] }
 0x21a   :  { %4530 = vmatpush.bf16.msra.mxu3 %v6407_v48  ;;  %v6855_v48 = vor.u32 %v7543_v2, %v6852_v63  ;;  %v6983_v57 = vor.u32 %v7575_v5, %v6980_v0  ;;  %v7571_v6 = vld [vmem:[%s11464_s1 + $0x11cc] sm:$0xf]  ;;  %v6839_v60 = vor.u32 %v7539_v29, %v6836_v51  ;;  %v6692_v23 = vld [vmem:[%s11464_s1 + $0xfb8] sm:$0xf0] }
 0x21b   :  { %4489 = vmatpush.bf16.msra.mxu0 %v6007_v56  ;;  %v6711_v56 = vor.u32 %v7507_v45, %v6708_v47  ;;  %v7503_v3 = vld [vmem:[%s11464_s1 + $0xfac] sm:$0xf]  ;;  %v6967_v58 = vor.u32 %v7571_v6, %v6964_v59  ;;  %v6820_v21 = vld [vmem:[%s11464_s1 + $0x10b8] sm:$0xf0] }
 0x21c   :  { %4503 = vmatpush.bf16.msra.mxu1 %v6135_v50  ;;  %v7471_v50 = vld [vmem:[%s11464_s1 + $0xeac] sm:$0xf]  ;;  %v6948_v13 = vld [vmem:[%s11464_s1 + $0x11b8] sm:$0xf0]  ;;  %v6695_v62 = vor.u32 %v7503_v3, %v6692_v23 }
 0x21d   :  { %4517 = vmatpush.bf16.msra.mxu2 %v6263_v22  ;;  %v6564_v22 = vld [vmem:[%s11464_s1 + $0xeb8] sm:$0xf0]  ;;  %v7499_v31 = vld [vmem:[%s11464_s1 + $0xf8c] sm:$0xf] }
 0x21e   :  { %4531 = vmatpush.bf16.msra.mxu3 %v6391_v17  ;;  %v7535_v17 = vld [vmem:[%s11464_s1 + $0x10ac] sm:$0xf]  ;;  %v6567_v55 = vor.u32 %v7471_v50, %v6564_v22  ;;  %v6804_v36 = vld [vmem:[%s11464_s1 + $0x1098] sm:$0xf0] }
 0x21f   :  { %4490 = vmatpush.bf16.msra.mxu0 %v5991_v24  ;;  %v6823_v11 = vor.u32 %v7535_v17, %v6820_v21  ;;  %v6676_v24 = vld [vmem:[%s11464_s1 + $0xf98] sm:$0xf0]  ;;  %v7531_v7 = vld [vmem:[%s11464_s1 + $0x108c] sm:$0xf] }
 0x220   :  { %4504 = vmatpush.bf16.msra.mxu1 %v6119_v16  ;;  %v6932_v53 = vld [vmem:[%s11464_s1 + $0x1198] sm:$0xf0]  ;;  %v6679_v54 = vor.u32 %v7499_v31, %v6676_v24  ;;  %v6807_v15 = vor.u32 %v7531_v7, %v6804_v36  ;;  %v7463_v42 = vld [vmem:[%s11464_s1 + $0xe6c] sm:$0xf] }
 0x221   :  { %4518 = vmatpush.bf16.msra.mxu2 %v6247_v61  ;;  %v7563_v61 = vld [vmem:[%s11464_s1 + $0x118c] sm:$0xf]  ;;  %v6532_v14 = vld [vmem:[%s11464_s1 + $0xe78] sm:$0xf0] }
 0x222   :  { %4532 = vmatpush.bf16.msra.mxu3 %v6375_v18  ;;  %v7495_v28 = vld [vmem:[%s11464_s1 + $0xf6c] sm:$0xf]  ;;  %v6660_v30 = vld [vmem:[%s11464_s1 + $0xf78] sm:$0xf0]  ;;  %v6535_v2 = vor.u32 %v7463_v42, %v6532_v14 }
 0x223   :  { %4491 = vmatpush.bf16.msra.mxu0 %v5975_v25  ;;  %v4269_v16 = vpop.f32.mrf.mxu0  ;;  %v7527_v1 = vld [vmem:[%s11464_s1 + $0x106c] sm:$0xf]  ;;  %v6788_v19 = vld [vmem:[%s11464_s1 + $0x1078] sm:$0xf0]  ;;  %v6663_v63 = vor.u32 %v7495_v28, %v6660_v30 }
 0x224   :  { %4505 = vmatpush.bf16.msra.mxu1 %v6103_v49  ;;  %v4270_v44 = vadd.f32 %v4269_v16, %v11195_v20  ;;  %v4283_v18 = vpop.f32.mrf.mxu1  ;;  %v6935_v20 = vor.u32 %v7563_v61, %v6932_v53  ;;  %v7559_v25 = vld [vmem:[%s11464_s1 + $0x116c] sm:$0xf]  ;;  %v6916_v37 = vld [vmem:[%s11464_s1 + $0x1178] sm:$0xf0]  ;;  %v6791_v49 = vor.u32 %v7527_v1, %v6788_v19 }
 0x225   :  { %4519 = vmatpush.bf16.msra.mxu2 %v6231_v39  ;;  %v7459_v39 = vld [vmem:[%s11464_s1 + $0xe4c] sm:$0xf]  ;;  %v6516_v5 = vld [vmem:[%s11464_s1 + $0xe58] sm:$0xf0] }
 0x226   :  { %4533 = vmatpush.bf16.msra.mxu3 %v6359_v27  ;;  %4492 = vmatmul.bf16.vlgmr.msra.gmra.mxu0 %v8316_v35  ;;  %v7567_v35 = vld [vmem:[%s11464_s1 + $0x11ac] sm:$0xf]  ;;  %v4284_v26 = vadd.f32 %v4283_v18, %v4270_v44  ;;  %v6919_v27 = vor.u32 %v7559_v25, %v6916_v37  ;;  %v6772_v34 = vld [vmem:[%s11464_s1 + $0x1058] sm:$0xf0]  ;;  %v6519_v6 = vor.u32 %v7459_v39, %v6516_v5 }
 0x227   :  { %4540 = vmatpush.bf16.msrb.mxu0 %v6599_v12  ;;  %4506 = vmatmul.bf16.vlgmr.msra.gmra.mxu1 %v8326_v40  ;;  %v7467_v40 = vld [vmem:[%s11464_s1 + $0xe8c] sm:$0xf]  ;;  %v6900_v29 = vld [vmem:[%s11464_s1 + $0x1158] sm:$0xf0] }
 0x228   :  { %4554 = vmatpush.bf16.msrb.mxu1 %v6727_v4  ;;  %4520 = vmatmul.bf16.vlgmr.msra.gmra.mxu2 %v8533_v32  ;;  %v6548_v32 = vld [vmem:[%s11464_s1 + $0xe98] sm:$0xf0]  ;;  %v7491_v0 = vld [vmem:[%s11464_s1 + $0xf4c] sm:$0xf] }
 0x229   :  { %4568 = vmatpush.bf16.msrb.mxu2 %v6855_v48  ;;  %4534 = vmatmul.bf16.vlgmr.msra.gmra.mxu3 %v8546_v41  ;;  %v6951_v41 = vor.u32 %v7567_v35, %v6948_v13  ;;  %v6551_v43 = vor.u32 %v7467_v40, %v6548_v32  ;;  %v6644_v4 = vld [vmem:[%s11464_s1 + $0xf58] sm:$0xf0]  ;;  %v7523_v48 = vld [vmem:[%s11464_s1 + $0x104c] sm:$0xf] }
 0x22a   :  { %4582 = vmatpush.bf16.msrb.mxu3 %v6983_v57  ;;  %v7555_v47 = vld [vmem:[%s11464_s1 + $0x114c] sm:$0xf]  ;;  %v6500_v22 = vld [vmem:[%s11464_s1 + $0xe38] sm:$0xf0] }
 0x22b   :  { %4541 = vmatpush.bf16.msrb.mxu0 %v6583_v33  ;;  %v4297_v12 = vpop.f32.mrf.mxu2  ;;  %v4271_v45 = vpop.f32.mrf.mxu0  ;;  %v7455_v50 = vld [vmem:[%s11464_s1 + $0xe2c] sm:$0xf]  ;;  %v6628_v23 = vld [vmem:[%s11464_s1 + $0xf38] sm:$0xf0] }
 0x22c   :  { %4555 = vmatpush.bf16.msrb.mxu1 %v6711_v56  ;;  %v4298_v9 = vadd.f32 %v4297_v12, %v4284_v26  ;;  %v4311_v57 = vpop.f32.mrf.mxu3  ;;  %v4272_v51 = vadd.f32 %v4271_v45, %v11263_v10  ;;  %v4285_v59 = vpop.f32.mrf.mxu1  ;;  %v6647_v56 = vor.u32 %v7491_v0, %v6644_v4  ;;  %v7487_v3 = vld [vmem:[%s11464_s1 + $0xf2c] sm:$0xf]  ;;  %v6903_v10 = vor.u32 %v7555_v47, %v6900_v29  ;;  %v6756_v21 = vld [vmem:[%s11464_s1 + $0x1038] sm:$0xf0] }
 0x22d   :  { %4569 = vmatpush.bf16.msrb.mxu2 %v6839_v60  ;;  %v6775_v60 = vor.u32 %v7523_v48, %v6772_v34  ;;  %v7519_v17 = vld [vmem:[%s11464_s1 + $0x102c] sm:$0xf]  ;;  %v6884_v13 = vld [vmem:[%s11464_s1 + $0x1138] sm:$0xf0] }
 0x22e   :  { %4583 = vmatpush.bf16.msrb.mxu3 %v6967_v58  ;;  %v4312_v33 = vadd.f32 %v4311_v57, %v4298_v9  ;;  %v4286_v58 = vadd.f32 %v4285_v59, %v4272_v51  ;;  %v7551_v35 = vld [vmem:[%s11464_s1 + $0x112c] sm:$0xf]  ;;  %v6484_v32 = vld [vmem:[%s11464_s1 + $0xe18] sm:$0xf0] }
 0x22f   :  { %4542 = vmatpush.bf16.msrb.mxu0 %v6567_v55  ;;  %v6503_v55 = vor.u32 %v7455_v50, %v6500_v22  ;;  %v7451_v40 = vld [vmem:[%s11464_s1 + $0xe0c] sm:$0xf]  ;;  %v6612_v7 = vld [vmem:[%s11464_s1 + $0xf18] sm:$0xf0] }
 0x230   :  { %4556 = vmatpush.bf16.msrb.mxu1 %v6695_v62  ;;  %v6631_v62 = vor.u32 %v7487_v3, %v6628_v23  ;;  %v7483_v31 = vld [vmem:[%s11464_s1 + $0xf0c] sm:$0xf]  ;;  %v6740_v16 = vld [vmem:[%s11464_s1 + $0x1018] sm:$0xf0]  ;;  %v6487_v18 = vor.u32 %v7451_v40, %v6484_v32 }
 0x231   :  { %4570 = vmatpush.bf16.msrb.mxu2 %v6823_v11  ;;  %v6759_v11 = vor.u32 %v7519_v17, %v6756_v21  ;;  %v7515_v36 = vld [vmem:[%s11464_s1 + $0x100c] sm:$0xf] }
 0x232   :  { %4584 = vmatpush.bf16.msrb.mxu3 %v6951_v41  ;;  %v6887_v41 = vor.u32 %v7551_v35, %v6884_v13  ;;  %v7547_v44 = vld [vmem:[%s11464_s1 + $0x110c] sm:$0xf]  ;;  %v6743_v42 = vor.u32 %v7515_v36, %v6740_v16 }
 0x233   :  { %4543 = vmatpush.bf16.msrb.mxu0 %v6551_v43  ;;  %v4299_v24 = vpop.f32.mrf.mxu2  ;;  %v6868_v43 = vld [vmem:[%s11464_s1 + $0x1118] sm:$0xf0] }
 0x234   :  { %4557 = vmatpush.bf16.msrb.mxu1 %v6679_v54  ;;  %v4300_v61 = vadd.f32 %v4299_v24, %v4286_v58  ;;  %v4313_v53 = vpop.f32.mrf.mxu3  ;;  %v6871_v14 = vor.u32 %v7547_v44, %v6868_v43 }
 0x235   :  { %4571 = vmatpush.bf16.msrb.mxu2 %v6807_v15  ;;  %v6615_v15 = vor.u32 %v7483_v31, %v6612_v7 }
 0x236   :  { %4585 = vmatpush.bf16.msrb.mxu3 %v6935_v20  ;;  %v4314_v54 = vadd.f32 %v4313_v53, %v4300_v61 }
 0x237   :  { %4544 = vmatpush.bf16.msrb.mxu0 %v6535_v2 }
 0x238   :  { %4558 = vmatpush.bf16.msrb.mxu1 %v6663_v63 }
 0x239   :  { %4572 = vmatpush.bf16.msrb.mxu2 %v6791_v49 }
 0x23a   :  { %4586 = vmatpush.bf16.msrb.mxu3 %v6919_v27 }
 0x23b   :  { %4545 = vmatpush.bf16.msrb.mxu0 %v6519_v6 }
 0x23c   :  { %4559 = vmatpush.bf16.msrb.mxu1 %v6647_v56 }
 0x23d   :  { %4573 = vmatpush.bf16.msrb.mxu2 %v6775_v60 }
 0x23e   :  { %4587 = vmatpush.bf16.msrb.mxu3 %v6903_v10 }
 0x23f   :  { %4546 = vmatpush.bf16.msrb.mxu0 %v6503_v55 }
 0x240   :  { %4560 = vmatpush.bf16.msrb.mxu1 %v6631_v62 }
 0x241   :  { %4574 = vmatpush.bf16.msrb.mxu2 %v6759_v11 }
 0x242   :  { %4588 = vmatpush.bf16.msrb.mxu3 %v6887_v41 }
 0x243   :  { %4547 = vmatpush.bf16.msrb.mxu0 %v6487_v18  ;;  %v4325_v28 = vpop.f32.mrf.mxu0 }
 0x244   :  { %4561 = vmatpush.bf16.msrb.mxu1 %v6615_v15  ;;  %v4326_v20 = vadd.f32 %v4325_v28, %v4312_v33  ;;  %v4339_v26 = vpop.f32.mrf.mxu1 }
 0x245   :  { %4575 = vmatpush.bf16.msrb.mxu2 %v6743_v42 }
 0x246   :  { %4589 = vmatpush.bf16.msrb.mxu3 %v6871_v14  ;;  %4548 = vmatmul.bf16.vlgmr.msrb.gmra.mxu0 %v8544_v38  ;;  %v11449_v30 = vadd.f32 %v4339_v26, %v4326_v20 }
 0x247   :  { %4562 = vmatmul.bf16.vlgmr.msrb.gmra.mxu1 %v8554_v46 }
 0x248   :  { %4576 = vmatmul.bf16.vlgmr.msrb.gmra.mxu2 %v11494_v8  ;;  %v7579_v8 = vld [vmem:[%s11466_s2] sm:$0xf] }
 0x249   :  { %4590 = vmatmul.bf16.vlgmr.msrb.gmra.mxu3 %v11495_v52  ;;  %v613_v52 = vperm.slane %v7579_v8, 3 }
 0x24b   :  { %v4327_v1 = vpop.f32.mrf.mxu0  ;;  %v4353_v2 = vpop.f32.mrf.mxu2 }
 0x24c   :  { %v4328_v19 = vadd.f32 %v4327_v1, %v4314_v54  ;;  %v4341_v25 = vpop.f32.mrf.mxu1  ;;  %v4367_v63 = vpop.f32.mrf.mxu3  ;;  %v4354_v27 = vadd.f32 %v4353_v2, %v613_v52 }
 0x24e   :  { %v11451_v37 = vadd.f32 %v4341_v25, %v4328_v19  ;;  %v4368_v48 = vadd.f32 %v4367_v63, %v4354_v27 }
 0x253   :  { %v4355_v49 = vpop.f32.mrf.mxu2 }
 0x254   :  { %v4369_v38 = vpop.f32.mrf.mxu3  ;;  %v4356_v47 = vadd.f32 %v4355_v49, %v613_v52 }
 0x256   :  { %v4370_v6 = vadd.f32 %v4369_v38, %v4356_v47 }
 0x263   :  { %v4381_v39 = vpop.f32.mrf.mxu0 }
 0x264   :  { %v4395_v46 = vpop.f32.mrf.mxu1  ;;  %v4382_v9 = vadd.f32 %v4381_v39, %v4368_v48 }
 0x266   :  { %v4396_v51 = vadd.f32 %v4395_v46, %v4382_v9 }
 0x26b   :  { %v4409_v5 = vpop.f32.mrf.mxu2  ;;  %v4383_v12 = vpop.f32.mrf.mxu0 }
 0x26c   :  { %v4423_v0 = vpop.f32.mrf.mxu3  ;;  %v4397_v4 = vpop.f32.mrf.mxu1  ;;  %v4410_v33 = vadd.f32 %v4409_v5, %v4396_v51  ;;  %v4384_v60 = vadd.f32 %v4383_v12, %v4370_v6 }
 0x26e   :  { %v4424_v22 = vadd.f32 %v4423_v0, %v4410_v33  ;;  %v4398_v10 = vadd.f32 %v4397_v4, %v4384_v60 }
 0x273   :  { %v4411_v34 = vpop.f32.mrf.mxu2 }
 0x274   :  { %v4425_v45 = vpop.f32.mrf.mxu3  ;;  %v4412_v23 = vadd.f32 %v4411_v34, %v4398_v10 }
 0x276   :  { %v4426_v55 = vadd.f32 %v4425_v45, %v4412_v23 }
 0x283   :  { %v4437_v57 = vpop.f32.mrf.mxu0 }
 0x284   :  { %v4451_v29 = vpop.f32.mrf.mxu1  ;;  %v4438_v58 = vadd.f32 %v4437_v57, %v4424_v22 }
 0x286   :  { %v4452_v21 = vadd.f32 %v4451_v29, %v4438_v58 }
 0x28b   :  { %v4465_v59 = vpop.f32.mrf.mxu2  ;;  %v4439_v50 = vpop.f32.mrf.mxu0 }
 0x28c   :  { %v4479_v56 = vpop.f32.mrf.mxu3  ;;  %v4453_v3 = vpop.f32.mrf.mxu1  ;;  %v4466_v62 = vadd.f32 %v4465_v59, %v4452_v21  ;;  %v4440_v40 = vadd.f32 %v4439_v50, %v4426_v55 }
 0x28e   :  { %v4480_v32 = vadd.f32 %v4479_v56, %v4466_v62  ;;  %v4454_v41 = vadd.f32 %v4453_v3, %v4440_v40 }
 0x293   :  { %v4467_v17 = vpop.f32.mrf.mxu2 }
 0x294   :  { %v4481_v35 = vpop.f32.mrf.mxu3  ;;  %v4468_v36 = vadd.f32 %v4467_v17, %v4454_v41 }
 0x296   :  { %v4482_v44 = vadd.f32 %v4481_v35, %v4468_v36 }
 0x2a3   :  { %v4493_v13 = vpop.f32.mrf.mxu0 }
 0x2a4   :  { %v4507_v11 = vpop.f32.mrf.mxu1  ;;  %v4494_v24 = vadd.f32 %v4493_v13, %v4480_v32 }
 0x2a6   :  { %v4508_v61 = vadd.f32 %v4507_v11, %v4494_v24 }
 0x2ab   :  { %v4521_v31 = vpop.f32.mrf.mxu2  ;;  %v4495_v16 = vpop.f32.mrf.mxu0 }
 0x2ac   :  { %v4535_v7 = vpop.f32.mrf.mxu3  ;;  %v4509_v53 = vpop.f32.mrf.mxu1  ;;  %v4522_v43 = vadd.f32 %v4521_v31, %v4508_v61  ;;  %v4496_v18 = vadd.f32 %v4495_v16, %v4482_v44 }
 0x2ae   :  { %v4536_v15 = vadd.f32 %v4535_v7, %v4522_v43  ;;  %v4510_v28 = vadd.f32 %v4509_v53, %v4496_v18 }
 0x2b3   :  { %v4523_v54 = vpop.f32.mrf.mxu2 }
 0x2b4   :  { %v4537_v42 = vpop.f32.mrf.mxu3  ;;  %v4524_v1 = vadd.f32 %v4523_v54, %v4510_v28 }
 0x2b6   :  { %v4538_v2 = vadd.f32 %v4537_v42, %v4524_v1 }
 0x2c3   :  { %v4549_v14 = vpop.f32.mrf.mxu0 }
 0x2c4   :  { %v4550_v20 = vadd.f32 %v4549_v14, %v4536_v15  ;;  %v4563_v26 = vpop.f32.mrf.mxu1 }
 0x2c6   :  { %v4564_v19 = vadd.f32 %v4563_v26, %v4550_v20 }
 0x2cb   :  { %v4577_v25 = vpop.f32.mrf.mxu2  ;;  %v4551_v38 = vpop.f32.mrf.mxu0 }
 0x2cc   :  { %v4578_v63 = vadd.f32 %v4577_v25, %v4564_v19  ;;  %v4591_v49 = vpop.f32.mrf.mxu3  ;;  %v4552_v46 = vadd.f32 %v4551_v38, %v4538_v2  ;;  %v4565_v52 = vpop.f32.mrf.mxu1 }
 0x2ce   :  { %v4592_v39 = vadd.f32 %v4591_v49, %v4578_v63  ;;  %v4566_v5 = vadd.f32 %v4565_v52, %v4552_v46 }
 0x2d0   :  { %v4597_v8 = vpack.c.bf16 %v4592_v39, %v11449_v30 }
 0x2d2   :  { %4601 = vst [vmem:[%s11467_s3 + $0x8] sm:$0xff] %v4597_v8 }
 0x2d3   :  { %v4579_v0 = vpop.f32.mrf.mxu2 }
 0x2d4   :  { %v4580_v27 = vadd.f32 %v4579_v0, %v4566_v5  ;;  %v4593_v12 = vpop.f32.mrf.mxu3 }
 0x2d6   :  { %v4594_v4 = vadd.f32 %v4593_v12, %v4580_v27 }
 0x2d8   :  { %v4599_v48 = vpack.c.bf16 %v4594_v4, %v11451_v37 }
 0x2da   :  { %4603 = vst [vmem:[%s11467_s3 + $0x18] sm:$0xff] %v4599_v48 }

</bundles_post_ra>
